<compile_context>
chip_gen: v6e
topology: v6e:2x2x1
jax: 0.10.0
libtpu: 0.0.40
codegen_flags: <defaults>
</compile_context>

<pallas_src>
import jax
import jax.numpy as jnp
from jax.experimental import pallas as pl
from jax.experimental.pallas import tpu as pltpu

HIDDEN = 768      # BERT pooled-output size (hard-coded by nn.Linear(768, 512))
FC1 = 512
NCLASS = 2
NCLASS_PAD = 128  # lane-dense class dim (pad 2 -> 128, slice back in wrapper)
TILE_B = 256      # batch tile: multiple of 8/16/128/256; small enough for v7x VMEM
NEG_BIG = -1e30   # finite "−inf" for padded class columns


def head_kernel(pooled_ref, wp_ref, bp_ref, w1_ref, b1_ref, w2_ref, b2_ref,
                out_ref):
    # pooled_ref: [TILE_B, 768] bf16   wp: [768, 768] bf16   bp: [1, 768] f32
    # w1: [768, 512] bf16  b1: [1, 512] f32
    # w2: [512, 128] bf16 (cols 2..127 zero)  b2: [1, 128] f32 (cols 2..127 = -1e30)

    # fused pooler projection: tanh(pooled @ wp + bp)   (bf16 MXU, f32 accum)
    cls = jnp.tanh(
        jnp.dot(pooled_ref[...], wp_ref[...],
                preferred_element_type=jnp.float32) + bp_ref[...])

    # fc1 + ReLU (elementwise kept in f32)
    h = jnp.dot(cls.astype(jnp.bfloat16), w1_ref[...],
                preferred_element_type=jnp.float32) + b1_ref[...]
    h = jnp.maximum(h, 0.0)

    # Dropout(p=0.1): identity in eval/inference mode (module.eval() semantics).

    # fc2 on the 128-padded (lane-dense) class dim
    logits = jnp.dot(h.astype(jnp.bfloat16), w2_ref[...],
                     preferred_element_type=jnp.float32) + b2_ref[...]

    # LogSoftmax over dim=1; padded columns carry bias -1e30 so exp() == 0 and
    # they do not perturb the real-class normalization.
    m = jnp.max(logits, axis=1, keepdims=True)
    s = logits - m
    lse = jnp.log(jnp.sum(jnp.exp(s), axis=1, keepdims=True))
    out_ref[...] = (s - lse).astype(out_ref.dtype)


def bertbc_head(pooled, wp, bp, w1, b1, w2, b2, *, tile_b=TILE_B):
    """pooled: [B, 768] f32 masked-mean activations. Returns [B, 2] log-probs."""
    B = pooled.shape[0]
    n_tiles = pl.cdiv(B, tile_b)
    b_pad = n_tiles * tile_b
    if b_pad != B:
        # zero-pad ragged tail; padded rows produce finite garbage and are sliced off
        pooled = jnp.pad(pooled, ((0, b_pad - B), (0, 0)))

    # bf16 operands for the mem-bound activation stream / MXU bf16 path
    pooled_b = pooled.astype(jnp.bfloat16)
    wp_b = wp.astype(jnp.bfloat16)
    w1_b = w1.astype(jnp.bfloat16)

    # lane-dense fc2: pad weights with zeros, pad bias with a large-negative finite value
    w2_p = jnp.zeros((FC1, NCLASS_PAD), jnp.bfloat16)
    w2_p = w2_p.at[:, :NCLASS].set(w2.astype(jnp.bfloat16))
    b2_p = jnp.full((1, NCLASS_PAD), NEG_BIG, jnp.float32)
    b2_p = b2_p.at[0, :NCLASS].set(b2.astype(jnp.float32))

    bp_2 = bp.reshape(1, HIDDEN).astype(jnp.float32)
    b1_2 = b1.reshape(1, FC1).astype(jnp.float32)

    out = pl.pallas_call(
        head_kernel,
        out_shape=jax.ShapeDtypeStruct((b_pad, NCLASS_PAD), jnp.float32),
        grid=(n_tiles,),
        in_specs=[
            # activation stream: tiled over batch, double-buffered by the pipeline
            pl.BlockSpec((tile_b, HIDDEN), lambda i: (i, 0)),
            # weights / biases: constant index_map -> VMEM-resident, no re-DMA
            pl.BlockSpec((HIDDEN, HIDDEN), lambda i: (0, 0)),
            pl.BlockSpec((1, HIDDEN), lambda i: (0, 0)),
            pl.BlockSpec((HIDDEN, FC1), lambda i: (0, 0)),
            pl.BlockSpec((1, FC1), lambda i: (0, 0)),
            pl.BlockSpec((FC1, NCLASS_PAD), lambda i: (0, 0)),
            pl.BlockSpec((1, NCLASS_PAD), lambda i: (0, 0)),
        ],
        out_specs=pl.BlockSpec((tile_b, NCLASS_PAD), lambda i: (i, 0)),
        compiler_params=pltpu.CompilerParams(
            dimension_semantics=("parallel",)),   # shard batch tiles across v7x TCs
    )(pooled_b, wp_b, bp_2, w1_b, b1_2, w2_p, b2_p)

    return out[:B, :NCLASS]


def bert_pooler_stub(sent_id, mask, emb_table):
    # Deterministic stand-in for `self.bert(sent_id, attention_mask=mask)[1]`:
    # embed tokens + masked mean-pool over the sequence -> [B, 768].
    # (The 768x768 tanh projection is fused into the Pallas kernel.)
    emb = emb_table[sent_id]                                  # [B, S, H]
    m = mask.astype(jnp.float32)[..., None]                   # [B, S, 1]
    return (emb * m).sum(axis=1) / jnp.maximum(m.sum(axis=1), 1.0)


def bertbc_forward(sent_id, mask, params):
    pooled = bert_pooler_stub(sent_id, mask, params["emb"])
    return bertbc_head(pooled, params["wp"], params["bp"],
                       params["w1"], params["b1"],
                       params["w2"], params["b2"])


def init_params(key, vocab=100):
    ks = jax.random.split(key, 7)
    scale = 0.02
    return {
        "emb": scale * jax.random.normal(ks[0], (vocab, HIDDEN), jnp.float32),
        "wp":  scale * jax.random.normal(ks[1], (HIDDEN, HIDDEN), jnp.float32),
        "bp":  jnp.zeros((HIDDEN,), jnp.float32),
        "w1":  scale * jax.random.normal(ks[2], (HIDDEN, FC1), jnp.float32),
        "b1":  scale * jax.random.normal(ks[3], (FC1,), jnp.float32),
        "w2":  scale * jax.random.normal(ks[4], (FC1, NCLASS), jnp.float32),
        "b2":  scale * jax.random.normal(ks[5], (NCLASS,), jnp.float32),
    }


if __name__ == "__main__":
    key = jax.random.PRNGKey(0)
    pkey, ikey = jax.random.split(key)
    params = init_params(pkey)

    B, S = 2, 8
    sent_id = jax.random.randint(ikey, (B, S), 0, 100, dtype=jnp.int32)
    mask = jnp.ones((B, S), dtype=jnp.int32)

    out = bertbc_forward(sent_id, mask, params)
    out = jax.block_until_ready(out)

    assert out.shape == (B, NCLASS)
    # log-softmax rows should exp-sum to ~1 (normalization done in f32)
    assert jnp.allclose(jnp.exp(out).sum(axis=1), 1.0, atol=1e-4)
    print("KERNEL_OK")
</pallas_src>

<mosaic_0001>
module attributes {stable_mosaic.version = 11 : i64} {
  func.func @head_kernel(%arg0: i32, %arg1: memref<256x768xbf16, #tpu.memory_space<vmem>>, %arg2: memref<768x768xbf16, #tpu.memory_space<vmem>>, %arg3: memref<1x768xf32, #tpu.memory_space<vmem>>, %arg4: memref<768x512xbf16, #tpu.memory_space<vmem>>, %arg5: memref<1x512xf32, #tpu.memory_space<vmem>>, %arg6: memref<512x128xbf16, #tpu.memory_space<vmem>>, %arg7: memref<1x128xf32, #tpu.memory_space<vmem>>, %arg8: memref<256x128xf32, #tpu.memory_space<vmem>>) attributes {dimension_semantics = [#tpu.dimension_semantics<parallel>], iteration_bounds = array<i64: 1>, scalar_prefetch = 0 : i64, scratch_operands = 0 : i64, tpu.core_type = #tpu.core_type<tc>, window_params = [{transform_indices = @transform_0, window_bounds = array<i64: 256, 768>}, {pipeline_mode = #tpu.pipeline_mode<synchronous>, transform_indices = @transform_1, window_bounds = array<i64: 768, 768>}, {pipeline_mode = #tpu.pipeline_mode<synchronous>, transform_indices = @transform_2, window_bounds = array<i64: 1, 768>}, {pipeline_mode = #tpu.pipeline_mode<synchronous>, transform_indices = @transform_3, window_bounds = array<i64: 768, 512>}, {pipeline_mode = #tpu.pipeline_mode<synchronous>, transform_indices = @transform_4, window_bounds = array<i64: 1, 512>}, {pipeline_mode = #tpu.pipeline_mode<synchronous>, transform_indices = @transform_5, window_bounds = array<i64: 512, 128>}, {pipeline_mode = #tpu.pipeline_mode<synchronous>, transform_indices = @transform_6, window_bounds = array<i64: 1, 128>}, {transform_indices = @transform_7, window_bounds = array<i64: 256, 128>}]} {
    %c0 = arith.constant 0 : index
    %c0_0 = arith.constant 0 : index
    %0 = vector.load %arg1[%c0, %c0_0] : memref<256x768xbf16, #tpu.memory_space<vmem>>, vector<256x768xbf16>
    %c0_1 = arith.constant 0 : index
    %c0_2 = arith.constant 0 : index
    %1 = vector.load %arg2[%c0_1, %c0_2] : memref<768x768xbf16, #tpu.memory_space<vmem>>, vector<768x768xbf16>
    %cst = arith.constant dense<0.000000e+00> : vector<256x768xf32>
    %2 = tpu.matmul %0, %1, %cst {dimension_numbers = #tpu.dot_dimension_numbers<[1], [0], [0], [1], [0, 0, 1, 1], [], []>} : vector<256x768xbf16>, vector<768x768xbf16>, vector<256x768xf32> -> vector<256x768xf32>
    %c0_3 = arith.constant 0 : index
    %c0_4 = arith.constant 0 : index
    %3 = vector.load %arg3[%c0_3, %c0_4] : memref<1x768xf32, #tpu.memory_space<vmem>>, vector<1x768xf32>
    %4 = vector.broadcast %3 : vector<1x768xf32> to vector<256x768xf32>
    %5 = arith.addf %2, %4 : vector<256x768xf32>
    %6 = math.tanh %5 : vector<256x768xf32>
    %7 = arith.truncf %6 : vector<256x768xf32> to vector<256x768xbf16>
    %c0_5 = arith.constant 0 : index
    %c0_6 = arith.constant 0 : index
    %8 = vector.load %arg4[%c0_5, %c0_6] : memref<768x512xbf16, #tpu.memory_space<vmem>>, vector<768x512xbf16>
    %cst_7 = arith.constant dense<0.000000e+00> : vector<256x512xf32>
    %9 = tpu.matmul %7, %8, %cst_7 {dimension_numbers = #tpu.dot_dimension_numbers<[1], [0], [0], [1], [0, 0, 1, 1], [], []>} : vector<256x768xbf16>, vector<768x512xbf16>, vector<256x512xf32> -> vector<256x512xf32>
    %c0_8 = arith.constant 0 : index
    %c0_9 = arith.constant 0 : index
    %10 = vector.load %arg5[%c0_8, %c0_9] : memref<1x512xf32, #tpu.memory_space<vmem>>, vector<1x512xf32>
    %11 = vector.broadcast %10 : vector<1x512xf32> to vector<256x512xf32>
    %12 = arith.addf %9, %11 : vector<256x512xf32>
    %cst_10 = arith.constant 0.000000e+00 : f32
    %13 = vector.broadcast %cst_10 : f32 to vector<256x512xf32>
    %14 = arith.maximumf %12, %13 : vector<256x512xf32>
    %15 = arith.truncf %14 : vector<256x512xf32> to vector<256x512xbf16>
    %c0_11 = arith.constant 0 : index
    %c0_12 = arith.constant 0 : index
    %16 = vector.load %arg6[%c0_11, %c0_12] : memref<512x128xbf16, #tpu.memory_space<vmem>>, vector<512x128xbf16>
    %cst_13 = arith.constant dense<0.000000e+00> : vector<256x128xf32>
    %17 = tpu.matmul %15, %16, %cst_13 {dimension_numbers = #tpu.dot_dimension_numbers<[1], [0], [0], [1], [0, 0, 1, 1], [], []>} : vector<256x512xbf16>, vector<512x128xbf16>, vector<256x128xf32> -> vector<256x128xf32>
    %c0_14 = arith.constant 0 : index
    %c0_15 = arith.constant 0 : index
    %18 = vector.load %arg7[%c0_14, %c0_15] : memref<1x128xf32, #tpu.memory_space<vmem>>, vector<1x128xf32>
    %19 = vector.broadcast %18 : vector<1x128xf32> to vector<256x128xf32>
    %20 = arith.addf %17, %19 : vector<256x128xf32>
    %cst_16 = arith.constant dense<0xFF800000> : vector<256xf32>
    %21 = vector.multi_reduction <maximumf>, %20, %cst_16 [1] : vector<256x128xf32> to vector<256xf32>
    %22 = vector.shape_cast %21 : vector<256xf32> to vector<256x1xf32>
    %23 = vector.broadcast %22 : vector<256x1xf32> to vector<256x128xf32>
    %24 = arith.subf %20, %23 : vector<256x128xf32>
    %25 = math.exp %24 : vector<256x128xf32>
    %cst_17 = arith.constant dense<0.000000e+00> : vector<256xf32>
    %26 = vector.multi_reduction <add>, %25, %cst_17 [1] : vector<256x128xf32> to vector<256xf32>
    %27 = vector.shape_cast %26 : vector<256xf32> to vector<256x1xf32>
    %28 = math.log %27 : vector<256x1xf32>
    %29 = vector.broadcast %28 : vector<256x1xf32> to vector<256x128xf32>
    %30 = arith.subf %24, %29 : vector<256x128xf32>
    %c0_18 = arith.constant 0 : index
    %c0_19 = arith.constant 0 : index
    %31 = vector.load %arg8[%c0_18, %c0_19] : memref<256x128xf32, #tpu.memory_space<vmem>>, vector<256x128xf32>
    tpu.vector_store %arg8[%c0_18, %c0_19], %30 {strides = array<i32>} : memref<256x128xf32, #tpu.memory_space<vmem>>, vector<256x128xf32>,
    return
  }
  func.func @transform_0(%arg0: i32) -> (i32, i32) {
    %c0_i32 = arith.constant 0 : i32
    %c0_i32_0 = arith.constant 0 : i32
    return %arg0, %c0_i32 : i32, i32
  }
  func.func @transform_1(%arg0: i32) -> (i32, i32) {
    %c0_i32 = arith.constant 0 : i32
    %c0_i32_0 = arith.constant 0 : i32
    %c0_i32_1 = arith.constant 0 : i32
    return %c0_i32, %c0_i32_0 : i32, i32
  }
  func.func @transform_2(%arg0: i32) -> (i32, i32) {
    %c0_i32 = arith.constant 0 : i32
    %c0_i32_0 = arith.constant 0 : i32
    %c0_i32_1 = arith.constant 0 : i32
    return %c0_i32, %c0_i32_0 : i32, i32
  }
  func.func @transform_3(%arg0: i32) -> (i32, i32) {
    %c0_i32 = arith.constant 0 : i32
    %c0_i32_0 = arith.constant 0 : i32
    %c0_i32_1 = arith.constant 0 : i32
    return %c0_i32, %c0_i32_0 : i32, i32
  }
  func.func @transform_4(%arg0: i32) -> (i32, i32) {
    %c0_i32 = arith.constant 0 : i32
    %c0_i32_0 = arith.constant 0 : i32
    %c0_i32_1 = arith.constant 0 : i32
    return %c0_i32, %c0_i32_0 : i32, i32
  }
  func.func @transform_5(%arg0: i32) -> (i32, i32) {
    %c0_i32 = arith.constant 0 : i32
    %c0_i32_0 = arith.constant 0 : i32
    %c0_i32_1 = arith.constant 0 : i32
    return %c0_i32, %c0_i32_0 : i32, i32
  }
  func.func @transform_6(%arg0: i32) -> (i32, i32) {
    %c0_i32 = arith.constant 0 : i32
    %c0_i32_0 = arith.constant 0 : i32
    %c0_i32_1 = arith.constant 0 : i32
    return %c0_i32, %c0_i32_0 : i32, i32
  }
  func.func @transform_7(%arg0: i32) -> (i32, i32) {
    %c0_i32 = arith.constant 0 : i32
    %c0_i32_0 = arith.constant 0 : i32
    return %arg0, %c0_i32 : i32, i32
  }
}

</mosaic_0001>

<bundles_post_ra>
// kernel: tpu_custom_call.1
= control target key start
LH: loop header
LB: loop body
LE: loop exit
PB: predicated region body
PF: predicated region fallthrough
CT: control target
= control target key end

     0   :  { %12 = vsyncpa [#allocation3], 0  ;;  %s12973_s0 = inlined_call_operand.hbm [shape: bf16[256,768], index: 0, kind: input, shape index: {}]   ;;  %s12974_s1 = inlined_call_operand.hbm [shape: bf16[768,768], index: 1, kind: input, shape index: {}]   ;;  %s12975_s2 = inlined_call_operand.hbm [shape: f32[1,768], index: 2, kind: input, shape index: {}]   ;;  %s12976_s3 = inlined_call_operand.hbm [shape: bf16[768,512], index: 3, kind: input, shape index: {}]   ;;  %s12977_s4 = inlined_call_operand.hbm [shape: f32[1,512], index: 4, kind: input, shape index: {}]   ;;  %s12978_s5 = inlined_call_operand.hbm [shape: bf16[512,128], index: 5, kind: input, shape index: {}]   ;;  %s12979_s6 = inlined_call_operand.hbm [shape: f32[1,128], index: 6, kind: input, shape index: {}]   ;;  %s12980_s7 = inlined_call_operand.hbm [shape: f32[256,128], index: 7, kind: output, shape index: {}]  }
   0x1   :  { %13 = vsyncpa [#allocation6], 0 }
   0x2   :  { %14 = vsyncpa [#allocation9], 0 }
   0x3   :  { %15 = vsyncpa [#allocation12], 0 }
   0x4   :  { %16 = vsyncpa [#allocation4], 0  ;;  %s10590_s24 = smov [#allocation5]   ;;  %s10591_s26 = smov [#allocation8]  }
   0x5   :  { %s34_s25 = sshll.u32 %s10590_s24, 4  ;;  %s56_s27 = sshll.u32 %s10591_s26, 4  ;;  %s35_s25 = int_to_ptr.vmem [resolvable:$true] %s34_s25  ;;  %s57_s27 = int_to_ptr.vmem [resolvable:$true] %s56_s27 }
   0x6   :  { %s10428_s28 = scalar_lea.vmem %s35_s25, 36864  ;;  %p10433_p1 = scmp.lt.s32.totalorder %s35_s25, %s35_s25 }
   0x7   :  { %p10429_p0 = scmp.ne.s32.totalorder %s35_s25, %s10428_s28  ;;  %p10434_p2 = scmp.lt.s32.totalorder %s10428_s28, %s10428_s28 }
   0x9   :  { %p10435_p3 = por %p10434_p2, %p10433_p1 }
   0xb   :  { %p10436_p4 = pnand %p10435_p3, %p10429_p0 }
   0xd   :  { %10439 = shalt.err (!%p10436_p4)
}
   0xe   :  { %s10592_s29 = smov 384   ;;  %s10593_s30 = smov 24  }
   0xf   :  { %40 = dma.hbm_to_vmem [thread:$0]  %s12974_s1, 36864, %s35_s25, [#allocation6], %s10592_s29, %s10592_s29, %s10593_s30  }
  0x10   :  { %s10448_s10 = scalar_lea.vmem %s57_s27, 24576  ;;  %p10453_p6 = scmp.lt.s32.totalorder %s57_s27, %s57_s27 }
  0x11   :  { %p10449_p5 = scmp.ne.s32.totalorder %s57_s27, %s10448_s10  ;;  %p10454_p7 = scmp.lt.s32.totalorder %s10448_s10, %s10448_s10 }
  0x13   :  { %p10455_p8 = por %p10454_p7, %p10453_p6 }
  0x15   :  { %p10456_p9 = pnand %p10455_p8, %p10449_p5 }
  0x17   :  { %10459 = shalt.err (!%p10456_p9)
}
  0x18   :  { %s10594_s11 = smov 256   ;;  %s10595_s12 = smov 16  }
  0x19   :  { %62 = dma.hbm_to_vmem [thread:$0]  %s12976_s3, 24576, %s57_s27, [#allocation9], %s10594_s11, %s10594_s11, %s10595_s12  }
  0x1a   :  { %s10596_s15 = smov [#allocation11]  }
  0x1b   :  { %s78_s16 = sshll.u32 %s10596_s15, 4  ;;  %s79_s16 = int_to_ptr.vmem [resolvable:$true] %s78_s16 }
  0x1c   :  { %s10468_s17 = scalar_lea.vmem %s79_s16, 4096  ;;  %p10473_p11 = scmp.lt.s32.totalorder %s79_s16, %s79_s16 }
  0x1d   :  { %p10469_p10 = scmp.ne.s32.totalorder %s79_s16, %s10468_s17  ;;  %p10474_p12 = scmp.lt.s32.totalorder %s10468_s17, %s10468_s17 }
  0x1f   :  { %p10475_p13 = por %p10474_p12, %p10473_p11 }
  0x21   :  { %p10476_p0 = pnand %p10475_p13, %p10469_p10 }
  0x23   :  { %10479 = shalt.err (!%p10476_p0)
}
  0x24   :  { %s10597_s1 = smov 64   ;;  %s10598_s18 = smov 4  }
  0x25   :  { %84 = dma.hbm_to_vmem [thread:$0]  %s12978_s5, 4096, %s79_s16, [#allocation12], %s10597_s1, %s10597_s1, %s10598_s18  }
  0x26   :  { %s10599_s21 = smov [#allocation2]   ;;  %s10600_s3 = smov [#allocation7]  }
  0x27   :  { %s22_s22 = sshll.u32 %s10599_s21, 4  ;;  %s47_s23 = sshll.u32 %s10600_s3, 4  ;;  %s23_s22 = int_to_ptr.vmem [resolvable:$true] %s22_s22  ;;  %s48_s23 = int_to_ptr.vmem [resolvable:$true] %s47_s23 }
  0x28   :  { %s10488_s24 = scalar_lea.vmem %s23_s22, 12288  ;;  %p10493_p2 = scmp.lt.s32.totalorder %s23_s22, %s23_s22 }
  0x29   :  { %p10489_p1 = scmp.ne.s32.totalorder %s23_s22, %s10488_s24  ;;  %p10494_p3 = scmp.lt.s32.totalorder %s10488_s24, %s10488_s24 }
  0x2b   :  { %p10495_p4 = por %p10494_p3, %p10493_p2 }
  0x2d   :  { %p10496_p5 = pnand %p10495_p4, %p10489_p1 }
  0x2f   :  { %10499 = shalt.err (!%p10496_p5)
}
  0x30   :  { %28 = dma.hbm_to_vmem [thread:$0]  %s12973_s0, 12288, %s23_s22, [#allocation3], %s10592_s29, %s10592_s29, %s10593_s30  }
  0x31   :  { %s10508_s5 = scalar_lea.vmem %s48_s23, 96  ;;  %p10513_p7 = scmp.lt.s32.totalorder %s48_s23, %s48_s23 }
  0x32   :  { %p10509_p6 = scmp.ne.s32.totalorder %s48_s23, %s10508_s5  ;;  %p10514_p8 = scmp.lt.s32.totalorder %s10508_s5, %s10508_s5 }
  0x34   :  { %p10515_p9 = por %p10514_p8, %p10513_p7 }
  0x36   :  { %p10516_p10 = pnand %p10515_p9, %p10509_p6 }
  0x38   :  { %10519 = shalt.err (!%p10516_p10)
}
  0x39   :  { %50 = dma.hbm_to_vmem [thread:$0]  %s12975_s2, 96, %s48_s23, [#allocation6]  }
  0x3a   :  { %s10601_s8 = smov [#allocation10]   ;;  %s10602_s10 = smov [#allocation13]  }
  0x3b   :  { %s69_s9 = sshll.u32 %s10601_s8, 4  ;;  %s91_s11 = sshll.u32 %s10602_s10, 4  ;;  %s70_s9 = int_to_ptr.vmem [resolvable:$true] %s69_s9  ;;  %s92_s11 = int_to_ptr.vmem [resolvable:$true] %s91_s11 }
  0x3c   :  { %s10528_s12 = scalar_lea.vmem %s70_s9, 64  ;;  %p10533_p12 = scmp.lt.s32.totalorder %s70_s9, %s70_s9 }
  0x3d   :  { %p10529_p11 = scmp.ne.s32.totalorder %s70_s9, %s10528_s12  ;;  %p10534_p13 = scmp.lt.s32.totalorder %s10528_s12, %s10528_s12 }
  0x3f   :  { %p10535_p0 = por %p10534_p13, %p10533_p12 }
  0x41   :  { %p10536_p1 = pnand %p10535_p0, %p10529_p11 }
  0x43   :  { %10539 = shalt.err (!%p10536_p1)
}
  0x44   :  { %72 = dma.hbm_to_vmem [thread:$0]  %s12977_s4, 64, %s70_s9, [#allocation9]  }
  0x45   :  { %s10548_s30 = scalar_lea.vmem %s92_s11, 16  ;;  %s10552_s2 = scalar_lea.vmem %s92_s11, 32 }
  0x46   :  { %p10549_p2 = scmp.ne.s32.totalorder %s92_s11, %s10548_s30  ;;  %p10553_p3 = scmp.lt.s32.totalorder %s92_s11, %s92_s11 }
  0x47   :  { %p10554_p4 = scmp.lt.s32.totalorder %s10552_s2, %s10548_s30 }
  0x49   :  { %p10555_p5 = por %p10554_p4, %p10553_p3 }
  0x4b   :  { %p10556_p6 = pnand %p10555_p5, %p10549_p2 }
  0x4d   :  { %10559 = shalt.err (!%p10556_p6)
}
  0x4e   :  { %94 = dma.hbm_to_vmem [thread:$0]  %s12979_s6, 16, %s92_s11, [#allocation12]  }
  0x4f   :  { %10580 = dma.done.wait [#allocation3], 12288  }
  0x50   :  { %10581 = vsyncadd [#allocation3], 4294955008 }
  0x51   :  { %10582 = dma.done.wait [#allocation6], 36960  }
  0x52   :  { %10583 = vsyncadd [#allocation6], 4294930336 }
  0x53   :  { %10584 = dma.done.wait [#allocation9], 24640  }
  0x54   :  { %10585 = vsyncadd [#allocation9], 4294942656 }
  0x55   :  { %10586 = dma.done.wait [#allocation12], 4112  }
  0x56   :  { %10587 = vsyncadd [#allocation12], 4294963184  ;;  %v8840_v0 = vld [vmem:[#allocation5 + $0x154] ss:$24 sps:$4 sm:$0xff]   ;;  %v8842_v1 = vld [vmem:[#allocation5 + $0x150] ss:$24 sps:$4 sm:$0xff]  }
  0x57   :  { %2453 = vmatprep.subr.bf16.mxu0 %v8840_v0  ;;  %8792 = vmatprep.subr.bf16.mxu1 %v8840_v0  ;;  %v8843_v2 = vld [vmem:[#allocation5 + $0x124] ss:$24 sps:$4 sm:$0xff]   ;;  %v8845_v3 = vld [vmem:[#allocation5 + $0x120] ss:$24 sps:$4 sm:$0xff]   ;;  %v8846_v4 = vld [vmem:[#allocation5 + $0xf4] ss:$24 sps:$4 sm:$0xff]  }
  0x58   :  { %2454 = vmatpush1.bf16.msra.mxu0 %v8842_v1  ;;  %8808 = vmatpush1.bf16.msra.mxu1 %v8842_v1  ;;  %v8848_v5 = vld [vmem:[#allocation5 + $0xf0] ss:$24 sps:$4 sm:$0xff]   ;;  %v8849_v6 = vld [vmem:[#allocation5 + $0xc4] ss:$24 sps:$4 sm:$0xff]   ;;  %v8851_v7 = vld [vmem:[#allocation5 + $0xc0] ss:$24 sps:$4 sm:$0xff]  }
  0x59   :  { %2455 = vmatprep.subr.bf16.mxu0 %v8843_v2  ;;  %8793 = vmatprep.subr.bf16.mxu1 %v8843_v2  ;;  %v8852_v8 = vld [vmem:[#allocation5 + $0x94] ss:$24 sps:$4 sm:$0xff]   ;;  %v8854_v9 = vld [vmem:[#allocation5 + $0x90] ss:$24 sps:$4 sm:$0xff]   ;;  %v8855_v10 = vld [vmem:[#allocation5 + $0x64] ss:$24 sps:$4 sm:$0xff]  }
  0x5a   :  { %v8857_v11 = vld [vmem:[#allocation5 + $0x60] ss:$24 sps:$4 sm:$0xff]   ;;  %v8858_v12 = vld [vmem:[#allocation5 + $0x34] ss:$24 sps:$4 sm:$0xff]   ;;  %v8888_v13 = vld [vmem:[#allocation2 + $0x4] ss:$24 sps:$4 sm:$0xff]  }
  0x5b   :  { %v8860_v14 = vld [vmem:[#allocation5 + $0x30] ss:$24 sps:$4 sm:$0xff]   ;;  %v8890_v15 = vld [vmem:[#allocation2 + $0x184] ss:$24 sps:$4 sm:$0xff]   ;;  %2485 = vmatprep.mubr.bf16.mxu0 %v8888_v13  ;;  %v8863_v17 = vld [vmem:[#allocation5] ss:$24 sps:$4 sm:$0xff]  }
  0x5c   :  { %2456 = vmatpush1.bf16.msra.mxu0 %v8845_v3  ;;  %8809 = vmatpush1.bf16.msra.mxu1 %v8845_v3  ;;  %v8861_v16 = vld [vmem:[#allocation5 + $0x4] ss:$24 sps:$4 sm:$0xff]   ;;  %v8864_v18 = vld [vmem:[#allocation5 + $0x2d4] ss:$24 sps:$4 sm:$0xff]   ;;  %v8866_v19 = vld [vmem:[#allocation5 + $0x2d0] ss:$24 sps:$4 sm:$0xff]  }
  0x5d   :  { %2457 = vmatprep.subr.bf16.mxu0 %v8846_v4  ;;  %8794 = vmatprep.subr.bf16.mxu1 %v8846_v4  ;;  %v8867_v20 = vld [vmem:[#allocation5 + $0x2a4] ss:$24 sps:$4 sm:$0xff]   ;;  %v8869_v21 = vld [vmem:[#allocation5 + $0x2a0] ss:$24 sps:$4 sm:$0xff]   ;;  %v8870_v22 = vld [vmem:[#allocation5 + $0x274] ss:$24 sps:$4 sm:$0xff]  }
  0x5e   :  { %2565 = vmatprep.mubr.bf16.mxu1 %v8890_v15  ;;  %v8872_v23 = vld [vmem:[#allocation5 + $0x270] ss:$24 sps:$4 sm:$0xff]   ;;  %v8873_v24 = vld [vmem:[#allocation5 + $0x244] ss:$24 sps:$4 sm:$0xff]   ;;  %v8875_v25 = vld [vmem:[#allocation5 + $0x240] ss:$24 sps:$4 sm:$0xff]  }
  0x5f   :  { %v8876_v26 = vld [vmem:[#allocation5 + $0x214] ss:$24 sps:$4 sm:$0xff]   ;;  %v8878_v27 = vld [vmem:[#allocation5 + $0x210] ss:$24 sps:$4 sm:$0xff]   ;;  %v8879_v28 = vld [vmem:[#allocation5 + $0x1e4] ss:$24 sps:$4 sm:$0xff]  }
  0x60   :  { %2458 = vmatpush1.bf16.msra.mxu0 %v8848_v5  ;;  %8810 = vmatpush1.bf16.msra.mxu1 %v8848_v5  ;;  %v8881_v29 = vld [vmem:[#allocation5 + $0x1e0] ss:$24 sps:$4 sm:$0xff]   ;;  %v8882_v30 = vld [vmem:[#allocation5 + $0x1b4] ss:$24 sps:$4 sm:$0xff]   ;;  %v8884_v31 = vld [vmem:[#allocation5 + $0x1b0] ss:$24 sps:$4 sm:$0xff]  }
  0x61   :  { %2459 = vmatprep.subr.bf16.mxu0 %v8849_v6  ;;  %8795 = vmatprep.subr.bf16.mxu1 %v8849_v6  ;;  %v8885_v32 = vld [vmem:[#allocation5 + $0x184] ss:$24 sps:$4 sm:$0xff]   ;;  %v8887_v33 = vld [vmem:[#allocation5 + $0x180] ss:$24 sps:$4 sm:$0xff]   ;;  %v8896_v34 = vld [vmem:[#allocation5 + $0x454] ss:$24 sps:$4 sm:$0xff]  }
  0x62   :  { %v8892_v35 = vld [vmem:[#allocation2] ss:$24 sps:$4 sm:$0xff]   ;;  %v8899_v36 = vld [vmem:[#allocation5 + $0x754] ss:$24 sps:$4 sm:$0xff]   ;;  %v8894_v38 = vld [vmem:[#allocation5 + $0x450] ss:$24 sps:$4 sm:$0xff]  }
  0x63   :  { %v8893_v37 = vld [vmem:[#allocation2 + $0x180] ss:$24 sps:$4 sm:$0xff]   ;;  %v8897_v39 = vld [vmem:[#allocation5 + $0x750] ss:$24 sps:$4 sm:$0xff]   ;;  %v8902_v40 = vld [vmem:[#allocation5 + $0x424] ss:$24 sps:$4 sm:$0xff]  }
  0x64   :  { %2460 = vmatpush1.bf16.msra.mxu0 %v8851_v7  ;;  %8811 = vmatpush1.bf16.msra.mxu1 %v8851_v7  ;;  %v8905_v41 = vld [vmem:[#allocation5 + $0x724] ss:$24 sps:$4 sm:$0xff]   ;;  %v8906_v42 = vld [vmem:[#allocation2 + $0x34] ss:$24 sps:$4 sm:$0xff]   ;;  %v8900_v44 = vld [vmem:[#allocation5 + $0x420] ss:$24 sps:$4 sm:$0xff]  }
  0x65   :  { %2461 = vmatprep.subr.bf16.mxu0 %v8852_v8  ;;  %8796 = vmatprep.subr.bf16.mxu1 %v8852_v8  ;;  %v8908_v43 = vld [vmem:[#allocation2 + $0x1b4] ss:$24 sps:$4 sm:$0xff]   ;;  %v8903_v45 = vld [vmem:[#allocation5 + $0x720] ss:$24 sps:$4 sm:$0xff]   ;;  %v8910_v47 = vld [vmem:[#allocation2 + $0x30] ss:$24 sps:$4 sm:$0xff]  }
  0x66   :  { %v8914_v46 = vld [vmem:[#allocation5 + $0x3f4] ss:$24 sps:$4 sm:$0xff]   ;;  %v8911_v49 = vld [vmem:[#allocation2 + $0x1b0] ss:$24 sps:$4 sm:$0xff]   ;;  %v8920_v52 = vld [vmem:[#allocation5 + $0x3c4] ss:$24 sps:$4 sm:$0xff]  }
  0x67   :  { %v8917_v48 = vld [vmem:[#allocation5 + $0x6f4] ss:$24 sps:$4 sm:$0xff]   ;;  %v8912_v50 = vld [vmem:[#allocation5 + $0x3f0] ss:$24 sps:$4 sm:$0xff]   ;;  %v8923_v53 = vld [vmem:[#allocation5 + $0x6c4] ss:$24 sps:$4 sm:$0xff]  }
  0x68   :  { %2462 = vmatpush1.bf16.msra.mxu0 %v8854_v9  ;;  %8812 = vmatpush1.bf16.msra.mxu1 %v8854_v9  ;;  %v8915_v51 = vld [vmem:[#allocation5 + $0x6f0] ss:$24 sps:$4 sm:$0xff]   ;;  %v8924_v54 = vld [vmem:[#allocation2 + $0x64] ss:$24 sps:$4 sm:$0xff]   ;;  %v8918_v56 = vld [vmem:[#allocation5 + $0x3c0] ss:$24 sps:$4 sm:$0xff]  }
  0x69   :  { %2463 = vmatprep.subr.bf16.mxu0 %v8855_v10  ;;  %8797 = vmatprep.subr.bf16.mxu1 %v8855_v10  ;;  %v8926_v55 = vld [vmem:[#allocation2 + $0x1e4] ss:$24 sps:$4 sm:$0xff]   ;;  %v8921_v57 = vld [vmem:[#allocation5 + $0x6c0] ss:$24 sps:$4 sm:$0xff]   ;;  %v8932_v58 = vld [vmem:[#allocation5 + $0x394] ss:$24 sps:$4 sm:$0xff]  }
  0x6a   :  { %v8928_v59 = vld [vmem:[#allocation2 + $0x60] ss:$24 sps:$4 sm:$0xff]   ;;  %v8935_v60 = vld [vmem:[#allocation5 + $0x694] ss:$24 sps:$4 sm:$0xff]   ;;  %v8930_v62 = vld [vmem:[#allocation5 + $0x390] ss:$24 sps:$4 sm:$0xff]  }
  0x6b   :  { %v8929_v61 = vld [vmem:[#allocation2 + $0x1e0] ss:$24 sps:$4 sm:$0xff]   ;;  %v8933_v63 = vld [vmem:[#allocation5 + $0x690] ss:$24 sps:$4 sm:$0xff]   ;;  %v8938_v0 = vld [vmem:[#allocation5 + $0x364] ss:$24 sps:$4 sm:$0xff]  }
  0x6c   :  { %2464 = vmatpush1.bf16.msra.mxu0 %v8857_v11  ;;  %8813 = vmatpush1.bf16.msra.mxu1 %v8857_v11  ;;  %v8941_v1 = vld [vmem:[#allocation5 + $0x664] ss:$24 sps:$4 sm:$0xff]   ;;  %v8942_v2 = vld [vmem:[#allocation2 + $0x94] ss:$24 sps:$4 sm:$0xff]   ;;  %v8936_v4 = vld [vmem:[#allocation5 + $0x360] ss:$24 sps:$4 sm:$0xff]  }
  0x6d   :  { %2465 = vmatprep.subr.bf16.mxu0 %v8858_v12  ;;  %8798 = vmatprep.subr.bf16.mxu1 %v8858_v12  ;;  %v8944_v3 = vld [vmem:[#allocation2 + $0x214] ss:$24 sps:$4 sm:$0xff]   ;;  %v8939_v5 = vld [vmem:[#allocation5 + $0x660] ss:$24 sps:$4 sm:$0xff]   ;;  %v8946_v7 = vld [vmem:[#allocation2 + $0x90] ss:$24 sps:$4 sm:$0xff]  }
  0x6e   :  { %v8950_v6 = vld [vmem:[#allocation5 + $0x334] ss:$24 sps:$4 sm:$0xff]   ;;  %v8947_v9 = vld [vmem:[#allocation2 + $0x210] ss:$24 sps:$4 sm:$0xff]   ;;  %v8956_v12 = vld [vmem:[#allocation5 + $0x304] ss:$24 sps:$4 sm:$0xff]  }
  0x6f   :  { %v8953_v8 = vld [vmem:[#allocation5 + $0x634] ss:$24 sps:$4 sm:$0xff]   ;;  %v8948_v10 = vld [vmem:[#allocation5 + $0x330] ss:$24 sps:$4 sm:$0xff]   ;;  %v8959_v13 = vld [vmem:[#allocation5 + $0x604] ss:$24 sps:$4 sm:$0xff]  }
  0x70   :  { %2466 = vmatpush1.bf16.msra.mxu0 %v8860_v14  ;;  %8814 = vmatpush1.bf16.msra.mxu1 %v8860_v14  ;;  %v8951_v11 = vld [vmem:[#allocation5 + $0x630] ss:$24 sps:$4 sm:$0xff]   ;;  %v8960_v14 = vld [vmem:[#allocation2 + $0xc4] ss:$24 sps:$4 sm:$0xff]   ;;  %s10603_s4 = smov [#allocation14]  }
  0x71   :  { %2467 = vmatprep.subr.bf16.mxu0 %v8861_v16  ;;  %8799 = vmatprep.subr.bf16.mxu1 %v8861_v16  ;;  %v8962_v15 = vld [vmem:[#allocation2 + $0x244] ss:$24 sps:$4 sm:$0xff]   ;;  %v8954_v16 = vld [vmem:[#allocation5 + $0x300] ss:$24 sps:$4 sm:$0xff]   ;;  %s7944_s6 = sshll.u32 %s10603_s4, 4  ;;  %s7945_s6 = int_to_ptr.vmem [resolvable:$true] %s7944_s6 }
  0x72   :  { %s10560_s15 = scalar_lea.vmem %s7945_s6, 4096  ;;  %p10565_p8 = scmp.lt.s32.totalorder %s7945_s6, %s7945_s6 }
  0x73   :  { %p10561_p7 = scmp.ne.s32.totalorder %s7945_s6, %s10560_s15  ;;  %p10566_p9 = scmp.lt.s32.totalorder %s10560_s15, %s10560_s15 }
  0x74   :  { %2468 = vmatpush1.bf16.msra.mxu0 %v8863_v17  ;;  %8815 = vmatpush1.bf16.msra.mxu1 %v8863_v17  ;;  %v8957_v17 = vld [vmem:[#allocation5 + $0x600] ss:$24 sps:$4 sm:$0xff]  }
  0x75   :  { %2469 = vmatprep.subr.bf16.mxu0 %v8864_v18  ;;  %8800 = vmatprep.subr.bf16.mxu1 %v8864_v18  ;;  %v8964_v18 = vld [vmem:[#allocation2 + $0xc0] ss:$24 sps:$4 sm:$0xff]   ;;  %p10567_p10 = por %p10566_p9, %p10565_p8 }
  0x77   :  { %p10568_p11 = pnand %p10567_p10, %p10561_p7 }
  0x78   :  { %2470 = vmatpush2.bf16.msra.mxu0 %v8866_v19  ;;  %8816 = vmatpush2.bf16.msra.mxu1 %v8866_v19  ;;  %v8968_v19 = vld [vmem:[#allocation5 + $0x5d4] ss:$24 sps:$4 sm:$0xff]  }
  0x79   :  { %2471 = vmatprep.subr.bf16.mxu0 %v8867_v20  ;;  %8801 = vmatprep.subr.bf16.mxu1 %v8867_v20  ;;  %v8971_v20 = vld [vmem:[#allocation5 + $0x8d4] ss:$24 sps:$4 sm:$0xff]  }
  0x7c   :  { %2472 = vmatpush2.bf16.msra.mxu0 %v8869_v21  ;;  %8817 = vmatpush2.bf16.msra.mxu1 %v8869_v21  ;;  %v8965_v21 = vld [vmem:[#allocation2 + $0x240] ss:$24 sps:$4 sm:$0xff]  }
  0x7d   :  { %2473 = vmatprep.subr.bf16.mxu0 %v8870_v22  ;;  %8802 = vmatprep.subr.bf16.mxu1 %v8870_v22  ;;  %v8966_v22 = vld [vmem:[#allocation5 + $0x5d0] ss:$24 sps:$4 sm:$0xff]  }
  0x80   :  { %2474 = vmatpush2.bf16.msra.mxu0 %v8872_v23  ;;  %8818 = vmatpush2.bf16.msra.mxu1 %v8872_v23  ;;  %v8969_v23 = vld [vmem:[#allocation5 + $0x8d0] ss:$24 sps:$4 sm:$0xff]  }
  0x81   :  { %2475 = vmatprep.subr.bf16.mxu0 %v8873_v24  ;;  %8803 = vmatprep.subr.bf16.mxu1 %v8873_v24  ;;  %v8974_v24 = vld [vmem:[#allocation5 + $0x5a4] ss:$24 sps:$4 sm:$0xff]  }
  0x84   :  { %2476 = vmatpush2.bf16.msra.mxu0 %v8875_v25  ;;  %8819 = vmatpush2.bf16.msra.mxu1 %v8875_v25  ;;  %v8977_v25 = vld [vmem:[#allocation5 + $0x8a4] ss:$24 sps:$4 sm:$0xff]  }
  0x85   :  { %2477 = vmatprep.subr.bf16.mxu0 %v8876_v26  ;;  %8804 = vmatprep.subr.bf16.mxu1 %v8876_v26  ;;  %v8978_v26 = vld [vmem:[#allocation2 + $0xf4] ss:$24 sps:$4 sm:$0xff]  }
  0x88   :  { %2478 = vmatpush2.bf16.msra.mxu0 %v8878_v27  ;;  %8820 = vmatpush2.bf16.msra.mxu1 %v8878_v27  ;;  %v8980_v27 = vld [vmem:[#allocation2 + $0x274] ss:$24 sps:$4 sm:$0xff]  }
  0x89   :  { %2479 = vmatprep.subr.bf16.mxu0 %v8879_v28  ;;  %8805 = vmatprep.subr.bf16.mxu1 %v8879_v28  ;;  %v8972_v28 = vld [vmem:[#allocation5 + $0x5a0] ss:$24 sps:$4 sm:$0xff]  }
  0x8c   :  { %2480 = vmatpush2.bf16.msra.mxu0 %v8881_v29  ;;  %8821 = vmatpush2.bf16.msra.mxu1 %v8881_v29  ;;  %v8975_v29 = vld [vmem:[#allocation5 + $0x8a0] ss:$24 sps:$4 sm:$0xff]  }
  0x8d   :  { %2481 = vmatprep.subr.bf16.mxu0 %v8882_v30  ;;  %8806 = vmatprep.subr.bf16.mxu1 %v8882_v30  ;;  %v8986_v30 = vld [vmem:[#allocation5 + $0x574] ss:$24 sps:$4 sm:$0xff]  }
  0x90   :  { %2482 = vmatpush2.bf16.msra.mxu0 %v8884_v31  ;;  %8822 = vmatpush2.bf16.msra.mxu1 %v8884_v31  ;;  %v8982_v31 = vld [vmem:[#allocation2 + $0xf0] ss:$24 sps:$4 sm:$0xff]  }
  0x91   :  { %2483 = vmatprep.subr.bf16.mxu0 %v8885_v32  ;;  %8807 = vmatprep.subr.bf16.mxu1 %v8885_v32  ;;  %v8989_v32 = vld [vmem:[#allocation5 + $0x874] ss:$24 sps:$4 sm:$0xff]  }
  0x94   :  { %2484 = vmatpush2.bf16.msra.mxu0 %v8887_v33  ;;  %8823 = vmatpush2.bf16.msra.mxu1 %v8887_v33  ;;  %v8983_v33 = vld [vmem:[#allocation2 + $0x270] ss:$24 sps:$4 sm:$0xff]  }
  0x95   :  { %2646 = vmatprep.subr.bf16.mxu1 %v8896_v34  ;;  %2839 = vmatprep.subr.bf16.mxu0 %v8899_v36  ;;  %v8984_v34 = vld [vmem:[#allocation5 + $0x570] ss:$24 sps:$4 sm:$0xff]   ;;  %v8992_v36 = vld [vmem:[#allocation5 + $0x544] ss:$24 sps:$4 sm:$0xff]  }
  0x97   :  { %2486 = vmatmul.mubr.bf16.vlgmr.msra.gmra.mxu0 %v8892_v35  ;;  %2566 = vmatmul.mubr.bf16.vlgmr.msra.gmra.mxu1 %v8893_v37  ;;  %v8987_v35 = vld [vmem:[#allocation5 + $0x870] ss:$24 sps:$4 sm:$0xff]   ;;  %v8995_v37 = vld [vmem:[#allocation5 + $0x844] ss:$24 sps:$4 sm:$0xff]  }
  0x98   :  { %2647 = vmatpush1.bf16.msra.mxu1 %v8894_v38  ;;  %2840 = vmatpush1.bf16.msra.mxu0 %v8897_v39  ;;  %v8996_v38 = vld [vmem:[#allocation2 + $0x124] ss:$24 sps:$4 sm:$0xff]  }
  0x99   :  { %2648 = vmatprep.subr.bf16.mxu1 %v8902_v40  ;;  %2841 = vmatprep.subr.bf16.mxu0 %v8905_v41  ;;  %v8998_v39 = vld [vmem:[#allocation2 + $0x2a4] ss:$24 sps:$4 sm:$0xff]   ;;  %v8990_v40 = vld [vmem:[#allocation5 + $0x540] ss:$24 sps:$4 sm:$0xff]  }
  0x9a   :  { %2495 = vmatprep.mubr.bf16.mxu0 %v8906_v42  ;;  %2575 = vmatprep.mubr.bf16.mxu1 %v8908_v43  ;;  %v8993_v41 = vld [vmem:[#allocation5 + $0x840] ss:$24 sps:$4 sm:$0xff]   ;;  %v9004_v43 = vld [vmem:[#allocation5 + $0x514] ss:$24 sps:$4 sm:$0xff]  }
  0x9b   :  { %v9000_v42 = vld [vmem:[#allocation2 + $0x120] ss:$24 sps:$4 sm:$0xff]  }
  0x9c   :  { %2649 = vmatpush1.bf16.msra.mxu1 %v8900_v44  ;;  %2842 = vmatpush1.bf16.msra.mxu0 %v8903_v45  ;;  %v9007_v44 = vld [vmem:[#allocation5 + $0x814] ss:$24 sps:$4 sm:$0xff]   ;;  %v9001_v45 = vld [vmem:[#allocation2 + $0x2a0] ss:$24 sps:$4 sm:$0xff]  }
  0x9d   :  { %2650 = vmatprep.subr.bf16.mxu1 %v8914_v46  ;;  %2843 = vmatprep.subr.bf16.mxu0 %v8917_v48  ;;  %v9002_v46 = vld [vmem:[#allocation5 + $0x510] ss:$24 sps:$4 sm:$0xff]   ;;  %v9010_v48 = vld [vmem:[#allocation5 + $0x4e4] ss:$24 sps:$4 sm:$0xff]  }
  0x9f   :  { %2496 = vmatmul.mubr.bf16.gmra.mxu0 %v8910_v47  ;;  %2576 = vmatmul.mubr.bf16.gmra.mxu1 %v8911_v49  ;;  %v9005_v47 = vld [vmem:[#allocation5 + $0x810] ss:$24 sps:$4 sm:$0xff]   ;;  %v9013_v49 = vld [vmem:[#allocation5 + $0x7e4] ss:$24 sps:$4 sm:$0xff]  }
  0xa0   :  { %2651 = vmatpush1.bf16.msra.mxu1 %v8912_v50  ;;  %2844 = vmatpush1.bf16.msra.mxu0 %v8915_v51  ;;  %v9014_v50 = vld [vmem:[#allocation2 + $0x154] ss:$24 sps:$4 sm:$0xff]  }
  0xa1   :  { %2652 = vmatprep.subr.bf16.mxu1 %v8920_v52  ;;  %2845 = vmatprep.subr.bf16.mxu0 %v8923_v53  ;;  %v9016_v51 = vld [vmem:[#allocation2 + $0x2d4] ss:$24 sps:$4 sm:$0xff]   ;;  %v9008_v52 = vld [vmem:[#allocation5 + $0x4e0] ss:$24 sps:$4 sm:$0xff]  }
  0xa2   :  { %2505 = vmatprep.mubr.bf16.mxu0 %v8924_v54  ;;  %2585 = vmatprep.mubr.bf16.mxu1 %v8926_v55  ;;  %v9011_v53 = vld [vmem:[#allocation5 + $0x7e0] ss:$24 sps:$4 sm:$0xff]   ;;  %v9022_v54 = vld [vmem:[#allocation5 + $0x4b4] ss:$24 sps:$4 sm:$0xff]   ;;  %v9018_v55 = vld [vmem:[#allocation2 + $0x150] ss:$24 sps:$4 sm:$0xff]  }
  0xa4   :  { %2653 = vmatpush1.bf16.msra.mxu1 %v8918_v56  ;;  %2846 = vmatpush1.bf16.msra.mxu0 %v8921_v57  ;;  %v9025_v56 = vld [vmem:[#allocation5 + $0x7b4] ss:$24 sps:$4 sm:$0xff]   ;;  %v9019_v57 = vld [vmem:[#allocation2 + $0x2d0] ss:$24 sps:$4 sm:$0xff]  }
  0xa5   :  { %2654 = vmatprep.subr.bf16.mxu1 %v8932_v58  ;;  %2847 = vmatprep.subr.bf16.mxu0 %v8935_v60  ;;  %v9020_v58 = vld [vmem:[#allocation5 + $0x4b0] ss:$24 sps:$4 sm:$0xff]   ;;  %v9028_v60 = vld [vmem:[#allocation5 + $0x484] ss:$24 sps:$4 sm:$0xff]  }
  0xa7   :  { %2506 = vmatmul.mubr.bf16.gmra.mxu0 %v8928_v59  ;;  %2586 = vmatmul.mubr.bf16.gmra.mxu1 %v8929_v61  ;;  %v9023_v59 = vld [vmem:[#allocation5 + $0x7b0] ss:$24 sps:$4 sm:$0xff]   ;;  %v9031_v61 = vld [vmem:[#allocation5 + $0x784] ss:$24 sps:$4 sm:$0xff]  }
  0xa8   :  { %2655 = vmatpush1.bf16.msra.mxu1 %v8930_v62  ;;  %2848 = vmatpush1.bf16.msra.mxu0 %v8933_v63  ;;  %v9034_v62 = vld [vmem:[#allocation2 + $0xc] ss:$24 sps:$4 sm:$0xff]  }
  0xa9   :  { %2656 = vmatprep.subr.bf16.mxu1 %v8938_v0  ;;  %2849 = vmatprep.subr.bf16.mxu0 %v8941_v1  ;;  %v9037_v63 = vld [vmem:[#allocation2 + $0x14] ss:$24 sps:$4 sm:$0xff]   ;;  %v9026_v0 = vld [vmem:[#allocation5 + $0x480] ss:$24 sps:$4 sm:$0xff]  }
  0xaa   :  { %2515 = vmatprep.mubr.bf16.mxu0 %v8942_v2  ;;  %2595 = vmatprep.mubr.bf16.mxu1 %v8944_v3  ;;  %v9029_v1 = vld [vmem:[#allocation5 + $0x780] ss:$24 sps:$4 sm:$0xff]   ;;  %v9040_v3 = vld [vmem:[#allocation5 + $0x15c] ss:$24 sps:$4 sm:$0xff]  }
  0xab   :  { %v9032_v2 = vld [vmem:[#allocation2 + $0x8] ss:$24 sps:$4 sm:$0xff]  }
  0xac   :  { %2657 = vmatpush1.bf16.msra.mxu1 %v8936_v4  ;;  %2850 = vmatpush1.bf16.msra.mxu0 %v8939_v5  ;;  %v9043_v4 = vld [vmem:[#allocation5 + $0x45c] ss:$24 sps:$4 sm:$0xff]   ;;  %v9035_v5 = vld [vmem:[#allocation2 + $0x10] ss:$24 sps:$4 sm:$0xff]  }
  0xad   :  { %2658 = vmatprep.subr.bf16.mxu1 %v8950_v6  ;;  %2851 = vmatprep.subr.bf16.mxu0 %v8953_v8  ;;  %v9038_v6 = vld [vmem:[#allocation5 + $0x158] ss:$24 sps:$4 sm:$0xff]   ;;  %v9044_v8 = vld [vmem:[#allocation2 + $0x3c] ss:$24 sps:$4 sm:$0xff]  }
  0xaf   :  { %2516 = vmatmul.mubr.bf16.gmra.mxu0 %v8946_v7  ;;  %2596 = vmatmul.mubr.bf16.gmra.mxu1 %v8947_v9  ;;  %v9041_v7 = vld [vmem:[#allocation5 + $0x458] ss:$24 sps:$4 sm:$0xff]   ;;  %v9046_v9 = vld [vmem:[#allocation2 + $0x44] ss:$24 sps:$4 sm:$0xff]  }
  0xb0   :  { %2659 = vmatpush1.bf16.msra.mxu1 %v8948_v10  ;;  %2852 = vmatpush1.bf16.msra.mxu0 %v8951_v11  ;;  %v9052_v10 = vld [vmem:[#allocation5 + $0x12c] ss:$24 sps:$4 sm:$0xff]  }
  0xb1   :  { %2660 = vmatprep.subr.bf16.mxu1 %v8956_v12  ;;  %2853 = vmatprep.subr.bf16.mxu0 %v8959_v13  ;;  %v9055_v11 = vld [vmem:[#allocation5 + $0x42c] ss:$24 sps:$4 sm:$0xff]   ;;  %v9050_v12 = vld [vmem:[#allocation5 + $0x128] ss:$24 sps:$4 sm:$0xff]  }
  0xb2   :  { %2525 = vmatprep.mubr.bf16.mxu0 %v8960_v14  ;;  %2605 = vmatprep.mubr.bf16.mxu1 %v8962_v15  ;;  %v9053_v13 = vld [vmem:[#allocation5 + $0x428] ss:$24 sps:$4 sm:$0xff]   ;;  %v9064_v14 = vld [vmem:[#allocation5 + $0xfc] ss:$24 sps:$4 sm:$0xff]   ;;  %v9048_v15 = vld [vmem:[#allocation2 + $0x38] ss:$24 sps:$4 sm:$0xff]  }
  0xb4   :  { %2661 = vmatpush1.bf16.msra.mxu1 %v8954_v16  ;;  %2854 = vmatpush1.bf16.msra.mxu0 %v8957_v17  ;;  %v9067_v16 = vld [vmem:[#allocation5 + $0x3fc] ss:$24 sps:$4 sm:$0xff]   ;;  %v9049_v17 = vld [vmem:[#allocation2 + $0x40] ss:$24 sps:$4 sm:$0xff]  }
  0xb5   :  { %2662 = vmatprep.subr.bf16.mxu1 %v8968_v19  ;;  %2855 = vmatprep.subr.bf16.mxu0 %v8971_v20  ;;  %v9058_v19 = vld [vmem:[#allocation2 + $0x74] ss:$24 sps:$4 sm:$0xff]   ;;  %v9062_v20 = vld [vmem:[#allocation5 + $0xf8] ss:$24 sps:$4 sm:$0xff]  }
  0xb7   :  { %2526 = vmatmul.mubr.bf16.gmra.mxu0 %v8964_v18  ;;  %2606 = vmatmul.mubr.bf16.gmra.mxu1 %v8965_v21  ;;  %v9056_v18 = vld [vmem:[#allocation2 + $0x6c] ss:$24 sps:$4 sm:$0xff]   ;;  %v9065_v21 = vld [vmem:[#allocation5 + $0x3f8] ss:$24 sps:$4 sm:$0xff]  }
  0xb8   :  { %2663 = vmatpush2.bf16.msra.mxu1 %v8966_v22  ;;  %2856 = vmatpush2.bf16.msra.mxu0 %v8969_v23  ;;  %v9076_v22 = vld [vmem:[#allocation5 + $0xcc] ss:$24 sps:$4 sm:$0xff]  }
  0xb9   :  { %2664 = vmatprep.subr.bf16.mxu1 %v8974_v24  ;;  %2857 = vmatprep.subr.bf16.mxu0 %v8977_v25  ;;  %v9079_v23 = vld [vmem:[#allocation5 + $0x3cc] ss:$24 sps:$4 sm:$0xff]   ;;  %v9074_v24 = vld [vmem:[#allocation5 + $0xc8] ss:$24 sps:$4 sm:$0xff]  }
  0xba   :  { %2535 = vmatprep.mubr.bf16.mxu0 %v8978_v26  ;;  %2615 = vmatprep.mubr.bf16.mxu1 %v8980_v27  ;;  %v9060_v25 = vld [vmem:[#allocation2 + $0x68] ss:$24 sps:$4 sm:$0xff]  }
  0xbb   :  { %v9061_v26 = vld [vmem:[#allocation2 + $0x70] ss:$24 sps:$4 sm:$0xff]  }
  0xbc   :  { %2665 = vmatpush2.bf16.msra.mxu1 %v8972_v28  ;;  %2858 = vmatpush2.bf16.msra.mxu0 %v8975_v29  ;;  %v9077_v27 = vld [vmem:[#allocation5 + $0x3c8] ss:$24 sps:$4 sm:$0xff]   ;;  %v9088_v28 = vld [vmem:[#allocation5 + $0x9c] ss:$24 sps:$4 sm:$0xff]  }
  0xbd   :  { %2666 = vmatprep.subr.bf16.mxu1 %v8986_v30  ;;  %2859 = vmatprep.subr.bf16.mxu0 %v8989_v32  ;;  %v9091_v29 = vld [vmem:[#allocation5 + $0x39c] ss:$24 sps:$4 sm:$0xff]   ;;  %v9086_v32 = vld [vmem:[#allocation5 + $0x98] ss:$24 sps:$4 sm:$0xff]  }
  0xbe   :  { %v9068_v30 = vld [vmem:[#allocation2 + $0x9c] ss:$24 sps:$4 sm:$0xff]  }
  0xbf   :  { %2536 = vmatmul.mubr.bf16.gmra.mxu0 %v8982_v31  ;;  %2616 = vmatmul.mubr.bf16.gmra.mxu1 %v8983_v33  ;;  %v9070_v31 = vld [vmem:[#allocation2 + $0xa4] ss:$24 sps:$4 sm:$0xff]   ;;  %v9089_v33 = vld [vmem:[#allocation5 + $0x398] ss:$24 sps:$4 sm:$0xff]  }
  0xc0   :  { %2667 = vmatpush2.bf16.msra.mxu1 %v8984_v34  ;;  %2860 = vmatpush2.bf16.msra.mxu0 %v8987_v35  ;;  %v9100_v34 = vld [vmem:[#allocation5 + $0x6c] ss:$24 sps:$4 sm:$0xff]  }
  0xc1   :  { %2668 = vmatprep.subr.bf16.mxu1 %v8992_v36  ;;  %2861 = vmatprep.subr.bf16.mxu0 %v8995_v37  ;;  %v9103_v35 = vld [vmem:[#allocation5 + $0x36c] ss:$24 sps:$4 sm:$0xff]   ;;  %v9098_v36 = vld [vmem:[#allocation5 + $0x68] ss:$24 sps:$4 sm:$0xff]  }
  0xc2   :  { %2545 = vmatprep.mubr.bf16.mxu0 %v8996_v38  ;;  %2625 = vmatprep.mubr.bf16.mxu1 %v8998_v39  ;;  %v9101_v37 = vld [vmem:[#allocation5 + $0x368] ss:$24 sps:$4 sm:$0xff]   ;;  %v9072_v38 = vld [vmem:[#allocation2 + $0x98] ss:$24 sps:$4 sm:$0xff]  }
  0xc3   :  { %v9073_v39 = vld [vmem:[#allocation2 + $0xa0] ss:$24 sps:$4 sm:$0xff]  }
  0xc4   :  { %2669 = vmatpush2.bf16.msra.mxu1 %v8990_v40  ;;  %2862 = vmatpush2.bf16.msra.mxu0 %v8993_v41  ;;  %v9112_v40 = vld [vmem:[#allocation5 + $0x3c] ss:$24 sps:$4 sm:$0xff]  }
  0xc5   :  { %2670 = vmatprep.subr.bf16.mxu1 %v9004_v43  ;;  %2863 = vmatprep.subr.bf16.mxu0 %v9007_v44  ;;  %v9115_v41 = vld [vmem:[#allocation5 + $0x33c] ss:$24 sps:$4 sm:$0xff]   ;;  %v9110_v44 = vld [vmem:[#allocation5 + $0x38] ss:$24 sps:$4 sm:$0xff]  }
  0xc6   :  { %v9082_v43 = vld [vmem:[#allocation2 + $0xd4] ss:$24 sps:$4 sm:$0xff]  }
  0xc7   :  { %2546 = vmatmul.mubr.bf16.gmra.mxu0 %v9000_v42  ;;  %2626 = vmatmul.mubr.bf16.gmra.mxu1 %v9001_v45  ;;  %v9080_v42 = vld [vmem:[#allocation2 + $0xcc] ss:$24 sps:$4 sm:$0xff]   ;;  %v9113_v45 = vld [vmem:[#allocation5 + $0x338] ss:$24 sps:$4 sm:$0xff]  }
  0xc8   :  { %2671 = vmatpush2.bf16.msra.mxu1 %v9002_v46  ;;  %2864 = vmatpush2.bf16.msra.mxu0 %v9005_v47  ;;  %v9124_v46 = vld [vmem:[#allocation5 + $0xc] ss:$24 sps:$4 sm:$0xff]  }
  0xc9   :  { %2672 = vmatprep.subr.bf16.mxu1 %v9010_v48  ;;  %2865 = vmatprep.subr.bf16.mxu0 %v9013_v49  ;;  %v9127_v47 = vld [vmem:[#allocation5 + $0x30c] ss:$24 sps:$4 sm:$0xff]   ;;  %v9122_v48 = vld [vmem:[#allocation5 + $0x8] ss:$24 sps:$4 sm:$0xff]  }
  0xca   :  { %2555 = vmatprep.mubr.bf16.mxu0 %v9014_v50  ;;  %2635 = vmatprep.mubr.bf16.mxu1 %v9016_v51  ;;  %v9084_v49 = vld [vmem:[#allocation2 + $0xc8] ss:$24 sps:$4 sm:$0xff]  }
  0xcb   :  { %v9085_v50 = vld [vmem:[#allocation2 + $0xd0] ss:$24 sps:$4 sm:$0xff]  }
  0xcc   :  { %2673 = vmatpush2.bf16.msra.mxu1 %v9008_v52  ;;  %2866 = vmatpush2.bf16.msra.mxu0 %v9011_v53  ;;  %v9125_v51 = vld [vmem:[#allocation5 + $0x308] ss:$24 sps:$4 sm:$0xff]   ;;  %v9136_v52 = vld [vmem:[#allocation5 + $0x2dc] ss:$24 sps:$4 sm:$0xff]  }
  0xcd   :  { %2674 = vmatprep.subr.bf16.mxu1 %v9022_v54  ;;  %2867 = vmatprep.subr.bf16.mxu0 %v9025_v56  ;;  %v9139_v53 = vld [vmem:[#allocation5 + $0x5dc] ss:$24 sps:$4 sm:$0xff]   ;;  %v9134_v56 = vld [vmem:[#allocation5 + $0x2d8] ss:$24 sps:$4 sm:$0xff]  }
  0xce   :  { %v9092_v54 = vld [vmem:[#allocation2 + $0xfc] ss:$24 sps:$4 sm:$0xff]  }
  0xcf   :  { %2556 = vmatmul.mubr.bf16.gmra.mxu0 %v9018_v55  ;;  %2636 = vmatmul.mubr.bf16.gmra.mxu1 %v9019_v57  ;;  %v9094_v55 = vld [vmem:[#allocation2 + $0x104] ss:$24 sps:$4 sm:$0xff]   ;;  %v9137_v57 = vld [vmem:[#allocation5 + $0x5d8] ss:$24 sps:$4 sm:$0xff]  }
  0xd0   :  { %2675 = vmatpush2.bf16.msra.mxu1 %v9020_v58  ;;  %2868 = vmatpush2.bf16.msra.mxu0 %v9023_v59  ;;  %v9148_v58 = vld [vmem:[#allocation5 + $0x2ac] ss:$24 sps:$4 sm:$0xff]  }
  0xd1   :  { %2676 = vmatprep.subr.bf16.mxu1 %v9028_v60  ;;  %2869 = vmatprep.subr.bf16.mxu0 %v9031_v61  ;;  %v9151_v59 = vld [vmem:[#allocation5 + $0x5ac] ss:$24 sps:$4 sm:$0xff]   ;;  %v9146_v60 = vld [vmem:[#allocation5 + $0x2a8] ss:$24 sps:$4 sm:$0xff]  }
  0xd2   :  { %2678 = vmatprep.mubr.bf16.mxu1 %v9034_v62  ;;  %2871 = vmatprep.mubr.bf16.mxu0 %v9037_v63  ;;  %v9149_v61 = vld [vmem:[#allocation5 + $0x5a8] ss:$24 sps:$4 sm:$0xff]   ;;  %v9096_v62 = vld [vmem:[#allocation2 + $0xf8] ss:$24 sps:$4 sm:$0xff]  }
  0xd3   :  { %v9097_v63 = vld [vmem:[#allocation2 + $0x100] ss:$24 sps:$4 sm:$0xff]  }
  0xd4   :  { %2677 = vmatpush2.bf16.msra.mxu1 %v9026_v0  ;;  %2870 = vmatpush2.bf16.msra.mxu0 %v9029_v1  ;;  %v9160_v0 = vld [vmem:[#allocation5 + $0x27c] ss:$24 sps:$4 sm:$0xff]  }
  0xd5   :  { %3032 = vmatprep.subr.bf16.mxu1 %v9040_v3  ;;  %3225 = vmatprep.subr.bf16.mxu0 %v9043_v4  ;;  %v9163_v1 = vld [vmem:[#allocation5 + $0x57c] ss:$24 sps:$4 sm:$0xff]   ;;  %v9158_v4 = vld [vmem:[#allocation5 + $0x278] ss:$24 sps:$4 sm:$0xff]  }
  0xd6   :  { %v9106_v3 = vld [vmem:[#allocation2 + $0x134] ss:$24 sps:$4 sm:$0xff]  }
  0xd7   :  { %2679 = vmatmul.mubr.bf16.vlgmr.msra.gmra.mxu1 %v9032_v2  ;;  %2872 = vmatmul.mubr.bf16.vlgmr.msra.gmra.mxu0 %v9035_v5  ;;  %v9104_v2 = vld [vmem:[#allocation2 + $0x12c] ss:$24 sps:$4 sm:$0xff]   ;;  %v9161_v5 = vld [vmem:[#allocation5 + $0x578] ss:$24 sps:$4 sm:$0xff]  }
  0xd8   :  { %3033 = vmatpush1.bf16.msra.mxu1 %v9038_v6  ;;  %3226 = vmatpush1.bf16.msra.mxu0 %v9041_v7  ;;  %v9172_v6 = vld [vmem:[#allocation5 + $0x24c] ss:$24 sps:$4 sm:$0xff]  }
  0xd9   :  { %2688 = vmatprep.mubr.bf16.mxu1 %v9044_v8  ;;  %2881 = vmatprep.mubr.bf16.mxu0 %v9046_v9  ;;  %v9175_v7 = vld [vmem:[#allocation5 + $0x54c] ss:$24 sps:$4 sm:$0xff]   ;;  %v9170_v8 = vld [vmem:[#allocation5 + $0x248] ss:$24 sps:$4 sm:$0xff]  }
  0xda   :  { %3034 = vmatprep.subr.bf16.mxu1 %v9052_v10  ;;  %3227 = vmatprep.subr.bf16.mxu0 %v9055_v11  ;;  %v9108_v9 = vld [vmem:[#allocation2 + $0x128] ss:$24 sps:$4 sm:$0xff]  }
  0xdb   :  { %v9109_v10 = vld [vmem:[#allocation2 + $0x130] ss:$24 sps:$4 sm:$0xff]  }
  0xdc   :  { %3035 = vmatpush1.bf16.msra.mxu1 %v9050_v12  ;;  %3228 = vmatpush1.bf16.msra.mxu0 %v9053_v13  ;;  %v9173_v11 = vld [vmem:[#allocation5 + $0x548] ss:$24 sps:$4 sm:$0xff]   ;;  %v9184_v12 = vld [vmem:[#allocation5 + $0x21c] ss:$24 sps:$4 sm:$0xff]  }
  0xdd   :  { %3036 = vmatprep.subr.bf16.mxu1 %v9064_v14  ;;  %3229 = vmatprep.subr.bf16.mxu0 %v9067_v16  ;;  %v9187_v13 = vld [vmem:[#allocation5 + $0x51c] ss:$24 sps:$4 sm:$0xff]   ;;  %v9182_v16 = vld [vmem:[#allocation5 + $0x218] ss:$24 sps:$4 sm:$0xff]  }
  0xde   :  { %v9116_v14 = vld [vmem:[#allocation2 + $0x15c] ss:$24 sps:$4 sm:$0xff]  }
  0xdf   :  { %2689 = vmatmul.mubr.bf16.gmra.mxu1 %v9048_v15  ;;  %2882 = vmatmul.mubr.bf16.gmra.mxu0 %v9049_v17  ;;  %v9118_v15 = vld [vmem:[#allocation2 + $0x164] ss:$24 sps:$4 sm:$0xff]   ;;  %v9185_v17 = vld [vmem:[#allocation5 + $0x518] ss:$24 sps:$4 sm:$0xff]  }
  0xe0   :  { %2698 = vmatprep.mubr.bf16.mxu1 %v9056_v18  ;;  %2891 = vmatprep.mubr.bf16.mxu0 %v9058_v19  ;;  %v9196_v18 = vld [vmem:[#allocation5 + $0x1ec] ss:$24 sps:$4 sm:$0xff]  }
  0xe1   :  { %3037 = vmatpush1.bf16.msra.mxu1 %v9062_v20  ;;  %3230 = vmatpush1.bf16.msra.mxu0 %v9065_v21  ;;  %v9199_v19 = vld [vmem:[#allocation5 + $0x4ec] ss:$24 sps:$4 sm:$0xff]   ;;  %v9194_v20 = vld [vmem:[#allocation5 + $0x1e8] ss:$24 sps:$4 sm:$0xff]   ;;  %v9120_v21 = vld [vmem:[#allocation2 + $0x158] ss:$24 sps:$4 sm:$0xff]  }
  0xe2   :  { %3038 = vmatprep.subr.bf16.mxu1 %v9076_v22  ;;  %3231 = vmatprep.subr.bf16.mxu0 %v9079_v23  ;;  %v9121_v22 = vld [vmem:[#allocation2 + $0x160] ss:$24 sps:$4 sm:$0xff]  }
  0xe3   :  { %v9197_v23 = vld [vmem:[#allocation5 + $0x4e8] ss:$24 sps:$4 sm:$0xff]  }
  0xe5   :  { %3039 = vmatpush1.bf16.msra.mxu1 %v9074_v24  ;;  %3232 = vmatpush1.bf16.msra.mxu0 %v9077_v27  ;;  %v9208_v24 = vld [vmem:[#allocation5 + $0x1bc] ss:$24 sps:$4 sm:$0xff]  }
  0xe6   :  { %3040 = vmatprep.subr.bf16.mxu1 %v9088_v28  ;;  %3233 = vmatprep.subr.bf16.mxu0 %v9091_v29  ;;  %v9130_v27 = vld [vmem:[#allocation2 + $0x194] ss:$24 sps:$4 sm:$0xff]   ;;  %v9206_v28 = vld [vmem:[#allocation5 + $0x1b8] ss:$24 sps:$4 sm:$0xff]  }
  0xe7   :  { %2699 = vmatmul.mubr.bf16.gmra.mxu1 %v9060_v25  ;;  %2892 = vmatmul.mubr.bf16.gmra.mxu0 %v9061_v26  ;;  %v9211_v25 = vld [vmem:[#allocation5 + $0x4bc] ss:$24 sps:$4 sm:$0xff]   ;;  %v9128_v26 = vld [vmem:[#allocation2 + $0x18c] ss:$24 sps:$4 sm:$0xff]   ;;  %v9209_v29 = vld [vmem:[#allocation5 + $0x4b8] ss:$24 sps:$4 sm:$0xff]  }
  0xe8   :  { %2708 = vmatprep.mubr.bf16.mxu1 %v9068_v30  ;;  %2901 = vmatprep.mubr.bf16.mxu0 %v9070_v31  ;;  %v9220_v30 = vld [vmem:[#allocation5 + $0x18c] ss:$24 sps:$4 sm:$0xff]  }
  0xe9   :  { %3041 = vmatpush1.bf16.msra.mxu1 %v9086_v32  ;;  %3234 = vmatpush1.bf16.msra.mxu0 %v9089_v33  ;;  %v9223_v31 = vld [vmem:[#allocation5 + $0x48c] ss:$24 sps:$4 sm:$0xff]   ;;  %v9218_v32 = vld [vmem:[#allocation5 + $0x188] ss:$24 sps:$4 sm:$0xff]  }
  0xea   :  { %3042 = vmatprep.subr.bf16.mxu1 %v9100_v34  ;;  %3235 = vmatprep.subr.bf16.mxu0 %v9103_v35  ;;  %v9132_v33 = vld [vmem:[#allocation2 + $0x188] ss:$24 sps:$4 sm:$0xff]   ;;  %v9226_v35 = vld [vmem:[#allocation5 + $0x75c] ss:$24 sps:$4 sm:$0xff]  }
  0xeb   :  { %v9221_v34 = vld [vmem:[#allocation5 + $0x488] ss:$24 sps:$4 sm:$0xff]  }
  0xed   :  { %3043 = vmatpush1.bf16.msra.mxu1 %v9098_v36  ;;  %3236 = vmatpush1.bf16.msra.mxu0 %v9101_v37  ;;  %v9229_v36 = vld [vmem:[#allocation5 + $0x164] ss:$24 sps:$4 sm:$0xff]   ;;  %v9133_v37 = vld [vmem:[#allocation2 + $0x190] ss:$24 sps:$4 sm:$0xff]  }
  0xee   :  { %3044 = vmatprep.subr.bf16.mxu1 %v9112_v40  ;;  %3237 = vmatprep.subr.bf16.mxu0 %v9115_v41  ;;  %v9144_v40 = vld [vmem:[#allocation2 + $0x1b8] ss:$24 sps:$4 sm:$0xff]  }
  0xef   :  { %2709 = vmatmul.mubr.bf16.gmra.mxu1 %v9072_v38  ;;  %2902 = vmatmul.mubr.bf16.gmra.mxu0 %v9073_v39  ;;  %v9140_v38 = vld [vmem:[#allocation2 + $0x1bc] ss:$24 sps:$4 sm:$0xff]   ;;  %v9145_v41 = vld [vmem:[#allocation2 + $0x1c0] ss:$24 sps:$4 sm:$0xff]  }
  0xf0   :  { %2718 = vmatprep.mubr.bf16.mxu1 %v9080_v42  ;;  %2911 = vmatprep.mubr.bf16.mxu0 %v9082_v43  ;;  %v9142_v39 = vld [vmem:[#allocation2 + $0x1c4] ss:$24 sps:$4 sm:$0xff]   ;;  %v9154_v43 = vld [vmem:[#allocation2 + $0x1f4] ss:$24 sps:$4 sm:$0xff]  }
  0xf1   :  { %3045 = vmatpush1.bf16.msra.mxu1 %v9110_v44  ;;  %3238 = vmatpush1.bf16.msra.mxu0 %v9113_v45  ;;  %v9152_v42 = vld [vmem:[#allocation2 + $0x1ec] ss:$24 sps:$4 sm:$0xff]   ;;  %v9156_v44 = vld [vmem:[#allocation2 + $0x1e8] ss:$24 sps:$4 sm:$0xff]  }
  0xf2   :  { %3046 = vmatprep.subr.bf16.mxu1 %v9124_v46  ;;  %3239 = vmatprep.subr.bf16.mxu0 %v9127_v47  ;;  %v9157_v45 = vld [vmem:[#allocation2 + $0x1f0] ss:$24 sps:$4 sm:$0xff]   ;;  %v9164_v46 = vld [vmem:[#allocation2 + $0x21c] ss:$24 sps:$4 sm:$0xff]  }
  0xf3   :  { %v9166_v47 = vld [vmem:[#allocation2 + $0x224] ss:$24 sps:$4 sm:$0xff]  }
  0xf5   :  { %3047 = vmatpush1.bf16.msra.mxu1 %v9122_v48  ;;  %3240 = vmatpush1.bf16.msra.mxu0 %v9125_v51  ;;  %v9168_v48 = vld [vmem:[#allocation2 + $0x218] ss:$24 sps:$4 sm:$0xff]   ;;  %v9178_v51 = vld [vmem:[#allocation2 + $0x254] ss:$24 sps:$4 sm:$0xff]  }
  0xf6   :  { %3048 = vmatprep.subr.bf16.mxu1 %v9136_v52  ;;  %3241 = vmatprep.subr.bf16.mxu0 %v9139_v53  ;;  %v9180_v52 = vld [vmem:[#allocation2 + $0x248] ss:$24 sps:$4 sm:$0xff]  }
  0xf7   :  { %2719 = vmatmul.mubr.bf16.gmra.mxu1 %v9084_v49  ;;  %2912 = vmatmul.mubr.bf16.gmra.mxu0 %v9085_v50  ;;  %v9169_v49 = vld [vmem:[#allocation2 + $0x220] ss:$24 sps:$4 sm:$0xff]   ;;  %v9176_v50 = vld [vmem:[#allocation2 + $0x24c] ss:$24 sps:$4 sm:$0xff]   ;;  %v9181_v53 = vld [vmem:[#allocation2 + $0x250] ss:$24 sps:$4 sm:$0xff]  }
  0xf8   :  { %2728 = vmatprep.mubr.bf16.mxu1 %v9092_v54  ;;  %2921 = vmatprep.mubr.bf16.mxu0 %v9094_v55  ;;  %v9188_v54 = vld [vmem:[#allocation2 + $0x27c] ss:$24 sps:$4 sm:$0xff]  }
  0xf9   :  { %3049 = vmatpush2.bf16.msra.mxu1 %v9134_v56  ;;  %3242 = vmatpush2.bf16.msra.mxu0 %v9137_v57  ;;  %v9190_v55 = vld [vmem:[#allocation2 + $0x284] ss:$24 sps:$4 sm:$0xff]   ;;  %v9192_v56 = vld [vmem:[#allocation2 + $0x278] ss:$24 sps:$4 sm:$0xff]  }
  0xfa   :  { %3050 = vmatprep.subr.bf16.mxu1 %v9148_v58  ;;  %3243 = vmatprep.subr.bf16.mxu0 %v9151_v59  ;;  %v9193_v57 = vld [vmem:[#allocation2 + $0x280] ss:$24 sps:$4 sm:$0xff]   ;;  %v9200_v58 = vld [vmem:[#allocation2 + $0x2ac] ss:$24 sps:$4 sm:$0xff]  }
  0xfb   :  { %v9202_v59 = vld [vmem:[#allocation2 + $0x2b4] ss:$24 sps:$4 sm:$0xff]  }
  0xfd   :  { %3051 = vmatpush2.bf16.msra.mxu1 %v9146_v60  ;;  %3244 = vmatpush2.bf16.msra.mxu0 %v9149_v61  ;;  %v9204_v60 = vld [vmem:[#allocation2 + $0x2a8] ss:$24 sps:$4 sm:$0xff]  }
  0xfe   :  { %3052 = vmatprep.subr.bf16.mxu1 %v9160_v0  ;;  %3245 = vmatprep.subr.bf16.mxu0 %v9163_v1  ;;  %v9205_v61 = vld [vmem:[#allocation2 + $0x2b0] ss:$24 sps:$4 sm:$0xff]   ;;  %v503_v0 = vlaneseq }
  0xff   :  { %2729 = vmatmul.mubr.bf16.gmra.mxu1 %v9096_v62  ;;  %2922 = vmatmul.mubr.bf16.gmra.mxu0 %v9097_v63  ;;  %v9212_v62 = vld [vmem:[#allocation2 + $0x2dc] ss:$24 sps:$4 sm:$0xff]   ;;  %v9216_v1 = vld [vmem:[#allocation2 + $0x2d8] ss:$24 sps:$4 sm:$0xff]  }
 0x100   :  { %2738 = vmatprep.mubr.bf16.mxu1 %v9104_v2  ;;  %2931 = vmatprep.mubr.bf16.mxu0 %v9106_v3  ;;  %v9214_v63 = vld [vmem:[#allocation2 + $0x2e4] ss:$24 sps:$4 sm:$0xff]   ;;  %v9217_v2 = vld [vmem:[#allocation2 + $0x2e0] ss:$24 sps:$4 sm:$0xff]   ;;  %v10673_v3 = vshrl.u32 %v503_v0, 7 }
 0x101   :  { %3053 = vmatpush2.bf16.msra.mxu1 %v9158_v4  ;;  %3246 = vmatpush2.bf16.msra.mxu0 %v9161_v5  ;;  %v10248_v4 = vld [vmem:[#allocation2 + $0x4] ss:$24 sps:$4 sm:$0xff]  }
 0x102   :  { %3054 = vmatprep.subr.bf16.mxu1 %v9172_v6  ;;  %3247 = vmatprep.subr.bf16.mxu0 %v9175_v7  ;;  %13069 = vst [vmem:[#allocation20_spill] sm:$0xff] %v10673_v3  ;;  %v10249_v5 = vld [vmem:[#allocation2 + $0xc] ss:$24 sps:$4 sm:$0xff]   ;;  %v12982_v6 = vsub.s32 0, %v10673_v3 }
 0x103   :  { %v501_v7 = vld [vmem:[#allocation7] sm:$0x3f] }
 0x105   :  { %3055 = vmatpush2.bf16.msra.mxu1 %v9170_v8  ;;  %3248 = vmatpush2.bf16.msra.mxu0 %v9173_v11  ;;  %v9224_v8 = vld [vmem:[#allocation5 + $0x758] ss:$24 sps:$4 sm:$0xff]   ;;  %v10679_v11 = vrot.slane %v501_v7, %v12982_v6 }
 0x106   :  { %3056 = vmatprep.subr.bf16.mxu1 %v9184_v12  ;;  %3249 = vmatprep.subr.bf16.mxu0 %v9187_v13  ;;  %v9232_v12 = vld [vmem:[#allocation5 + $0x72c] ss:$24 sps:$4 sm:$0xff]   ;;  %v10274_v6 = vld [vmem:[#allocation2 + $0x120] ss:$24 sps:$4 sm:$0xff]  }
 0x107   :  { %2739 = vmatmul.mubr.bf16.gmra.mxu1 %v9108_v9  ;;  %2932 = vmatmul.mubr.bf16.gmra.mxu0 %v9109_v10  ;;  %v12981_v9 = vsub.s32 1, %v10673_v3  ;;  %v9227_v10 = vld [vmem:[#allocation5 + $0x160] ss:$24 sps:$4 sm:$0xff]   ;;  %v9235_v13 = vld [vmem:[#allocation5 + $0x134] ss:$24 sps:$4 sm:$0xff]  }
 0x108   :  { %2748 = vmatprep.mubr.bf16.mxu1 %v9116_v14  ;;  %2941 = vmatprep.mubr.bf16.mxu0 %v9118_v15  ;;  %v9230_v15 = vld [vmem:[#allocation5 + $0x728] ss:$24 sps:$4 sm:$0xff]  }
 0x109   :  { %3057 = vmatpush2.bf16.msra.mxu1 %v9182_v16  ;;  %3250 = vmatpush2.bf16.msra.mxu0 %v9185_v17  ;;  %v10683_v14 = vrot.slane %v501_v7, %v12981_v9  ;;  %v9233_v16 = vld [vmem:[#allocation5 + $0x130] ss:$24 sps:$4 sm:$0xff]  }
 0x10a   :  { %3058 = vmatprep.subr.bf16.mxu1 %v9196_v18  ;;  %3251 = vmatprep.subr.bf16.mxu0 %v9199_v19  ;;  %v10250_v19 = vld [vmem:[#allocation2] ss:$24 sps:$4 sm:$0xff]  }
 0x10b   :  { %v9302_v3 = vld [vmem:[#allocation5 + $0x7e8] ss:$24 sps:$4 sm:$0xff]  }
 0x10d   :  { %3059 = vmatpush2.bf16.msra.mxu1 %v9194_v20  ;;  %3252 = vmatpush2.bf16.msra.mxu0 %v9197_v23  ;;  %v10251_v20 = vld [vmem:[#allocation2 + $0x8] ss:$24 sps:$4 sm:$0xff]  }
 0x10e   :  { %3060 = vmatprep.subr.bf16.mxu1 %v9208_v24  ;;  %3253 = vmatprep.subr.bf16.mxu0 %v9211_v25 }
 0x10f   :  { %2749 = vmatmul.mubr.bf16.gmra.mxu1 %v9120_v21  ;;  %2942 = vmatmul.mubr.bf16.gmra.mxu0 %v9121_v22  ;;  %v9238_v21 = vld [vmem:[#allocation5 + $0x6fc] ss:$24 sps:$4 sm:$0xff]  }
 0x110   :  { %2758 = vmatprep.mubr.bf16.mxu1 %v9128_v26  ;;  %2951 = vmatprep.mubr.bf16.mxu0 %v9130_v27  ;;  %v9241_v22 = vld [vmem:[#allocation5 + $0x104] ss:$24 sps:$4 sm:$0xff]   ;;  %v10252_v26 = vld [vmem:[#allocation2 + $0x34] ss:$24 sps:$4 sm:$0xff]  }
 0x111   :  { %3061 = vmatpush2.bf16.msra.mxu1 %v9206_v28  ;;  %3254 = vmatpush2.bf16.msra.mxu0 %v9209_v29  ;;  %v10253_v27 = vld [vmem:[#allocation2 + $0x3c] ss:$24 sps:$4 sm:$0xff]  }
 0x112   :  { %3062 = vmatprep.subr.bf16.mxu1 %v9220_v30  ;;  %3255 = vmatprep.subr.bf16.mxu0 %v9223_v31 }
 0x115   :  { %3063 = vmatpush2.bf16.msra.mxu1 %v9218_v32  ;;  %3256 = vmatpush2.bf16.msra.mxu0 %v9221_v34  ;;  %v9236_v32 = vld [vmem:[#allocation5 + $0x6f8] ss:$24 sps:$4 sm:$0xff]  }
 0x116   :  { %3418 = vmatprep.subr.bf16.mxu1 %v9226_v35  ;;  %3611 = vmatprep.subr.bf16.mxu0 %v9229_v36 }
 0x117   :  { %2759 = vmatmul.mubr.bf16.gmra.mxu1 %v9132_v33  ;;  %2952 = vmatmul.mubr.bf16.gmra.mxu0 %v9133_v37  ;;  %v9239_v33 = vld [vmem:[#allocation5 + $0x100] ss:$24 sps:$4 sm:$0xff]   ;;  %v9244_v37 = vld [vmem:[#allocation5 + $0x6cc] ss:$24 sps:$4 sm:$0xff]  }
 0x118   :  { %2768 = vmatprep.mubr.bf16.mxu1 %v9140_v38  ;;  %2961 = vmatprep.mubr.bf16.mxu0 %v9142_v39  ;;  %v9247_v38 = vld [vmem:[#allocation5 + $0xd4] ss:$24 sps:$4 sm:$0xff]  }
 0x11f   :  { %2769 = vmatmul.mubr.bf16.gmra.mxu1 %v9144_v40  ;;  %2962 = vmatmul.mubr.bf16.gmra.mxu0 %v9145_v41  ;;  %v10254_v41 = vld [vmem:[#allocation2 + $0x30] ss:$24 sps:$4 sm:$0xff]  }
 0x120   :  { %2778 = vmatprep.mubr.bf16.mxu1 %v9152_v42  ;;  %2971 = vmatprep.mubr.bf16.mxu0 %v9154_v43  ;;  %v10255_v42 = vld [vmem:[#allocation2 + $0x38] ss:$24 sps:$4 sm:$0xff]   ;;  %v9242_v43 = vld [vmem:[#allocation5 + $0x6c8] ss:$24 sps:$4 sm:$0xff]  }
 0x127   :  { %2779 = vmatmul.mubr.bf16.gmra.mxu1 %v9156_v44  ;;  %2972 = vmatmul.mubr.bf16.gmra.mxu0 %v9157_v45  ;;  %v9245_v44 = vld [vmem:[#allocation5 + $0xd0] ss:$24 sps:$4 sm:$0xff]  }
 0x128   :  { %2788 = vmatprep.mubr.bf16.mxu1 %v9164_v46  ;;  %2981 = vmatprep.mubr.bf16.mxu0 %v9166_v47  ;;  %v10256_v46 = vld [vmem:[#allocation2 + $0x64] ss:$24 sps:$4 sm:$0xff]  }
 0x129   :  { %v10257_v47 = vld [vmem:[#allocation2 + $0x6c] ss:$24 sps:$4 sm:$0xff]  }
 0x12f   :  { %2789 = vmatmul.mubr.bf16.gmra.mxu1 %v9168_v48  ;;  %2982 = vmatmul.mubr.bf16.gmra.mxu0 %v9169_v49  ;;  %v9250_v48 = vld [vmem:[#allocation5 + $0x69c] ss:$24 sps:$4 sm:$0xff]  }
 0x130   :  { %2798 = vmatprep.mubr.bf16.mxu1 %v9176_v50  ;;  %2991 = vmatprep.mubr.bf16.mxu0 %v9178_v51  ;;  %v9253_v49 = vld [vmem:[#allocation5 + $0xa4] ss:$24 sps:$4 sm:$0xff]  }
 0x137   :  { %2799 = vmatmul.mubr.bf16.gmra.mxu1 %v9180_v52  ;;  %2992 = vmatmul.mubr.bf16.gmra.mxu0 %v9181_v53 }
 0x138   :  { %2808 = vmatprep.mubr.bf16.mxu1 %v9188_v54  ;;  %3001 = vmatprep.mubr.bf16.mxu0 %v9190_v55 }
 0x13f   :  { %2809 = vmatmul.mubr.bf16.gmra.mxu1 %v9192_v56  ;;  %3002 = vmatmul.mubr.bf16.gmra.mxu0 %v9193_v57  ;;  %v9248_v56 = vld [vmem:[#allocation5 + $0x698] ss:$24 sps:$4 sm:$0xff]  }
 0x140   :  { %2818 = vmatprep.mubr.bf16.mxu1 %v9200_v58  ;;  %3011 = vmatprep.mubr.bf16.mxu0 %v9202_v59  ;;  %v9251_v57 = vld [vmem:[#allocation5 + $0xa0] ss:$24 sps:$4 sm:$0xff]  }
 0x147   :  { %2819 = vmatmul.mubr.bf16.gmra.mxu1 %v9204_v60  ;;  %3012 = vmatmul.mubr.bf16.gmra.mxu0 %v9205_v61  ;;  %v9256_v61 = vld [vmem:[#allocation5 + $0x66c] ss:$24 sps:$4 sm:$0xff]  }
 0x148   :  { %2828 = vmatprep.mubr.bf16.mxu1 %v9212_v62  ;;  %3021 = vmatprep.mubr.bf16.mxu0 %v9214_v63  ;;  %v9259_v62 = vld [vmem:[#allocation5 + $0x74] ss:$24 sps:$4 sm:$0xff]  }
 0x14f   :  { %2829 = vmatmul.mubr.bf16.gmra.mxu1 %v9216_v1  ;;  %3022 = vmatmul.mubr.bf16.gmra.mxu0 %v9217_v2  ;;  %v10258_v1 = vld [vmem:[#allocation2 + $0x60] ss:$24 sps:$4 sm:$0xff]  }
 0x150   :  { %3064 = vmatprep.mubr.bf16.mxu1 %v10248_v4  ;;  %3257 = vmatprep.mubr.bf16.mxu0 %v10249_v5  ;;  %v10259_v2 = vld [vmem:[#allocation2 + $0x68] ss:$24 sps:$4 sm:$0xff]  }
 0x151   :  { %v9254_v4 = vld [vmem:[#allocation5 + $0x668] ss:$24 sps:$4 sm:$0xff]  }
 0x152   :  { %v9257_v5 = vld [vmem:[#allocation5 + $0x70] ss:$24 sps:$4 sm:$0xff]  }
 0x157   :  { %v10685_v17 = vpop.f32.mrf.mxu0  ;;  %v2567_v18 = vpop.f32.mrf.mxu1  ;;  %3065 = vmatmul.mubr.bf16.vlgmr.msra.gmra.mxu1 %v10250_v19  ;;  %3258 = vmatmul.mubr.bf16.vlgmr.msra.gmra.mxu0 %v10251_v20 }
 0x158   :  { %v10688_v23 = vadd.f32 %v2567_v18, %v10679_v11  ;;  %3419 = vmatpush1.bf16.msra.mxu1 %v9224_v8  ;;  %3612 = vmatpush1.bf16.msra.mxu0 %v9227_v10  ;;  %v10260_v8 = vld [vmem:[#allocation2 + $0x94] ss:$24 sps:$4 sm:$0xff]  }
 0x159   :  { %v10690_v24 = vpop.f32.mrf.mxu0  ;;  %v2569_v25 = vpop.f32.mrf.mxu1  ;;  %3074 = vmatprep.mubr.bf16.mxu1 %v10252_v26  ;;  %3267 = vmatprep.mubr.bf16.mxu0 %v10253_v27  ;;  %v10261_v10 = vld [vmem:[#allocation2 + $0x9c] ss:$24 sps:$4 sm:$0xff]  }
 0x15a   :  { %v10693_v28 = vadd.f32 %v2569_v25, %v10683_v14  ;;  %3420 = vmatprep.subr.bf16.mxu1 %v9232_v12  ;;  %3613 = vmatprep.subr.bf16.mxu0 %v9235_v13  ;;  %v9262_v12 = vld [vmem:[#allocation5 + $0x63c] ss:$24 sps:$4 sm:$0xff]   ;;  %v9263_v25 = vld [vmem:[#allocation5 + $0x40] ss:$24 sps:$4 sm:$0xff]  }
 0x15b   :  { %v10695_v29 = vpop.f32.mrf.mxu0  ;;  %v2571_v30 = vpop.f32.mrf.mxu1  ;;  %v9265_v13 = vld [vmem:[#allocation5 + $0x44] ss:$24 sps:$4 sm:$0xff]  }
 0x15c   :  { %v10698_v31 = vadd.f32 %v2571_v30, %v10679_v11  ;;  %3421 = vmatpush1.bf16.msra.mxu1 %v9230_v15  ;;  %3614 = vmatpush1.bf16.msra.mxu0 %v9233_v16 }
 0x15d   :  { %v10700_v34 = vpop.f32.mrf.mxu0  ;;  %v2573_v35 = vpop.f32.mrf.mxu1  ;;  %3422 = vmatprep.subr.bf16.mxu1 %v9238_v21  ;;  %3615 = vmatprep.subr.bf16.mxu0 %v9241_v22  ;;  %v9260_v22 = vld [vmem:[#allocation5 + $0x638] ss:$24 sps:$4 sm:$0xff]  }
 0x15e   :  { %v10703_v36 = vadd.f32 %v2573_v35, %v10683_v14 }
 0x15f   :  { %v10705_v39 = vpop.f32.mrf.mxu0  ;;  %v2577_v40 = vpop.f32.mrf.mxu1  ;;  %3075 = vmatmul.mubr.bf16.gmra.mxu1 %v10254_v41  ;;  %3268 = vmatmul.mubr.bf16.gmra.mxu0 %v10255_v42  ;;  %v9266_v41 = vld [vmem:[#allocation5 + $0x608] ss:$24 sps:$4 sm:$0xff]  }
 0x160   :  { %v10708_v45 = vadd.f32 %v2577_v40, %v10679_v11  ;;  %3084 = vmatprep.mubr.bf16.mxu1 %v10256_v46  ;;  %3277 = vmatprep.mubr.bf16.mxu0 %v10257_v47  ;;  %v10263_v40 = vld [vmem:[#allocation2 + $0x98] ss:$24 sps:$4 sm:$0xff]   ;;  %v10265_v46 = vld [vmem:[#allocation2 + $0xcc] ss:$24 sps:$4 sm:$0xff]   ;;  %v9274_v47 = vld [vmem:[#allocation5 + $0x8dc] ss:$24 sps:$4 sm:$0xff]  }
 0x161   :  { %v10710_v50 = vpop.f32.mrf.mxu0  ;;  %v2579_v51 = vpop.f32.mrf.mxu1  ;;  %3423 = vmatpush1.bf16.msra.mxu1 %v9236_v32  ;;  %3616 = vmatpush1.bf16.msra.mxu0 %v9239_v33  ;;  %v9268_v32 = vld [vmem:[#allocation5 + $0x60c] ss:$24 sps:$4 sm:$0xff]   ;;  %v9269_v42 = vld [vmem:[#allocation5 + $0x10] ss:$24 sps:$4 sm:$0xff]  }
 0x162   :  { %v10713_v52 = vadd.f32 %v2579_v51, %v10683_v14  ;;  %3424 = vmatprep.subr.bf16.mxu1 %v9244_v37  ;;  %3617 = vmatprep.subr.bf16.mxu0 %v9247_v38  ;;  %v9271_v33 = vld [vmem:[#allocation5 + $0x14] ss:$24 sps:$4 sm:$0xff]   ;;  %v10262_v38 = vld [vmem:[#allocation2 + $0x90] ss:$24 sps:$4 sm:$0xff]  }
 0x163   :  { %v10715_v53 = vpop.f32.mrf.mxu0  ;;  %v2581_v54 = vpop.f32.mrf.mxu1 }
 0x164   :  { %v10718_v55 = vadd.f32 %v2581_v54, %v10679_v11 }
 0x165   :  { %v10720_v58 = vpop.f32.mrf.mxu0  ;;  %v2583_v59 = vpop.f32.mrf.mxu1  ;;  %3425 = vmatpush1.bf16.msra.mxu1 %v9242_v43  ;;  %3618 = vmatpush1.bf16.msra.mxu0 %v9245_v44  ;;  %v10264_v44 = vld [vmem:[#allocation2 + $0xc4] ss:$24 sps:$4 sm:$0xff]  }
 0x166   :  { %v10723_v60 = vadd.f32 %v2583_v59, %v10683_v14  ;;  %3426 = vmatprep.subr.bf16.mxu1 %v9250_v48  ;;  %3619 = vmatprep.subr.bf16.mxu0 %v9253_v49  ;;  %v9277_v48 = vld [vmem:[#allocation5 + $0x2e4] ss:$24 sps:$4 sm:$0xff]  }
 0x167   :  { %v10725_v63 = vpop.f32.mrf.mxu0  ;;  %v2587_v0 = vpop.f32.mrf.mxu1  ;;  %3085 = vmatmul.mubr.bf16.gmra.mxu1 %v10258_v1  ;;  %3278 = vmatmul.mubr.bf16.gmra.mxu0 %v10259_v2 }
 0x168   :  { %v10728_v7 = vadd.f32 %v2587_v0, %v10679_v11  ;;  %3094 = vmatprep.mubr.bf16.mxu1 %v10260_v8  ;;  %3287 = vmatprep.mubr.bf16.mxu0 %v10261_v10 }
 0x169   :  { %v10730_v15 = vpop.f32.mrf.mxu0  ;;  %v2589_v16 = vpop.f32.mrf.mxu1  ;;  %3427 = vmatpush1.bf16.msra.mxu1 %v9248_v56  ;;  %3620 = vmatpush1.bf16.msra.mxu0 %v9251_v57 }
 0x16a   :  { %v10733_v18 = vadd.f32 %v2589_v16, %v10683_v14  ;;  %3428 = vmatprep.subr.bf16.mxu1 %v9256_v61  ;;  %3621 = vmatprep.subr.bf16.mxu0 %v9259_v62  ;;  %v9272_v61 = vld [vmem:[#allocation5 + $0x8d8] ss:$24 sps:$4 sm:$0xff]   ;;  %v9278_v16 = vld [vmem:[#allocation5 + $0x8a8] ss:$24 sps:$4 sm:$0xff]  }
 0x16b   :  { %v10735_v19 = vpop.f32.mrf.mxu0  ;;  %v2591_v20 = vpop.f32.mrf.mxu1  ;;  %v9275_v62 = vld [vmem:[#allocation5 + $0x2e0] ss:$24 sps:$4 sm:$0xff]  }
 0x16c   :  { %v10738_v21 = vadd.f32 %v2591_v20, %v10679_v11  ;;  %v9281_v20 = vld [vmem:[#allocation5 + $0x2b0] ss:$24 sps:$4 sm:$0xff]  }
 0x16d   :  { %v10740_v26 = vpop.f32.mrf.mxu0  ;;  %v2593_v27 = vpop.f32.mrf.mxu1  ;;  %3429 = vmatpush1.bf16.msra.mxu1 %v9254_v4  ;;  %3622 = vmatpush1.bf16.msra.mxu0 %v9257_v5  ;;  %v9280_v4 = vld [vmem:[#allocation5 + $0x8ac] ss:$24 sps:$4 sm:$0xff]  }
 0x16e   :  { %v10743_v30 = vadd.f32 %v2593_v27, %v10683_v14  ;;  %3430 = vmatprep.subr.bf16.mxu1 %v9262_v12  ;;  %3623 = vmatprep.subr.bf16.mxu0 %v9265_v13  ;;  %v9283_v5 = vld [vmem:[#allocation5 + $0x2b4] ss:$24 sps:$4 sm:$0xff]   ;;  %v10266_v12 = vld [vmem:[#allocation2 + $0xc0] ss:$24 sps:$4 sm:$0xff]  }
 0x16f   :  { %v10745_v35 = vpop.f32.mrf.mxu0  ;;  %v2597_v37 = vpop.f32.mrf.mxu1  ;;  %3095 = vmatmul.mubr.bf16.gmra.mxu1 %v10262_v38  ;;  %3288 = vmatmul.mubr.bf16.gmra.mxu0 %v10263_v40  ;;  %v10267_v13 = vld [vmem:[#allocation2 + $0xc8] ss:$24 sps:$4 sm:$0xff]   ;;  %v10269_v27 = vld [vmem:[#allocation2 + $0xfc] ss:$24 sps:$4 sm:$0xff]  }
 0x170   :  { %v10748_v43 = vadd.f32 %v2597_v37, %v10679_v11  ;;  %3104 = vmatprep.mubr.bf16.mxu1 %v10264_v44  ;;  %3297 = vmatprep.mubr.bf16.mxu0 %v10265_v46  ;;  %v9284_v46 = vld [vmem:[#allocation5 + $0x878] ss:$24 sps:$4 sm:$0xff]  }
 0x171   :  { %v10750_v49 = vpop.f32.mrf.mxu0  ;;  %v2599_v51 = vpop.f32.mrf.mxu1  ;;  %3431 = vmatpush1.bf16.msra.mxu1 %v9260_v22  ;;  %3624 = vmatpush1.bf16.msra.mxu0 %v9263_v25  ;;  %v10268_v25 = vld [vmem:[#allocation2 + $0xf4] ss:$24 sps:$4 sm:$0xff]  }
 0x172   :  { %13070 = vst [vmem:[#allocation21_spill] sm:$0xff] %v10748_v43  ;;  %v10753_v54 = vadd.f32 %v2599_v51, %v10683_v14  ;;  %3432 = vmatprep.subr.bf16.mxu1 %v9268_v32  ;;  %3625 = vmatprep.subr.bf16.mxu0 %v9271_v33  ;;  %v9286_v32 = vld [vmem:[#allocation5 + $0x87c] ss:$24 sps:$4 sm:$0xff]  }
 0x173   :  { %v10755_v56 = vpop.f32.mrf.mxu0  ;;  %v2601_v57 = vpop.f32.mrf.mxu1  ;;  %v9289_v33 = vld [vmem:[#allocation5 + $0x284] ss:$24 sps:$4 sm:$0xff]  }
 0x174   :  { %13071 = vst [vmem:[#allocation22_spill] sm:$0xff] %v10753_v54  ;;  %v10758_v59 = vadd.f32 %v2601_v57, %v10679_v11 }
 0x175   :  { %v10760_v0 = vpop.f32.mrf.mxu0  ;;  %v2603_v1 = vpop.f32.mrf.mxu1  ;;  %3433 = vmatpush1.bf16.msra.mxu1 %v9266_v41  ;;  %3626 = vmatpush1.bf16.msra.mxu0 %v9269_v42 }
 0x176   :  { %13072 = vst [vmem:[#allocation23_spill] sm:$0xff] %v10758_v59  ;;  %v10763_v2 = vadd.f32 %v2603_v1, %v10683_v14  ;;  %3434 = vmatprep.subr.bf16.mxu1 %v9274_v47  ;;  %3627 = vmatprep.subr.bf16.mxu0 %v9277_v48  ;;  %v9287_v47 = vld [vmem:[#allocation5 + $0x280] ss:$24 sps:$4 sm:$0xff]  }
 0x177   :  { %v10765_v8 = vpop.f32.mrf.mxu0  ;;  %v2607_v10 = vpop.f32.mrf.mxu1  ;;  %3105 = vmatmul.mubr.bf16.gmra.mxu1 %v10266_v12  ;;  %3298 = vmatmul.mubr.bf16.gmra.mxu0 %v10267_v13  ;;  %v9290_v12 = vld [vmem:[#allocation5 + $0x848] ss:$24 sps:$4 sm:$0xff]  }
 0x178   :  { %13073 = vst [vmem:[#allocation24_spill] sm:$0xff] %v10763_v2  ;;  %v10768_v22 = vadd.f32 %v2607_v10, %v10679_v11  ;;  %3114 = vmatprep.mubr.bf16.mxu1 %v10268_v25  ;;  %3307 = vmatprep.mubr.bf16.mxu0 %v10269_v27  ;;  %v10271_v10 = vld [vmem:[#allocation2 + $0xf8] ss:$24 sps:$4 sm:$0xff]   ;;  %v9298_v27 = vld [vmem:[#allocation5 + $0x81c] ss:$24 sps:$4 sm:$0xff]  }
 0x179   :  { %v10770_v37 = vpop.f32.mrf.mxu0  ;;  %v2609_v38 = vpop.f32.mrf.mxu1  ;;  %3435 = vmatpush2.bf16.msra.mxu1 %v9272_v61  ;;  %3628 = vmatpush2.bf16.msra.mxu0 %v9275_v62  ;;  %v9292_v61 = vld [vmem:[#allocation5 + $0x84c] ss:$24 sps:$4 sm:$0xff]   ;;  %v9293_v13 = vld [vmem:[#allocation5 + $0x250] ss:$24 sps:$4 sm:$0xff]  }
 0x17a   :  { %13074 = vst [vmem:[#allocation25_spill] sm:$0xff] %v10768_v22  ;;  %v10773_v40 = vadd.f32 %v2609_v38, %v10683_v14  ;;  %3436 = vmatprep.subr.bf16.mxu1 %v9280_v4  ;;  %3629 = vmatprep.subr.bf16.mxu0 %v9283_v5  ;;  %v9295_v62 = vld [vmem:[#allocation5 + $0x254] ss:$24 sps:$4 sm:$0xff]   ;;  %v10270_v5 = vld [vmem:[#allocation2 + $0xf0] ss:$24 sps:$4 sm:$0xff]  }
 0x17b   :  { %v10775_v41 = vpop.f32.mrf.mxu0  ;;  %v2611_v42 = vpop.f32.mrf.mxu1 }
 0x17c   :  { %13075 = vst [vmem:[#allocation26_spill] sm:$0xff] %v10773_v40  ;;  %v10778_v44 = vadd.f32 %v2611_v42, %v10679_v11 }
 0x17d   :  { %v10780_v48 = vpop.f32.mrf.mxu0  ;;  %v2613_v51 = vpop.f32.mrf.mxu1  ;;  %3437 = vmatpush2.bf16.msra.mxu1 %v9278_v16  ;;  %3630 = vmatpush2.bf16.msra.mxu0 %v9281_v20  ;;  %v10272_v16 = vld [vmem:[#allocation2 + $0x124] ss:$24 sps:$4 sm:$0xff]  }
 0x17e   :  { %13076 = vst [vmem:[#allocation27_spill] sm:$0xff] %v10778_v44  ;;  %v10783_v57 = vadd.f32 %v2613_v51, %v10683_v14  ;;  %3438 = vmatprep.subr.bf16.mxu1 %v9286_v32  ;;  %3631 = vmatprep.subr.bf16.mxu0 %v9289_v33  ;;  %v10273_v20 = vld [vmem:[#allocation2 + $0x12c] ss:$24 sps:$4 sm:$0xff]   ;;  %v9317_v44 = vld [vmem:[#allocation5 + $0x190] ss:$24 sps:$4 sm:$0xff]  }
 0x17f   :  { %v10785_v1 = vpop.f32.mrf.mxu0  ;;  %v2617_v4 = vpop.f32.mrf.mxu1  ;;  %3115 = vmatmul.mubr.bf16.gmra.mxu1 %v10270_v5  ;;  %3308 = vmatmul.mubr.bf16.gmra.mxu0 %v10271_v10  ;;  %v9301_v32 = vld [vmem:[#allocation5 + $0x224] ss:$24 sps:$4 sm:$0xff]   ;;  %v9296_v10 = vld [vmem:[#allocation5 + $0x818] ss:$24 sps:$4 sm:$0xff]  }
 0x180   :  { %13077 = vst [vmem:[#allocation28_spill] sm:$0xff] %v10783_v57  ;;  %v10788_v25 = vadd.f32 %v2617_v4, %v10679_v11  ;;  %3124 = vmatprep.mubr.bf16.mxu1 %v10272_v16  ;;  %3317 = vmatprep.mubr.bf16.mxu0 %v10273_v20  ;;  %v9299_v16 = vld [vmem:[#allocation5 + $0x220] ss:$24 sps:$4 sm:$0xff]  }
 0x181   :  { %v10790_v33 = vpop.f32.mrf.mxu0  ;;  %v2619_v38 = vpop.f32.mrf.mxu1  ;;  %3439 = vmatpush2.bf16.msra.mxu1 %v9284_v46  ;;  %3632 = vmatpush2.bf16.msra.mxu0 %v9287_v47  ;;  %v9304_v47 = vld [vmem:[#allocation5 + $0x7ec] ss:$24 sps:$4 sm:$0xff]  }
 0x182   :  { %13078 = vst [vmem:[#allocation29_spill] sm:$0xff] %v10788_v25  ;;  %v10793_v42 = vadd.f32 %v2619_v38, %v10683_v14  ;;  %3440 = vmatprep.subr.bf16.mxu1 %v9292_v61  ;;  %3633 = vmatprep.subr.bf16.mxu0 %v9295_v62  ;;  %v9307_v61 = vld [vmem:[#allocation5 + $0x1f4] ss:$24 sps:$4 sm:$0xff]  }
 0x183   :  { %v10795_v51 = vpop.f32.mrf.mxu0  ;;  %v2621_v4 = vpop.f32.mrf.mxu1 }
 0x184   :  { %13079 = vst [vmem:[#allocation30_spill] sm:$0xff] %v10793_v42  ;;  %v10798_v5 = vadd.f32 %v2621_v4, %v10679_v11  ;;  %v10275_v4 = vld [vmem:[#allocation2 + $0x128] ss:$24 sps:$4 sm:$0xff]  }
 0x185   :  { %v10800_v20 = vpop.f32.mrf.mxu0  ;;  %v2623_v9 = vpop.f32.mrf.mxu1  ;;  %3441 = vmatpush2.bf16.msra.mxu1 %v9290_v12  ;;  %3634 = vmatpush2.bf16.msra.mxu0 %v9293_v13  ;;  %v10276_v12 = vld [vmem:[#allocation2 + $0x154] ss:$24 sps:$4 sm:$0xff]  }
 0x186   :  { %13080 = vst [vmem:[#allocation31_spill] sm:$0xff] %v10798_v5  ;;  %v10803_v46 = vadd.f32 %v2623_v9, %v10683_v14  ;;  %3442 = vmatprep.subr.bf16.mxu1 %v9298_v27  ;;  %3635 = vmatprep.subr.bf16.mxu0 %v9301_v32  ;;  %v9305_v5 = vld [vmem:[#allocation5 + $0x1f0] ss:$24 sps:$4 sm:$0xff]   ;;  %v10277_v9 = vld [vmem:[#allocation2 + $0x15c] ss:$24 sps:$4 sm:$0xff]  }
 0x187   :  { %v10805_v62 = vpop.f32.mrf.mxu0  ;;  %v2627_v38 = vpop.f32.mrf.mxu1  ;;  %3125 = vmatmul.mubr.bf16.gmra.mxu1 %v10274_v6  ;;  %3318 = vmatmul.mubr.bf16.gmra.mxu0 %v10275_v4  ;;  %v9310_v13 = vld [vmem:[#allocation5 + $0x7bc] ss:$24 sps:$4 sm:$0xff]  }
 0x188   :  { %13081 = vst [vmem:[#allocation32_spill] sm:$0xff] %v10803_v46  ;;  %v10808_v42 = vadd.f32 %v2627_v38, %v10679_v11  ;;  %3134 = vmatprep.mubr.bf16.mxu1 %v10276_v12  ;;  %3327 = vmatprep.mubr.bf16.mxu0 %v10277_v9  ;;  %v9313_v27 = vld [vmem:[#allocation5 + $0x1c4] ss:$24 sps:$4 sm:$0xff]   ;;  %v9308_v12 = vld [vmem:[#allocation5 + $0x7b8] ss:$24 sps:$4 sm:$0xff]  }
 0x189   :  { %v10810_v32 = vpop.f32.mrf.mxu0  ;;  %v2629_v46 = vpop.f32.mrf.mxu1  ;;  %3443 = vmatpush2.bf16.msra.mxu1 %v9296_v10  ;;  %3636 = vmatpush2.bf16.msra.mxu0 %v9299_v16  ;;  %v9311_v9 = vld [vmem:[#allocation5 + $0x1c0] ss:$24 sps:$4 sm:$0xff]   ;;  %v9316_v16 = vld [vmem:[#allocation5 + $0x78c] ss:$24 sps:$4 sm:$0xff]  }
 0x18a   :  { %13082 = vst [vmem:[#allocation33_spill] sm:$0xff] %v10808_v42  ;;  %v10813_v6 = vadd.f32 %v2629_v46, %v10683_v14  ;;  %3444 = vmatprep.subr.bf16.mxu1 %v9304_v47  ;;  %3637 = vmatprep.subr.bf16.mxu0 %v9307_v61  ;;  %v9319_v46 = vld [vmem:[#allocation5 + $0x194] ss:$24 sps:$4 sm:$0xff]  }
 0x18b   :  { %v10815_v4 = vpop.f32.mrf.mxu0  ;;  %v2631_v38 = vpop.f32.mrf.mxu1 }
 0x18c   :  { %13083 = vst [vmem:[#allocation34_spill] sm:$0xff] %v10813_v6  ;;  %v10818_v42 = vadd.f32 %v2631_v38, %v10679_v11  ;;  %v10278_v6 = vld [vmem:[#allocation2 + $0x150] ss:$24 sps:$4 sm:$0xff]  }
 0x18d   :  { %v10820_v25 = vpop.f32.mrf.mxu0  ;;  %v2633_v57 = vpop.f32.mrf.mxu1  ;;  %3445 = vmatpush2.bf16.msra.mxu1 %v9302_v3  ;;  %3638 = vmatpush2.bf16.msra.mxu0 %v9305_v5  ;;  %v10279_v38 = vld [vmem:[#allocation2 + $0x158] ss:$24 sps:$4 sm:$0xff]   ;;  %v10280_v3 = vld [vmem:[#allocation2 + $0x184] ss:$24 sps:$4 sm:$0xff]  }
 0x18e   :  { %13084 = vst [vmem:[#allocation35_spill] sm:$0xff] %v10818_v42  ;;  %v10823_v10 = vadd.f32 %v2633_v57, %v10683_v14  ;;  %3446 = vmatprep.subr.bf16.mxu1 %v9310_v13  ;;  %3639 = vmatprep.subr.bf16.mxu0 %v9313_v27  ;;  %v9314_v42 = vld [vmem:[#allocation5 + $0x788] ss:$24 sps:$4 sm:$0xff]   ;;  %v10281_v57 = vld [vmem:[#allocation2 + $0x18c] ss:$24 sps:$4 sm:$0xff]  }
 0x18f   :  { %v10825_v47 = vpop.f32.mrf.mxu0  ;;  %v2637_v61 = vpop.f32.mrf.mxu1  ;;  %3135 = vmatmul.mubr.bf16.gmra.mxu1 %v10278_v6  ;;  %3328 = vmatmul.mubr.bf16.gmra.mxu0 %v10279_v38  ;;  %v9322_v5 = vld [vmem:[#allocation5 + $0x464] ss:$24 sps:$4 sm:$0xff]  }
 0x190   :  { %13085 = vst [vmem:[#allocation36_spill] sm:$0xff] %v10823_v10  ;;  %v10828_v40 = vadd.f32 %v2637_v61, %v10679_v11  ;;  %3144 = vmatprep.mubr.bf16.mxu1 %v10280_v3  ;;  %3337 = vmatprep.mubr.bf16.mxu0 %v10281_v57  ;;  %v9325_v13 = vld [vmem:[#allocation5 + $0x764] ss:$24 sps:$4 sm:$0xff]  }
 0x191   :  { %v10830_v27 = vpop.f32.mrf.mxu0  ;;  %v2639_v10 = vpop.f32.mrf.mxu1  ;;  %3447 = vmatpush2.bf16.msra.mxu1 %v9308_v12  ;;  %3640 = vmatpush2.bf16.msra.mxu0 %v9311_v9  ;;  %v2488_v12 = vadd.f32 %v10685_v17, %v10679_v11 }
 0x192   :  { %13086 = vst [vmem:[#allocation37_spill] sm:$0xff] %v10828_v40  ;;  %v10833_v6 = vadd.f32 %v2639_v10, %v10683_v14  ;;  %3448 = vmatprep.subr.bf16.mxu1 %v9316_v16  ;;  %3641 = vmatprep.subr.bf16.mxu0 %v9319_v46  ;;  %v10282_v46 = vld [vmem:[#allocation2 + $0x180] ss:$24 sps:$4 sm:$0xff]  }
 0x193   :  { %v10835_v38 = vpop.f32.mrf.mxu0  ;;  %v2641_v61 = vpop.f32.mrf.mxu1 }
 0x194   :  { %13087 = vst [vmem:[#allocation38_spill] sm:$0xff] %v10833_v6  ;;  %v10838_v40 = vadd.f32 %v2641_v61, %v10679_v11  ;;  %v10283_v6 = vld [vmem:[#allocation2 + $0x188] ss:$24 sps:$4 sm:$0xff]   ;;  %v2490_v61 = vadd.f32 %v10690_v24, %v10683_v14 }
 0x195   :  { %v10840_v3 = vpop.f32.mrf.mxu0  ;;  %v2643_v57 = vpop.f32.mrf.mxu1  ;;  %3449 = vmatpush2.bf16.msra.mxu1 %v9314_v42  ;;  %3642 = vmatpush2.bf16.msra.mxu0 %v9317_v44  ;;  %v10284_v42 = vld [vmem:[#allocation2 + $0x1b4] ss:$24 sps:$4 sm:$0xff]  }
 0x196   :  { %13088 = vst [vmem:[#allocation39_spill] sm:$0xff] %v10838_v40  ;;  %v10845_v9 = vadd.f32 %v2643_v57, %v10683_v14  ;;  %3804 = vmatprep.subr.bf16.mxu1 %v9322_v5  ;;  %3997 = vmatprep.subr.bf16.mxu0 %v9325_v13  ;;  %v10285_v44 = vld [vmem:[#allocation2 + $0x1bc] ss:$24 sps:$4 sm:$0xff]   ;;  %v2492_v5 = vadd.f32 %v10695_v29, %v10679_v11  ;;  %v10286_v29 = vld [vmem:[#allocation2 + $0x1b0] ss:$24 sps:$4 sm:$0xff]  }
 0x197   :  { %v2680_v10 = vpop.f32.mrf.mxu1  ;;  %v2873_v16 = vpop.f32.mrf.mxu0  ;;  %3145 = vmatmul.mubr.bf16.gmra.mxu1 %v10282_v46  ;;  %3338 = vmatmul.mubr.bf16.gmra.mxu0 %v10283_v6  ;;  %v2494_v6 = vadd.f32 %v10700_v34, %v10683_v14 }
 0x198   :  { %13089 = vst [vmem:[#allocation40_spill] sm:$0xff] %v10845_v9  ;;  %v2681_v40 = vadd.f32 %v2680_v10, %v2488_v12  ;;  %3154 = vmatprep.mubr.bf16.mxu1 %v10284_v42  ;;  %3347 = vmatprep.mubr.bf16.mxu0 %v10285_v44  ;;  %v2498_v10 = vadd.f32 %v10705_v39, %v10679_v11 }
 0x199   :  { %v2682_v17 = vpop.f32.mrf.mxu1  ;;  %v2875_v22 = vpop.f32.mrf.mxu0 }
 0x19a   :  { %v2874_v13 = vadd.f32 %v2873_v16, %v2681_v40  ;;  %v2683_v57 = vadd.f32 %v2682_v17, %v2490_v61  ;;  %v10287_v40 = vld [vmem:[#allocation2 + $0x1b8] ss:$24 sps:$4 sm:$0xff]   ;;  %v2500_v16 = vadd.f32 %v10710_v50, %v10683_v14  ;;  %v10289_v61 = vld [vmem:[#allocation2 + $0x1ec] ss:$24 sps:$4 sm:$0xff]   ;;  %v2504_v50 = vadd.f32 %v10720_v58, %v10683_v14 }
 0x19b   :  { %v2684_v9 = vpop.f32.mrf.mxu1  ;;  %v2877_v2 = vpop.f32.mrf.mxu0 }
 0x19c   :  { %v2876_v46 = vadd.f32 %v2875_v22, %v2683_v57  ;;  %v2685_v59 = vadd.f32 %v2684_v9, %v2492_v5  ;;  %9736 = vtanh.f32 %v2874_v13  ;;  %v10288_v9 = vld [vmem:[#allocation2 + $0x1e4] ss:$24 sps:$4 sm:$0xff]  }
 0x19d   :  { %v2686_v24 = vpop.f32.mrf.mxu1  ;;  %v2879_v12 = vpop.f32.mrf.mxu0 }
 0x19e   :  { %v2878_v42 = vadd.f32 %v2877_v2, %v2685_v59  ;;  %v2687_v44 = vadd.f32 %v2686_v24, %v2494_v6  ;;  %v2502_v2 = vadd.f32 %v10715_v53, %v10679_v11 }
 0x19f   :  { %v2690_v54 = vpop.f32.mrf.mxu1  ;;  %v2883_v43 = vpop.f32.mrf.mxu0  ;;  %3155 = vmatmul.mubr.bf16.gmra.mxu1 %v10286_v29  ;;  %3348 = vmatmul.mubr.bf16.gmra.mxu0 %v10287_v40  ;;  %v10290_v29 = vld [vmem:[#allocation2 + $0x1e0] ss:$24 sps:$4 sm:$0xff]   ;;  %v2510_v40 = vadd.f32 %v10730_v15, %v10683_v14  ;;  %v2514_v15 = vadd.f32 %v10740_v26, %v10683_v14 }
 0x1a0   :  { %9738 = vtanh.f32 %v2878_v42  ;;  %v2880_v34 = vadd.f32 %v2879_v12, %v2687_v44  ;;  %v2691_v22 = vadd.f32 %v2690_v54, %v2498_v10  ;;  %3164 = vmatprep.mubr.bf16.mxu1 %v10288_v9  ;;  %3357 = vmatprep.mubr.bf16.mxu0 %v10289_v61  ;;  %v2512_v61 = vadd.f32 %v10735_v19, %v10679_v11 }
 0x1a1   :  { %9740 = vtanh.f32 %v2876_v46  ;;  %v2692_v39 = vpop.f32.mrf.mxu1  ;;  %v2885_v59 = vpop.f32.mrf.mxu0  ;;  %v2508_v46 = vadd.f32 %v10725_v63, %v10679_v11 }
 0x1a2   :  { %9742 = vtanh.f32 %v2880_v34  ;;  %v2884_v17 = vadd.f32 %v2883_v43, %v2691_v22  ;;  %v2693_v5 = vadd.f32 %v2692_v39, %v2500_v16  ;;  %v10291_v43 = vld [vmem:[#allocation2 + $0x1e8] ss:$24 sps:$4 sm:$0xff]   ;;  %v10292_v34 = vld [vmem:[#allocation2 + $0x214] ss:$24 sps:$4 sm:$0xff]  }
 0x1a3   :  { %v2694_v13 = vpop.f32.mrf.mxu1  ;;  %v2887_v57 = vpop.f32.mrf.mxu0  ;;  %v10293_v22 = vld [vmem:[#allocation2 + $0x21c] ss:$24 sps:$4 sm:$0xff]  }
 0x1a4   :  { %v2886_v6 = vadd.f32 %v2885_v59, %v2693_v5  ;;  %v2695_v54 = vadd.f32 %v2694_v13, %v2502_v2  ;;  %9744 = vtanh.f32 %v2884_v17 }
 0x1a5   :  { %v2696_v24 = vpop.f32.mrf.mxu1  ;;  %v2889_v12 = vpop.f32.mrf.mxu0 }
 0x1a6   :  { %v2888_v10 = vadd.f32 %v2887_v57, %v2695_v54  ;;  %v2697_v42 = vadd.f32 %v2696_v24, %v2504_v50 }
 0x1a7   :  { %v2700_v44 = vpop.f32.mrf.mxu1  ;;  %v2893_v53 = vpop.f32.mrf.mxu0  ;;  %3165 = vmatmul.mubr.bf16.gmra.mxu1 %v10290_v29  ;;  %3358 = vmatmul.mubr.bf16.gmra.mxu0 %v10291_v43  ;;  %v10294_v29 = vld [vmem:[#allocation2 + $0x210] ss:$24 sps:$4 sm:$0xff]  }
 0x1a8   :  { %9746 = vtanh.f32 %v2888_v10  ;;  %v2890_v58 = vadd.f32 %v2889_v12, %v2697_v42  ;;  %v2701_v16 = vadd.f32 %v2700_v44, %v2508_v46  ;;  %3174 = vmatprep.mubr.bf16.mxu1 %v10292_v34  ;;  %3367 = vmatprep.mubr.bf16.mxu0 %v10293_v22  ;;  %v2518_v12 = vadd.f32 %v10745_v35, %v10679_v11  ;;  %v10295_v43 = vld [vmem:[#allocation2 + $0x218] ss:$24 sps:$4 sm:$0xff]   ;;  %v10297_v35 = vld [vmem:[#allocation2 + $0x24c] ss:$24 sps:$4 sm:$0xff]  }
 0x1a9   :  { %9748 = vtanh.f32 %v2886_v6  ;;  %v2702_v63 = vpop.f32.mrf.mxu1  ;;  %v2895_v9 = vpop.f32.mrf.mxu0  ;;  %v2520_v44 = vadd.f32 %v10750_v49, %v10683_v14  ;;  %v2522_v49 = vadd.f32 %v10755_v56, %v10679_v11 }
 0x1aa   :  { %9750 = vtanh.f32 %v2890_v58  ;;  %v2894_v39 = vadd.f32 %v2893_v53, %v2701_v16  ;;  %v2703_v59 = vadd.f32 %v2702_v63, %v2510_v40  ;;  %v9737_v5 = vpop.eup %9736  ;;  %v10296_v16 = vld [vmem:[#allocation2 + $0x244] ss:$24 sps:$4 sm:$0xff]  }
 0x1ab   :  { %v2704_v2 = vpop.f32.mrf.mxu1  ;;  %v2897_v17 = vpop.f32.mrf.mxu0 }
 0x1ac   :  { %v2896_v13 = vadd.f32 %v2895_v9, %v2703_v59  ;;  %v2705_v57 = vadd.f32 %v2704_v2, %v2512_v61  ;;  %9752 = vtanh.f32 %v2894_v39 }
 0x1ad   :  { %v9739_v50 = vpop.eup %9738  ;;  %v2706_v54 = vpop.f32.mrf.mxu1 }
 0x1ae   :  { %v2899_v24 = vpop.f32.mrf.mxu0  ;;  %v9741_v6 = vpop.eup %9740  ;;  %v10871_v46 = vpack.c.bf16 %v9739_v50, %v9737_v5  ;;  %v2898_v19 = vadd.f32 %v2897_v17, %v2705_v57  ;;  %v2707_v10 = vadd.f32 %v2706_v54, %v2514_v15  ;;  %v2524_v17 = vadd.f32 %v10760_v0, %v10683_v14 }
 0x1af   :  { %v9743_v42 = vpop.eup %9742  ;;  %v2710_v53 = vpop.f32.mrf.mxu1  ;;  %3175 = vmatmul.mubr.bf16.gmra.mxu1 %v10294_v29  ;;  %3368 = vmatmul.mubr.bf16.gmra.mxu0 %v10295_v43  ;;  %v10300_v43 = vld [vmem:[#allocation2 + $0x274] ss:$24 sps:$4 sm:$0xff]  }
 0x1b0   :  { %13090 = vst [vmem:[#allocation41_spill] sm:$0xff] %v10871_v46  ;;  %v2903_v26 = vpop.f32.mrf.mxu0  ;;  %9754 = vtanh.f32 %v2898_v19  ;;  %v2900_v40 = vadd.f32 %v2899_v24, %v2707_v10  ;;  %v2711_v58 = vadd.f32 %v2710_v53, %v2518_v12  ;;  %3184 = vmatprep.mubr.bf16.mxu1 %v10296_v16  ;;  %3377 = vmatprep.mubr.bf16.mxu0 %v10297_v35  ;;  %v10299_v53 = vld [vmem:[#allocation2 + $0x248] ss:$24 sps:$4 sm:$0xff]  }
 0x1b1   :  { %v10875_v34 = vpack.c.bf16 %v9743_v42, %v9741_v6  ;;  %9756 = vtanh.f32 %v2896_v13  ;;  %v2712_v22 = vpop.f32.mrf.mxu1  ;;  %v9745_v2 = vpop.eup %9744  ;;  %v2528_v24 = vadd.f32 %v10765_v8, %v10679_v11  ;;  %v2530_v10 = vadd.f32 %v10770_v37, %v10683_v14  ;;  %v10301_v8 = vld [vmem:[#allocation2 + $0x27c] ss:$24 sps:$4 sm:$0xff]  }
 0x1b2   :  { %v2905_v63 = vpop.f32.mrf.mxu0  ;;  %9758 = vtanh.f32 %v2900_v40  ;;  %v2904_v9 = vadd.f32 %v2903_v26, %v2711_v58  ;;  %v2713_v61 = vadd.f32 %v2712_v22, %v2520_v44  ;;  %v10298_v44 = vld [vmem:[#allocation2 + $0x240] ss:$24 sps:$4 sm:$0xff]   ;;  %v2532_v37 = vadd.f32 %v10775_v41, %v10679_v11 }
 0x1b3   :  { %13091 = vst [vmem:[#allocation42_spill] sm:$0xff] %v10875_v34  ;;  %v2714_v39 = vpop.f32.mrf.mxu1 }
 0x1b4   :  { %v2907_v59 = vpop.f32.mrf.mxu0  ;;  %v2906_v5 = vadd.f32 %v2905_v63, %v2713_v61  ;;  %v2715_v15 = vadd.f32 %v2714_v39, %v2522_v49  ;;  %9760 = vtanh.f32 %v2904_v9  ;;  %v2534_v61 = vadd.f32 %v10780_v48, %v10683_v14 }
 0x1b5   :  { %v9747_v57 = vpop.eup %9746  ;;  %v2716_v50 = vpop.f32.mrf.mxu1 }
 0x1b6   :  { %v2909_v54 = vpop.f32.mrf.mxu0  ;;  %v9749_v13 = vpop.eup %9748  ;;  %v2908_v6 = vadd.f32 %v2907_v59, %v2715_v15  ;;  %v2717_v56 = vadd.f32 %v2716_v50, %v2524_v17  ;;  %v10883_v12 = vpack.c.bf16 %v9747_v57, %v9745_v2  ;;  %v2538_v57 = vadd.f32 %v10785_v1, %v10679_v11  ;;  %v10305_v1 = vld [vmem:[#allocation2 + $0x2ac] ss:$24 sps:$4 sm:$0xff]  }
 0x1b7   :  { %v9751_v19 = vpop.eup %9750  ;;  %v2720_v42 = vpop.f32.mrf.mxu1  ;;  %3185 = vmatmul.mubr.bf16.gmra.mxu1 %v10298_v44  ;;  %3378 = vmatmul.mubr.bf16.gmra.mxu0 %v10299_v53 }
 0x1b8   :  { %13092 = vst [vmem:[#allocation43_spill] sm:$0xff] %v10883_v12  ;;  %v2913_v0 = vpop.f32.mrf.mxu0  ;;  %9762 = vtanh.f32 %v2908_v6  ;;  %v2910_v26 = vadd.f32 %v2909_v54, %v2717_v56  ;;  %v2721_v29 = vadd.f32 %v2720_v42, %v2528_v24  ;;  %3194 = vmatprep.mubr.bf16.mxu1 %v10300_v43  ;;  %3387 = vmatprep.mubr.bf16.mxu0 %v10301_v8  ;;  %v10302_v56 = vld [vmem:[#allocation2 + $0x270] ss:$24 sps:$4 sm:$0xff]  }
 0x1b9   :  { %v10887_v40 = vpack.c.bf16 %v9751_v19, %v9749_v13  ;;  %9764 = vtanh.f32 %v2906_v5  ;;  %v2722_v58 = vpop.f32.mrf.mxu1  ;;  %v9753_v9 = vpop.eup %9752  ;;  %v2540_v24 = vadd.f32 %v10790_v33, %v10683_v14  ;;  %v10303_v19 = vld [vmem:[#allocation2 + $0x278] ss:$24 sps:$4 sm:$0xff]   ;;  %v2542_v33 = vadd.f32 %v10795_v51, %v10679_v11 }
 0x1ba   :  { %v2915_v16 = vpop.f32.mrf.mxu0  ;;  %9766 = vtanh.f32 %v2910_v26  ;;  %v2914_v35 = vadd.f32 %v2913_v0, %v2721_v29  ;;  %v2723_v22 = vadd.f32 %v2722_v58, %v2530_v10  ;;  %v10304_v0 = vld [vmem:[#allocation2 + $0x2a4] ss:$24 sps:$4 sm:$0xff]  }
 0x1bb   :  { %13093 = vst [vmem:[#allocation44_spill] sm:$0xff] %v10887_v40  ;;  %v2724_v63 = vpop.f32.mrf.mxu1 }
 0x1bc   :  { %v2917_v49 = vpop.f32.mrf.mxu0  ;;  %v2916_v39 = vadd.f32 %v2915_v16, %v2723_v22  ;;  %v2725_v59 = vadd.f32 %v2724_v63, %v2532_v37  ;;  %9768 = vtanh.f32 %v2914_v35  ;;  %v2544_v37 = vadd.f32 %v10800_v20, %v10683_v14 }
 0x1bd   :  { %v9755_v2 = vpop.eup %9754  ;;  %v2726_v17 = vpop.f32.mrf.mxu1 }
 0x1be   :  { %v2919_v15 = vpop.f32.mrf.mxu0  ;;  %v9757_v5 = vpop.eup %9756  ;;  %v2918_v50 = vadd.f32 %v2917_v49, %v2725_v59  ;;  %v2727_v41 = vadd.f32 %v2726_v17, %v2534_v61  ;;  %v10895_v54 = vpack.c.bf16 %v9755_v2, %v9753_v9 }
 0x1bf   :  { %v9759_v13 = vpop.eup %9758  ;;  %v2730_v6 = vpop.f32.mrf.mxu1  ;;  %3195 = vmatmul.mubr.bf16.gmra.mxu1 %v10302_v56  ;;  %3388 = vmatmul.mubr.bf16.gmra.mxu0 %v10303_v19 }
 0x1c0   :  { %13094 = vst [vmem:[#allocation45_spill] sm:$0xff] %v10895_v54  ;;  %v2923_v48 = vpop.f32.mrf.mxu0  ;;  %9770 = vtanh.f32 %v2918_v50  ;;  %v2920_v10 = vadd.f32 %v2919_v15, %v2727_v41  ;;  %v2731_v42 = vadd.f32 %v2730_v6, %v2538_v57  ;;  %3204 = vmatprep.mubr.bf16.mxu1 %v10304_v0  ;;  %3397 = vmatprep.mubr.bf16.mxu0 %v10305_v1  ;;  %v10306_v57 = vld [vmem:[#allocation2 + $0x2a0] ss:$24 sps:$4 sm:$0xff]   ;;  %v11145_v54 = vld [vmem:[#allocation2 + $0x2b0] ss:$24 sps:$4 sm:$0xff]  }
 0x1c1   :  { %v10899_v44 = vpack.c.bf16 %v9759_v13, %v9757_v5  ;;  %9772 = vtanh.f32 %v2916_v39  ;;  %v2732_v53 = vpop.f32.mrf.mxu1  ;;  %v9761_v16 = vpop.eup %9760  ;;  %v2548_v39 = vadd.f32 %v10805_v62, %v10679_v11  ;;  %v2550_v15 = vadd.f32 %v10810_v32, %v10683_v14  ;;  %v10307_v50 = vld [vmem:[#allocation2 + $0x2a8] ss:$24 sps:$4 sm:$0xff]   ;;  %v10309_v62 = vld [vmem:[#allocation2 + $0x2dc] ss:$24 sps:$4 sm:$0xff]  }
 0x1c2   :  { %v2925_v26 = vpop.f32.mrf.mxu0  ;;  %9774 = vtanh.f32 %v2920_v10  ;;  %v2924_v29 = vadd.f32 %v2923_v48, %v2731_v42  ;;  %v2733_v43 = vadd.f32 %v2732_v53, %v2540_v24  ;;  %v10308_v24 = vld [vmem:[#allocation2 + $0x2d4] ss:$24 sps:$4 sm:$0xff]   ;;  %v2552_v32 = vadd.f32 %v10815_v4, %v10679_v11 }
 0x1c3   :  { %13095 = vst [vmem:[#allocation46_spill] sm:$0xff] %v10899_v44  ;;  %v2734_v8 = vpop.f32.mrf.mxu1  ;;  %v2554_v53 = vadd.f32 %v10820_v25, %v10683_v14 }
 0x1c4   :  { %v2927_v58 = vpop.f32.mrf.mxu0  ;;  %v2926_v35 = vadd.f32 %v2925_v26, %v2733_v43  ;;  %v2735_v22 = vadd.f32 %v2734_v8, %v2542_v33  ;;  %9776 = vtanh.f32 %v2924_v29 }
 0x1c5   :  { %v9763_v63 = vpop.eup %9762  ;;  %v2736_v49 = vpop.f32.mrf.mxu1 }
 0x1c6   :  { %v2929_v9 = vpop.f32.mrf.mxu0  ;;  %v9765_v61 = vpop.eup %9764  ;;  %v2928_v59 = vadd.f32 %v2927_v58, %v2735_v22  ;;  %v2737_v51 = vadd.f32 %v2736_v49, %v2544_v37  ;;  %v10907_v2 = vpack.c.bf16 %v9763_v63, %v9761_v16  ;;  %v2558_v16 = vadd.f32 %v10825_v47, %v10679_v11  ;;  %v10313_v47 = vld [vmem:[#allocation2 + $0x4] ss:$24 sps:$4 sm:$0xff]  }
 0x1c7   :  { %v9767_v17 = vpop.eup %9766  ;;  %v2740_v5 = vpop.f32.mrf.mxu1  ;;  %3205 = vmatmul.mubr.bf16.gmra.mxu1 %v10306_v57  ;;  %3398 = vmatmul.mubr.bf16.gmra.mxu0 %v10307_v50  ;;  %v2560_v63 = vadd.f32 %v10830_v27, %v10683_v14  ;;  %v2562_v27 = vadd.f32 %v10835_v38, %v10679_v11  ;;  %v9328_v11 = vld [vmem:[#allocation5 + $0x434] ss:$24 sps:$4 sm:$0xff]  }
 0x1c8   :  { %13096 = vst [vmem:[#allocation47_spill] sm:$0xff] %v10907_v2  ;;  %v2933_v20 = vpop.f32.mrf.mxu0  ;;  %9778 = vtanh.f32 %v2928_v59  ;;  %v2930_v41 = vadd.f32 %v2929_v9, %v2737_v51  ;;  %v2741_v13 = vadd.f32 %v2740_v5, %v2548_v39  ;;  %3214 = vmatprep.mubr.bf16.mxu1 %v10308_v24  ;;  %3407 = vmatprep.mubr.bf16.mxu0 %v10309_v62  ;;  %v10310_v9 = vld [vmem:[#allocation2 + $0x2d0] ss:$24 sps:$4 sm:$0xff]   ;;  %v10312_v51 = vld [vmem:[#allocation2 + $0x14] ss:$24 sps:$4 sm:$0xff]  }
 0x1c9   :  { %v10911_v6 = vpack.c.bf16 %v9767_v17, %v9765_v61  ;;  %9780 = vtanh.f32 %v2926_v35  ;;  %v2742_v48 = vpop.f32.mrf.mxu1  ;;  %v9769_v1 = vpop.eup %9768  ;;  %v10311_v61 = vld [vmem:[#allocation2 + $0x2d8] ss:$24 sps:$4 sm:$0xff]   ;;  %v2564_v24 = vadd.f32 %v10840_v3, %v10683_v14  ;;  %v9331_v38 = vld [vmem:[#allocation5 + $0x734] ss:$24 sps:$4 sm:$0xff]  }
 0x1ca   :  { %v2935_v56 = vpop.f32.mrf.mxu0  ;;  %9782 = vtanh.f32 %v2930_v41  ;;  %v2934_v19 = vadd.f32 %v2933_v20, %v2741_v13  ;;  %v2743_v10 = vadd.f32 %v2742_v48, %v2550_v15  ;;  %v10315_v14 = vld [vmem:[#allocation2] ss:$24 sps:$4 sm:$0xff]  }
 0x1cb   :  { %13097 = vst [vmem:[#allocation48_spill] sm:$0xff] %v10911_v6  ;;  %v2744_v42 = vpop.f32.mrf.mxu1 }
 0x1cc   :  { %v2937_v0 = vpop.f32.mrf.mxu0  ;;  %v2936_v26 = vadd.f32 %v2935_v56, %v2743_v10  ;;  %v2745_v33 = vadd.f32 %v2744_v42, %v2552_v32  ;;  %9784 = vtanh.f32 %v2934_v19  ;;  %v9320_v56 = vld [vmem:[#allocation5 + $0x460] ss:$24 sps:$4 sm:$0xff]  }
 0x1cd   :  { %v9771_v29 = vpop.eup %9770  ;;  %v2746_v43 = vpop.f32.mrf.mxu1  ;;  %v9323_v32 = vld [vmem:[#allocation5 + $0x760] ss:$24 sps:$4 sm:$0xff]  }
 0x1ce   :  { %v2939_v8 = vpop.f32.mrf.mxu0  ;;  %v9773_v58 = vpop.eup %9772  ;;  %v2938_v37 = vadd.f32 %v2937_v0, %v2745_v33  ;;  %v2747_v4 = vadd.f32 %v2746_v43, %v2554_v53  ;;  %v10919_v35 = vpack.c.bf16 %v9771_v29, %v9769_v1 }
 0x1cf   :  { %v9775_v22 = vpop.eup %9774  ;;  %v2750_v49 = vpop.f32.mrf.mxu1  ;;  %3215 = vmatmul.mubr.bf16.gmra.mxu1 %v10310_v9  ;;  %3408 = vmatmul.mubr.bf16.gmra.mxu0 %v10311_v61  ;;  %v9334_v9 = vld [vmem:[#allocation5 + $0x404] ss:$24 sps:$4 sm:$0xff]  }
 0x1d0   :  { %13098 = vst [vmem:[#allocation49_spill] sm:$0xff] %v10919_v35  ;;  %v2943_v25 = vpop.f32.mrf.mxu0  ;;  %9786 = vtanh.f32 %v2938_v37  ;;  %v2940_v39 = vadd.f32 %v2939_v8, %v2747_v4  ;;  %v2751_v59 = vadd.f32 %v2750_v49, %v2558_v16  ;;  %3450 = vmatprep.mubr.bf16.mxu1 %v10312_v51  ;;  %3643 = vmatprep.mubr.bf16.mxu0 %v10313_v47  ;;  %v10314_v8 = vld [vmem:[#allocation2 + $0x10] ss:$24 sps:$4 sm:$0xff]   ;;  %v10316_v49 = vld [vmem:[#allocation2 + $0x44] ss:$24 sps:$4 sm:$0xff]  }
 0x1d1   :  { %v10923_v17 = vpack.c.bf16 %v9775_v22, %v9773_v58  ;;  %9788 = vtanh.f32 %v2936_v26  ;;  %v2752_v15 = vpop.f32.mrf.mxu1  ;;  %v9777_v13 = vpop.eup %9776  ;;  %v9326_v16 = vld [vmem:[#allocation5 + $0x430] ss:$24 sps:$4 sm:$0xff]   ;;  %v9337_v61 = vld [vmem:[#allocation5 + $0x704] ss:$24 sps:$4 sm:$0xff]  }
 0x1d2   :  { %v2945_v5 = vpop.f32.mrf.mxu0  ;;  %9790 = vtanh.f32 %v2940_v39  ;;  %v2944_v20 = vadd.f32 %v2943_v25, %v2751_v59  ;;  %v2753_v57 = vadd.f32 %v2752_v15, %v2560_v63  ;;  %v9329_v37 = vld [vmem:[#allocation5 + $0x730] ss:$24 sps:$4 sm:$0xff]   ;;  %v10317_v25 = vld [vmem:[#allocation2 + $0x34] ss:$24 sps:$4 sm:$0xff]  }
 0x1d3   :  { %13099 = vst [vmem:[#allocation50_spill] sm:$0xff] %v10923_v17  ;;  %v2754_v50 = vpop.f32.mrf.mxu1 }
 0x1d4   :  { %v2947_v41 = vpop.f32.mrf.mxu0  ;;  %v2946_v62 = vadd.f32 %v2945_v5, %v2753_v57  ;;  %v2755_v48 = vadd.f32 %v2754_v50, %v2562_v27  ;;  %9792 = vtanh.f32 %v2944_v20  ;;  %v9332_v50 = vld [vmem:[#allocation5 + $0x400] ss:$24 sps:$4 sm:$0xff]  }
 0x1d5   :  { %v9779_v19 = vpop.eup %9778  ;;  %v2756_v10 = vpop.f32.mrf.mxu1 }
 0x1d6   :  { %v2949_v42 = vpop.f32.mrf.mxu0  ;;  %v9781_v0 = vpop.eup %9780  ;;  %v2948_v1 = vadd.f32 %v2947_v41, %v2755_v48  ;;  %v2757_v53 = vadd.f32 %v2756_v10, %v2564_v24  ;;  %v10929_v26 = vpack.c.bf16 %v9779_v19, %v9777_v13  ;;  %v9335_v41 = vld [vmem:[#allocation5 + $0x700] ss:$24 sps:$4 sm:$0xff]   ;;  %v9343_v48 = vld [vmem:[#allocation5 + $0x6d4] ss:$24 sps:$4 sm:$0xff]  }
 0x1d7   :  { %v9783_v33 = vpop.eup %9782  ;;  %v2760_v29 = vpop.f32.mrf.mxu1  ;;  %3451 = vmatmul.mubr.bf16.vlgmr.msra.gmra.mxu1 %v10314_v8  ;;  %3644 = vmatmul.mubr.bf16.vlgmr.msra.gmra.mxu0 %v10315_v14  ;;  %v10318_v10 = vld [vmem:[#allocation2 + $0x40] ss:$24 sps:$4 sm:$0xff]  }
 0x1d8   :  { %13100 = vst [vmem:[#allocation51_spill] sm:$0xff] %v10929_v26  ;;  %v2953_v43 = vpop.f32.mrf.mxu0  ;;  %9794 = vtanh.f32 %v2948_v1  ;;  %v2950_v3 = vadd.f32 %v2949_v42, %v2757_v53  ;;  %v2761_v58 = vadd.f32 %v2760_v29, %v10688_v23  ;;  %3805 = vmatpush1.bf16.msra.mxu1 %v9320_v56  ;;  %3998 = vmatpush1.bf16.msra.mxu0 %v9323_v32  ;;  %v10319_v42 = vld [vmem:[#allocation2 + $0x30] ss:$24 sps:$4 sm:$0xff]   ;;  %v10320_v53 = vld [vmem:[#allocation2 + $0x74] ss:$24 sps:$4 sm:$0xff]  }
 0x1d9   :  { %v10932_v4 = vpack.c.bf16 %v9783_v33, %v9781_v0  ;;  %9796 = vtanh.f32 %v2946_v62  ;;  %v2762_v22 = vpop.f32.mrf.mxu1  ;;  %3460 = vmatprep.mubr.bf16.mxu1 %v10316_v49  ;;  %3653 = vmatprep.mubr.bf16.mxu0 %v10317_v25  ;;  %v9785_v47 = vpop.eup %9784  ;;  %v9340_v62 = vld [vmem:[#allocation5 + $0x3d4] ss:$24 sps:$4 sm:$0xff]   ;;  %v9338_v29 = vld [vmem:[#allocation5 + $0x3d0] ss:$24 sps:$4 sm:$0xff]   ;;  %v11127_v26 = vld [vmem:[#allocation2 + $0x280] ss:$24 sps:$4 sm:$0xff]  }
 0x1da   :  { %v2955_v63 = vpop.f32.mrf.mxu0  ;;  %9798 = vtanh.f32 %v2950_v3  ;;  %v2954_v39 = vadd.f32 %v2953_v43, %v2761_v58  ;;  %v2763_v59 = vadd.f32 %v2762_v22, %v10693_v28  ;;  %3806 = vmatprep.subr.bf16.mxu1 %v9328_v11  ;;  %3999 = vmatprep.subr.bf16.mxu0 %v9331_v38  ;;  %v10321_v11 = vld [vmem:[#allocation2 + $0x64] ss:$24 sps:$4 sm:$0xff]   ;;  %v9341_v43 = vld [vmem:[#allocation5 + $0x6d0] ss:$24 sps:$4 sm:$0xff]  }
 0x1db   :  { %13101 = vst [vmem:[#allocation52_spill] sm:$0xff] %v10932_v4  ;;  %v2764_v23 = vpop.f32.mrf.mxu1  ;;  %v9349_v3 = vld [vmem:[#allocation5 + $0x6a4] ss:$24 sps:$4 sm:$0xff]  }
 0x1dc   :  { %v2957_v51 = vpop.f32.mrf.mxu0  ;;  %v2956_v15 = vadd.f32 %v2955_v63, %v2763_v59  ;;  %v2765_v5 = vadd.f32 %v2764_v23, %v10698_v31  ;;  %3807 = vmatpush1.bf16.msra.mxu1 %v9326_v16  ;;  %4000 = vmatpush1.bf16.msra.mxu0 %v9329_v37  ;;  %9800 = vtanh.f32 %v2954_v39  ;;  %v9347_v39 = vld [vmem:[#allocation5 + $0x6a0] ss:$24 sps:$4 sm:$0xff]  }
 0x1dd   :  { %v9787_v27 = vpop.eup %9786  ;;  %v2766_v20 = vpop.f32.mrf.mxu1  ;;  %3808 = vmatprep.subr.bf16.mxu1 %v9334_v9  ;;  %4001 = vmatprep.subr.bf16.mxu0 %v9337_v61  ;;  %v9344_v61 = vld [vmem:[#allocation5 + $0x3a0] ss:$24 sps:$4 sm:$0xff]  }
 0x1de   :  { %v2959_v57 = vpop.f32.mrf.mxu0  ;;  %v9789_v13 = vpop.eup %9788  ;;  %v2958_v24 = vadd.f32 %v2957_v51, %v2765_v5  ;;  %v2767_v28 = vadd.f32 %v2766_v20, %v10703_v36  ;;  %v10937_v56 = vpack.c.bf16 %v9787_v27, %v9785_v47  ;;  %v9352_v51 = vld [vmem:[#allocation5 + $0x374] ss:$24 sps:$4 sm:$0xff]   ;;  %v10322_v20 = vld [vmem:[#allocation2 + $0x70] ss:$24 sps:$4 sm:$0xff]  }
 0x1df   :  { %v9791_v32 = vpop.eup %9790  ;;  %v2770_v31 = vpop.f32.mrf.mxu1  ;;  %3461 = vmatmul.mubr.bf16.gmra.mxu1 %v10318_v10  ;;  %3654 = vmatmul.mubr.bf16.gmra.mxu0 %v10319_v42  ;;  %v9355_v47 = vld [vmem:[#allocation5 + $0x674] ss:$24 sps:$4 sm:$0xff]   ;;  %v9361_v10 = vld [vmem:[#allocation5 + $0x644] ss:$24 sps:$4 sm:$0xff]  }
 0x1e0   :  { %13102 = vst [vmem:[#allocation53_spill] sm:$0xff] %v10937_v56  ;;  %v2963_v19 = vpop.f32.mrf.mxu0  ;;  %9802 = vtanh.f32 %v2958_v24  ;;  %v2960_v0 = vadd.f32 %v2959_v57, %v2767_v28  ;;  %v2771_v1 = vadd.f32 %v2770_v31, %v10708_v45  ;;  %3470 = vmatprep.mubr.bf16.mxu1 %v10320_v53  ;;  %3663 = vmatprep.mubr.bf16.mxu0 %v10321_v11  ;;  %v9346_v45 = vld [vmem:[#allocation5 + $0x3a4] ss:$24 sps:$4 sm:$0xff]   ;;  %v10323_v57 = vld [vmem:[#allocation2 + $0x60] ss:$24 sps:$4 sm:$0xff]  }
 0x1e1   :  { %v10940_v36 = vpack.c.bf16 %v9791_v32, %v9789_v13  ;;  %9804 = vtanh.f32 %v2956_v15  ;;  %v2772_v38 = vpop.f32.mrf.mxu1  ;;  %3809 = vmatpush1.bf16.msra.mxu1 %v9332_v50  ;;  %4002 = vmatpush1.bf16.msra.mxu0 %v9335_v41  ;;  %v9793_v37 = vpop.eup %9792  ;;  %v10324_v13 = vld [vmem:[#allocation2 + $0xa4] ss:$24 sps:$4 sm:$0xff]   ;;  %v9353_v32 = vld [vmem:[#allocation5 + $0x670] ss:$24 sps:$4 sm:$0xff]  }
 0x1e2   :  { %v2965_v33 = vpop.f32.mrf.mxu0  ;;  %9806 = vtanh.f32 %v2960_v0  ;;  %v2964_v8 = vadd.f32 %v2963_v19, %v2771_v1  ;;  %v2773_v14 = vadd.f32 %v2772_v38, %v10713_v52  ;;  %3810 = vmatprep.subr.bf16.mxu1 %v9340_v62  ;;  %4003 = vmatprep.subr.bf16.mxu0 %v9343_v48  ;;  %v9350_v48 = vld [vmem:[#allocation5 + $0x370] ss:$24 sps:$4 sm:$0xff]  }
 0x1e3   :  { %13103 = vst [vmem:[#allocation54_spill] sm:$0xff] %v10940_v36  ;;  %v2774_v58 = vpop.f32.mrf.mxu1 }
 0x1e4   :  { %v2967_v16 = vpop.f32.mrf.mxu0  ;;  %v2966_v22 = vadd.f32 %v2965_v33, %v2773_v14  ;;  %v2775_v63 = vadd.f32 %v2774_v58, %v10718_v55  ;;  %9808 = vtanh.f32 %v2964_v8  ;;  %v9359_v8 = vld [vmem:[#allocation5 + $0x640] ss:$24 sps:$4 sm:$0xff]   ;;  %v9367_v58 = vld [vmem:[#allocation5 + $0x614] ss:$24 sps:$4 sm:$0xff]  }
 0x1e5   :  { %v9795_v49 = vpop.eup %9794  ;;  %v2776_v25 = vpop.f32.mrf.mxu1  ;;  %3811 = vmatpush1.bf16.msra.mxu1 %v9338_v29  ;;  %4004 = vmatpush1.bf16.msra.mxu0 %v9341_v43  ;;  %v9356_v43 = vld [vmem:[#allocation5 + $0x340] ss:$24 sps:$4 sm:$0xff]  }
 0x1e6   :  { %v2969_v9 = vpop.f32.mrf.mxu0  ;;  %v9797_v59 = vpop.eup %9796  ;;  %v2968_v23 = vadd.f32 %v2967_v16, %v2775_v63  ;;  %v2777_v52 = vadd.f32 %v2776_v25, %v10723_v60  ;;  %3812 = vmatprep.subr.bf16.mxu1 %v9346_v45  ;;  %4005 = vmatprep.subr.bf16.mxu0 %v9349_v3  ;;  %v10945_v15 = vpack.c.bf16 %v9795_v49, %v9793_v37  ;;  %v10325_v60 = vld [vmem:[#allocation2 + $0x94] ss:$24 sps:$4 sm:$0xff]   ;;  %v10326_v63 = vld [vmem:[#allocation2 + $0xa0] ss:$24 sps:$4 sm:$0xff]   ;;  %v10327_v49 = vld [vmem:[#allocation2 + $0x90] ss:$24 sps:$4 sm:$0xff]  }
 0x1e7   :  { %v9799_v5 = vpop.eup %9798  ;;  %v2780_v55 = vpop.f32.mrf.mxu1  ;;  %3471 = vmatmul.mubr.bf16.gmra.mxu1 %v10322_v20  ;;  %3664 = vmatmul.mubr.bf16.gmra.mxu0 %v10323_v57  ;;  %v9364_v3 = vld [vmem:[#allocation5 + $0x314] ss:$24 sps:$4 sm:$0xff]   ;;  %v9370_v20 = vld [vmem:[#allocation5 + $0x5e4] ss:$24 sps:$4 sm:$0xff]  }
 0x1e8   :  { %13104 = vst [vmem:[#allocation55_spill] sm:$0xff] %v10945_v15  ;;  %v2973_v27 = vpop.f32.mrf.mxu0  ;;  %9810 = vtanh.f32 %v2968_v23  ;;  %v2970_v50 = vadd.f32 %v2969_v9, %v2777_v52  ;;  %v2781_v41 = vadd.f32 %v2780_v55, %v10728_v7  ;;  %3480 = vmatprep.mubr.bf16.mxu1 %v10324_v13  ;;  %3673 = vmatprep.mubr.bf16.mxu0 %v10325_v60  ;;  %v9358_v7 = vld [vmem:[#allocation5 + $0x344] ss:$24 sps:$4 sm:$0xff]   ;;  %v13107_v9 = vld [vmem:[#allocation21_spill] sm:$0xff] }
 0x1e9   :  { %v10948_v24 = vpack.c.bf16 %v9799_v5, %v9797_v59  ;;  %9812 = vtanh.f32 %v2966_v22  ;;  %v2782_v28 = vpop.f32.mrf.mxu1  ;;  %3813 = vmatpush1.bf16.msra.mxu1 %v9344_v61  ;;  %4006 = vmatpush1.bf16.msra.mxu0 %v9347_v39  ;;  %v9801_v1 = vpop.eup %9800  ;;  %v10328_v39 = vld [vmem:[#allocation2 + $0xd4] ss:$24 sps:$4 sm:$0xff]   ;;  %v13109_v55 = vld [vmem:[#allocation22_spill] sm:$0xff] }
 0x1ea   :  { %v2975_v62 = vpop.f32.mrf.mxu0  ;;  %9814 = vtanh.f32 %v2970_v50  ;;  %v2974_v31 = vadd.f32 %v2973_v27, %v2781_v41  ;;  %v2783_v19 = vadd.f32 %v2782_v28, %v10733_v18  ;;  %3814 = vmatprep.subr.bf16.mxu1 %v9352_v51  ;;  %4007 = vmatprep.subr.bf16.mxu0 %v9355_v47  ;;  %v9362_v51 = vld [vmem:[#allocation5 + $0x310] ss:$24 sps:$4 sm:$0xff]   ;;  %v9373_v57 = vld [vmem:[#allocation5 + $0x8e4] ss:$24 sps:$4 sm:$0xff]  }
 0x1eb   :  { %13105 = vst [vmem:[#allocation56_spill] sm:$0xff] %v10948_v24  ;;  %v2784_v42 = vpop.f32.mrf.mxu1  ;;  %v9365_v47 = vld [vmem:[#allocation5 + $0x610] ss:$24 sps:$4 sm:$0xff]  }
 0x1ec   :  { %v2977_v0 = vpop.f32.mrf.mxu0  ;;  %v2976_v53 = vadd.f32 %v2975_v62, %v2783_v19  ;;  %v2785_v11 = vadd.f32 %v2784_v42, %v10738_v21  ;;  %9816 = vtanh.f32 %v2974_v31  ;;  %v13110_v28 = vld [vmem:[#allocation23_spill] sm:$0xff]  ;;  %v9368_v19 = vld [vmem:[#allocation5 + $0x5e0] ss:$24 sps:$4 sm:$0xff]  }
 0x1ed   :  { %v9803_v38 = vpop.eup %9802  ;;  %v2786_v33 = vpop.f32.mrf.mxu1  ;;  %3815 = vmatpush1.bf16.msra.mxu1 %v9350_v48  ;;  %4008 = vmatpush1.bf16.msra.mxu0 %v9353_v32 }
 0x1ee   :  { %v2979_v29 = vpop.f32.mrf.mxu0  ;;  %v9805_v14 = vpop.eup %9804  ;;  %v2978_v45 = vadd.f32 %v2977_v0, %v2785_v11  ;;  %v2787_v18 = vadd.f32 %v2786_v33, %v10743_v30  ;;  %3816 = vmatprep.subr.bf16.mxu1 %v9358_v7  ;;  %4009 = vmatprep.subr.bf16.mxu0 %v9361_v10  ;;  %v10953_v16 = vpack.c.bf16 %v9803_v38, %v9801_v1  ;;  %v10329_v30 = vld [vmem:[#allocation2 + $0xc4] ss:$24 sps:$4 sm:$0xff]   ;;  %v9371_v7 = vld [vmem:[#allocation5 + $0x8e0] ss:$24 sps:$4 sm:$0xff]   ;;  %v13111_v0 = vld [vmem:[#allocation24_spill] sm:$0xff] }
 0x1ef   :  { %v9807_v37 = vpop.eup %9806  ;;  %v2790_v21 = vpop.f32.mrf.mxu1  ;;  %3481 = vmatmul.mubr.bf16.gmra.mxu1 %v10326_v63  ;;  %3674 = vmatmul.mubr.bf16.gmra.mxu0 %v10327_v49  ;;  %v9379_v11 = vld [vmem:[#allocation5 + $0x8b4] ss:$24 sps:$4 sm:$0xff]   ;;  %v9374_v49 = vld [vmem:[#allocation5 + $0x5b0] ss:$24 sps:$4 sm:$0xff]  }
 0x1f0   :  { %13106 = vst [vmem:[#allocation57_spill] sm:$0xff] %v10953_v16  ;;  %v2983_v22 = vpop.f32.mrf.mxu0  ;;  %9818 = vtanh.f32 %v2978_v45  ;;  %v2980_v25 = vadd.f32 %v2979_v29, %v2787_v18  ;;  %v2791_v61 = vadd.f32 %v2790_v21, %v13107_v9  ;;  %3490 = vmatprep.mubr.bf16.mxu1 %v10328_v39  ;;  %3683 = vmatprep.mubr.bf16.mxu0 %v10329_v30  ;;  %v13113_v18 = vld [vmem:[#allocation25_spill] sm:$0xff]  ;;  %v9382_v30 = vld [vmem:[#allocation5 + $0x584] ss:$24 sps:$4 sm:$0xff]  }
 0x1f1   :  { %v10956_v59 = vpack.c.bf16 %v9807_v37, %v9805_v14  ;;  %9820 = vtanh.f32 %v2976_v53  ;;  %v2792_v23 = vpop.f32.mrf.mxu1  ;;  %3817 = vmatpush1.bf16.msra.mxu1 %v9356_v43  ;;  %4010 = vmatpush1.bf16.msra.mxu0 %v9359_v8  ;;  %v9809_v13 = vpop.eup %9808  ;;  %v9376_v53 = vld [vmem:[#allocation5 + $0x5b4] ss:$24 sps:$4 sm:$0xff]   ;;  %v10963_v8 = vld [vmem:[#allocation2 + $0xd0] ss:$24 sps:$4 sm:$0xff]   ;;  %v10331_v14 = vld [vmem:[#allocation2 + $0xc0] ss:$24 sps:$4 sm:$0xff]  }
 0x1f2   :  { %v2985_v52 = vpop.f32.mrf.mxu0  ;;  %9822 = vtanh.f32 %v2980_v25  ;;  %v2984_v5 = vadd.f32 %v2983_v22, %v2791_v61  ;;  %v2793_v27 = vadd.f32 %v2792_v23, %v13109_v55  ;;  %3818 = vmatprep.subr.bf16.mxu1 %v9364_v3  ;;  %4011 = vmatprep.subr.bf16.mxu0 %v9367_v58  ;;  %v10967_v58 = vld [vmem:[#allocation2 + $0x104] ss:$24 sps:$4 sm:$0xff]   ;;  %v10333_v37 = vld [vmem:[#allocation2 + $0xf4] ss:$24 sps:$4 sm:$0xff]   ;;  %v9377_v25 = vld [vmem:[#allocation5 + $0x8b0] ss:$24 sps:$4 sm:$0xff]  }
 0x1f3   :  { %13108 = vst [vmem:[#allocation21_spill] sm:$0xff] %v10956_v59  ;;  %v2794_v50 = vpop.f32.mrf.mxu1  ;;  %v13115_v61 = vld [vmem:[#allocation26_spill] sm:$0xff]  ;;  %v13116_v55 = vld [vmem:[#allocation27_spill] sm:$0xff] }
 0x1f4   :  { %v2987_v41 = vpop.f32.mrf.mxu0  ;;  %v2986_v60 = vadd.f32 %v2985_v52, %v2793_v27  ;;  %v2795_v62 = vadd.f32 %v2794_v50, %v13110_v28  ;;  %9824 = vtanh.f32 %v2984_v5  ;;  %v9385_v23 = vld [vmem:[#allocation5 + $0x884] ss:$24 sps:$4 sm:$0xff]   ;;  %v11109_v59 = vld [vmem:[#allocation2 + $0x250] ss:$24 sps:$4 sm:$0xff]  }
 0x1f5   :  { %v9811_v48 = vpop.eup %9810  ;;  %v2796_v32 = vpop.f32.mrf.mxu1  ;;  %3819 = vmatpush1.bf16.msra.mxu1 %v9362_v51  ;;  %4012 = vmatpush1.bf16.msra.mxu0 %v9365_v47 }
 0x1f6   :  { %v2989_v31 = vpop.f32.mrf.mxu0  ;;  %v9813_v10 = vpop.eup %9812  ;;  %v2988_v42 = vadd.f32 %v2987_v41, %v2795_v62  ;;  %v2797_v1 = vadd.f32 %v2796_v32, %v13111_v0  ;;  %3820 = vmatprep.subr.bf16.mxu1 %v9370_v20  ;;  %4013 = vmatprep.subr.bf16.mxu0 %v9373_v57  ;;  %v10961_v38 = vpack.c.bf16 %v9811_v48, %v9809_v13  ;;  %v9380_v41 = vld [vmem:[#allocation5 + $0x580] ss:$24 sps:$4 sm:$0xff]   ;;  %v13117_v62 = vld [vmem:[#allocation28_spill] sm:$0xff] }
 0x1f7   :  { %v9815_v33 = vpop.eup %9814  ;;  %v2800_v29 = vpop.f32.mrf.mxu1  ;;  %3491 = vmatmul.mubr.bf16.gmra.mxu1 %v10963_v8  ;;  %3684 = vmatmul.mubr.bf16.gmra.mxu0 %v10331_v14  ;;  %v9383_v13 = vld [vmem:[#allocation5 + $0x880] ss:$24 sps:$4 sm:$0xff]   ;;  %v9388_v32 = vld [vmem:[#allocation5 + $0x554] ss:$24 sps:$4 sm:$0xff]  }
 0x1f8   :  { %13112 = vst [vmem:[#allocation22_spill] sm:$0xff] %v10961_v38  ;;  %v2993_v43 = vpop.f32.mrf.mxu0  ;;  %9826 = vtanh.f32 %v2988_v42  ;;  %v2990_v45 = vadd.f32 %v2989_v31, %v2797_v1  ;;  %v2801_v3 = vadd.f32 %v2800_v29, %v13113_v18  ;;  %3500 = vmatprep.mubr.bf16.mxu1 %v10967_v58  ;;  %3693 = vmatprep.mubr.bf16.mxu0 %v10333_v37  ;;  %v9391_v31 = vld [vmem:[#allocation5 + $0x854] ss:$24 sps:$4 sm:$0xff]   ;;  %v10977_v0 = vld [vmem:[#allocation2 + $0x100] ss:$24 sps:$4 sm:$0xff]  }
 0x1f9   :  { %v10970_v21 = vpack.c.bf16 %v9815_v33, %v9813_v10  ;;  %9828 = vtanh.f32 %v2986_v60  ;;  %v2802_v22 = vpop.f32.mrf.mxu1  ;;  %3821 = vmatpush2.bf16.msra.mxu1 %v9368_v19  ;;  %4014 = vmatpush2.bf16.msra.mxu0 %v9371_v7  ;;  %v9817_v47 = vpop.eup %9816  ;;  %v10335_v1 = vld [vmem:[#allocation2 + $0xf0] ss:$24 sps:$4 sm:$0xff]   ;;  %v10981_v29 = vld [vmem:[#allocation2 + $0x134] ss:$24 sps:$4 sm:$0xff]  }
 0x1fa   :  { %v2995_v63 = vpop.f32.mrf.mxu0  ;;  %9830 = vtanh.f32 %v2990_v45  ;;  %v2994_v9 = vadd.f32 %v2993_v43, %v2801_v3  ;;  %v2803_v39 = vadd.f32 %v2802_v22, %v13115_v61  ;;  %3822 = vmatprep.subr.bf16.mxu1 %v9376_v53  ;;  %4015 = vmatprep.subr.bf16.mxu0 %v9379_v11  ;;  %v13119_v11 = vld [vmem:[#allocation29_spill] sm:$0xff]  ;;  %v10337_v43 = vld [vmem:[#allocation2 + $0x124] ss:$24 sps:$4 sm:$0xff]   ;;  %v9386_v3 = vld [vmem:[#allocation5 + $0x550] ss:$24 sps:$4 sm:$0xff]  }
 0x1fb   :  { %13114 = vst [vmem:[#allocation23_spill] sm:$0xff] %v10970_v21  ;;  %v2804_v52 = vpop.f32.mrf.mxu1  ;;  %v9389_v37 = vld [vmem:[#allocation5 + $0x850] ss:$24 sps:$4 sm:$0xff]  }
 0x1fc   :  { %v2997_v51 = vpop.f32.mrf.mxu0  ;;  %v2996_v5 = vadd.f32 %v2995_v63, %v2803_v39  ;;  %v2805_v27 = vadd.f32 %v2804_v52, %v13116_v55  ;;  %9832 = vtanh.f32 %v2994_v9  ;;  %v13121_v63 = vld [vmem:[#allocation30_spill] sm:$0xff]  ;;  %v13122_v52 = vld [vmem:[#allocation31_spill] sm:$0xff] }
 0x1fd   :  { %v9819_v20 = vpop.eup %9818  ;;  %v2806_v57 = vpop.f32.mrf.mxu1  ;;  %3823 = vmatpush2.bf16.msra.mxu1 %v9374_v49  ;;  %4016 = vmatpush2.bf16.msra.mxu0 %v9377_v25  ;;  %v9394_v25 = vld [vmem:[#allocation5 + $0x524] ss:$24 sps:$4 sm:$0xff]  }
 0x1fe   :  { %v2999_v50 = vpop.f32.mrf.mxu0  ;;  %v9821_v60 = vpop.eup %9820  ;;  %v2998_v28 = vadd.f32 %v2997_v51, %v2805_v27  ;;  %v2807_v48 = vadd.f32 %v2806_v57, %v13117_v62  ;;  %3824 = vmatprep.subr.bf16.mxu1 %v9382_v30  ;;  %4017 = vmatprep.subr.bf16.mxu0 %v9385_v23  ;;  %v10975_v19 = vpack.c.bf16 %v9819_v20, %v9817_v47  ;;  %v9397_v9 = vld [vmem:[#allocation5 + $0x824] ss:$24 sps:$4 sm:$0xff]   ;;  %v9392_v27 = vld [vmem:[#allocation5 + $0x520] ss:$24 sps:$4 sm:$0xff]  }
 0x1ff   :  { %v9823_v7 = vpop.eup %9822  ;;  %v2810_v10 = vpop.f32.mrf.mxu1  ;;  %3501 = vmatmul.mubr.bf16.gmra.mxu1 %v10977_v0  ;;  %3694 = vmatmul.mubr.bf16.gmra.mxu0 %v10335_v1  ;;  %v9395_v20 = vld [vmem:[#allocation5 + $0x820] ss:$24 sps:$4 sm:$0xff]  }
 0x200   :  { %13118 = vst [vmem:[#allocation24_spill] sm:$0xff] %v10975_v19  ;;  %v3003_v42 = vpop.f32.mrf.mxu0  ;;  %9834 = vtanh.f32 %v2998_v28  ;;  %v3000_v53 = vadd.f32 %v2999_v50, %v2807_v48  ;;  %v2811_v33 = vadd.f32 %v2810_v10, %v13119_v11  ;;  %3510 = vmatprep.mubr.bf16.mxu1 %v10981_v29  ;;  %3703 = vmatprep.mubr.bf16.mxu0 %v10337_v43  ;;  %v9403_v28 = vld [vmem:[#allocation5 + $0x7f4] ss:$24 sps:$4 sm:$0xff]   ;;  %v10339_v10 = vld [vmem:[#allocation2 + $0x120] ss:$24 sps:$4 sm:$0xff]  }
 0x201   :  { %v10984_v14 = vpack.c.bf16 %v9823_v7, %v9821_v60  ;;  %9836 = vtanh.f32 %v2996_v5  ;;  %v2812_v45 = vpop.f32.mrf.mxu1  ;;  %3825 = vmatpush2.bf16.msra.mxu1 %v9380_v41  ;;  %4018 = vmatpush2.bf16.msra.mxu0 %v9383_v13  ;;  %v9825_v30 = vpop.eup %9824  ;;  %v13123_v41 = vld [vmem:[#allocation32_spill] sm:$0xff]  ;;  %v13125_v1 = vld [vmem:[#allocation33_spill] sm:$0xff]  ;;  %v10995_v11 = vld [vmem:[#allocation2 + $0x164] ss:$24 sps:$4 sm:$0xff]  }
 0x202   :  { %v3005_v18 = vpop.f32.mrf.mxu0  ;;  %9838 = vtanh.f32 %v3000_v53  ;;  %v3004_v22 = vadd.f32 %v3003_v42, %v2811_v33  ;;  %v2813_v49 = vadd.f32 %v2812_v45, %v13121_v63  ;;  %3826 = vmatprep.subr.bf16.mxu1 %v9388_v32  ;;  %4019 = vmatprep.subr.bf16.mxu0 %v9391_v31  ;;  %v9400_v60 = vld [vmem:[#allocation5 + $0x4f4] ss:$24 sps:$4 sm:$0xff]   ;;  %v10991_v7 = vld [vmem:[#allocation2 + $0x130] ss:$24 sps:$4 sm:$0xff]  }
 0x203   :  { %13120 = vst [vmem:[#allocation25_spill] sm:$0xff] %v10984_v14  ;;  %v2814_v61 = vpop.f32.mrf.mxu1  ;;  %v10341_v33 = vld [vmem:[#allocation2 + $0x154] ss:$24 sps:$4 sm:$0xff]  }
 0x204   :  { %v3007_v39 = vpop.f32.mrf.mxu0  ;;  %v3006_v23 = vadd.f32 %v3005_v18, %v2813_v49  ;;  %v2815_v51 = vadd.f32 %v2814_v61, %v13122_v52  ;;  %v13127_v49 = vld [vmem:[#allocation34_spill] sm:$0xff] }
 0x205   :  { %v9827_v47 = vpop.eup %9826  ;;  %v2816_v5 = vpop.f32.mrf.mxu1  ;;  %3827 = vmatpush2.bf16.msra.mxu1 %v9386_v3  ;;  %4020 = vmatpush2.bf16.msra.mxu0 %v9389_v37  ;;  %v9398_v3 = vld [vmem:[#allocation5 + $0x4f0] ss:$24 sps:$4 sm:$0xff]   ;;  %v9409_v61 = vld [vmem:[#allocation5 + $0x7c4] ss:$24 sps:$4 sm:$0xff]  }
 0x206   :  { %v3009_v55 = vpop.f32.mrf.mxu0  ;;  %v9829_v57 = vpop.eup %9828  ;;  %v3008_v50 = vadd.f32 %v3007_v39, %v2815_v51  ;;  %v2817_v13 = vadd.f32 %v2816_v5, %v13123_v41  ;;  %3828 = vmatprep.subr.bf16.mxu1 %v9394_v25  ;;  %4021 = vmatprep.subr.bf16.mxu0 %v9397_v9  ;;  %v10989_v62 = vpack.c.bf16 %v9827_v47, %v9825_v30  ;;  %v9401_v37 = vld [vmem:[#allocation5 + $0x7f0] ss:$24 sps:$4 sm:$0xff]   ;;  %v9406_v9 = vld [vmem:[#allocation5 + $0x4c4] ss:$24 sps:$4 sm:$0xff]  }
 0x207   :  { %v9831_v48 = vpop.eup %9830  ;;  %v2820_v32 = vpop.f32.mrf.mxu1  ;;  %3511 = vmatmul.mubr.bf16.gmra.mxu1 %v10991_v7  ;;  %3704 = vmatmul.mubr.bf16.gmra.mxu0 %v10339_v10 }
 0x208   :  { %13124 = vst [vmem:[#allocation26_spill] sm:$0xff] %v10989_v62  ;;  %v3013_v31 = vpop.f32.mrf.mxu0  ;;  %9840 = vtanh.f32 %v3008_v50  ;;  %v3010_v42 = vadd.f32 %v3009_v55, %v2817_v13  ;;  %v2821_v53 = vadd.f32 %v2820_v32, %v13125_v1  ;;  %3520 = vmatprep.mubr.bf16.mxu1 %v10995_v11  ;;  %3713 = vmatprep.mubr.bf16.mxu0 %v10341_v33  ;;  %v13129_v13 = vld [vmem:[#allocation36_spill] sm:$0xff] }
 0x209   :  { %v10998_v43 = vpack.c.bf16 %v9831_v48, %v9829_v57  ;;  %9842 = vtanh.f32 %v3004_v22  ;;  %v2822_v45 = vpop.f32.mrf.mxu1  ;;  %3829 = vmatpush2.bf16.msra.mxu1 %v9392_v27  ;;  %4022 = vmatpush2.bf16.msra.mxu0 %v9395_v20  ;;  %v9833_v52 = vpop.eup %9832  ;;  %v13128_v22 = vld [vmem:[#allocation35_spill] sm:$0xff]  ;;  %v9404_v20 = vld [vmem:[#allocation5 + $0x4c0] ss:$24 sps:$4 sm:$0xff]  }
 0x20a   :  { %v3015_v18 = vpop.f32.mrf.mxu0  ;;  %9844 = vtanh.f32 %v3010_v42  ;;  %v3014_v63 = vadd.f32 %v3013_v31, %v2821_v53  ;;  %v2823_v25 = vadd.f32 %v2822_v45, %v13127_v49  ;;  %3830 = vmatprep.subr.bf16.mxu1 %v9400_v60  ;;  %4023 = vmatprep.subr.bf16.mxu0 %v9403_v28  ;;  %v9407_v57 = vld [vmem:[#allocation5 + $0x7c0] ss:$24 sps:$4 sm:$0xff]   ;;  %v9415_v28 = vld [vmem:[#allocation5 + $0x794] ss:$24 sps:$4 sm:$0xff]   ;;  %v10343_v1 = vld [vmem:[#allocation2 + $0x150] ss:$24 sps:$4 sm:$0xff]  }
 0x20b   :  { %13126 = vst [vmem:[#allocation27_spill] sm:$0xff] %v10998_v43  ;;  %9846 = vtanh.f32 %v3006_v23  ;;  %v2824_v39 = vpop.f32.mrf.mxu1  ;;  %v9412_v23 = vld [vmem:[#allocation5 + $0x494] ss:$24 sps:$4 sm:$0xff]   ;;  %v11005_v42 = vld [vmem:[#allocation2 + $0x160] ss:$24 sps:$4 sm:$0xff]  }
 0x20c   :  { %v3017_v30 = vpop.f32.mrf.mxu0  ;;  %v3016_v51 = vadd.f32 %v3015_v18, %v2823_v25  ;;  %v2825_v47 = vadd.f32 %v2824_v39, %v13128_v22  ;;  %9848 = vtanh.f32 %v3014_v63  ;;  %v13131_v53 = vld [vmem:[#allocation20_spill] sm:$0xff]  ;;  %v13132_v18 = vld [vmem:[#allocation37_spill] sm:$0xff]  ;;  %v10345_v49 = vld [vmem:[#allocation2 + $0x184] ss:$24 sps:$4 sm:$0xff]  }
 0x20d   :  { %v9835_v5 = vpop.eup %9834  ;;  %v2826_v55 = vpop.f32.mrf.mxu1  ;;  %3831 = vmatpush2.bf16.msra.mxu1 %v9398_v3  ;;  %4024 = vmatpush2.bf16.msra.mxu0 %v9401_v37  ;;  %v12986_v33 = vsub.s32 2, %v13131_v53  ;;  %v11010_v37 = vld [vmem:[#allocation2 + $0x194] ss:$24 sps:$4 sm:$0xff]   ;;  %v9413_v39 = vld [vmem:[#allocation5 + $0x790] ss:$24 sps:$4 sm:$0xff]  }
 0x20e   :  { %v3019_v27 = vpop.f32.mrf.mxu0  ;;  %v9837_v50 = vpop.eup %9836  ;;  %v3018_v41 = vadd.f32 %v3017_v30, %v2825_v47  ;;  %v2827_v60 = vadd.f32 %v2826_v55, %v13129_v13  ;;  %3832 = vmatprep.subr.bf16.mxu1 %v9406_v9  ;;  %4025 = vmatprep.subr.bf16.mxu0 %v9409_v61  ;;  %v11003_v48 = vpack.c.bf16 %v9835_v5, %v9833_v52  ;;  %v9410_v61 = vld [vmem:[#allocation5 + $0x490] ss:$24 sps:$4 sm:$0xff]   ;;  %v13134_v52 = vld [vmem:[#allocation38_spill] sm:$0xff]  ;;  %v12985_v47 = vsub.s32 3, %v13131_v53 }
 0x20f   :  { %v9839_v32 = vpop.eup %9838  ;;  %v2830_v31 = vpop.f32.mrf.mxu1  ;;  %3521 = vmatmul.mubr.bf16.gmra.mxu1 %v11005_v42  ;;  %3714 = vmatmul.mubr.bf16.gmra.mxu0 %v10343_v1  ;;  %v9418_v5 = vld [vmem:[#allocation8 + $0xe4] ss:$16 sps:$4 sm:$0xff]   ;;  %13145 = vst [vmem:[#allocation38_spill] sm:$0xff] %v11145_v54 }
 0x210   :  { %13130 = vst [vmem:[#allocation28_spill] sm:$0xff] %v11003_v48  ;;  %v3023_v10 = vpop.f32.mrf.mxu0  ;;  %9850 = vtanh.f32 %v3018_v41  ;;  %v3020_v45 = vadd.f32 %v3019_v27, %v2827_v60  ;;  %v2831_v3 = vadd.f32 %v2830_v31, %v13132_v18  ;;  %3530 = vmatprep.mubr.bf16.mxu1 %v11010_v37  ;;  %3723 = vmatprep.mubr.bf16.mxu0 %v10345_v49  ;;  %v9421_v55 = vld [vmem:[#allocation8 + $0x2e4] ss:$16 sps:$4 sm:$0xff]   ;;  %v10346_v60 = vld [vmem:[#allocation7] sm:$0x3f] }
 0x211   :  { %v11013_v63 = vpack.c.bf16 %v9839_v32, %v9837_v50  ;;  %9852 = vtanh.f32 %v3016_v51  ;;  %v2832_v25 = vpop.f32.mrf.mxu1  ;;  %3833 = vmatpush2.bf16.msra.mxu1 %v9404_v20  ;;  %4026 = vmatpush2.bf16.msra.mxu0 %v9407_v57  ;;  %v13135_v51 = vld [vmem:[#allocation39_spill] sm:$0xff]  ;;  %v11020_v20 = vrot.slane %v10346_v60, %v12986_v33 }
 0x212   :  { %v3025_v9 = vpop.f32.mrf.mxu0  ;;  %9854 = vtanh.f32 %v3020_v45  ;;  %v3024_v30 = vadd.f32 %v3023_v10, %v2831_v3  ;;  %v2833_v22 = vadd.f32 %v2832_v25, %v13134_v52  ;;  %3834 = vmatprep.subr.bf16.mxu1 %v9412_v23  ;;  %4027 = vmatprep.subr.bf16.mxu0 %v9415_v28  ;;  %v13136_v28 = vld [vmem:[#allocation40_spill] sm:$0xff]  ;;  %v11025_v45 = vrot.slane %v10346_v60, %v12985_v47  ;;  %v11077_v48 = vld [vmem:[#allocation2 + $0x224] ss:$24 sps:$4 sm:$0xff]  }
 0x213   :  { %13133 = vst [vmem:[#allocation29_spill] sm:$0xff] %v11013_v63  ;;  %v2834_v27 = vpop.f32.mrf.mxu1  ;;  %v11027_v25 = vld [vmem:[#allocation2 + $0x190] ss:$24 sps:$4 sm:$0xff]  }
 0x214   :  { %v3027_v50 = vpop.f32.mrf.mxu0  ;;  %v3026_v41 = vadd.f32 %v3025_v9, %v2833_v22  ;;  %v2835_v13 = vadd.f32 %v2834_v27, %v13135_v51  ;;  %9856 = vtanh.f32 %v3024_v30  ;;  %v10348_v9 = vld [vmem:[#allocation2 + $0x180] ss:$24 sps:$4 sm:$0xff]   ;;  %v11033_v27 = vld [vmem:[#allocation2 + $0x1c4] ss:$24 sps:$4 sm:$0xff]   ;;  %v10350_v30 = vld [vmem:[#allocation2 + $0x1b4] ss:$24 sps:$4 sm:$0xff]  }
 0x215   :  { %v9841_v57 = vpop.eup %9840  ;;  %v2836_v32 = vpop.f32.mrf.mxu1  ;;  %3835 = vmatpush2.bf16.msra.mxu1 %v9410_v61  ;;  %4028 = vmatpush2.bf16.msra.mxu0 %v9413_v39 }
 0x216   :  { %v3029_v31 = vpop.f32.mrf.mxu0  ;;  %v9843_v10 = vpop.eup %9842  ;;  %v3028_v23 = vadd.f32 %v3027_v50, %v2835_v13  ;;  %v2837_v1 = vadd.f32 %v2836_v32, %v13136_v28  ;;  %5652 = vmatprep.subr.bf16.mxu1 %v9418_v5  ;;  %5845 = vmatprep.subr.bf16.mxu0 %v9421_v55 }
 0x217   :  { %v9845_v18 = vpop.eup %9844  ;;  %v3066_v3 = vpop.f32.mrf.mxu1  ;;  %3531 = vmatmul.mubr.bf16.gmra.mxu1 %v11027_v25  ;;  %3724 = vmatmul.mubr.bf16.gmra.mxu0 %v10348_v9  ;;  %v11030_v61 = vpack.c.bf16 %v9841_v57, %v9843_v10 }
 0x218   :  { %v3259_v49 = vpop.f32.mrf.mxu0  ;;  %v9847_v39 = vpop.eup %9846  ;;  %9858 = vtanh.f32 %v3028_v23  ;;  %v3030_v52 = vadd.f32 %v3029_v31, %v2837_v1  ;;  %v3067_v22 = vadd.f32 %v3066_v3, %v11020_v20  ;;  %3540 = vmatprep.mubr.bf16.mxu1 %v11033_v27  ;;  %3733 = vmatprep.mubr.bf16.mxu0 %v10350_v30  ;;  %v10352_v30 = vld [vmem:[#allocation2 + $0x1b0] ss:$24 sps:$4 sm:$0xff]  }
 0x219   :  { %13137 = vst [vmem:[#allocation30_spill] sm:$0xff] %v11030_v61  ;;  %9860 = vtanh.f32 %v3026_v41  ;;  %v3068_v5 = vpop.f32.mrf.mxu1  ;;  %v11036_v50 = vpack.c.bf16 %v9845_v18, %v9847_v39  ;;  %v9849_v32 = vpop.eup %9848 }
 0x21a   :  { %v3261_v55 = vpop.f32.mrf.mxu0  ;;  %9862 = vtanh.f32 %v3030_v52  ;;  %v11038_v51 = vadd.f32 %v3259_v49, %v3067_v22  ;;  %v3069_v13 = vadd.f32 %v3068_v5, %v11025_v45  ;;  %v11049_v22 = vld [vmem:[#allocation2 + $0x1c0] ss:$24 sps:$4 sm:$0xff]  }
 0x21b   :  { %13138 = vst [vmem:[#allocation31_spill] sm:$0xff] %v11036_v50  ;;  %v3070_v60 = vpop.f32.mrf.mxu1 }
 0x21c   :  { %v3263_v57 = vpop.f32.mrf.mxu0  ;;  %v11041_v31 = vadd.f32 %v3261_v55, %v3069_v13  ;;  %v3071_v10 = vadd.f32 %v3070_v60, %v11020_v20  ;;  %v11055_v13 = vld [vmem:[#allocation2 + $0x1f4] ss:$24 sps:$4 sm:$0xff]   ;;  %v10354_v60 = vld [vmem:[#allocation2 + $0x1e4] ss:$24 sps:$4 sm:$0xff]  }
 0x21d   :  { %v9851_v23 = vpop.eup %9850  ;;  %v3072_v28 = vpop.f32.mrf.mxu1 }
 0x21e   :  { %v3265_v1 = vpop.f32.mrf.mxu0  ;;  %v9853_v41 = vpop.eup %9852  ;;  %v11044_v3 = vadd.f32 %v3263_v57, %v3071_v10  ;;  %v3073_v18 = vadd.f32 %v3072_v28, %v11025_v45  ;;  %v11047_v9 = vpack.c.bf16 %v9851_v23, %v9849_v32 }
 0x21f   :  { %v9855_v49 = vpop.eup %9854  ;;  %v3076_v39 = vpop.f32.mrf.mxu1  ;;  %3541 = vmatmul.mubr.bf16.gmra.mxu1 %v11049_v22  ;;  %3734 = vmatmul.mubr.bf16.gmra.mxu0 %v10352_v30 }
 0x220   :  { %13139 = vst [vmem:[#allocation32_spill] sm:$0xff] %v11047_v9  ;;  %v3269_v52 = vpop.f32.mrf.mxu0  ;;  %v11052_v5 = vadd.f32 %v3265_v1, %v3073_v18  ;;  %v3077_v55 = vadd.f32 %v3076_v39, %v11020_v20  ;;  %3550 = vmatprep.mubr.bf16.mxu1 %v11055_v13  ;;  %3743 = vmatprep.mubr.bf16.mxu0 %v10354_v60 }
 0x221   :  { %v11058_v57 = vpack.c.bf16 %v9855_v49, %v9853_v41  ;;  %v3078_v32 = vpop.f32.mrf.mxu1  ;;  %v9857_v1 = vpop.eup %9856 }
 0x222   :  { %v3271_v10 = vpop.f32.mrf.mxu0  ;;  %v11060_v23 = vadd.f32 %v3269_v52, %v3077_v55  ;;  %v3079_v28 = vadd.f32 %v3078_v32, %v11025_v45 }
 0x223   :  { %13140 = vst [vmem:[#allocation33_spill] sm:$0xff] %v11058_v57  ;;  %v3080_v47 = vpop.f32.mrf.mxu1  ;;  %v11071_v57 = vld [vmem:[#allocation2 + $0x1f0] ss:$24 sps:$4 sm:$0xff]  }
 0x224   :  { %v3273_v30 = vpop.f32.mrf.mxu0  ;;  %v11063_v18 = vadd.f32 %v3271_v10, %v3079_v28  ;;  %v3081_v39 = vadd.f32 %v3080_v47, %v11020_v20  ;;  %v10356_v10 = vld [vmem:[#allocation2 + $0x1e0] ss:$24 sps:$4 sm:$0xff]  }
 0x225   :  { %v9859_v33 = vpop.eup %9858  ;;  %v3082_v9 = vpop.f32.mrf.mxu1 }
 0x226   :  { %v3275_v61 = vpop.f32.mrf.mxu0  ;;  %v9861_v50 = vpop.eup %9860  ;;  %v11066_v60 = vadd.f32 %v3273_v30, %v3081_v39  ;;  %v3083_v41 = vadd.f32 %v3082_v9, %v11025_v45  ;;  %v11069_v49 = vpack.c.bf16 %v9859_v33, %v9857_v1  ;;  %v10358_v9 = vld [vmem:[#allocation2 + $0x214] ss:$24 sps:$4 sm:$0xff]  }
 0x227   :  { %v9863_v52 = vpop.eup %9862  ;;  %v3086_v55 = vpop.f32.mrf.mxu1  ;;  %3551 = vmatmul.mubr.bf16.gmra.mxu1 %v11071_v57  ;;  %3744 = vmatmul.mubr.bf16.gmra.mxu0 %v10356_v10 }
 0x228   :  { %13141 = vst [vmem:[#allocation34_spill] sm:$0xff] %v11069_v49  ;;  %v3279_v32 = vpop.f32.mrf.mxu0  ;;  %v11074_v47 = vadd.f32 %v3275_v61, %v3083_v41  ;;  %v3087_v28 = vadd.f32 %v3086_v55, %v11020_v20  ;;  %3560 = vmatprep.mubr.bf16.mxu1 %v11077_v48  ;;  %3753 = vmatprep.mubr.bf16.mxu0 %v10358_v9 }
 0x229   :  { %v11080_v33 = vpack.c.bf16 %v9863_v52, %v9861_v50  ;;  %v3088_v30 = vpop.f32.mrf.mxu1 }
 0x22a   :  { %v3281_v1 = vpop.f32.mrf.mxu0  ;;  %v11082_v39 = vadd.f32 %v3279_v32, %v3087_v28  ;;  %v3089_v49 = vadd.f32 %v3088_v30, %v11025_v45  ;;  %v10360_v32 = vld [vmem:[#allocation2 + $0x210] ss:$24 sps:$4 sm:$0xff]   ;;  %v11097_v30 = vld [vmem:[#allocation2 + $0x254] ss:$24 sps:$4 sm:$0xff]  }
 0x22b   :  { %13142 = vst [vmem:[#allocation35_spill] sm:$0xff] %v11080_v33  ;;  %v3090_v63 = vpop.f32.mrf.mxu1  ;;  %v11091_v33 = vld [vmem:[#allocation2 + $0x220] ss:$24 sps:$4 sm:$0xff]  }
 0x22c   :  { %v3283_v10 = vpop.f32.mrf.mxu0  ;;  %v11085_v61 = vadd.f32 %v3281_v1, %v3089_v49  ;;  %v3091_v41 = vadd.f32 %v3090_v63, %v11020_v20  ;;  %v10362_v63 = vld [vmem:[#allocation2 + $0x244] ss:$24 sps:$4 sm:$0xff]  }
 0x22d   :  { %v3092_v55 = vpop.f32.mrf.mxu1 }
 0x22e   :  { %v3285_v62 = vpop.f32.mrf.mxu0  ;;  %v11088_v43 = vadd.f32 %v3283_v10, %v3091_v41  ;;  %v3093_v9 = vadd.f32 %v3092_v55, %v11025_v45 }
 0x22f   :  { %v3096_v50 = vpop.f32.mrf.mxu1  ;;  %3561 = vmatmul.mubr.bf16.gmra.mxu1 %v11091_v33  ;;  %3754 = vmatmul.mubr.bf16.gmra.mxu0 %v10360_v32 }
 0x230   :  { %v3289_v52 = vpop.f32.mrf.mxu0  ;;  %v11094_v28 = vadd.f32 %v3285_v62, %v3093_v9  ;;  %v3097_v49 = vadd.f32 %v3096_v50, %v11020_v20  ;;  %3570 = vmatprep.mubr.bf16.mxu1 %v11097_v30  ;;  %3763 = vmatprep.mubr.bf16.mxu0 %v10362_v63 }
 0x231   :  { %v3098_v1 = vpop.f32.mrf.mxu1 }
 0x232   :  { %v3291_v10 = vpop.f32.mrf.mxu0  ;;  %v11100_v41 = vadd.f32 %v3289_v52, %v3097_v49  ;;  %v3099_v55 = vadd.f32 %v3098_v1, %v11025_v45  ;;  %v10364_v52 = vld [vmem:[#allocation2 + $0x240] ss:$24 sps:$4 sm:$0xff]  }
 0x233   :  { %v3100_v19 = vpop.f32.mrf.mxu1 }
 0x234   :  { %v3293_v14 = vpop.f32.mrf.mxu0  ;;  %v11103_v38 = vadd.f32 %v3291_v10, %v3099_v55  ;;  %v3101_v62 = vadd.f32 %v3100_v19, %v11020_v20  ;;  %v11115_v10 = vld [vmem:[#allocation2 + $0x284] ss:$24 sps:$4 sm:$0xff]   ;;  %v10366_v19 = vld [vmem:[#allocation2 + $0x274] ss:$24 sps:$4 sm:$0xff]  }
 0x235   :  { %v3102_v9 = vpop.f32.mrf.mxu1 }
 0x236   :  { %v3295_v50 = vpop.f32.mrf.mxu0  ;;  %v11106_v32 = vadd.f32 %v3293_v14, %v3101_v62  ;;  %v3103_v21 = vadd.f32 %v3102_v9, %v11025_v45 }
 0x237   :  { %v3106_v16 = vpop.f32.mrf.mxu1  ;;  %3571 = vmatmul.mubr.bf16.gmra.mxu1 %v11109_v59  ;;  %3764 = vmatmul.mubr.bf16.gmra.mxu0 %v10364_v52 }
 0x238   :  { %v3299_v63 = vpop.f32.mrf.mxu0  ;;  %v11112_v49 = vadd.f32 %v3295_v50, %v3103_v21  ;;  %v3107_v1 = vadd.f32 %v3106_v16, %v11020_v20  ;;  %3580 = vmatprep.mubr.bf16.mxu1 %v11115_v10  ;;  %3773 = vmatprep.mubr.bf16.mxu0 %v10366_v19 }
 0x239   :  { %v3108_v14 = vpop.f32.mrf.mxu1 }
 0x23a   :  { %v3301_v55 = vpop.f32.mrf.mxu0  ;;  %v11118_v62 = vadd.f32 %v3299_v63, %v3107_v1  ;;  %v3109_v9 = vadd.f32 %v3108_v14, %v11025_v45  ;;  %v10368_v63 = vld [vmem:[#allocation2 + $0x270] ss:$24 sps:$4 sm:$0xff]  }
 0x23b   :  { %v3110_v15 = vpop.f32.mrf.mxu1 }
 0x23c   :  { %v3303_v53 = vpop.f32.mrf.mxu0  ;;  %v11121_v24 = vadd.f32 %v3301_v55, %v3109_v9  ;;  %v3111_v21 = vadd.f32 %v3110_v15, %v11020_v20  ;;  %v11133_v55 = vld [vmem:[#allocation2 + $0x2b4] ss:$24 sps:$4 sm:$0xff]   ;;  %v10370_v15 = vld [vmem:[#allocation2 + $0x2a4] ss:$24 sps:$4 sm:$0xff]  }
 0x23d   :  { %v3112_v50 = vpop.f32.mrf.mxu1 }
 0x23e   :  { %v3305_v16 = vpop.f32.mrf.mxu0  ;;  %v11124_v52 = vadd.f32 %v3303_v53, %v3111_v21  ;;  %v3113_v56 = vadd.f32 %v3112_v50, %v11025_v45 }
 0x23f   :  { %v3116_v36 = vpop.f32.mrf.mxu1  ;;  %3581 = vmatmul.mubr.bf16.gmra.mxu1 %v11127_v26  ;;  %3774 = vmatmul.mubr.bf16.gmra.mxu0 %v10368_v63 }
 0x240   :  { %v3309_v19 = vpop.f32.mrf.mxu0  ;;  %v11130_v1 = vadd.f32 %v3305_v16, %v3113_v56  ;;  %v3117_v14 = vadd.f32 %v3116_v36, %v11020_v20  ;;  %3590 = vmatprep.mubr.bf16.mxu1 %v11133_v55  ;;  %3783 = vmatprep.mubr.bf16.mxu0 %v10370_v15 }
 0x241   :  { %v3118_v53 = vpop.f32.mrf.mxu1 }
 0x242   :  { %v3311_v9 = vpop.f32.mrf.mxu0  ;;  %v11136_v21 = vadd.f32 %v3309_v19, %v3117_v14  ;;  %v3119_v50 = vadd.f32 %v3118_v53, %v11025_v45  ;;  %v10372_v19 = vld [vmem:[#allocation2 + $0x2a0] ss:$24 sps:$4 sm:$0xff]  }
 0x243   :  { %v3120_v4 = vpop.f32.mrf.mxu1 }
 0x244   :  { %v3313_v35 = vpop.f32.mrf.mxu0  ;;  %v11139_v17 = vadd.f32 %v3311_v9, %v3119_v50  ;;  %v3121_v56 = vadd.f32 %v3120_v4, %v11020_v20  ;;  %v11151_v9 = vld [vmem:[#allocation2 + $0x2e4] ss:$24 sps:$4 sm:$0xff]  }
 0x245   :  { %v3122_v16 = vpop.f32.mrf.mxu1  ;;  %13147 = vst [vmem:[#allocation40_spill] sm:$0xff] %v11151_v9 }
 0x246   :  { %13143 = vst [vmem:[#allocation36_spill] sm:$0xff] %v11139_v17  ;;  %v3315_v36 = vpop.f32.mrf.mxu0  ;;  %v11142_v63 = vadd.f32 %v3313_v35, %v3121_v56  ;;  %v3123_v2 = vadd.f32 %v3122_v16, %v11025_v45  ;;  %v10374_v35 = vld [vmem:[#allocation2 + $0x2d4] ss:$24 sps:$4 sm:$0xff]  }
 0x247   :  { %v3126_v6 = vpop.f32.mrf.mxu1  ;;  %3591 = vmatmul.mubr.bf16.gmra.mxu1 %v11145_v54  ;;  %3784 = vmatmul.mubr.bf16.gmra.mxu0 %v10372_v19  ;;  %v9427_v54 = vld [vmem:[#allocation8 + $0x2c4] ss:$16 sps:$4 sm:$0xff]  }
 0x248   :  { %13144 = vst [vmem:[#allocation37_spill] sm:$0xff] %v11142_v63  ;;  %v3319_v15 = vpop.f32.mrf.mxu0  ;;  %v11148_v14 = vadd.f32 %v3315_v36, %v3123_v2  ;;  %v3127_v53 = vadd.f32 %v3126_v6, %v11020_v20  ;;  %3600 = vmatprep.mubr.bf16.mxu1 %v11151_v9  ;;  %3793 = vmatprep.mubr.bf16.mxu0 %v10374_v35  ;;  %v11163_v9 = vld [vmem:[#allocation2 + $0x2e0] ss:$24 sps:$4 sm:$0xff]  }
 0x249   :  { %v3128_v4 = vpop.f32.mrf.mxu1  ;;  %13151 = vst [vmem:[#allocation61_spill] sm:$0xff] %v11163_v9  ;;  %v9433_v63 = vld [vmem:[#allocation8 + $0x2a4] ss:$16 sps:$4 sm:$0xff]  }
 0x24a   :  { %13146 = vst [vmem:[#allocation39_spill] sm:$0xff] %v11148_v14  ;;  %v3321_v50 = vpop.f32.mrf.mxu0  ;;  %v11154_v56 = vadd.f32 %v3319_v15, %v3127_v53  ;;  %v3129_v16 = vadd.f32 %v3128_v4, %v11025_v45  ;;  %v10376_v15 = vld [vmem:[#allocation2 + $0x2d0] ss:$24 sps:$4 sm:$0xff]  }
 0x24b   :  { %v3130_v44 = vpop.f32.mrf.mxu1  ;;  %v9430_v14 = vld [vmem:[#allocation8 + $0xa4] ss:$16 sps:$4 sm:$0xff]  }
 0x24c   :  { %13148 = vst [vmem:[#allocation58_spill] sm:$0xff] %v11154_v56  ;;  %v3323_v12 = vpop.f32.mrf.mxu0  ;;  %v11157_v40 = vadd.f32 %v3321_v50, %v3129_v16  ;;  %v3131_v2 = vadd.f32 %v3130_v44, %v11020_v20  ;;  %v10377_v50 = vld [vmem:[#allocation2 + $0xc] ss:$24 sps:$4 sm:$0xff]  }
 0x24d   :  { %v3132_v36 = vpop.f32.mrf.mxu1  ;;  %v10378_v44 = vld [vmem:[#allocation2 + $0x14] ss:$24 sps:$4 sm:$0xff]  }
 0x24e   :  { %13149 = vst [vmem:[#allocation59_spill] sm:$0xff] %v11157_v40  ;;  %v3325_v6 = vpop.f32.mrf.mxu0  ;;  %v11160_v19 = vadd.f32 %v3323_v12, %v3131_v2  ;;  %v3133_v46 = vadd.f32 %v3132_v36, %v11025_v45 }
 0x24f   :  { %v3136_v34 = vpop.f32.mrf.mxu1  ;;  %3601 = vmatmul.mubr.bf16.gmra.mxu1 %v11163_v9  ;;  %3794 = vmatmul.mubr.bf16.gmra.mxu0 %v10376_v15 }
 0x250   :  { %13150 = vst [vmem:[#allocation60_spill] sm:$0xff] %v11160_v19  ;;  %v3329_v35 = vpop.f32.mrf.mxu0  ;;  %v11166_v53 = vadd.f32 %v3325_v6, %v3133_v46  ;;  %v3137_v4 = vadd.f32 %v3136_v34, %v11020_v20  ;;  %3836 = vmatprep.mubr.bf16.mxu1 %v10377_v50  ;;  %4029 = vmatprep.mubr.bf16.mxu0 %v10378_v44  ;;  %v9416_v46 = vld [vmem:[#allocation8 + $0xe0] ss:$16 sps:$4 sm:$0xff]   ;;  %v9424_v44 = vld [vmem:[#allocation8 + $0xc4] ss:$16 sps:$4 sm:$0xff]  }
 0x251   :  { %v3138_v12 = vpop.f32.mrf.mxu1  ;;  %v9419_v6 = vld [vmem:[#allocation8 + $0x2e0] ss:$16 sps:$4 sm:$0xff]  }
 0x252   :  { %13152 = vst [vmem:[#allocation62_spill] sm:$0xff] %v11166_v53  ;;  %v3331_v16 = vpop.f32.mrf.mxu0  ;;  %v11169_v2 = vadd.f32 %v3329_v35, %v3137_v4  ;;  %v3139_v36 = vadd.f32 %v3138_v12, %v11025_v45  ;;  %v10380_v12 = vld [vmem:[#allocation2 + $0x10] ss:$24 sps:$4 sm:$0xff]  }
 0x253   :  { %v3140_v19 = vpop.f32.mrf.mxu1 }
 0x254   :  { %13153 = vst [vmem:[#allocation63_spill] sm:$0xff] %v11169_v2  ;;  %v3333_v40 = vpop.f32.mrf.mxu0  ;;  %v11172_v56 = vadd.f32 %v3331_v16, %v3139_v36  ;;  %v3141_v15 = vadd.f32 %v3140_v19, %v11020_v20  ;;  %v10379_v2 = vld [vmem:[#allocation2 + $0x8] ss:$24 sps:$4 sm:$0xff]  }
 0x255   :  { %v3142_v9 = vpop.f32.mrf.mxu1  ;;  %v9422_v36 = vld [vmem:[#allocation8 + $0xc0] ss:$16 sps:$4 sm:$0xff]  }
 0x256   :  { %13154 = vst [vmem:[#allocation64_spill] sm:$0xff] %v11172_v56  ;;  %v3335_v34 = vpop.f32.mrf.mxu0  ;;  %v11175_v53 = vadd.f32 %v3333_v40, %v3141_v15  ;;  %v3143_v50 = vadd.f32 %v3142_v9, %v11025_v45  ;;  %v9425_v56 = vld [vmem:[#allocation8 + $0x2c0] ss:$16 sps:$4 sm:$0xff]  }
 0x257   :  { %v3146_v35 = vpop.f32.mrf.mxu1  ;;  %3837 = vmatmul.mubr.bf16.vlgmr.msra.gmra.mxu1 %v10379_v2  ;;  %4030 = vmatmul.mubr.bf16.vlgmr.msra.gmra.mxu0 %v10380_v12  ;;  %v10382_v9 = vld [vmem:[#allocation2 + $0x44] ss:$24 sps:$4 sm:$0xff]  }
 0x258   :  { %13155 = vst [vmem:[#allocation65_spill] sm:$0xff] %v11175_v53  ;;  %v3339_v4 = vpop.f32.mrf.mxu0  ;;  %v11178_v16 = vadd.f32 %v3335_v34, %v3143_v50  ;;  %v3147_v19 = vadd.f32 %v3146_v35, %v11020_v20  ;;  %5653 = vmatpush1.bf16.msra.mxu1 %v9416_v46  ;;  %5846 = vmatpush1.bf16.msra.mxu0 %v9419_v6  ;;  %v10381_v53 = vld [vmem:[#allocation2 + $0x3c] ss:$24 sps:$4 sm:$0xff]  }
 0x259   :  { %v3148_v40 = vpop.f32.mrf.mxu1  ;;  %3846 = vmatprep.mubr.bf16.mxu1 %v10381_v53  ;;  %4039 = vmatprep.mubr.bf16.mxu0 %v10382_v9  ;;  %v9428_v12 = vld [vmem:[#allocation8 + $0xa0] ss:$16 sps:$4 sm:$0xff]  }
 0x25a   :  { %v3341_v15 = vpop.f32.mrf.mxu0  ;;  %v11181_v17 = vadd.f32 %v3339_v4, %v3147_v19  ;;  %v3149_v2 = vadd.f32 %v3148_v40, %v11025_v45  ;;  %5654 = vmatprep.subr.bf16.mxu1 %v9424_v44  ;;  %5847 = vmatprep.subr.bf16.mxu0 %v9427_v54  ;;  %v9431_v9 = vld [vmem:[#allocation8 + $0x2a0] ss:$16 sps:$4 sm:$0xff]   ;;  %v9436_v44 = vld [vmem:[#allocation8 + $0x84] ss:$16 sps:$4 sm:$0xff]  }
 0x25b   :  { %v3150_v34 = vpop.f32.mrf.mxu1  ;;  %v9439_v54 = vld [vmem:[#allocation8 + $0x284] ss:$16 sps:$4 sm:$0xff]  }
 0x25c   :  { %13156 = vst [vmem:[#allocation66_spill] sm:$0xff] %v11181_v17  ;;  %v3343_v50 = vpop.f32.mrf.mxu0  ;;  %v11184_v46 = vadd.f32 %v3341_v15, %v3149_v2  ;;  %v3151_v6 = vadd.f32 %v3150_v34, %v11020_v20  ;;  %5655 = vmatpush1.bf16.msra.mxu1 %v9422_v36  ;;  %5848 = vmatpush1.bf16.msra.mxu0 %v9425_v56  ;;  %v10383_v15 = vld [vmem:[#allocation2 + $0x38] ss:$24 sps:$4 sm:$0xff]   ;;  %v10385_v34 = vld [vmem:[#allocation2 + $0x6c] ss:$24 sps:$4 sm:$0xff]  }
 0x25d   :  { %v3152_v35 = vpop.f32.mrf.mxu1  ;;  %5656 = vmatprep.subr.bf16.mxu1 %v9430_v14  ;;  %5849 = vmatprep.subr.bf16.mxu0 %v9433_v63  ;;  %v10384_v2 = vld [vmem:[#allocation2 + $0x40] ss:$24 sps:$4 sm:$0xff]   ;;  %v10386_v14 = vld [vmem:[#allocation2 + $0x74] ss:$24 sps:$4 sm:$0xff]  }
 0x25e   :  { %13157 = vst [vmem:[#allocation67_spill] sm:$0xff] %v11184_v46  ;;  %v3345_v53 = vpop.f32.mrf.mxu0  ;;  %v11187_v4 = vadd.f32 %v3343_v50, %v3151_v6  ;;  %v3153_v19 = vadd.f32 %v3152_v35, %v11025_v45  ;;  %v9434_v6 = vld [vmem:[#allocation8 + $0x80] ss:$16 sps:$4 sm:$0xff]  }
 0x25f   :  { %v3156_v40 = vpop.f32.mrf.mxu1  ;;  %3847 = vmatmul.mubr.bf16.gmra.mxu1 %v10383_v15  ;;  %4040 = vmatmul.mubr.bf16.gmra.mxu0 %v10384_v2  ;;  %v9437_v35 = vld [vmem:[#allocation8 + $0x280] ss:$16 sps:$4 sm:$0xff]  }
 0x260   :  { %13158 = vst [vmem:[#allocation68_spill] sm:$0xff] %v11187_v4  ;;  %v3349_v17 = vpop.f32.mrf.mxu0  ;;  %v11190_v36 = vadd.f32 %v3345_v53, %v3153_v19  ;;  %v3157_v56 = vadd.f32 %v3156_v40, %v11020_v20  ;;  %3856 = vmatprep.mubr.bf16.mxu1 %v10385_v34  ;;  %4049 = vmatprep.mubr.bf16.mxu0 %v10386_v14  ;;  %v9442_v53 = vld [vmem:[#allocation8 + $0x64] ss:$16 sps:$4 sm:$0xff]  }
 0x261   :  { %v3158_v63 = vpop.f32.mrf.mxu1  ;;  %5657 = vmatpush1.bf16.msra.mxu1 %v9428_v12  ;;  %5850 = vmatpush1.bf16.msra.mxu0 %v9431_v9  ;;  %v9445_v19 = vld [vmem:[#allocation8 + $0x264] ss:$16 sps:$4 sm:$0xff]   ;;  %v9440_v12 = vld [vmem:[#allocation8 + $0x60] ss:$16 sps:$4 sm:$0xff]  }
 0x262   :  { %13159 = vst [vmem:[#allocation69_spill] sm:$0xff] %v11190_v36  ;;  %v3351_v50 = vpop.f32.mrf.mxu0  ;;  %v11193_v4 = vadd.f32 %v3349_v17, %v3157_v56  ;;  %v3159_v15 = vadd.f32 %v3158_v63, %v11025_v45  ;;  %5658 = vmatprep.subr.bf16.mxu1 %v9436_v44  ;;  %5851 = vmatprep.subr.bf16.mxu0 %v9439_v54  ;;  %v9443_v9 = vld [vmem:[#allocation8 + $0x260] ss:$16 sps:$4 sm:$0xff]   ;;  %v9448_v44 = vld [vmem:[#allocation8 + $0x44] ss:$16 sps:$4 sm:$0xff]  }
 0x263   :  { %v3160_v2 = vpop.f32.mrf.mxu1  ;;  %v9451_v54 = vld [vmem:[#allocation8 + $0x244] ss:$16 sps:$4 sm:$0xff]  }
 0x264   :  { %13160 = vst [vmem:[#allocation70_spill] sm:$0xff] %v11193_v4  ;;  %v3353_v40 = vpop.f32.mrf.mxu0  ;;  %v11196_v36 = vadd.f32 %v3351_v50, %v3159_v15  ;;  %v3161_v34 = vadd.f32 %v3160_v2, %v11020_v20  ;;  %v10387_v50 = vld [vmem:[#allocation2 + $0x68] ss:$24 sps:$4 sm:$0xff]  }
 0x265   :  { %v3162_v14 = vpop.f32.mrf.mxu1  ;;  %5659 = vmatpush1.bf16.msra.mxu1 %v9434_v6  ;;  %5852 = vmatpush1.bf16.msra.mxu0 %v9437_v35  ;;  %v10388_v15 = vld [vmem:[#allocation2 + $0x70] ss:$24 sps:$4 sm:$0xff]   ;;  %v10389_v35 = vld [vmem:[#allocation2 + $0x9c] ss:$24 sps:$4 sm:$0xff]  }
 0x266   :  { %13161 = vst [vmem:[#allocation71_spill] sm:$0xff] %v11196_v36  ;;  %v3355_v46 = vpop.f32.mrf.mxu0  ;;  %v11199_v17 = vadd.f32 %v3353_v40, %v3161_v34  ;;  %v3163_v56 = vadd.f32 %v3162_v14, %v11025_v45  ;;  %5660 = vmatprep.subr.bf16.mxu1 %v9442_v53  ;;  %5853 = vmatprep.subr.bf16.mxu0 %v9445_v19  ;;  %v10390_v40 = vld [vmem:[#allocation2 + $0xa4] ss:$24 sps:$4 sm:$0xff]  }
 0x267   :  { %v3166_v63 = vpop.f32.mrf.mxu1  ;;  %3857 = vmatmul.mubr.bf16.gmra.mxu1 %v10387_v50  ;;  %4050 = vmatmul.mubr.bf16.gmra.mxu0 %v10388_v15  ;;  %v9446_v53 = vld [vmem:[#allocation8 + $0x40] ss:$16 sps:$4 sm:$0xff]  }
 0x268   :  { %13162 = vst [vmem:[#allocation72_spill] sm:$0xff] %v11199_v17  ;;  %v3359_v4 = vpop.f32.mrf.mxu0  ;;  %v11202_v2 = vadd.f32 %v3355_v46, %v3163_v56  ;;  %v3167_v6 = vadd.f32 %v3166_v63, %v11020_v20  ;;  %3866 = vmatprep.mubr.bf16.mxu1 %v10389_v35  ;;  %4059 = vmatprep.mubr.bf16.mxu0 %v10390_v40  ;;  %v9449_v19 = vld [vmem:[#allocation8 + $0x240] ss:$16 sps:$4 sm:$0xff]   ;;  %v9454_v46 = vld [vmem:[#allocation8 + $0x24] ss:$16 sps:$4 sm:$0xff]  }
 0x269   :  { %v3168_v34 = vpop.f32.mrf.mxu1  ;;  %5661 = vmatpush1.bf16.msra.mxu1 %v9440_v12  ;;  %5854 = vmatpush1.bf16.msra.mxu0 %v9443_v9  ;;  %v9457_v56 = vld [vmem:[#allocation8 + $0x224] ss:$16 sps:$4 sm:$0xff]   ;;  %v9452_v12 = vld [vmem:[#allocation8 + $0x20] ss:$16 sps:$4 sm:$0xff]  }
 0x26a   :  { %13163 = vst [vmem:[#allocation73_spill] sm:$0xff] %v11202_v2  ;;  %v3361_v14 = vpop.f32.mrf.mxu0  ;;  %v11205_v17 = vadd.f32 %v3359_v4, %v3167_v6  ;;  %v3169_v50 = vadd.f32 %v3168_v34, %v11025_v45  ;;  %5662 = vmatprep.subr.bf16.mxu1 %v9448_v44  ;;  %5855 = vmatprep.subr.bf16.mxu0 %v9451_v54  ;;  %v9455_v9 = vld [vmem:[#allocation8 + $0x220] ss:$16 sps:$4 sm:$0xff]   ;;  %v9460_v44 = vld [vmem:[#allocation8 + $0x4] ss:$16 sps:$4 sm:$0xff]  }
 0x26b   :  { %v3170_v15 = vpop.f32.mrf.mxu1  ;;  %v9463_v54 = vld [vmem:[#allocation8 + $0x204] ss:$16 sps:$4 sm:$0xff]  }
 0x26c   :  { %13164 = vst [vmem:[#allocation74_spill] sm:$0xff] %v11205_v17  ;;  %v3363_v63 = vpop.f32.mrf.mxu0  ;;  %v11208_v2 = vadd.f32 %v3361_v14, %v3169_v50  ;;  %v3171_v35 = vadd.f32 %v3170_v15, %v11020_v20  ;;  %v10391_v14 = vld [vmem:[#allocation2 + $0x98] ss:$24 sps:$4 sm:$0xff]  }
 0x26d   :  { %v3172_v40 = vpop.f32.mrf.mxu1  ;;  %5663 = vmatpush1.bf16.msra.mxu1 %v9446_v53  ;;  %5856 = vmatpush1.bf16.msra.mxu0 %v9449_v19  ;;  %v10392_v50 = vld [vmem:[#allocation2 + $0xa0] ss:$24 sps:$4 sm:$0xff]   ;;  %v10393_v19 = vld [vmem:[#allocation2 + $0xcc] ss:$24 sps:$4 sm:$0xff]  }
 0x26e   :  { %13165 = vst [vmem:[#allocation75_spill] sm:$0xff] %v11208_v2  ;;  %v3365_v36 = vpop.f32.mrf.mxu0  ;;  %v11211_v4 = vadd.f32 %v3363_v63, %v3171_v35  ;;  %v3173_v6 = vadd.f32 %v3172_v40, %v11025_v45  ;;  %5664 = vmatprep.subr.bf16.mxu1 %v9454_v46  ;;  %5857 = vmatprep.subr.bf16.mxu0 %v9457_v56  ;;  %v10394_v63 = vld [vmem:[#allocation2 + $0xd4] ss:$24 sps:$4 sm:$0xff]  }
 0x26f   :  { %v3176_v34 = vpop.f32.mrf.mxu1  ;;  %3867 = vmatmul.mubr.bf16.gmra.mxu1 %v10391_v14  ;;  %4060 = vmatmul.mubr.bf16.gmra.mxu0 %v10392_v50  ;;  %v9458_v46 = vld [vmem:[#allocation8] ss:$16 sps:$4 sm:$0xff]  }
 0x270   :  { %13166 = vst [vmem:[#allocation76_spill] sm:$0xff] %v11211_v4  ;;  %v3369_v17 = vpop.f32.mrf.mxu0  ;;  %v11214_v15 = vadd.f32 %v3365_v36, %v3173_v6  ;;  %v3177_v53 = vadd.f32 %v3176_v34, %v11020_v20  ;;  %3876 = vmatprep.mubr.bf16.mxu1 %v10393_v19  ;;  %4069 = vmatprep.mubr.bf16.mxu0 %v10394_v63  ;;  %v9461_v56 = vld [vmem:[#allocation8 + $0x200] ss:$16 sps:$4 sm:$0xff]   ;;  %v9466_v36 = vld [vmem:[#allocation8 + $0x1e4] ss:$16 sps:$4 sm:$0xff]  }
 0x271   :  { %v3178_v35 = vpop.f32.mrf.mxu1  ;;  %5665 = vmatpush1.bf16.msra.mxu1 %v9452_v12  ;;  %5858 = vmatpush1.bf16.msra.mxu0 %v9455_v9  ;;  %v9469_v6 = vld [vmem:[#allocation8 + $0x3e4] ss:$16 sps:$4 sm:$0xff]   ;;  %v9464_v12 = vld [vmem:[#allocation8 + $0x1e0] ss:$16 sps:$4 sm:$0xff]  }
 0x272   :  { %13167 = vst [vmem:[#allocation77_spill] sm:$0xff] %v11214_v15  ;;  %v3371_v40 = vpop.f32.mrf.mxu0  ;;  %v11217_v4 = vadd.f32 %v3369_v17, %v3177_v53  ;;  %v3179_v14 = vadd.f32 %v3178_v35, %v11025_v45  ;;  %5666 = vmatprep.subr.bf16.mxu1 %v9460_v44  ;;  %5859 = vmatprep.subr.bf16.mxu0 %v9463_v54  ;;  %v9467_v9 = vld [vmem:[#allocation8 + $0x3e0] ss:$16 sps:$4 sm:$0xff]   ;;  %v9472_v44 = vld [vmem:[#allocation8 + $0x1c4] ss:$16 sps:$4 sm:$0xff]  }
 0x273   :  { %v3180_v50 = vpop.f32.mrf.mxu1  ;;  %v9475_v54 = vld [vmem:[#allocation8 + $0x3c4] ss:$16 sps:$4 sm:$0xff]  }
 0x274   :  { %13168 = vst [vmem:[#allocation78_spill] sm:$0xff] %v11217_v4  ;;  %v3373_v34 = vpop.f32.mrf.mxu0  ;;  %v11220_v15 = vadd.f32 %v3371_v40, %v3179_v14  ;;  %v3181_v19 = vadd.f32 %v3180_v50, %v11020_v20  ;;  %v10395_v40 = vld [vmem:[#allocation2 + $0xc8] ss:$24 sps:$4 sm:$0xff]  }
 0x275   :  { %v3182_v63 = vpop.f32.mrf.mxu1  ;;  %5667 = vmatpush1.bf16.msra.mxu1 %v9458_v46  ;;  %5860 = vmatpush1.bf16.msra.mxu0 %v9461_v56  ;;  %v10396_v56 = vld [vmem:[#allocation2 + $0xfc] ss:$24 sps:$4 sm:$0xff]  }
 0x276   :  { %v3375_v2 = vpop.f32.mrf.mxu0  ;;  %v11223_v17 = vadd.f32 %v3373_v34, %v3181_v19  ;;  %v3183_v53 = vadd.f32 %v3182_v63, %v11025_v45  ;;  %5668 = vmatprep.subr.bf16.mxu1 %v9466_v36  ;;  %5861 = vmatprep.subr.bf16.mxu0 %v9469_v6  ;;  %v9470_v36 = vld [vmem:[#allocation8 + $0x1c0] ss:$16 sps:$4 sm:$0xff]  }
 0x277   :  { %v3186_v35 = vpop.f32.mrf.mxu1  ;;  %3877 = vmatmul.mubr.bf16.gmra.mxu1 %v10395_v40  ;;  %4070 = vmatmul.mubr.bf16.gmra.mxu0 %v10963_v8  ;;  %v9473_v6 = vld [vmem:[#allocation8 + $0x3c0] ss:$16 sps:$4 sm:$0xff]   ;;  %v9478_v8 = vld [vmem:[#allocation8 + $0x1a4] ss:$16 sps:$4 sm:$0xff]  }
 0x278   :  { %v3379_v4 = vpop.f32.mrf.mxu0  ;;  %v11227_v14 = vadd.f32 %v3375_v2, %v3183_v53  ;;  %v3187_v46 = vadd.f32 %v3186_v35, %v11020_v20  ;;  %3886 = vmatprep.mubr.bf16.mxu1 %v10396_v56  ;;  %4079 = vmatprep.mubr.bf16.mxu0 %v10967_v58  ;;  %v9481_v2 = vld [vmem:[#allocation8 + $0x3a4] ss:$16 sps:$4 sm:$0xff]  }
 0x279   :  { %v3188_v50 = vpop.f32.mrf.mxu1  ;;  %5669 = vmatpush2.bf16.msra.mxu1 %v9464_v12  ;;  %5862 = vmatpush2.bf16.msra.mxu0 %v9467_v9  ;;  %v9476_v12 = vld [vmem:[#allocation8 + $0x1a0] ss:$16 sps:$4 sm:$0xff]  }
 0x27a   :  { %13169 = vst [vmem:[#allocation79_spill] sm:$0xff] %v11227_v14  ;;  %v3381_v34 = vpop.f32.mrf.mxu0  ;;  %v11231_v19 = vadd.f32 %v3379_v4, %v3187_v46  ;;  %v3189_v63 = vadd.f32 %v3188_v50, %v11025_v45  ;;  %5670 = vmatprep.subr.bf16.mxu1 %v9472_v44  ;;  %5863 = vmatprep.subr.bf16.mxu0 %v9475_v54  ;;  %v9479_v9 = vld [vmem:[#allocation8 + $0x3a0] ss:$16 sps:$4 sm:$0xff]   ;;  %v9484_v44 = vld [vmem:[#allocation8 + $0x184] ss:$16 sps:$4 sm:$0xff]  }
 0x27b   :  { %v3190_v53 = vpop.f32.mrf.mxu1  ;;  %v9487_v54 = vld [vmem:[#allocation8 + $0x384] ss:$16 sps:$4 sm:$0xff]  }
 0x27c   :  { %13170 = vst [vmem:[#allocation80_spill] sm:$0xff] %v11231_v19  ;;  %v3383_v35 = vpop.f32.mrf.mxu0  ;;  %v11234_v40 = vadd.f32 %v3381_v34, %v3189_v63  ;;  %v3191_v58 = vadd.f32 %v3190_v53, %v11020_v20  ;;  %v10397_v34 = vld [vmem:[#allocation2 + $0xf8] ss:$24 sps:$4 sm:$0xff]  }
 0x27d   :  { %v3192_v56 = vpop.f32.mrf.mxu1  ;;  %5671 = vmatpush2.bf16.msra.mxu1 %v9470_v36  ;;  %5864 = vmatpush2.bf16.msra.mxu0 %v9473_v6  ;;  %v10398_v6 = vld [vmem:[#allocation2 + $0x12c] ss:$24 sps:$4 sm:$0xff]  }
 0x27e   :  { %v3385_v14 = vpop.f32.mrf.mxu0  ;;  %v11237_v4 = vadd.f32 %v3383_v35, %v3191_v58  ;;  %v3193_v46 = vadd.f32 %v3192_v56, %v11025_v45  ;;  %5672 = vmatprep.subr.bf16.mxu1 %v9478_v8  ;;  %5865 = vmatprep.subr.bf16.mxu0 %v9481_v2  ;;  %v9482_v8 = vld [vmem:[#allocation8 + $0x180] ss:$16 sps:$4 sm:$0xff]  }
 0x27f   :  { %v3196_v50 = vpop.f32.mrf.mxu1  ;;  %3887 = vmatmul.mubr.bf16.gmra.mxu1 %v10397_v34  ;;  %4080 = vmatmul.mubr.bf16.gmra.mxu0 %v10977_v0  ;;  %v9485_v2 = vld [vmem:[#allocation8 + $0x380] ss:$16 sps:$4 sm:$0xff]   ;;  %v9490_v0 = vld [vmem:[#allocation8 + $0x164] ss:$16 sps:$4 sm:$0xff]  }
 0x280   :  { %v3389_v19 = vpop.f32.mrf.mxu0  ;;  %v11241_v63 = vadd.f32 %v3385_v14, %v3193_v46  ;;  %v3197_v36 = vadd.f32 %v3196_v50, %v11020_v20  ;;  %3896 = vmatprep.mubr.bf16.mxu1 %v10398_v6  ;;  %4089 = vmatprep.mubr.bf16.mxu0 %v10981_v29  ;;  %v9493_v14 = vld [vmem:[#allocation8 + $0x364] ss:$16 sps:$4 sm:$0xff]  }
 0x281   :  { %v3198_v53 = vpop.f32.mrf.mxu1  ;;  %5673 = vmatpush2.bf16.msra.mxu1 %v9476_v12  ;;  %5866 = vmatpush2.bf16.msra.mxu0 %v9479_v9  ;;  %v9488_v12 = vld [vmem:[#allocation8 + $0x160] ss:$16 sps:$4 sm:$0xff]  }
 0x282   :  { %13171 = vst [vmem:[#allocation81_spill] sm:$0xff] %v11241_v63  ;;  %v3391_v35 = vpop.f32.mrf.mxu0  ;;  %v11245_v58 = vadd.f32 %v3389_v19, %v3197_v36  ;;  %v3199_v56 = vadd.f32 %v3198_v53, %v11025_v45  ;;  %5674 = vmatprep.subr.bf16.mxu1 %v9484_v44  ;;  %5867 = vmatprep.subr.bf16.mxu0 %v9487_v54  ;;  %v9491_v9 = vld [vmem:[#allocation8 + $0x360] ss:$16 sps:$4 sm:$0xff]   ;;  %v9496_v44 = vld [vmem:[#allocation8 + $0x144] ss:$16 sps:$4 sm:$0xff]  }
 0x283   :  { %v3200_v46 = vpop.f32.mrf.mxu1  ;;  %v9499_v54 = vld [vmem:[#allocation8 + $0x344] ss:$16 sps:$4 sm:$0xff]  }
 0x284   :  { %13172 = vst [vmem:[#allocation82_spill] sm:$0xff] %v11245_v58  ;;  %v3393_v50 = vpop.f32.mrf.mxu0  ;;  %v11248_v34 = vadd.f32 %v3391_v35, %v3199_v56  ;;  %v3201_v29 = vadd.f32 %v3200_v46, %v11020_v20  ;;  %v10399_v35 = vld [vmem:[#allocation2 + $0x128] ss:$24 sps:$4 sm:$0xff]  }
 0x285   :  { %v3202_v6 = vpop.f32.mrf.mxu1  ;;  %5675 = vmatpush2.bf16.msra.mxu1 %v9482_v8  ;;  %5868 = vmatpush2.bf16.msra.mxu0 %v9485_v2  ;;  %v10400_v2 = vld [vmem:[#allocation2 + $0x15c] ss:$24 sps:$4 sm:$0xff]  }
 0x286   :  { %v3395_v63 = vpop.f32.mrf.mxu0  ;;  %v11251_v19 = vadd.f32 %v3393_v50, %v3201_v29  ;;  %v3203_v36 = vadd.f32 %v3202_v6, %v11025_v45  ;;  %5676 = vmatprep.subr.bf16.mxu1 %v9490_v0  ;;  %5869 = vmatprep.subr.bf16.mxu0 %v9493_v14  ;;  %v9494_v0 = vld [vmem:[#allocation8 + $0x140] ss:$16 sps:$4 sm:$0xff]  }
 0x287   :  { %v3206_v53 = vpop.f32.mrf.mxu1  ;;  %3897 = vmatmul.mubr.bf16.gmra.mxu1 %v10399_v35  ;;  %4090 = vmatmul.mubr.bf16.gmra.mxu0 %v10991_v7  ;;  %v9497_v14 = vld [vmem:[#allocation8 + $0x340] ss:$16 sps:$4 sm:$0xff]   ;;  %v9502_v7 = vld [vmem:[#allocation8 + $0x124] ss:$16 sps:$4 sm:$0xff]  }
 0x288   :  { %v3399_v58 = vpop.f32.mrf.mxu0  ;;  %v11255_v56 = vadd.f32 %v3395_v63, %v3203_v36  ;;  %v3207_v8 = vadd.f32 %v3206_v53, %v11020_v20  ;;  %3906 = vmatprep.mubr.bf16.mxu1 %v10400_v2  ;;  %4099 = vmatprep.mubr.bf16.mxu0 %v10995_v11  ;;  %v9505_v63 = vld [vmem:[#allocation8 + $0x324] ss:$16 sps:$4 sm:$0xff]  }
 0x289   :  { %v3208_v46 = vpop.f32.mrf.mxu1  ;;  %5677 = vmatpush2.bf16.msra.mxu1 %v9488_v12  ;;  %5870 = vmatpush2.bf16.msra.mxu0 %v9491_v9  ;;  %v9500_v12 = vld [vmem:[#allocation8 + $0x120] ss:$16 sps:$4 sm:$0xff]  }
 0x28a   :  { %13173 = vst [vmem:[#allocation83_spill] sm:$0xff] %v11255_v56  ;;  %v3401_v50 = vpop.f32.mrf.mxu0  ;;  %v11259_v29 = vadd.f32 %v3399_v58, %v3207_v8  ;;  %v3209_v6 = vadd.f32 %v3208_v46, %v11025_v45  ;;  %5678 = vmatprep.subr.bf16.mxu1 %v9496_v44  ;;  %5871 = vmatprep.subr.bf16.mxu0 %v9499_v54  ;;  %v9503_v9 = vld [vmem:[#allocation8 + $0x320] ss:$16 sps:$4 sm:$0xff]   ;;  %v9508_v44 = vld [vmem:[#allocation8 + $0x104] ss:$16 sps:$4 sm:$0xff]  }
 0x28b   :  { %v3210_v36 = vpop.f32.mrf.mxu1  ;;  %v9511_v54 = vld [vmem:[#allocation8 + $0x304] ss:$16 sps:$4 sm:$0xff]  }
 0x28c   :  { %13174 = vst [vmem:[#allocation84_spill] sm:$0xff] %v11259_v29  ;;  %v3403_v53 = vpop.f32.mrf.mxu0  ;;  %v11262_v35 = vadd.f32 %v3401_v50, %v3209_v6  ;;  %v3211_v11 = vadd.f32 %v3210_v36, %v11020_v20  ;;  %v10401_v50 = vld [vmem:[#allocation2 + $0x158] ss:$24 sps:$4 sm:$0xff]  }
 0x28d   :  { %v3212_v2 = vpop.f32.mrf.mxu1  ;;  %5679 = vmatpush2.bf16.msra.mxu1 %v9494_v0  ;;  %5872 = vmatpush2.bf16.msra.mxu0 %v9497_v14  ;;  %v10402_v14 = vld [vmem:[#allocation2 + $0x18c] ss:$24 sps:$4 sm:$0xff]  }
 0x28e   :  { %v3405_v56 = vpop.f32.mrf.mxu0  ;;  %v11265_v58 = vadd.f32 %v3403_v53, %v3211_v11  ;;  %v3213_v8 = vadd.f32 %v3212_v2, %v11025_v45  ;;  %5680 = vmatprep.subr.bf16.mxu1 %v9502_v7  ;;  %5873 = vmatprep.subr.bf16.mxu0 %v9505_v63  ;;  %v9506_v7 = vld [vmem:[#allocation8 + $0x100] ss:$16 sps:$4 sm:$0xff]  }
 0x28f   :  { %v3216_v46 = vpop.f32.mrf.mxu1  ;;  %3907 = vmatmul.mubr.bf16.gmra.mxu1 %v10401_v50  ;;  %4100 = vmatmul.mubr.bf16.gmra.mxu0 %v11005_v42  ;;  %v9509_v63 = vld [vmem:[#allocation8 + $0x300] ss:$16 sps:$4 sm:$0xff]   ;;  %v9514_v42 = vld [vmem:[#allocation8 + $0x4e4] ss:$16 sps:$4 sm:$0xff]  }
 0x290   :  { %v3409_v29 = vpop.f32.mrf.mxu0  ;;  %v11269_v6 = vadd.f32 %v3405_v56, %v3213_v8  ;;  %v3217_v0 = vadd.f32 %v3216_v46, %v11020_v20  ;;  %3916 = vmatprep.mubr.bf16.mxu1 %v10402_v14  ;;  %4109 = vmatprep.mubr.bf16.mxu0 %v11010_v37  ;;  %v9517_v56 = vld [vmem:[#allocation8 + $0xec] ss:$16 sps:$4 sm:$0xff]  }
 0x291   :  { %v3218_v36 = vpop.f32.mrf.mxu1  ;;  %5681 = vmatpush2.bf16.msra.mxu1 %v9500_v12  ;;  %5874 = vmatpush2.bf16.msra.mxu0 %v9503_v9 }
 0x292   :  { %13175 = vst [vmem:[#allocation85_spill] sm:$0xff] %v11269_v6  ;;  %v3411_v53 = vpop.f32.mrf.mxu0  ;;  %v11273_v11 = vadd.f32 %v3409_v29, %v3217_v0  ;;  %v3219_v2 = vadd.f32 %v3218_v36, %v11025_v45  ;;  %5682 = vmatprep.subr.bf16.mxu1 %v9508_v44  ;;  %5875 = vmatprep.subr.bf16.mxu0 %v9511_v54  ;;  %v10403_v54 = vld [vmem:[#allocation2 + $0x188] ss:$24 sps:$4 sm:$0xff]  }
 0x293   :  { %v3220_v8 = vpop.f32.mrf.mxu1 }
 0x294   :  { %v3413_v46 = vpop.f32.mrf.mxu0  ;;  %v11276_v50 = vadd.f32 %v3411_v53, %v3219_v2  ;;  %v3221_v37 = vadd.f32 %v3220_v8, %v11020_v20  ;;  %v10404_v20 = vld [vmem:[#allocation2 + $0x1bc] ss:$24 sps:$4 sm:$0xff]   ;;  %v10405_v8 = vld [vmem:[#allocation2 + $0x1b8] ss:$24 sps:$4 sm:$0xff]  }
 0x295   :  { %v3222_v14 = vpop.f32.mrf.mxu1  ;;  %5683 = vmatpush2.bf16.msra.mxu1 %v9506_v7  ;;  %5876 = vmatpush2.bf16.msra.mxu0 %v9509_v63 }
 0x296   :  { %v3415_v6 = vpop.f32.mrf.mxu0  ;;  %v11279_v12 = vadd.f32 %v3413_v46, %v3221_v37  ;;  %v3223_v29 = vadd.f32 %v3222_v14, %v11025_v45  ;;  %6038 = vmatprep.subr.bf16.mxu1 %v9514_v42  ;;  %6231 = vmatprep.subr.bf16.mxu0 %v9517_v56 }
 0x297   :  { %v3452_v9 = vpop.f32.mrf.mxu1  ;;  %3917 = vmatmul.mubr.bf16.gmra.mxu1 %v10403_v54  ;;  %4110 = vmatmul.mubr.bf16.gmra.mxu0 %v11027_v25 }
 0x298   :  { %v11282_v44 = vpop.f32.mrf.mxu0  ;;  %v11285_v0 = vadd.f32 %v3415_v6, %v3223_v29  ;;  %3926 = vmatprep.mubr.bf16.mxu1 %v10404_v20  ;;  %4119 = vmatprep.mubr.bf16.mxu0 %v11033_v27  ;;  %v3453_v36 = vadd.f32 %v3452_v9, %v11038_v51 }
 0x299   :  { %v3454_v53 = vpop.f32.mrf.mxu1 }
 0x29a   :  { %v11289_v7 = vpop.f32.mrf.mxu0  ;;  %v3455_v45 = vadd.f32 %v3454_v53, %v11041_v31  ;;  %9864 = vtanh.f32 %v3453_v36  ;;  %v10406_v31 = vld [vmem:[#allocation2 + $0x1ec] ss:$24 sps:$4 sm:$0xff]   ;;  %v10407_v36 = vld [vmem:[#allocation2 + $0x1e8] ss:$24 sps:$4 sm:$0xff]  }
 0x29b   :  { %v3456_v63 = vpop.f32.mrf.mxu1 }
 0x29c   :  { %v11292_v2 = vpop.f32.mrf.mxu0  ;;  %v3457_v42 = vadd.f32 %v3456_v63, %v11044_v3 }
 0x29d   :  { %v3458_v25 = vpop.f32.mrf.mxu1 }
 0x29e   :  { %v11295_v6 = vpop.f32.mrf.mxu0  ;;  %9866 = vtanh.f32 %v3457_v42  ;;  %v3459_v56 = vadd.f32 %v3458_v25, %v11052_v5 }
 0x29f   :  { %9868 = vtanh.f32 %v3455_v45  ;;  %v3462_v27 = vpop.f32.mrf.mxu1  ;;  %3927 = vmatmul.mubr.bf16.gmra.mxu1 %v10405_v8  ;;  %4120 = vmatmul.mubr.bf16.gmra.mxu0 %v11049_v22 }
 0x2a0   :  { %v11298_v51 = vpop.f32.mrf.mxu0  ;;  %9870 = vtanh.f32 %v3459_v56  ;;  %3936 = vmatprep.mubr.bf16.mxu1 %v10406_v31  ;;  %4129 = vmatprep.mubr.bf16.mxu0 %v11055_v13  ;;  %v3463_v3 = vadd.f32 %v3462_v27, %v11060_v23 }
 0x2a1   :  { %v3464_v46 = vpop.f32.mrf.mxu1 }
 0x2a2   :  { %v11303_v37 = vpop.f32.mrf.mxu0  ;;  %v3465_v5 = vadd.f32 %v3464_v46, %v11063_v18  ;;  %9872 = vtanh.f32 %v3463_v3  ;;  %v10408_v18 = vld [vmem:[#allocation2 + $0x21c] ss:$24 sps:$4 sm:$0xff]  }
 0x2a3   :  { %v3466_v14 = vpop.f32.mrf.mxu1 }
 0x2a4   :  { %v11306_v29 = vpop.f32.mrf.mxu0  ;;  %v3467_v9 = vadd.f32 %v3466_v14, %v11066_v60  ;;  %v10409_v14 = vld [vmem:[#allocation2 + $0x218] ss:$24 sps:$4 sm:$0xff]  }
 0x2a5   :  { %v3468_v54 = vpop.f32.mrf.mxu1 }
 0x2a6   :  { %v11309_v22 = vpop.f32.mrf.mxu0  ;;  %9874 = vtanh.f32 %v3467_v9  ;;  %v3469_v20 = vadd.f32 %v3468_v54, %v11074_v47 }
 0x2a7   :  { %9876 = vtanh.f32 %v3465_v5  ;;  %v3472_v13 = vpop.f32.mrf.mxu1  ;;  %3937 = vmatmul.mubr.bf16.gmra.mxu1 %v10407_v36  ;;  %4130 = vmatmul.mubr.bf16.gmra.mxu0 %v11071_v57  ;;  %v9865_v63 = vpop.eup %9864 }
 0x2a8   :  { %v11312_v23 = vpop.f32.mrf.mxu0  ;;  %9878 = vtanh.f32 %v3469_v20  ;;  %3946 = vmatprep.mubr.bf16.mxu1 %v10408_v18  ;;  %4139 = vmatprep.mubr.bf16.mxu0 %v11077_v48  ;;  %v3473_v60 = vadd.f32 %v3472_v13, %v11082_v39 }
 0x2a9   :  { %v3474_v53 = vpop.f32.mrf.mxu1 }
 0x2aa   :  { %v11317_v45 = vpop.f32.mrf.mxu0  ;;  %v3475_v42 = vadd.f32 %v3474_v53, %v11085_v61  ;;  %9880 = vtanh.f32 %v3473_v60 }
 0x2ab   :  { %v9867_v47 = vpop.eup %9866  ;;  %v3476_v25 = vpop.f32.mrf.mxu1 }
 0x2ac   :  { %v11320_v56 = vpop.f32.mrf.mxu0  ;;  %v9869_v27 = vpop.eup %9868  ;;  %v11322_v8 = vpack.c.bf16 %v9867_v47, %v9865_v63  ;;  %v3477_v57 = vadd.f32 %v3476_v25, %v11088_v43  ;;  %v10410_v43 = vld [vmem:[#allocation2 + $0x24c] ss:$24 sps:$4 sm:$0xff]  }
 0x2ad   :  { %v9871_v31 = vpop.eup %9870  ;;  %v3478_v48 = vpop.f32.mrf.mxu1 }
 0x2ae   :  { %13176 = vst [vmem:[#allocation86_spill] sm:$0xff] %v11322_v8  ;;  %v11325_v3 = vpop.f32.mrf.mxu0  ;;  %9882 = vtanh.f32 %v3477_v57  ;;  %v3479_v39 = vadd.f32 %v3478_v48, %v11094_v28  ;;  %v11328_v46 = vpack.c.bf16 %v9871_v31, %v9869_v27  ;;  %v10411_v57 = vld [vmem:[#allocation2 + $0x248] ss:$24 sps:$4 sm:$0xff]  }
 0x2af   :  { %9884 = vtanh.f32 %v3475_v42  ;;  %v3482_v61 = vpop.f32.mrf.mxu1  ;;  %3947 = vmatmul.mubr.bf16.gmra.mxu1 %v10409_v14  ;;  %4140 = vmatmul.mubr.bf16.gmra.mxu0 %v11091_v33  ;;  %v9873_v28 = vpop.eup %9872 }
 0x2b0   :  { %13177 = vst [vmem:[#allocation87_spill] sm:$0xff] %v11328_v46  ;;  %v11330_v5 = vpop.f32.mrf.mxu0  ;;  %9886 = vtanh.f32 %v3479_v39  ;;  %3956 = vmatprep.mubr.bf16.mxu1 %v10410_v43  ;;  %4149 = vmatprep.mubr.bf16.mxu0 %v11097_v30  ;;  %v3483_v9 = vadd.f32 %v3482_v61, %v11100_v41 }
 0x2b1   :  { %v3484_v54 = vpop.f32.mrf.mxu1 }
 0x2b2   :  { %v11335_v20 = vpop.f32.mrf.mxu0  ;;  %v3485_v36 = vadd.f32 %v3484_v54, %v11103_v38  ;;  %9888 = vtanh.f32 %v3483_v9 }
 0x2b3   :  { %v9875_v13 = vpop.eup %9874  ;;  %v3486_v18 = vpop.f32.mrf.mxu1 }
 0x2b4   :  { %v11338_v60 = vpop.f32.mrf.mxu0  ;;  %v9877_v53 = vpop.eup %9876  ;;  %v3487_v33 = vadd.f32 %v3486_v18, %v11106_v32  ;;  %v11341_v63 = vpack.c.bf16 %v9875_v13, %v9873_v28  ;;  %v10412_v32 = vld [vmem:[#allocation2 + $0x27c] ss:$24 sps:$4 sm:$0xff]  }
 0x2b5   :  { %v9879_v47 = vpop.eup %9878  ;;  %v3488_v30 = vpop.f32.mrf.mxu1 }
 0x2b6   :  { %13178 = vst [vmem:[#allocation88_spill] sm:$0xff] %v11341_v63  ;;  %v11343_v42 = vpop.f32.mrf.mxu0  ;;  %9890 = vtanh.f32 %v3487_v33  ;;  %v3489_v41 = vadd.f32 %v3488_v30, %v11112_v49  ;;  %v11346_v25 = vpack.c.bf16 %v9879_v47, %v9877_v53  ;;  %v10413_v33 = vld [vmem:[#allocation2 + $0x278] ss:$24 sps:$4 sm:$0xff]  }
 0x2b7   :  { %9892 = vtanh.f32 %v3485_v36  ;;  %v3492_v38 = vpop.f32.mrf.mxu1  ;;  %3957 = vmatmul.mubr.bf16.gmra.mxu1 %v10411_v57  ;;  %4150 = vmatmul.mubr.bf16.gmra.mxu0 %v11109_v59  ;;  %v9881_v49 = vpop.eup %9880  ;;  %v13184_v57 = vld [vmem:[#allocation36_spill] sm:$0xff] }
 0x2b8   :  { %13179 = vst [vmem:[#allocation89_spill] sm:$0xff] %v11346_v25  ;;  %v11348_v27 = vpop.f32.mrf.mxu0  ;;  %9894 = vtanh.f32 %v3489_v41  ;;  %3966 = vmatprep.mubr.bf16.mxu1 %v10412_v32  ;;  %4159 = vmatprep.mubr.bf16.mxu0 %v11115_v10  ;;  %v3493_v31 = vadd.f32 %v3492_v38, %v11118_v62 }
 0x2b9   :  { %v3494_v48 = vpop.f32.mrf.mxu1 }
 0x2ba   :  { %v11353_v39 = vpop.f32.mrf.mxu0  ;;  %v3495_v14 = vadd.f32 %v3494_v48, %v11121_v24  ;;  %9896 = vtanh.f32 %v3493_v31 }
 0x2bb   :  { %v9883_v61 = vpop.eup %9882  ;;  %v3496_v43 = vpop.f32.mrf.mxu1 }
 0x2bc   :  { %v11356_v9 = vpop.f32.mrf.mxu0  ;;  %v9885_v54 = vpop.eup %9884  ;;  %v3497_v59 = vadd.f32 %v3496_v43, %v11124_v52  ;;  %v11359_v28 = vpack.c.bf16 %v9883_v61, %v9881_v49  ;;  %v10414_v52 = vld [vmem:[#allocation2 + $0x2ac] ss:$24 sps:$4 sm:$0xff]   ;;  %v13186_v61 = vld [vmem:[#allocation37_spill] sm:$0xff] }
 0x2bd   :  { %v9887_v13 = vpop.eup %9886  ;;  %v3498_v10 = vpop.f32.mrf.mxu1 }
 0x2be   :  { %13180 = vst [vmem:[#allocation90_spill] sm:$0xff] %v11359_v28  ;;  %v11361_v36 = vpop.f32.mrf.mxu0  ;;  %9898 = vtanh.f32 %v3497_v59  ;;  %v3499_v62 = vadd.f32 %v3498_v10, %v11130_v1  ;;  %v11364_v18 = vpack.c.bf16 %v9887_v13, %v9885_v54 }
 0x2bf   :  { %9900 = vtanh.f32 %v3495_v14  ;;  %v3502_v24 = vpop.f32.mrf.mxu1  ;;  %3967 = vmatmul.mubr.bf16.gmra.mxu1 %v10413_v33  ;;  %4160 = vmatmul.mubr.bf16.gmra.mxu0 %v11127_v26  ;;  %v9889_v1 = vpop.eup %9888  ;;  %v13192_v33 = vld [vmem:[#allocation38_spill] sm:$0xff] }
 0x2c0   :  { %13181 = vst [vmem:[#allocation91_spill] sm:$0xff] %v11364_v18  ;;  %v11366_v53 = vpop.f32.mrf.mxu0  ;;  %9902 = vtanh.f32 %v3499_v62  ;;  %3976 = vmatprep.mubr.bf16.mxu1 %v10414_v52  ;;  %4169 = vmatprep.mubr.bf16.mxu0 %v11133_v55  ;;  %v3503_v47 = vadd.f32 %v3502_v24, %v11136_v21  ;;  %v13189_v21 = vld [vmem:[#allocation39_spill] sm:$0xff]  ;;  %v10416_v52 = vld [vmem:[#allocation2 + $0x2dc] ss:$24 sps:$4 sm:$0xff]  }
 0x2c1   :  { %13182 = vst [vmem:[#allocation92_spill] sm:$0xff] %v11366_v53  ;;  %v3504_v30 = vpop.f32.mrf.mxu1  ;;  %v10415_v24 = vld [vmem:[#allocation2 + $0x2a8] ss:$24 sps:$4 sm:$0xff]  }
 0x2c2   :  { %v11371_v41 = vpop.f32.mrf.mxu0  ;;  %v3505_v32 = vadd.f32 %v3504_v30, %v13184_v57  ;;  %9904 = vtanh.f32 %v3503_v47  ;;  %v13193_v47 = vld [vmem:[#allocation40_spill] sm:$0xff]  ;;  %v13194_v30 = vld [vmem:[#allocation58_spill] sm:$0xff] }
 0x2c3   :  { %13183 = vst [vmem:[#allocation93_spill] sm:$0xff] %v11371_v41  ;;  %v9891_v38 = vpop.eup %9890  ;;  %v3506_v31 = vpop.f32.mrf.mxu1  ;;  %v13224_v41 = vld [vmem:[#allocation69_spill] sm:$0xff] }
 0x2c4   :  { %v11374_v48 = vpop.f32.mrf.mxu0  ;;  %v9893_v49 = vpop.eup %9892  ;;  %v3507_v26 = vadd.f32 %v3506_v31, %v13186_v61  ;;  %v11377_v14 = vpack.c.bf16 %v9891_v38, %v9889_v1 }
 0x2c5   :  { %13185 = vst [vmem:[#allocation36_spill] sm:$0xff] %v11374_v48  ;;  %v9895_v43 = vpop.eup %9894  ;;  %v3508_v55 = vpop.f32.mrf.mxu1 }
 0x2c6   :  { %13187 = vst [vmem:[#allocation37_spill] sm:$0xff] %v11377_v14  ;;  %v11379_v54 = vpop.f32.mrf.mxu0  ;;  %9906 = vtanh.f32 %v3507_v26  ;;  %v3509_v59 = vadd.f32 %v3508_v55, %v13189_v21  ;;  %v11382_v13 = vpack.c.bf16 %v9895_v43, %v9893_v49  ;;  %v13198_v21 = vld [vmem:[#allocation60_spill] sm:$0xff] }
 0x2c7   :  { %13188 = vst [vmem:[#allocation94_spill] sm:$0xff] %v11379_v54  ;;  %9908 = vtanh.f32 %v3505_v32  ;;  %v3512_v10 = vpop.f32.mrf.mxu1  ;;  %3977 = vmatmul.mubr.bf16.gmra.mxu1 %v10415_v24  ;;  %4170 = vmatmul.mubr.bf16.gmra.mxu0 %v13192_v33  ;;  %v9897_v31 = vpop.eup %9896  ;;  %v13196_v32 = vld [vmem:[#allocation59_spill] sm:$0xff] }
 0x2c8   :  { %13190 = vst [vmem:[#allocation39_spill] sm:$0xff] %v11382_v13  ;;  %v11384_v62 = vpop.f32.mrf.mxu0  ;;  %9910 = vtanh.f32 %v3509_v59  ;;  %3986 = vmatprep.mubr.bf16.mxu1 %v10416_v52  ;;  %4179 = vmatprep.mubr.bf16.mxu0 %v13193_v47  ;;  %v3513_v1 = vadd.f32 %v3512_v10, %v13194_v30  ;;  %v13201_v10 = vld [vmem:[#allocation62_spill] sm:$0xff] }
 0x2c9   :  { %13191 = vst [vmem:[#allocation95_spill] sm:$0xff] %v11384_v62  ;;  %v3514_v38 = vpop.f32.mrf.mxu1  ;;  %v13204_v62 = vld [vmem:[#allocation61_spill] sm:$0xff] }
 0x2ca   :  { %v11389_v57 = vpop.f32.mrf.mxu0  ;;  %v3515_v61 = vadd.f32 %v3514_v38, %v13196_v32  ;;  %9912 = vtanh.f32 %v3513_v1  ;;  %v13206_v1 = vld [vmem:[#allocation63_spill] sm:$0xff] }
 0x2cb   :  { %13195 = vst [vmem:[#allocation38_spill] sm:$0xff] %v11389_v57  ;;  %v9899_v49 = vpop.eup %9898  ;;  %v3516_v26 = vpop.f32.mrf.mxu1  ;;  %v9520_v54 = vld [vmem:[#allocation8 + $0x4c4] ss:$16 sps:$4 sm:$0xff]  }
 0x2cc   :  { %v11392_v43 = vpop.f32.mrf.mxu0  ;;  %v9901_v55 = vpop.eup %9900  ;;  %v3517_v24 = vadd.f32 %v3516_v26, %v13198_v21  ;;  %v11395_v59 = vpack.c.bf16 %v9899_v49, %v9897_v31  ;;  %v13205_v31 = vld [vmem:[#allocation42_spill] sm:$0xff] }
 0x2cd   :  { %13197 = vst [vmem:[#allocation40_spill] sm:$0xff] %v11392_v43  ;;  %v9903_v33 = vpop.eup %9902  ;;  %v3518_v52 = vpop.f32.mrf.mxu1  ;;  %v10417_v43 = vld [vmem:[#allocation2 + $0x2d8] ss:$24 sps:$4 sm:$0xff]  }
 0x2ce   :  { %13199 = vst [vmem:[#allocation58_spill] sm:$0xff] %v11395_v59  ;;  %v11397_v47 = vpop.f32.mrf.mxu0  ;;  %9914 = vtanh.f32 %v3517_v24  ;;  %v3519_v30 = vadd.f32 %v3518_v52, %v13201_v10  ;;  %v11400_v57 = vpack.c.bf16 %v9903_v33, %v9901_v55 }
 0x2cf   :  { %13200 = vst [vmem:[#allocation59_spill] sm:$0xff] %v11397_v47  ;;  %9916 = vtanh.f32 %v3515_v61  ;;  %v3522_v38 = vpop.f32.mrf.mxu1  ;;  %3987 = vmatmul.mubr.bf16.gmra.mxu1 %v10417_v43  ;;  %4180 = vmatmul.mubr.bf16.gmra.mxu0 %v13204_v62  ;;  %v9905_v55 = vpop.eup %9904  ;;  %v13208_v61 = vld [vmem:[#allocation64_spill] sm:$0xff] }
 0x2d0   :  { %13202 = vst [vmem:[#allocation60_spill] sm:$0xff] %v11400_v57  ;;  %v11402_v32 = vpop.f32.mrf.mxu0  ;;  %9918 = vtanh.f32 %v3519_v30  ;;  %5684 = vmatprep.mubr.bf16.mxu1 %v13205_v31  ;;  %5877 = vmatprep.mubr.bf16.mxu0 %v11328_v46  ;;  %v3523_v49 = vadd.f32 %v3522_v38, %v13206_v1  ;;  %v9512_v38 = vld [vmem:[#allocation8 + $0x4e0] ss:$16 sps:$4 sm:$0xff]   ;;  %v9515_v1 = vld [vmem:[#allocation8 + $0xe8] ss:$16 sps:$4 sm:$0xff]  }
 0x2d1   :  { %13203 = vst [vmem:[#allocation62_spill] sm:$0xff] %v11402_v32  ;;  %v3524_v26 = vpop.f32.mrf.mxu1  ;;  %v13210_v32 = vld [vmem:[#allocation65_spill] sm:$0xff] }
 0x2d2   :  { %v11408_v21 = vpop.f32.mrf.mxu0  ;;  %v3525_v33 = vadd.f32 %v3524_v26, %v13208_v61  ;;  %9920 = vtanh.f32 %v3523_v49  ;;  %v9523_v26 = vld [vmem:[#allocation8 + $0xcc] ss:$16 sps:$4 sm:$0xff]  }
 0x2d3   :  { %13207 = vst [vmem:[#allocation61_spill] sm:$0xff] %v11408_v21  ;;  %v9907_v24 = vpop.eup %9906  ;;  %v3526_v52 = vpop.f32.mrf.mxu1  ;;  %v13216_v49 = vld [vmem:[#allocation44_spill] sm:$0xff] }
 0x2d4   :  { %v11411_v10 = vpop.f32.mrf.mxu0  ;;  %v9909_v43 = vpop.eup %9908  ;;  %v3527_v62 = vadd.f32 %v3526_v52, %v13210_v32  ;;  %v11414_v30 = vpack.c.bf16 %v9907_v24, %v9905_v55  ;;  %v13215_v32 = vld [vmem:[#allocation41_spill] sm:$0xff]  ;;  %v13217_v55 = vld [vmem:[#allocation66_spill] sm:$0xff] }
 0x2d5   :  { %13209 = vst [vmem:[#allocation63_spill] sm:$0xff] %v11411_v10  ;;  %v9911_v31 = vpop.eup %9910  ;;  %v3528_v46 = vpop.f32.mrf.mxu1 }
 0x2d6   :  { %13211 = vst [vmem:[#allocation64_spill] sm:$0xff] %v11414_v30  ;;  %v11416_v47 = vpop.f32.mrf.mxu0  ;;  %9922 = vtanh.f32 %v3527_v62  ;;  %v3529_v21 = vadd.f32 %v3528_v46, %v11178_v16  ;;  %v11419_v61 = vpack.c.bf16 %v9911_v31, %v9909_v43  ;;  %v9518_v31 = vld [vmem:[#allocation8 + $0x4c0] ss:$16 sps:$4 sm:$0xff]   ;;  %v9526_v43 = vld [vmem:[#allocation8 + $0x4a4] ss:$16 sps:$4 sm:$0xff]  }
 0x2d7   :  { %13212 = vst [vmem:[#allocation65_spill] sm:$0xff] %v11416_v47  ;;  %9924 = vtanh.f32 %v3525_v33  ;;  %v3532_v10 = vpop.f32.mrf.mxu1  ;;  %5685 = vmatmul.mubr.bf16.vlgmr.msra.gmra.mxu1 %v13215_v32  ;;  %5878 = vmatmul.mubr.bf16.vlgmr.msra.gmra.mxu0 %v11322_v8  ;;  %v9521_v33 = vld [vmem:[#allocation8 + $0xc8] ss:$16 sps:$4 sm:$0xff]   ;;  %v9913_v52 = vpop.eup %9912  ;;  %v9529_v62 = vld [vmem:[#allocation8 + $0xac] ss:$16 sps:$4 sm:$0xff]  }
 0x2d8   :  { %13213 = vst [vmem:[#allocation96_spill] sm:$0xff] %v11419_v61  ;;  %v11421_v48 = vpop.f32.mrf.mxu0  ;;  %9926 = vtanh.f32 %v3529_v21  ;;  %5694 = vmatprep.mubr.bf16.mxu1 %v13216_v49  ;;  %5887 = vmatprep.mubr.bf16.mxu0 %v11346_v25  ;;  %v3533_v24 = vadd.f32 %v3532_v10, %v13217_v55  ;;  %v13219_v21 = vld [vmem:[#allocation67_spill] sm:$0xff]  ;;  %v13221_v10 = vld [vmem:[#allocation68_spill] sm:$0xff] }
 0x2d9   :  { %13214 = vst [vmem:[#allocation97_spill] sm:$0xff] %v11421_v48  ;;  %6039 = vmatpush1.bf16.msra.mxu1 %v9512_v38  ;;  %v3534_v16 = vpop.f32.mrf.mxu1  ;;  %6232 = vmatpush1.bf16.msra.mxu0 %v9515_v1 }
 0x2da   :  { %v11428_v46 = vpop.f32.mrf.mxu0  ;;  %6040 = vmatprep.subr.bf16.mxu1 %v9520_v54  ;;  %6233 = vmatprep.subr.bf16.mxu0 %v9523_v26  ;;  %v3535_v32 = vadd.f32 %v3534_v16, %v13219_v21  ;;  %9928 = vtanh.f32 %v3533_v24  ;;  %v9524_v54 = vld [vmem:[#allocation8 + $0x4a0] ss:$16 sps:$4 sm:$0xff]   ;;  %v9527_v26 = vld [vmem:[#allocation8 + $0xa8] ss:$16 sps:$4 sm:$0xff]   ;;  %v9532_v21 = vld [vmem:[#allocation8 + $0x484] ss:$16 sps:$4 sm:$0xff]  }
 0x2db   :  { %13218 = vst [vmem:[#allocation66_spill] sm:$0xff] %v11428_v46  ;;  %v9915_v8 = vpop.eup %9914  ;;  %v3536_v49 = vpop.f32.mrf.mxu1  ;;  %v13227_v24 = vld [vmem:[#allocation43_spill] sm:$0xff] }
 0x2dc   :  { %v11431_v48 = vpop.f32.mrf.mxu0  ;;  %v9917_v25 = vpop.eup %9916  ;;  %v3537_v38 = vadd.f32 %v3536_v49, %v13221_v10  ;;  %v11434_v55 = vpack.c.bf16 %v9915_v8, %v9913_v52  ;;  %v9541_v10 = vld [vmem:[#allocation8 + $0x6c] ss:$16 sps:$4 sm:$0xff]  }
 0x2dd   :  { %13220 = vst [vmem:[#allocation67_spill] sm:$0xff] %v11431_v48  ;;  %v9919_v46 = vpop.eup %9918  ;;  %v3538_v1 = vpop.f32.mrf.mxu1  ;;  %6041 = vmatpush1.bf16.msra.mxu1 %v9518_v31  ;;  %6234 = vmatpush1.bf16.msra.mxu0 %v9521_v33  ;;  %v9535_v48 = vld [vmem:[#allocation8 + $0x8c] ss:$16 sps:$4 sm:$0xff]  }
 0x2de   :  { %13222 = vst [vmem:[#allocation68_spill] sm:$0xff] %v11434_v55  ;;  %v11436_v47 = vpop.f32.mrf.mxu0  ;;  %9930 = vtanh.f32 %v3537_v38  ;;  %v3539_v16 = vadd.f32 %v3538_v1, %v13224_v41  ;;  %6042 = vmatprep.subr.bf16.mxu1 %v9526_v43  ;;  %6235 = vmatprep.subr.bf16.mxu0 %v9529_v62  ;;  %v11439_v53 = vpack.c.bf16 %v9919_v46, %v9917_v25  ;;  %v13228_v31 = vld [vmem:[#allocation46_spill] sm:$0xff]  ;;  %v9530_v25 = vld [vmem:[#allocation8 + $0x480] ss:$16 sps:$4 sm:$0xff]  }
 0x2df   :  { %13223 = vst [vmem:[#allocation98_spill] sm:$0xff] %v11436_v47  ;;  %9932 = vtanh.f32 %v3535_v32  ;;  %v3542_v8 = vpop.f32.mrf.mxu1  ;;  %5695 = vmatmul.mubr.bf16.gmra.mxu1 %v13227_v24  ;;  %5888 = vmatmul.mubr.bf16.gmra.mxu0 %v11341_v63  ;;  %v13229_v41 = vld [vmem:[#allocation70_spill] sm:$0xff]  ;;  %v9921_v46 = vpop.eup %9920  ;;  %v13231_v1 = vld [vmem:[#allocation71_spill] sm:$0xff] }
 0x2e0   :  { %13225 = vst [vmem:[#allocation69_spill] sm:$0xff] %v11439_v53  ;;  %v11441_v49 = vpop.f32.mrf.mxu0  ;;  %9934 = vtanh.f32 %v3539_v16  ;;  %5704 = vmatprep.mubr.bf16.mxu1 %v13228_v31  ;;  %5897 = vmatprep.mubr.bf16.mxu0 %v11364_v18  ;;  %v3543_v33 = vadd.f32 %v3542_v8, %v13229_v41  ;;  %v9533_v32 = vld [vmem:[#allocation8 + $0x88] ss:$16 sps:$4 sm:$0xff]   ;;  %v9538_v62 = vld [vmem:[#allocation8 + $0x464] ss:$16 sps:$4 sm:$0xff]  }
 0x2e1   :  { %13226 = vst [vmem:[#allocation99_spill] sm:$0xff] %v11441_v49  ;;  %v3544_v52 = vpop.f32.mrf.mxu1  ;;  %6043 = vmatpush1.bf16.msra.mxu1 %v9524_v54  ;;  %6236 = vmatpush1.bf16.msra.mxu0 %v9527_v26  ;;  %v13233_v8 = vld [vmem:[#allocation72_spill] sm:$0xff]  ;;  %v13235_v49 = vld [vmem:[#allocation73_spill] sm:$0xff] }
 0x2e2   :  { %v11448_v43 = vpop.f32.mrf.mxu0  ;;  %6044 = vmatprep.subr.bf16.mxu1 %v9532_v21  ;;  %6237 = vmatprep.subr.bf16.mxu0 %v9535_v48  ;;  %v3545_v16 = vadd.f32 %v3544_v52, %v13231_v1  ;;  %9936 = vtanh.f32 %v3543_v33  ;;  %v9536_v48 = vld [vmem:[#allocation8 + $0x460] ss:$16 sps:$4 sm:$0xff]   ;;  %v9539_v21 = vld [vmem:[#allocation8 + $0x68] ss:$16 sps:$4 sm:$0xff]   ;;  %v9544_v1 = vld [vmem:[#allocation8 + $0x444] ss:$16 sps:$4 sm:$0xff]  }
 0x2e3   :  { %13230 = vst [vmem:[#allocation70_spill] sm:$0xff] %v11448_v43  ;;  %v9923_v38 = vpop.eup %9922  ;;  %v3546_v63 = vpop.f32.mrf.mxu1  ;;  %v13238_v33 = vld [vmem:[#allocation45_spill] sm:$0xff] }
 0x2e4   :  { %v11451_v31 = vpop.f32.mrf.mxu0  ;;  %v9925_v18 = vpop.eup %9924  ;;  %v3547_v41 = vadd.f32 %v3546_v63, %v13233_v8  ;;  %v11454_v24 = vpack.c.bf16 %v9923_v38, %v9921_v46  ;;  %v9545_v38 = vld [vmem:[#allocation8 + $0x48] ss:$16 sps:$4 sm:$0xff]   ;;  %v9550_v8 = vld [vmem:[#allocation8 + $0x424] ss:$16 sps:$4 sm:$0xff]  }
 0x2e5   :  { %13232 = vst [vmem:[#allocation71_spill] sm:$0xff] %v11451_v31  ;;  %v9927_v54 = vpop.eup %9926  ;;  %v3548_v26 = vpop.f32.mrf.mxu1  ;;  %6045 = vmatpush1.bf16.msra.mxu1 %v9530_v25  ;;  %6238 = vmatpush1.bf16.msra.mxu0 %v9533_v32  ;;  %v9547_v31 = vld [vmem:[#allocation8 + $0x4c] ss:$16 sps:$4 sm:$0xff]  }
 0x2e6   :  { %13234 = vst [vmem:[#allocation72_spill] sm:$0xff] %v11454_v24  ;;  %v11456_v43 = vpop.f32.mrf.mxu0  ;;  %9938 = vtanh.f32 %v3547_v41  ;;  %v3549_v52 = vadd.f32 %v3548_v26, %v13235_v49  ;;  %6046 = vmatprep.subr.bf16.mxu1 %v9538_v62  ;;  %6239 = vmatprep.subr.bf16.mxu0 %v9541_v10  ;;  %v11459_v47 = vpack.c.bf16 %v9927_v54, %v9925_v18  ;;  %v13239_v25 = vld [vmem:[#allocation48_spill] sm:$0xff]  ;;  %v13240_v49 = vld [vmem:[#allocation74_spill] sm:$0xff]  ;;  %v9542_v18 = vld [vmem:[#allocation8 + $0x440] ss:$16 sps:$4 sm:$0xff]  }
 0x2e7   :  { %9940 = vtanh.f32 %v3545_v16  ;;  %v3552_v63 = vpop.f32.mrf.mxu1  ;;  %5705 = vmatmul.mubr.bf16.gmra.mxu1 %v13238_v33  ;;  %5898 = vmatmul.mubr.bf16.gmra.mxu0 %v11359_v28  ;;  %v9929_v16 = vpop.eup %9928  ;;  %v9553_v41 = vld [vmem:[#allocation8 + $0x2c] ss:$16 sps:$4 sm:$0xff]  }
 0x2e8   :  { %13236 = vst [vmem:[#allocation73_spill] sm:$0xff] %v11459_v47  ;;  %v11461_v46 = vpop.f32.mrf.mxu0  ;;  %9942 = vtanh.f32 %v3549_v52  ;;  %5714 = vmatprep.mubr.bf16.mxu1 %v13239_v25  ;;  %5907 = vmatprep.mubr.bf16.mxu0 %v11382_v13  ;;  %v3553_v32 = vadd.f32 %v3552_v63, %v13240_v49  ;;  %v13242_v26 = vld [vmem:[#allocation75_spill] sm:$0xff]  ;;  %v13244_v63 = vld [vmem:[#allocation76_spill] sm:$0xff] }
 0x2e9   :  { %13237 = vst [vmem:[#allocation100_spill] sm:$0xff] %v11461_v46  ;;  %v3554_v62 = vpop.f32.mrf.mxu1  ;;  %6047 = vmatpush1.bf16.msra.mxu1 %v9536_v48  ;;  %6240 = vmatpush1.bf16.msra.mxu0 %v9539_v21  ;;  %v13246_v46 = vld [vmem:[#allocation77_spill] sm:$0xff] }
 0x2ea   :  { %v11468_v10 = vpop.f32.mrf.mxu0  ;;  %6048 = vmatprep.subr.bf16.mxu1 %v9544_v1  ;;  %6241 = vmatprep.subr.bf16.mxu0 %v9547_v31  ;;  %v3555_v52 = vadd.f32 %v3554_v62, %v13242_v26  ;;  %9944 = vtanh.f32 %v3553_v32  ;;  %v9548_v31 = vld [vmem:[#allocation8 + $0x420] ss:$16 sps:$4 sm:$0xff]   ;;  %v9551_v1 = vld [vmem:[#allocation8 + $0x28] ss:$16 sps:$4 sm:$0xff]   ;;  %v9556_v26 = vld [vmem:[#allocation8 + $0x404] ss:$16 sps:$4 sm:$0xff]  }
 0x2eb   :  { %13241 = vst [vmem:[#allocation74_spill] sm:$0xff] %v11468_v10  ;;  %v9931_v54 = vpop.eup %9930  ;;  %v3556_v28 = vpop.f32.mrf.mxu1  ;;  %v13248_v32 = vld [vmem:[#allocation47_spill] sm:$0xff] }
 0x2ec   :  { %v11471_v25 = vpop.f32.mrf.mxu0  ;;  %v9933_v13 = vpop.eup %9932  ;;  %v3557_v49 = vadd.f32 %v3556_v28, %v13244_v63  ;;  %v11474_v33 = vpack.c.bf16 %v9931_v54, %v9929_v16  ;;  %v9559_v28 = vld [vmem:[#allocation8 + $0xc] ss:$16 sps:$4 sm:$0xff]  }
 0x2ed   :  { %13243 = vst [vmem:[#allocation75_spill] sm:$0xff] %v11471_v25  ;;  %v9935_v48 = vpop.eup %9934  ;;  %v3558_v21 = vpop.f32.mrf.mxu1  ;;  %6049 = vmatpush1.bf16.msra.mxu1 %v9542_v18  ;;  %6242 = vmatpush1.bf16.msra.mxu0 %v9545_v38  ;;  %v13249_v18 = vld [vmem:[#allocation50_spill] sm:$0xff] }
 0x2ee   :  { %13245 = vst [vmem:[#allocation76_spill] sm:$0xff] %v11474_v33  ;;  %v11476_v10 = vpop.f32.mrf.mxu0  ;;  %9946 = vtanh.f32 %v3557_v49  ;;  %v3559_v62 = vadd.f32 %v3558_v21, %v13246_v46  ;;  %6050 = vmatprep.subr.bf16.mxu1 %v9550_v8  ;;  %6243 = vmatprep.subr.bf16.mxu0 %v9553_v41  ;;  %v11479_v25 = vpack.c.bf16 %v9935_v48, %v9933_v13  ;;  %v13250_v46 = vld [vmem:[#allocation78_spill] sm:$0xff]  ;;  %v9554_v13 = vld [vmem:[#allocation8 + $0x400] ss:$16 sps:$4 sm:$0xff]  }
 0x2ef   :  { %9948 = vtanh.f32 %v3555_v52  ;;  %v3562_v16 = vpop.f32.mrf.mxu1  ;;  %5715 = vmatmul.mubr.bf16.gmra.mxu1 %v13248_v32  ;;  %5908 = vmatmul.mubr.bf16.gmra.mxu0 %v11377_v14  ;;  %v9557_v52 = vld [vmem:[#allocation8 + $0x8] ss:$16 sps:$4 sm:$0xff]   ;;  %v9937_v63 = vpop.eup %9936  ;;  %v9562_v49 = vld [vmem:[#allocation8 + $0x5e4] ss:$16 sps:$4 sm:$0xff]   ;;  %v9565_v48 = vld [vmem:[#allocation8 + $0x1ec] ss:$16 sps:$4 sm:$0xff]  }
 0x2f0   :  { %13247 = vst [vmem:[#allocation77_spill] sm:$0xff] %v11479_v25  ;;  %v11481_v54 = vpop.f32.mrf.mxu0  ;;  %9950 = vtanh.f32 %v3559_v62  ;;  %5724 = vmatprep.mubr.bf16.mxu1 %v13249_v18  ;;  %5917 = vmatprep.mubr.bf16.mxu0 %v11400_v57  ;;  %v3563_v38 = vadd.f32 %v3562_v16, %v13250_v46 }
 0x2f1   :  { %v3564_v8 = vpop.f32.mrf.mxu1  ;;  %6051 = vmatpush1.bf16.msra.mxu1 %v9548_v31  ;;  %6244 = vmatpush1.bf16.msra.mxu0 %v9551_v1 }
 0x2f2   :  { %v11488_v41 = vpop.f32.mrf.mxu0  ;;  %6052 = vmatprep.subr.bf16.mxu1 %v9556_v26  ;;  %6245 = vmatprep.subr.bf16.mxu0 %v9559_v28  ;;  %v3565_v62 = vadd.f32 %v3564_v8, %v11220_v15  ;;  %9952 = vtanh.f32 %v3563_v38  ;;  %v9560_v26 = vld [vmem:[#allocation8 + $0x5e0] ss:$16 sps:$4 sm:$0xff]   ;;  %v9563_v28 = vld [vmem:[#allocation8 + $0x1e8] ss:$16 sps:$4 sm:$0xff]  }
 0x2f3   :  { %13251 = vst [vmem:[#allocation78_spill] sm:$0xff] %v11488_v41  ;;  %v9939_v21 = vpop.eup %9938  ;;  %v3566_v14 = vpop.f32.mrf.mxu1  ;;  %v13254_v41 = vld [vmem:[#allocation79_spill] sm:$0xff]  ;;  %v13256_v38 = vld [vmem:[#allocation49_spill] sm:$0xff] }
 0x2f4   :  { %v11491_v18 = vpop.f32.mrf.mxu0  ;;  %v9941_v57 = vpop.eup %9940  ;;  %v3567_v16 = vadd.f32 %v3566_v14, %v11223_v17  ;;  %v11494_v46 = vpack.c.bf16 %v9939_v21, %v9937_v63  ;;  %v9571_v17 = vld [vmem:[#allocation8 + $0x1cc] ss:$16 sps:$4 sm:$0xff]   ;;  %v9569_v21 = vld [vmem:[#allocation8 + $0x1c8] ss:$16 sps:$4 sm:$0xff]  }
 0x2f5   :  { %13252 = vst [vmem:[#allocation101_spill] sm:$0xff] %v11491_v18  ;;  %v9943_v31 = vpop.eup %9942  ;;  %v3568_v1 = vpop.f32.mrf.mxu1  ;;  %6053 = vmatpush1.bf16.msra.mxu1 %v9554_v13  ;;  %6246 = vmatpush1.bf16.msra.mxu0 %v9557_v52  ;;  %v9568_v18 = vld [vmem:[#allocation8 + $0x5c4] ss:$16 sps:$4 sm:$0xff]  }
 0x2f6   :  { %13253 = vst [vmem:[#allocation102_spill] sm:$0xff] %v11494_v46  ;;  %v11496_v32 = vpop.f32.mrf.mxu0  ;;  %9954 = vtanh.f32 %v3567_v16  ;;  %v3569_v15 = vadd.f32 %v3568_v1, %v13254_v41  ;;  %6054 = vmatprep.subr.bf16.mxu1 %v9562_v49  ;;  %v11499_v8 = vpack.c.bf16 %v9943_v31, %v9941_v57  ;;  %6247 = vmatprep.subr.bf16.mxu0 %v9565_v48  ;;  %v13257_v13 = vld [vmem:[#allocation52_spill] sm:$0xff]  ;;  %v9566_v48 = vld [vmem:[#allocation8 + $0x5c0] ss:$16 sps:$4 sm:$0xff]  }
 0x2f7   :  { %9956 = vtanh.f32 %v3565_v62  ;;  %v3572_v14 = vpop.f32.mrf.mxu1  ;;  %5725 = vmatmul.mubr.bf16.gmra.mxu1 %v13256_v38  ;;  %5918 = vmatmul.mubr.bf16.gmra.mxu0 %v11395_v59  ;;  %v13258_v41 = vld [vmem:[#allocation80_spill] sm:$0xff]  ;;  %v9945_v62 = vpop.eup %9944 }
 0x2f8   :  { %13255 = vst [vmem:[#allocation79_spill] sm:$0xff] %v11499_v8  ;;  %v11501_v63 = vpop.f32.mrf.mxu0  ;;  %9958 = vtanh.f32 %v3569_v15  ;;  %5734 = vmatprep.mubr.bf16.mxu1 %v13257_v13  ;;  %5927 = vmatprep.mubr.bf16.mxu0 %v11419_v61  ;;  %v3573_v52 = vadd.f32 %v3572_v14, %v13258_v41  ;;  %v9574_v16 = vld [vmem:[#allocation8 + $0x5a4] ss:$16 sps:$4 sm:$0xff]   ;;  %v9577_v31 = vld [vmem:[#allocation8 + $0x1ac] ss:$16 sps:$4 sm:$0xff]  }
 0x2f9   :  { %v3574_v57 = vpop.f32.mrf.mxu1  ;;  %6055 = vmatpush2.bf16.msra.mxu1 %v9560_v26  ;;  %6248 = vmatpush2.bf16.msra.mxu0 %v9563_v28 }
 0x2fa   :  { %v11508_v49 = vpop.f32.mrf.mxu0  ;;  %6056 = vmatprep.subr.bf16.mxu1 %v9568_v18  ;;  %6249 = vmatprep.subr.bf16.mxu0 %v9571_v17  ;;  %v3575_v15 = vadd.f32 %v3574_v57, %v11234_v40  ;;  %9960 = vtanh.f32 %v3573_v52  ;;  %v9572_v18 = vld [vmem:[#allocation8 + $0x5a0] ss:$16 sps:$4 sm:$0xff]   ;;  %v9575_v17 = vld [vmem:[#allocation8 + $0x1a8] ss:$16 sps:$4 sm:$0xff]  }
 0x2fb   :  { %13259 = vst [vmem:[#allocation80_spill] sm:$0xff] %v11508_v49  ;;  %v9947_v1 = vpop.eup %9946  ;;  %v3576_v59 = vpop.f32.mrf.mxu1  ;;  %v13262_v49 = vld [vmem:[#allocation81_spill] sm:$0xff]  ;;  %v13264_v52 = vld [vmem:[#allocation51_spill] sm:$0xff] }
 0x2fc   :  { %v11511_v13 = vpop.f32.mrf.mxu0  ;;  %v9949_v61 = vpop.eup %9948  ;;  %v3577_v14 = vadd.f32 %v3576_v59, %v11237_v4  ;;  %v11514_v41 = vpack.c.bf16 %v9947_v1, %v9945_v62  ;;  %v9583_v4 = vld [vmem:[#allocation8 + $0x18c] ss:$16 sps:$4 sm:$0xff]   ;;  %v9581_v1 = vld [vmem:[#allocation8 + $0x188] ss:$16 sps:$4 sm:$0xff]  }
 0x2fd   :  { %13260 = vst [vmem:[#allocation103_spill] sm:$0xff] %v11511_v13  ;;  %v9951_v26 = vpop.eup %9950  ;;  %v3578_v28 = vpop.f32.mrf.mxu1  ;;  %6057 = vmatpush2.bf16.msra.mxu1 %v9566_v48  ;;  %6250 = vmatpush2.bf16.msra.mxu0 %v9569_v21  ;;  %v9580_v13 = vld [vmem:[#allocation8 + $0x584] ss:$16 sps:$4 sm:$0xff]  }
 0x2fe   :  { %13261 = vst [vmem:[#allocation104_spill] sm:$0xff] %v11514_v41  ;;  %v11516_v38 = vpop.f32.mrf.mxu0  ;;  %9962 = vtanh.f32 %v3577_v14  ;;  %v3579_v40 = vadd.f32 %v3578_v28, %v13262_v49  ;;  %v11519_v57 = vpack.c.bf16 %v9951_v26, %v9949_v61  ;;  %6058 = vmatprep.subr.bf16.mxu1 %v9574_v16  ;;  %6251 = vmatprep.subr.bf16.mxu0 %v9577_v31  ;;  %v13265_v48 = vld [vmem:[#allocation54_spill] sm:$0xff]  ;;  %v9578_v31 = vld [vmem:[#allocation8 + $0x580] ss:$16 sps:$4 sm:$0xff]  }
 0x2ff   :  { %9964 = vtanh.f32 %v3575_v15  ;;  %v3582_v59 = vpop.f32.mrf.mxu1  ;;  %5735 = vmatmul.mubr.bf16.gmra.mxu1 %v13264_v52  ;;  %5928 = vmatmul.mubr.bf16.gmra.mxu0 %v11414_v30  ;;  %v13266_v49 = vld [vmem:[#allocation82_spill] sm:$0xff]  ;;  %v9953_v15 = vpop.eup %9952 }
 0x300   :  { %13263 = vst [vmem:[#allocation81_spill] sm:$0xff] %v11519_v57  ;;  %v11521_v62 = vpop.f32.mrf.mxu0  ;;  %9966 = vtanh.f32 %v3579_v40  ;;  %5744 = vmatprep.mubr.bf16.mxu1 %v13265_v48  ;;  %5937 = vmatprep.mubr.bf16.mxu0 %v11439_v53  ;;  %v3583_v61 = vadd.f32 %v3582_v59, %v13266_v49  ;;  %v9586_v14 = vld [vmem:[#allocation8 + $0x564] ss:$16 sps:$4 sm:$0xff]   ;;  %v9589_v26 = vld [vmem:[#allocation8 + $0x16c] ss:$16 sps:$4 sm:$0xff]  }
 0x301   :  { %v3584_v21 = vpop.f32.mrf.mxu1  ;;  %6059 = vmatpush2.bf16.msra.mxu1 %v9572_v18  ;;  %6252 = vmatpush2.bf16.msra.mxu0 %v9575_v17 }
 0x302   :  { %v11528_v16 = vpop.f32.mrf.mxu0  ;;  %6060 = vmatprep.subr.bf16.mxu1 %v9580_v13  ;;  %6253 = vmatprep.subr.bf16.mxu0 %v9583_v4  ;;  %v3585_v40 = vadd.f32 %v3584_v21, %v11248_v34  ;;  %9968 = vtanh.f32 %v3583_v61  ;;  %v9584_v13 = vld [vmem:[#allocation8 + $0x560] ss:$16 sps:$4 sm:$0xff]   ;;  %v9587_v4 = vld [vmem:[#allocation8 + $0x168] ss:$16 sps:$4 sm:$0xff]  }
 0x303   :  { %13267 = vst [vmem:[#allocation82_spill] sm:$0xff] %v11528_v16  ;;  %v9955_v28 = vpop.eup %9954  ;;  %v3586_v30 = vpop.f32.mrf.mxu1  ;;  %v13270_v16 = vld [vmem:[#allocation83_spill] sm:$0xff]  ;;  %v13273_v61 = vld [vmem:[#allocation53_spill] sm:$0xff] }
 0x304   :  { %v11531_v48 = vpop.f32.mrf.mxu0  ;;  %v9957_v53 = vpop.eup %9956  ;;  %v3587_v59 = vadd.f32 %v3586_v30, %v11251_v19  ;;  %v11534_v49 = vpack.c.bf16 %v9955_v28, %v9953_v15  ;;  %v9595_v19 = vld [vmem:[#allocation8 + $0x14c] ss:$16 sps:$4 sm:$0xff]   ;;  %v9593_v28 = vld [vmem:[#allocation8 + $0x148] ss:$16 sps:$4 sm:$0xff]  }
 0x305   :  { %13268 = vst [vmem:[#allocation105_spill] sm:$0xff] %v11531_v48  ;;  %v9959_v18 = vpop.eup %9958  ;;  %v3588_v17 = vpop.f32.mrf.mxu1  ;;  %6061 = vmatpush2.bf16.msra.mxu1 %v9578_v31  ;;  %6254 = vmatpush2.bf16.msra.mxu0 %v9581_v1  ;;  %v9592_v48 = vld [vmem:[#allocation8 + $0x544] ss:$16 sps:$4 sm:$0xff]  }
 0x306   :  { %13269 = vst [vmem:[#allocation106_spill] sm:$0xff] %v11534_v49  ;;  %v11536_v52 = vpop.f32.mrf.mxu0  ;;  %9970 = vtanh.f32 %v3587_v59  ;;  %v3589_v34 = vadd.f32 %v3588_v17, %v13270_v16  ;;  %v11539_v21 = vpack.c.bf16 %v9959_v18, %v9957_v53  ;;  %6062 = vmatprep.subr.bf16.mxu1 %v9586_v14  ;;  %6255 = vmatprep.subr.bf16.mxu0 %v9589_v26  ;;  %v13274_v31 = vld [vmem:[#allocation56_spill] sm:$0xff]  ;;  %v9590_v26 = vld [vmem:[#allocation8 + $0x540] ss:$16 sps:$4 sm:$0xff]  }
 0x307   :  { %9972 = vtanh.f32 %v3585_v40  ;;  %v3592_v30 = vpop.f32.mrf.mxu1  ;;  %5745 = vmatmul.mubr.bf16.gmra.mxu1 %v13273_v61  ;;  %5938 = vmatmul.mubr.bf16.gmra.mxu0 %v11434_v55  ;;  %v13275_v16 = vld [vmem:[#allocation84_spill] sm:$0xff]  ;;  %v9961_v40 = vpop.eup %9960 }
 0x308   :  { %13271 = vst [vmem:[#allocation83_spill] sm:$0xff] %v11539_v21  ;;  %v11541_v15 = vpop.f32.mrf.mxu0  ;;  %9974 = vtanh.f32 %v3589_v34  ;;  %5754 = vmatprep.mubr.bf16.mxu1 %v13274_v31  ;;  %5947 = vmatprep.mubr.bf16.mxu0 %v11459_v47  ;;  %v3593_v53 = vadd.f32 %v3592_v30, %v13275_v16  ;;  %v9598_v59 = vld [vmem:[#allocation8 + $0x524] ss:$16 sps:$4 sm:$0xff]   ;;  %v9601_v18 = vld [vmem:[#allocation8 + $0x12c] ss:$16 sps:$4 sm:$0xff]  }
 0x309   :  { %13272 = vst [vmem:[#allocation107_spill] sm:$0xff] %v11541_v15  ;;  %v3594_v1 = vpop.f32.mrf.mxu1  ;;  %6063 = vmatpush2.bf16.msra.mxu1 %v9584_v13  ;;  %6256 = vmatpush2.bf16.msra.mxu0 %v9587_v4 }
 0x30a   :  { %v11548_v14 = vpop.f32.mrf.mxu0  ;;  %6064 = vmatprep.subr.bf16.mxu1 %v9592_v48  ;;  %6257 = vmatprep.subr.bf16.mxu0 %v9595_v19  ;;  %v3595_v34 = vadd.f32 %v3594_v1, %v11262_v35  ;;  %9976 = vtanh.f32 %v3593_v53  ;;  %v9596_v48 = vld [vmem:[#allocation8 + $0x520] ss:$16 sps:$4 sm:$0xff]   ;;  %v9599_v19 = vld [vmem:[#allocation8 + $0x128] ss:$16 sps:$4 sm:$0xff]  }
 0x30b   :  { %13276 = vst [vmem:[#allocation84_spill] sm:$0xff] %v11548_v14  ;;  %v9963_v17 = vpop.eup %9962  ;;  %v3596_v55 = vpop.f32.mrf.mxu1  ;;  %v13279_v14 = vld [vmem:[#allocation20_spill] sm:$0xff]  ;;  %v13280_v35 = vld [vmem:[#allocation85_spill] sm:$0xff] }
 0x30c   :  { %v11551_v31 = vpop.f32.mrf.mxu0  ;;  %v9965_v47 = vpop.eup %9964  ;;  %v3597_v30 = vadd.f32 %v3596_v55, %v11265_v58  ;;  %v11554_v16 = vpack.c.bf16 %v9963_v17, %v9961_v40  ;;  %v521_v15 = vsub.s32 4, %v13279_v14  ;;  %v9604_v58 = vld [vmem:[#allocation8 + $0x504] ss:$16 sps:$4 sm:$0xff]   ;;  %v9607_v55 = vld [vmem:[#allocation8 + $0x10c] ss:$16 sps:$4 sm:$0xff]  }
 0x30d   :  { %13277 = vst [vmem:[#allocation108_spill] sm:$0xff] %v11551_v31  ;;  %v9967_v13 = vpop.eup %9966  ;;  %v3598_v4 = vpop.f32.mrf.mxu1  ;;  %6065 = vmatpush2.bf16.msra.mxu1 %v9590_v26  ;;  %6258 = vmatpush2.bf16.msra.mxu0 %v9593_v28  ;;  %v13282_v17 = vld [vmem:[#allocation55_spill] sm:$0xff]  ;;  %v525_v26 = vsub.s32 5, %v13279_v14  ;;  %v13283_v28 = vld [vmem:[#allocation21_spill] sm:$0xff] }
 0x30e   :  { %13278 = vst [vmem:[#allocation109_spill] sm:$0xff] %v11554_v16  ;;  %v11556_v61 = vpop.f32.mrf.mxu0  ;;  %9978 = vtanh.f32 %v3597_v30  ;;  %v3599_v1 = vadd.f32 %v3598_v4, %v13280_v35  ;;  %v11560_v31 = vpack.c.bf16 %v9967_v13, %v9965_v47  ;;  %6066 = vmatprep.subr.bf16.mxu1 %v9598_v59  ;;  %6259 = vmatprep.subr.bf16.mxu0 %v9601_v18  ;;  %v9605_v30 = vld [vmem:[#allocation8 + $0x108] ss:$16 sps:$4 sm:$0xff]  }
 0x30f   :  { %9980 = vtanh.f32 %v3595_v34  ;;  %v3602_v53 = vpop.f32.mrf.mxu1  ;;  %5755 = vmatmul.mubr.bf16.gmra.mxu1 %v13282_v17  ;;  %5948 = vmatmul.mubr.bf16.gmra.mxu0 %v11454_v24  ;;  %v9602_v34 = vld [vmem:[#allocation8 + $0x500] ss:$16 sps:$4 sm:$0xff]   ;;  %v9969_v13 = vpop.eup %9968  ;;  %v10418_v4 = vld [vmem:[#allocation7] sm:$0x3f] }
 0x310   :  { %13281 = vst [vmem:[#allocation85_spill] sm:$0xff] %v11560_v31  ;;  %v11562_v40 = vpop.f32.mrf.mxu0  ;;  %9982 = vtanh.f32 %v3599_v1  ;;  %5764 = vmatprep.mubr.bf16.mxu1 %v13283_v28  ;;  %5957 = vmatprep.mubr.bf16.mxu0 %v11479_v25  ;;  %v3603_v47 = vadd.f32 %v3602_v53, %v11273_v11  ;;  %v11572_v35 = vrot.slane %v10418_v4, %v521_v15  ;;  %v9610_v1 = vld [vmem:[#allocation8 + $0x2ec] ss:$16 sps:$4 sm:$0xff]  }
 0x311   :  { %v3604_v59 = vpop.f32.mrf.mxu1  ;;  %6067 = vmatpush2.bf16.msra.mxu1 %v9596_v48  ;;  %6260 = vmatpush2.bf16.msra.mxu0 %v9599_v19  ;;  %v9613_v24 = vld [vmem:[#allocation8 + $0x4ec] ss:$16 sps:$4 sm:$0xff]   ;;  %v11577_v17 = vrot.slane %v10418_v4, %v525_v26 }
 0x312   :  { %v11570_v18 = vpop.f32.mrf.mxu0  ;;  %6068 = vmatprep.subr.bf16.mxu1 %v9604_v58  ;;  %6261 = vmatprep.subr.bf16.mxu0 %v9607_v55  ;;  %v3605_v25 = vadd.f32 %v3604_v59, %v11276_v50  ;;  %9984 = vtanh.f32 %v3603_v47  ;;  %v3646_v50 = vadd.f32 %v11282_v44, %v11572_v35  ;;  %v13287_v26 = vld [vmem:[#allocation57_spill] sm:$0xff]  ;;  %v13288_v44 = vld [vmem:[#allocation23_spill] sm:$0xff] }
 0x313   :  { %13284 = vst [vmem:[#allocation110_spill] sm:$0xff] %v11570_v18  ;;  %v9971_v14 = vpop.eup %9970  ;;  %v3606_v28 = vpop.f32.mrf.mxu1 }
 0x314   :  { %v11575_v11 = vpop.f32.mrf.mxu0  ;;  %v9973_v53 = vpop.eup %9972  ;;  %v3607_v48 = vadd.f32 %v3606_v28, %v11279_v12  ;;  %v11580_v19 = vpack.c.bf16 %v9971_v14, %v9969_v13  ;;  %v3648_v28 = vadd.f32 %v11289_v7, %v11577_v17  ;;  %v3652_v7 = vadd.f32 %v11295_v6, %v11577_v17 }
 0x315   :  { %v9975_v18 = vpop.eup %9974  ;;  %v3608_v15 = vpop.f32.mrf.mxu1  ;;  %6069 = vmatpush2.bf16.msra.mxu1 %v9602_v34  ;;  %6262 = vmatpush2.bf16.msra.mxu0 %v9605_v30  ;;  %v3658_v6 = vadd.f32 %v11303_v37, %v11577_v17 }
 0x316   :  { %13285 = vst [vmem:[#allocation111_spill] sm:$0xff] %v11580_v19  ;;  %v11582_v58 = vpop.f32.mrf.mxu0  ;;  %9986 = vtanh.f32 %v3607_v48  ;;  %v3609_v55 = vadd.f32 %v3608_v15, %v11285_v0  ;;  %v11587_v59 = vpack.c.bf16 %v9975_v18, %v9973_v53  ;;  %6424 = vmatprep.subr.bf16.mxu1 %v9610_v1  ;;  %6617 = vmatprep.subr.bf16.mxu0 %v9613_v24 }
 0x317   :  { %9988 = vtanh.f32 %v3605_v25  ;;  %v3838_v12 = vpop.f32.mrf.mxu1  ;;  %5765 = vmatmul.mubr.bf16.gmra.mxu1 %v13287_v26  ;;  %5958 = vmatmul.mubr.bf16.gmra.mxu0 %v11474_v33  ;;  %v9977_v34 = vpop.eup %9976  ;;  %v3650_v24 = vadd.f32 %v11292_v2, %v11572_v35  ;;  %v3656_v33 = vadd.f32 %v11298_v51, %v11572_v35 }
 0x318   :  { %13286 = vst [vmem:[#allocation112_spill] sm:$0xff] %v11587_v59  ;;  %v4031_v14 = vpop.f32.mrf.mxu0  ;;  %9990 = vtanh.f32 %v3609_v55  ;;  %v3839_v47 = vadd.f32 %v3838_v12, %v3646_v50  ;;  %5774 = vmatprep.mubr.bf16.mxu1 %v13288_v44  ;;  %5967 = vmatprep.mubr.bf16.mxu0 %v11499_v8  ;;  %v13291_v44 = vld [vmem:[#allocation22_spill] sm:$0xff] }
 0x319   :  { %v3840_v0 = vpop.f32.mrf.mxu1 }
 0x31a   :  { %v4033_v18 = vpop.f32.mrf.mxu0  ;;  %v3841_v25 = vadd.f32 %v3840_v0, %v3648_v28  ;;  %v4032_v13 = vadd.f32 %v4031_v14, %v3839_v47 }
 0x31b   :  { %v9979_v30 = vpop.eup %9978  ;;  %v3842_v4 = vpop.f32.mrf.mxu1 }
 0x31c   :  { %v4035_v1 = vpop.f32.mrf.mxu0  ;;  %v9981_v53 = vpop.eup %9980  ;;  %v3843_v48 = vadd.f32 %v3842_v4, %v3650_v24  ;;  %v11599_v15 = vpack.c.bf16 %v9979_v30, %v9977_v34  ;;  %v4034_v55 = vadd.f32 %v4033_v18, %v3841_v25  ;;  %9992 = vtanh.f32 %v4032_v13  ;;  %v13292_v24 = vld [vmem:[#allocation25_spill] sm:$0xff] }
 0x31d   :  { %v9983_v50 = vpop.eup %9982  ;;  %v3844_v12 = vpop.f32.mrf.mxu1  ;;  %v3660_v13 = vadd.f32 %v11306_v29, %v11572_v35  ;;  %v3666_v29 = vadd.f32 %v11312_v23, %v11572_v35 }
 0x31e   :  { %13289 = vst [vmem:[#allocation57_spill] sm:$0xff] %v11599_v15  ;;  %v4037_v8 = vpop.f32.mrf.mxu0  ;;  %v4036_v2 = vadd.f32 %v4035_v1, %v3843_v48  ;;  %v3845_v28 = vadd.f32 %v3844_v12, %v3652_v7  ;;  %v11603_v0 = vpack.c.bf16 %v9983_v50, %v9981_v53 }
 0x31f   :  { %v3848_v14 = vpop.f32.mrf.mxu1  ;;  %5775 = vmatmul.mubr.bf16.gmra.mxu1 %v13291_v44  ;;  %5968 = vmatmul.mubr.bf16.gmra.mxu0 %v11494_v46  ;;  %v9985_v30 = vpop.eup %9984 }
 0x320   :  { %13290 = vst [vmem:[#allocation113_spill] sm:$0xff] %v11603_v0  ;;  %v4041_v47 = vpop.f32.mrf.mxu0  ;;  %9994 = vtanh.f32 %v4036_v2  ;;  %v4038_v18 = vadd.f32 %v4037_v8, %v3845_v28  ;;  %v3849_v34 = vadd.f32 %v3848_v14, %v3656_v33  ;;  %5784 = vmatprep.mubr.bf16.mxu1 %v13292_v24  ;;  %5977 = vmatprep.mubr.bf16.mxu0 %v11519_v57 }
 0x321   :  { %9996 = vtanh.f32 %v4034_v55  ;;  %v3850_v51 = vpop.f32.mrf.mxu1  ;;  %v3662_v33 = vadd.f32 %v11309_v22, %v11577_v17  ;;  %v3668_v22 = vadd.f32 %v11317_v45, %v11577_v17  ;;  %v3672_v45 = vadd.f32 %v11325_v3, %v11577_v17 }
 0x322   :  { %v4043_v25 = vpop.f32.mrf.mxu0  ;;  %9998 = vtanh.f32 %v4038_v18  ;;  %v3851_v4 = vadd.f32 %v3850_v51, %v3658_v6  ;;  %v4042_v53 = vadd.f32 %v4041_v47, %v3849_v34  ;;  %v13295_v51 = vld [vmem:[#allocation24_spill] sm:$0xff] }
 0x323   :  { %v9987_v1 = vpop.eup %9986  ;;  %v3852_v7 = vpop.f32.mrf.mxu1 }
 0x324   :  { %v4045_v37 = vpop.f32.mrf.mxu0  ;;  %v9989_v48 = vpop.eup %9988  ;;  %v3853_v8 = vadd.f32 %v3852_v7, %v3660_v13  ;;  %v11615_v50 = vpack.c.bf16 %v9987_v1, %v9985_v30  ;;  %v4044_v12 = vadd.f32 %v4043_v25, %v3851_v4  ;;  %10000 = vtanh.f32 %v4042_v53  ;;  %v13296_v13 = vld [vmem:[#allocation27_spill] sm:$0xff] }
 0x325   :  { %v9991_v55 = vpop.eup %9990  ;;  %v3854_v2 = vpop.f32.mrf.mxu1  ;;  %v3670_v1 = vadd.f32 %v11320_v56, %v11572_v35 }
 0x326   :  { %13293 = vst [vmem:[#allocation22_spill] sm:$0xff] %v11615_v50  ;;  %v4047_v28 = vpop.f32.mrf.mxu0  ;;  %v4046_v14 = vadd.f32 %v4045_v37, %v3853_v8  ;;  %v3855_v6 = vadd.f32 %v3854_v2, %v3662_v33  ;;  %v11619_v18 = vpack.c.bf16 %v9991_v55, %v9989_v48 }
 0x327   :  { %v3858_v47 = vpop.f32.mrf.mxu1  ;;  %5785 = vmatmul.mubr.bf16.gmra.mxu1 %v13295_v51  ;;  %5978 = vmatmul.mubr.bf16.gmra.mxu0 %v11514_v41  ;;  %v13323_v41 = vld [vmem:[#allocation97_spill] sm:$0xff] }
 0x328   :  { %13294 = vst [vmem:[#allocation25_spill] sm:$0xff] %v11619_v18  ;;  %v4051_v34 = vpop.f32.mrf.mxu0  ;;  %10002 = vtanh.f32 %v4046_v14  ;;  %v4048_v25 = vadd.f32 %v4047_v28, %v3855_v6  ;;  %v3859_v30 = vadd.f32 %v3858_v47, %v3666_v29  ;;  %5794 = vmatprep.mubr.bf16.mxu1 %v13296_v13  ;;  %5987 = vmatprep.mubr.bf16.mxu0 %v11539_v21 }
 0x329   :  { %10004 = vtanh.f32 %v4044_v12  ;;  %v3860_v23 = vpop.f32.mrf.mxu1  ;;  %v9993_v33 = vpop.eup %9992  ;;  %v3676_v14 = vadd.f32 %v11330_v5, %v11572_v35 }
 0x32a   :  { %v4053_v4 = vpop.f32.mrf.mxu0  ;;  %10006 = vtanh.f32 %v4048_v25  ;;  %v3861_v53 = vadd.f32 %v3860_v23, %v3668_v22  ;;  %v4052_v7 = vadd.f32 %v4051_v34, %v3859_v30  ;;  %v3678_v22 = vadd.f32 %v11335_v20, %v11577_v17  ;;  %v13298_v30 = vld [vmem:[#allocation26_spill] sm:$0xff] }
 0x32b   :  { %v3862_v37 = vpop.f32.mrf.mxu1  ;;  %v3680_v20 = vadd.f32 %v11338_v60, %v11572_v35 }
 0x32c   :  { %v4055_v48 = vpop.f32.mrf.mxu0  ;;  %v3863_v8 = vadd.f32 %v3862_v37, %v3670_v1  ;;  %v4054_v2 = vadd.f32 %v4053_v4, %v3861_v53  ;;  %10008 = vtanh.f32 %v4052_v7  ;;  %v13299_v1 = vld [vmem:[#allocation29_spill] sm:$0xff] }
 0x32d   :  { %v9995_v55 = vpop.eup %9994  ;;  %v3864_v28 = vpop.f32.mrf.mxu1 }
 0x32e   :  { %v4057_v29 = vpop.f32.mrf.mxu0  ;;  %v9997_v12 = vpop.eup %9996  ;;  %v11633_v6 = vpack.c.bf16 %v9995_v55, %v9993_v33  ;;  %v4056_v56 = vadd.f32 %v4055_v48, %v3863_v8  ;;  %v3865_v47 = vadd.f32 %v3864_v28, %v3672_v45  ;;  %v3682_v55 = vadd.f32 %v11343_v42, %v11577_v17 }
 0x32f   :  { %v9999_v34 = vpop.eup %9998  ;;  %v3868_v25 = vpop.f32.mrf.mxu1  ;;  %5795 = vmatmul.mubr.bf16.gmra.mxu1 %v13298_v30  ;;  %5988 = vmatmul.mubr.bf16.gmra.mxu0 %v11534_v49 }
 0x330   :  { %13297 = vst [vmem:[#allocation24_spill] sm:$0xff] %v11633_v6  ;;  %v4061_v3 = vpop.f32.mrf.mxu0  ;;  %10010 = vtanh.f32 %v4056_v56  ;;  %v4058_v23 = vadd.f32 %v4057_v29, %v3865_v47  ;;  %v3869_v4 = vadd.f32 %v3868_v25, %v3676_v14  ;;  %5804 = vmatprep.mubr.bf16.mxu1 %v13299_v1  ;;  %5997 = vmatprep.mubr.bf16.mxu0 %v11560_v31 }
 0x331   :  { %v11641_v5 = vpack.c.bf16 %v9999_v34, %v9997_v12  ;;  %10012 = vtanh.f32 %v4054_v2  ;;  %v3870_v53 = vpop.f32.mrf.mxu1  ;;  %v10001_v8 = vpop.eup %10000  ;;  %v3686_v47 = vadd.f32 %v11348_v27, %v11572_v35 }
 0x332   :  { %v4063_v37 = vpop.f32.mrf.mxu0  ;;  %10014 = vtanh.f32 %v4058_v23  ;;  %v3871_v7 = vadd.f32 %v3870_v53, %v3678_v22  ;;  %v4062_v48 = vadd.f32 %v4061_v3, %v3869_v4  ;;  %v3688_v3 = vadd.f32 %v11353_v39, %v11577_v17  ;;  %v13301_v4 = vld [vmem:[#allocation28_spill] sm:$0xff] }
 0x333   :  { %13300 = vst [vmem:[#allocation27_spill] sm:$0xff] %v11641_v5  ;;  %v3872_v33 = vpop.f32.mrf.mxu1  ;;  %v3690_v39 = vadd.f32 %v11356_v9, %v11572_v35 }
 0x334   :  { %v4065_v45 = vpop.f32.mrf.mxu0  ;;  %v3873_v28 = vadd.f32 %v3872_v33, %v3680_v20  ;;  %v4064_v14 = vadd.f32 %v4063_v37, %v3871_v7  ;;  %10016 = vtanh.f32 %v4062_v48  ;;  %v13302_v20 = vld [vmem:[#allocation31_spill] sm:$0xff] }
 0x335   :  { %v10003_v29 = vpop.eup %10002  ;;  %v3874_v12 = vpop.f32.mrf.mxu1 }
 0x336   :  { %v4067_v56 = vpop.f32.mrf.mxu0  ;;  %v10005_v2 = vpop.eup %10004  ;;  %v4066_v34 = vadd.f32 %v4065_v45, %v3873_v28  ;;  %v3875_v60 = vadd.f32 %v3874_v12, %v3682_v55  ;;  %v11649_v25 = vpack.c.bf16 %v10003_v29, %v10001_v8  ;;  %v3692_v29 = vadd.f32 %v11361_v36, %v11577_v17 }
 0x337   :  { %v10007_v22 = vpop.eup %10006  ;;  %v3878_v23 = vpop.f32.mrf.mxu1  ;;  %5805 = vmatmul.mubr.bf16.gmra.mxu1 %v13301_v4  ;;  %5998 = vmatmul.mubr.bf16.gmra.mxu0 %v11554_v16 }
 0x338   :  { %v4071_v42 = vpop.f32.mrf.mxu0  ;;  %10018 = vtanh.f32 %v4066_v34  ;;  %v4068_v53 = vadd.f32 %v4067_v56, %v3875_v60  ;;  %v3879_v37 = vadd.f32 %v3878_v23, %v3686_v47  ;;  %5814 = vmatprep.mubr.bf16.mxu1 %v13302_v20  ;;  %6007 = vmatprep.mubr.bf16.mxu0 %v11587_v59  ;;  %v11657_v27 = vpack.c.bf16 %v10007_v22, %v10005_v2  ;;  %v13304_v60 = vld [vmem:[#allocation92_spill] sm:$0xff] }
 0x339   :  { %10020 = vtanh.f32 %v4064_v14  ;;  %v3880_v7 = vpop.f32.mrf.mxu1  ;;  %v10009_v28 = vpop.eup %10008  ;;  %v3696_v22 = vadd.f32 %v13304_v60, %v11572_v35 }
 0x33a   :  { %13303 = vst [vmem:[#allocation26_spill] sm:$0xff] %v11657_v27  ;;  %v4073_v33 = vpop.f32.mrf.mxu0  ;;  %10022 = vtanh.f32 %v4068_v53  ;;  %v3881_v48 = vadd.f32 %v3880_v7, %v3688_v3  ;;  %v4072_v45 = vadd.f32 %v4071_v42, %v3879_v37  ;;  %v13305_v42 = vld [vmem:[#allocation93_spill] sm:$0xff] }
 0x33b   :  { %v3882_v8 = vpop.f32.mrf.mxu1  ;;  %v3698_v37 = vadd.f32 %v13305_v42, %v11577_v17 }
 0x33c   :  { %v4075_v55 = vpop.f32.mrf.mxu0  ;;  %v3883_v12 = vadd.f32 %v3882_v8, %v3690_v39  ;;  %v4074_v47 = vadd.f32 %v4073_v33, %v3881_v48  ;;  %10024 = vtanh.f32 %v4072_v45  ;;  %v13306_v39 = vld [vmem:[#allocation30_spill] sm:$0xff]  ;;  %v13307_v8 = vld [vmem:[#allocation33_spill] sm:$0xff]  ;;  %v13309_v45 = vld [vmem:[#allocation36_spill] sm:$0xff] }
 0x33d   :  { %v10011_v56 = vpop.eup %10010  ;;  %v3884_v2 = vpop.f32.mrf.mxu1 }
 0x33e   :  { %v4077_v34 = vpop.f32.mrf.mxu0  ;;  %v10013_v14 = vpop.eup %10012  ;;  %v4076_v23 = vadd.f32 %v4075_v55, %v3883_v12  ;;  %v3885_v9 = vadd.f32 %v3884_v2, %v3692_v29  ;;  %v11665_v53 = vpack.c.bf16 %v10011_v56, %v10009_v28  ;;  %v3700_v12 = vadd.f32 %v13309_v45, %v11572_v35 }
 0x33f   :  { %v10015_v3 = vpop.eup %10014  ;;  %v3888_v7 = vpop.f32.mrf.mxu1  ;;  %5815 = vmatmul.mubr.bf16.gmra.mxu1 %v13306_v39  ;;  %6008 = vmatmul.mubr.bf16.gmra.mxu0 %v11580_v19  ;;  %v13311_v19 = vld [vmem:[#allocation95_spill] sm:$0xff] }
 0x340   :  { %v4081_v36 = vpop.f32.mrf.mxu0  ;;  %10026 = vtanh.f32 %v4076_v23  ;;  %v4078_v33 = vadd.f32 %v4077_v34, %v3885_v9  ;;  %v3889_v48 = vadd.f32 %v3888_v7, %v3696_v22  ;;  %5824 = vmatprep.mubr.bf16.mxu1 %v13307_v8  ;;  %6017 = vmatprep.mubr.bf16.mxu0 %v11603_v0  ;;  %v11673_v55 = vpack.c.bf16 %v10015_v3, %v10013_v14  ;;  %v13310_v34 = vld [vmem:[#allocation94_spill] sm:$0xff] }
 0x341   :  { %10028 = vtanh.f32 %v4074_v47  ;;  %v3890_v28 = vpop.f32.mrf.mxu1  ;;  %v10017_v23 = vpop.eup %10016  ;;  %v3702_v22 = vadd.f32 %v13310_v34, %v11577_v17  ;;  %v3706_v59 = vadd.f32 %v13311_v19, %v11572_v35 }
 0x342   :  { %13308 = vst [vmem:[#allocation29_spill] sm:$0xff] %v11673_v55  ;;  %v4083_v29 = vpop.f32.mrf.mxu0  ;;  %10030 = vtanh.f32 %v4078_v33  ;;  %v3891_v56 = vadd.f32 %v3890_v28, %v3698_v37  ;;  %v4082_v2 = vadd.f32 %v4081_v36, %v3889_v48  ;;  %v13312_v36 = vld [vmem:[#allocation38_spill] sm:$0xff] }
 0x343   :  { %v3892_v60 = vpop.f32.mrf.mxu1  ;;  %v3708_v48 = vadd.f32 %v13312_v36, %v11577_v17 }
 0x344   :  { %v4085_v42 = vpop.f32.mrf.mxu0  ;;  %v3893_v9 = vadd.f32 %v3892_v60, %v3700_v12  ;;  %v4084_v0 = vadd.f32 %v4083_v29, %v3891_v56  ;;  %10032 = vtanh.f32 %v4082_v2  ;;  %v13313_v12 = vld [vmem:[#allocation32_spill] sm:$0xff]  ;;  %v13314_v60 = vld [vmem:[#allocation35_spill] sm:$0xff] }
 0x345   :  { %v10019_v7 = vpop.eup %10018  ;;  %v3894_v14 = vpop.f32.mrf.mxu1  ;;  %v13315_v2 = vld [vmem:[#allocation40_spill] sm:$0xff] }
 0x346   :  { %v4087_v3 = vpop.f32.mrf.mxu0  ;;  %v10021_v47 = vpop.eup %10020  ;;  %v4086_v16 = vadd.f32 %v4085_v42, %v3893_v9  ;;  %v3895_v45 = vadd.f32 %v3894_v14, %v3702_v22  ;;  %v11681_v33 = vpack.c.bf16 %v10019_v7, %v10017_v23  ;;  %v3710_v22 = vadd.f32 %v13315_v2, %v11572_v35 }
 0x347   :  { %v10023_v37 = vpop.eup %10022  ;;  %v3898_v28 = vpop.f32.mrf.mxu1  ;;  %5825 = vmatmul.mubr.bf16.gmra.mxu1 %v13313_v12  ;;  %6018 = vmatmul.mubr.bf16.gmra.mxu0 %v11599_v15  ;;  %v13317_v15 = vld [vmem:[#allocation62_spill] sm:$0xff] }
 0x348   :  { %v4091_v34 = vpop.f32.mrf.mxu0  ;;  %10034 = vtanh.f32 %v4086_v16  ;;  %v4088_v29 = vadd.f32 %v4087_v3, %v3895_v45  ;;  %v3899_v56 = vadd.f32 %v3898_v28, %v3706_v59  ;;  %5834 = vmatprep.mubr.bf16.mxu1 %v13314_v60  ;;  %6027 = vmatprep.mubr.bf16.mxu0 %v11619_v18  ;;  %v11689_v19 = vpack.c.bf16 %v10023_v37, %v10021_v47  ;;  %v13316_v59 = vld [vmem:[#allocation59_spill] sm:$0xff] }
 0x349   :  { %10036 = vtanh.f32 %v4084_v0  ;;  %v3900_v42 = vpop.f32.mrf.mxu1  ;;  %v10025_v16 = vpop.eup %10024  ;;  %v3712_v3 = vadd.f32 %v13316_v59, %v11577_v17  ;;  %v3716_v31 = vadd.f32 %v13317_v15, %v11572_v35  ;;  %v13320_v15 = vld [vmem:[#allocation42_spill] sm:$0xff] }
 0x34a   :  { %v4093_v23 = vpop.f32.mrf.mxu0  ;;  %10038 = vtanh.f32 %v4088_v29  ;;  %v3901_v9 = vadd.f32 %v3900_v42, %v3708_v48  ;;  %v4092_v7 = vadd.f32 %v4091_v34, %v3899_v56  ;;  %v13318_v34 = vld [vmem:[#allocation61_spill] sm:$0xff] }
 0x34b   :  { %v3902_v14 = vpop.f32.mrf.mxu1  ;;  %v3718_v56 = vadd.f32 %v13318_v34, %v11577_v17 }
 0x34c   :  { %v4095_v36 = vpop.f32.mrf.mxu0  ;;  %v3903_v45 = vadd.f32 %v3902_v14, %v3710_v22  ;;  %v4094_v18 = vadd.f32 %v4093_v23, %v3901_v9  ;;  %10040 = vtanh.f32 %v4092_v7  ;;  %v13319_v22 = vld [vmem:[#allocation34_spill] sm:$0xff]  ;;  %v13321_v7 = vld [vmem:[#allocation63_spill] sm:$0xff] }
 0x34d   :  { %v10027_v28 = vpop.eup %10026  ;;  %v3904_v47 = vpop.f32.mrf.mxu1 }
 0x34e   :  { %v4097_v37 = vpop.f32.mrf.mxu0  ;;  %v10029_v0 = vpop.eup %10028  ;;  %v4096_v49 = vadd.f32 %v4095_v36, %v3903_v45  ;;  %v3905_v2 = vadd.f32 %v3904_v47, %v3712_v3  ;;  %v11697_v29 = vpack.c.bf16 %v10027_v28, %v10025_v16  ;;  %v3720_v3 = vadd.f32 %v13321_v7, %v11572_v35 }
 0x34f   :  { %v10031_v48 = vpop.eup %10030  ;;  %v3908_v42 = vpop.f32.mrf.mxu1  ;;  %5835 = vmatmul.mubr.bf16.gmra.mxu1 %v13319_v22  ;;  %6028 = vmatmul.mubr.bf16.gmra.mxu0 %v11615_v50  ;;  %v9611_v50 = vld [vmem:[#allocation8 + $0x4e8] ss:$16 sps:$4 sm:$0xff]   ;;  %v3726_v7 = vadd.f32 %v13323_v41, %v11572_v35 }
 0x350   :  { %v4101_v59 = vpop.f32.mrf.mxu0  ;;  %10042 = vtanh.f32 %v4096_v49  ;;  %v4098_v23 = vadd.f32 %v4097_v37, %v3905_v2  ;;  %v3909_v9 = vadd.f32 %v3908_v42, %v3716_v31  ;;  %6070 = vmatprep.mubr.bf16.mxu1 %v11641_v5  ;;  %6263 = vmatprep.mubr.bf16.mxu0 %v13320_v15  ;;  %v11705_v14 = vpack.c.bf16 %v10031_v48, %v10029_v0  ;;  %v13322_v31 = vld [vmem:[#allocation65_spill] sm:$0xff] }
 0x351   :  { %10044 = vtanh.f32 %v4094_v18  ;;  %v3910_v36 = vpop.f32.mrf.mxu1  ;;  %v10033_v49 = vpop.eup %10032  ;;  %v3722_v37 = vadd.f32 %v13322_v31, %v11577_v17  ;;  %v9608_v18 = vld [vmem:[#allocation8 + $0x2e8] ss:$16 sps:$4 sm:$0xff]   ;;  %v9631_v5 = vld [vmem:[#allocation8 + $0x48c] ss:$16 sps:$4 sm:$0xff]  }
 0x352   :  { %v4103_v16 = vpop.f32.mrf.mxu0  ;;  %10046 = vtanh.f32 %v4098_v23  ;;  %v3911_v45 = vadd.f32 %v3910_v36, %v3718_v56  ;;  %v4102_v28 = vadd.f32 %v4101_v59, %v3909_v9  ;;  %v9616_v59 = vld [vmem:[#allocation8 + $0x2cc] ss:$16 sps:$4 sm:$0xff]  }
 0x353   :  { %v3912_v47 = vpop.f32.mrf.mxu1  ;;  %v9619_v9 = vld [vmem:[#allocation8 + $0x4cc] ss:$16 sps:$4 sm:$0xff]  }
 0x354   :  { %v4105_v34 = vpop.f32.mrf.mxu0  ;;  %v3913_v2 = vadd.f32 %v3912_v47, %v3720_v3  ;;  %v4104_v15 = vadd.f32 %v4103_v16, %v3911_v45  ;;  %v13324_v31 = vld [vmem:[#allocation66_spill] sm:$0xff]  ;;  %10048 = vtanh.f32 %v4102_v28  ;;  %v13325_v47 = vld [vmem:[#allocation41_spill] sm:$0xff] }
 0x355   :  { %v10035_v42 = vpop.eup %10034  ;;  %v3914_v0 = vpop.f32.mrf.mxu1  ;;  %v3728_v3 = vadd.f32 %v13324_v31, %v11577_v17  ;;  %v9614_v28 = vld [vmem:[#allocation8 + $0x2c8] ss:$16 sps:$4 sm:$0xff]  }
 0x356   :  { %v4107_v48 = vpop.f32.mrf.mxu0  ;;  %v10037_v21 = vpop.eup %10036  ;;  %v4106_v23 = vadd.f32 %v4105_v34, %v3913_v2  ;;  %v3915_v56 = vadd.f32 %v3914_v0, %v3722_v37  ;;  %v11713_v36 = vpack.c.bf16 %v10035_v42, %v10033_v49  ;;  %v13326_v34 = vld [vmem:[#allocation44_spill] sm:$0xff]  ;;  %v13327_v0 = vld [vmem:[#allocation67_spill] sm:$0xff] }
 0x357   :  { %v10039_v57 = vpop.eup %10038  ;;  %v3918_v16 = vpop.f32.mrf.mxu1  ;;  %6071 = vmatmul.mubr.bf16.vlgmr.msra.gmra.mxu1 %v11633_v6  ;;  %6264 = vmatmul.mubr.bf16.vlgmr.msra.gmra.mxu0 %v13325_v47  ;;  %v9617_v42 = vld [vmem:[#allocation8 + $0x4c8] ss:$16 sps:$4 sm:$0xff]   ;;  %v3730_v31 = vadd.f32 %v13327_v0, %v11572_v35 }
 0x358   :  { %v4111_v45 = vpop.f32.mrf.mxu0  ;;  %10050 = vtanh.f32 %v4106_v23  ;;  %v4108_v46 = vadd.f32 %v4107_v48, %v3915_v56  ;;  %v3919_v41 = vadd.f32 %v3918_v16, %v3726_v7  ;;  %6080 = vmatprep.mubr.bf16.mxu1 %v11657_v27  ;;  %6273 = vmatprep.mubr.bf16.mxu0 %v13326_v34  ;;  %v11721_v49 = vpack.c.bf16 %v10039_v57, %v10037_v21  ;;  %v9622_v48 = vld [vmem:[#allocation8 + $0x2ac] ss:$16 sps:$4 sm:$0xff]  }
 0x359   :  { %10052 = vtanh.f32 %v4104_v15  ;;  %6425 = vmatpush1.bf16.msra.mxu1 %v9608_v18  ;;  %v3920_v37 = vpop.f32.mrf.mxu1  ;;  %6618 = vmatpush1.bf16.msra.mxu0 %v9611_v50  ;;  %v9625_v7 = vld [vmem:[#allocation8 + $0x4ac] ss:$16 sps:$4 sm:$0xff]   ;;  %v10041_v21 = vpop.eup %10040 }
 0x35a   :  { %v4113_v2 = vpop.f32.mrf.mxu0  ;;  %10054 = vtanh.f32 %v4108_v46  ;;  %v3921_v23 = vadd.f32 %v3920_v37, %v3728_v3  ;;  %6426 = vmatprep.subr.bf16.mxu1 %v9616_v59  ;;  %6619 = vmatprep.subr.bf16.mxu0 %v9619_v9  ;;  %v4112_v56 = vadd.f32 %v4111_v45, %v3919_v41  ;;  %v13328_v15 = vld [vmem:[#allocation98_spill] sm:$0xff]  ;;  %v13329_v34 = vld [vmem:[#allocation99_spill] sm:$0xff] }
 0x35b   :  { %v3922_v16 = vpop.f32.mrf.mxu1  ;;  %v3732_v18 = vadd.f32 %v13328_v15, %v11577_v17  ;;  %v3736_v27 = vadd.f32 %v13329_v34, %v11572_v35  ;;  %v9620_v59 = vld [vmem:[#allocation8 + $0x2a8] ss:$16 sps:$4 sm:$0xff]   ;;  %v9628_v37 = vld [vmem:[#allocation8 + $0x28c] ss:$16 sps:$4 sm:$0xff]  }
 0x35c   :  { %v4115_v57 = vpop.f32.mrf.mxu0  ;;  %v3923_v47 = vadd.f32 %v3922_v16, %v3730_v31  ;;  %v4114_v6 = vadd.f32 %v4113_v2, %v3921_v23  ;;  %v9623_v9 = vld [vmem:[#allocation8 + $0x4a8] ss:$16 sps:$4 sm:$0xff]   ;;  %10056 = vtanh.f32 %v4112_v56 }
 0x35d   :  { %v10043_v50 = vpop.eup %10042  ;;  %v3924_v0 = vpop.f32.mrf.mxu1  ;;  %6427 = vmatpush1.bf16.msra.mxu1 %v9614_v28  ;;  %6620 = vmatpush1.bf16.msra.mxu0 %v9617_v42  ;;  %v13330_v16 = vld [vmem:[#allocation70_spill] sm:$0xff]  ;;  %v13331_v28 = vld [vmem:[#allocation43_spill] sm:$0xff] }
 0x35e   :  { %v4117_v46 = vpop.f32.mrf.mxu0  ;;  %v10045_v3 = vpop.eup %10044  ;;  %v4116_v45 = vadd.f32 %v4115_v57, %v3923_v47  ;;  %v3925_v41 = vadd.f32 %v3924_v0, %v3732_v18  ;;  %6428 = vmatprep.subr.bf16.mxu1 %v9622_v48  ;;  %6621 = vmatprep.subr.bf16.mxu0 %v9625_v7  ;;  %v11729_v15 = vpack.c.bf16 %v10043_v50, %v10041_v21  ;;  %v13332_v48 = vld [vmem:[#allocation46_spill] sm:$0xff]  ;;  %v13334_v50 = vld [vmem:[#allocation71_spill] sm:$0xff] }
 0x35f   :  { %v10047_v31 = vpop.eup %10046  ;;  %v3738_v34 = vadd.f32 %v13330_v16, %v11577_v17  ;;  %v3928_v2 = vpop.f32.mrf.mxu1  ;;  %6081 = vmatmul.mubr.bf16.gmra.mxu1 %v11649_v25  ;;  %6274 = vmatmul.mubr.bf16.gmra.mxu0 %v13331_v28  ;;  %v9626_v56 = vld [vmem:[#allocation8 + $0x288] ss:$16 sps:$4 sm:$0xff]   ;;  %v3740_v0 = vadd.f32 %v13334_v50, %v11572_v35 }
 0x360   :  { %v4121_v23 = vpop.f32.mrf.mxu0  ;;  %10058 = vtanh.f32 %v4116_v45  ;;  %v4118_v42 = vadd.f32 %v4117_v46, %v3925_v41  ;;  %v3929_v57 = vadd.f32 %v3928_v2, %v3736_v27  ;;  %6090 = vmatprep.mubr.bf16.mxu1 %v11673_v55  ;;  %6283 = vmatprep.mubr.bf16.mxu0 %v13332_v48  ;;  %v11737_v7 = vpack.c.bf16 %v10047_v31, %v10045_v3  ;;  %v9629_v47 = vld [vmem:[#allocation8 + $0x488] ss:$16 sps:$4 sm:$0xff]   ;;  %v9634_v27 = vld [vmem:[#allocation8 + $0x26c] ss:$16 sps:$4 sm:$0xff]  }
 0x361   :  { %10060 = vtanh.f32 %v4114_v6  ;;  %v3930_v21 = vpop.f32.mrf.mxu1  ;;  %6429 = vmatpush1.bf16.msra.mxu1 %v9620_v59  ;;  %6622 = vmatpush1.bf16.msra.mxu0 %v9623_v9  ;;  %v9637_v46 = vld [vmem:[#allocation8 + $0x46c] ss:$16 sps:$4 sm:$0xff]   ;;  %v10049_v31 = vpop.eup %10048  ;;  %v3742_v6 = vadd.f32 %v11456_v43, %v11577_v17 }
 0x362   :  { %13333 = vst [vmem:[#allocation28_spill] sm:$0xff] %v11737_v7  ;;  %v4123_v18 = vpop.f32.mrf.mxu0  ;;  %10062 = vtanh.f32 %v4118_v42  ;;  %v3931_v45 = vadd.f32 %v3930_v21, %v3738_v34  ;;  %6430 = vmatprep.subr.bf16.mxu1 %v9628_v37  ;;  %6623 = vmatprep.subr.bf16.mxu0 %v9631_v5  ;;  %v4122_v41 = vadd.f32 %v4121_v23, %v3929_v57  ;;  %v13335_v2 = vld [vmem:[#allocation100_spill] sm:$0xff] }
 0x363   :  { %v3932_v16 = vpop.f32.mrf.mxu1  ;;  %v3746_v28 = vadd.f32 %v13335_v2, %v11572_v35  ;;  %v9632_v5 = vld [vmem:[#allocation8 + $0x268] ss:$16 sps:$4 sm:$0xff]   ;;  %v9640_v21 = vld [vmem:[#allocation8 + $0x24c] ss:$16 sps:$4 sm:$0xff]  }
 0x364   :  { %v4125_v3 = vpop.f32.mrf.mxu0  ;;  %v3933_v59 = vadd.f32 %v3932_v16, %v3740_v0  ;;  %v4124_v48 = vadd.f32 %v4123_v18, %v3931_v45  ;;  %v9635_v37 = vld [vmem:[#allocation8 + $0x468] ss:$16 sps:$4 sm:$0xff]   ;;  %v9643_v55 = vld [vmem:[#allocation8 + $0x44c] ss:$16 sps:$4 sm:$0xff]   ;;  %10064 = vtanh.f32 %v4122_v41 }
 0x365   :  { %v10051_v9 = vpop.eup %10050  ;;  %v3934_v50 = vpop.f32.mrf.mxu1  ;;  %6431 = vmatpush1.bf16.msra.mxu1 %v9626_v56  ;;  %6624 = vmatpush1.bf16.msra.mxu0 %v9629_v47  ;;  %v13336_v16 = vld [vmem:[#allocation74_spill] sm:$0xff]  ;;  %v13337_v56 = vld [vmem:[#allocation45_spill] sm:$0xff] }
 0x366   :  { %v4127_v42 = vpop.f32.mrf.mxu0  ;;  %v10053_v34 = vpop.eup %10052  ;;  %v4126_v23 = vadd.f32 %v4125_v3, %v3933_v59  ;;  %v3935_v57 = vadd.f32 %v3934_v50, %v3742_v6  ;;  %6432 = vmatprep.subr.bf16.mxu1 %v9634_v27  ;;  %6625 = vmatprep.subr.bf16.mxu0 %v9637_v46  ;;  %v11745_v43 = vpack.c.bf16 %v10051_v9, %v10049_v31  ;;  %v13338_v27 = vld [vmem:[#allocation48_spill] sm:$0xff]  ;;  %v13339_v9 = vld [vmem:[#allocation75_spill] sm:$0xff] }
 0x367   :  { %v10055_v0 = vpop.eup %10054  ;;  %v3748_v2 = vadd.f32 %v13336_v16, %v11577_v17  ;;  %v3938_v18 = vpop.f32.mrf.mxu1  ;;  %6091 = vmatmul.mubr.bf16.gmra.mxu1 %v11665_v53  ;;  %6284 = vmatmul.mubr.bf16.gmra.mxu0 %v13337_v56  ;;  %v9638_v41 = vld [vmem:[#allocation8 + $0x248] ss:$16 sps:$4 sm:$0xff]   ;;  %v3750_v50 = vadd.f32 %v13339_v9, %v11572_v35  ;;  %v9655_v9 = vld [vmem:[#allocation8 + $0x40c] ss:$16 sps:$4 sm:$0xff]  }
 0x368   :  { %v4131_v45 = vpop.f32.mrf.mxu0  ;;  %10066 = vtanh.f32 %v4126_v23  ;;  %v4128_v47 = vadd.f32 %v4127_v42, %v3935_v57  ;;  %v3939_v3 = vadd.f32 %v3938_v18, %v3746_v28  ;;  %6100 = vmatprep.mubr.bf16.mxu1 %v11689_v19  ;;  %6293 = vmatprep.mubr.bf16.mxu0 %v13338_v27  ;;  %v11753_v46 = vpack.c.bf16 %v10055_v0, %v10053_v34  ;;  %v9641_v59 = vld [vmem:[#allocation8 + $0x448] ss:$16 sps:$4 sm:$0xff]   ;;  %v9646_v28 = vld [vmem:[#allocation8 + $0x22c] ss:$16 sps:$4 sm:$0xff]  }
 0x369   :  { %10068 = vtanh.f32 %v4124_v48  ;;  %v3940_v31 = vpop.f32.mrf.mxu1  ;;  %6433 = vmatpush1.bf16.msra.mxu1 %v9632_v5  ;;  %6626 = vmatpush1.bf16.msra.mxu0 %v9635_v37  ;;  %v9649_v42 = vld [vmem:[#allocation8 + $0x42c] ss:$16 sps:$4 sm:$0xff]   ;;  %v10057_v0 = vpop.eup %10056  ;;  %v3752_v48 = vadd.f32 %v11476_v10, %v11577_v17  ;;  %v3756_v18 = vadd.f32 %v11481_v54, %v11572_v35 }
 0x36a   :  { %v4133_v6 = vpop.f32.mrf.mxu0  ;;  %10070 = vtanh.f32 %v4128_v47  ;;  %v3941_v23 = vadd.f32 %v3940_v31, %v3748_v2  ;;  %6434 = vmatprep.subr.bf16.mxu1 %v9640_v21  ;;  %6627 = vmatprep.subr.bf16.mxu0 %v9643_v55  ;;  %v4132_v57 = vadd.f32 %v4131_v45, %v3939_v3  ;;  %v9644_v55 = vld [vmem:[#allocation8 + $0x228] ss:$16 sps:$4 sm:$0xff]   ;;  %v9652_v31 = vld [vmem:[#allocation8 + $0x20c] ss:$16 sps:$4 sm:$0xff]  }
 0x36b   :  { %v3942_v16 = vpop.f32.mrf.mxu1  ;;  %v9647_v21 = vld [vmem:[#allocation8 + $0x428] ss:$16 sps:$4 sm:$0xff]  }
 0x36c   :  { %v4135_v34 = vpop.f32.mrf.mxu0  ;;  %v3943_v5 = vadd.f32 %v3942_v16, %v3750_v50  ;;  %v4134_v56 = vadd.f32 %v4133_v6, %v3941_v23  ;;  %v13340_v16 = vld [vmem:[#allocation78_spill] sm:$0xff]  ;;  %10072 = vtanh.f32 %v4132_v57 }
 0x36d   :  { %v10059_v37 = vpop.eup %10058  ;;  %v3944_v27 = vpop.f32.mrf.mxu1  ;;  %6435 = vmatpush1.bf16.msra.mxu1 %v9638_v41  ;;  %6628 = vmatpush1.bf16.msra.mxu0 %v9641_v59  ;;  %v3758_v54 = vadd.f32 %v13340_v16, %v11577_v17  ;;  %v13341_v41 = vld [vmem:[#allocation47_spill] sm:$0xff]  ;;  %v9650_v57 = vld [vmem:[#allocation8 + $0x208] ss:$16 sps:$4 sm:$0xff]  }
 0x36e   :  { %v4137_v47 = vpop.f32.mrf.mxu0  ;;  %v10061_v2 = vpop.eup %10060  ;;  %v4136_v45 = vadd.f32 %v4135_v34, %v3943_v5  ;;  %v3945_v3 = vadd.f32 %v3944_v27, %v3752_v48  ;;  %6436 = vmatprep.subr.bf16.mxu1 %v9646_v28  ;;  %6629 = vmatprep.subr.bf16.mxu0 %v9649_v42  ;;  %v11761_v10 = vpack.c.bf16 %v10059_v37, %v10057_v0  ;;  %v13342_v28 = vld [vmem:[#allocation50_spill] sm:$0xff]  ;;  %v13343_v37 = vld [vmem:[#allocation101_spill] sm:$0xff] }
 0x36f   :  { %v10063_v50 = vpop.eup %10062  ;;  %v3948_v6 = vpop.f32.mrf.mxu1  ;;  %6101 = vmatmul.mubr.bf16.gmra.mxu1 %v11681_v33  ;;  %6294 = vmatmul.mubr.bf16.gmra.mxu0 %v13341_v41  ;;  %v9653_v5 = vld [vmem:[#allocation8 + $0x408] ss:$16 sps:$4 sm:$0xff]   ;;  %v3760_v27 = vadd.f32 %v13343_v37, %v11572_v35  ;;  %v9667_v37 = vld [vmem:[#allocation8 + $0x5cc] ss:$16 sps:$4 sm:$0xff]  }
 0x370   :  { %v4141_v23 = vpop.f32.mrf.mxu0  ;;  %10074 = vtanh.f32 %v4136_v45  ;;  %v4138_v59 = vadd.f32 %v4137_v47, %v3945_v3  ;;  %v3949_v34 = vadd.f32 %v3948_v6, %v3756_v18  ;;  %6110 = vmatprep.mubr.bf16.mxu1 %v11705_v14  ;;  %6303 = vmatprep.mubr.bf16.mxu0 %v13342_v28  ;;  %v11769_v42 = vpack.c.bf16 %v10063_v50, %v10061_v2  ;;  %v9658_v18 = vld [vmem:[#allocation8 + $0x3ec] ss:$16 sps:$4 sm:$0xff]  }
 0x371   :  { %10076 = vtanh.f32 %v4134_v56  ;;  %v3950_v0 = vpop.f32.mrf.mxu1  ;;  %6437 = vmatpush1.bf16.msra.mxu1 %v9644_v55  ;;  %6630 = vmatpush1.bf16.msra.mxu0 %v9647_v21  ;;  %v9661_v47 = vld [vmem:[#allocation8 + $0x5ec] ss:$16 sps:$4 sm:$0xff]   ;;  %v10065_v50 = vpop.eup %10064  ;;  %v3762_v56 = vadd.f32 %v11496_v32, %v11577_v17  ;;  %v3766_v6 = vadd.f32 %v11501_v63, %v11572_v35 }
 0x372   :  { %v4143_v48 = vpop.f32.mrf.mxu0  ;;  %10078 = vtanh.f32 %v4138_v59  ;;  %v3951_v45 = vadd.f32 %v3950_v0, %v3758_v54  ;;  %6438 = vmatprep.subr.bf16.mxu1 %v9652_v31  ;;  %6631 = vmatprep.subr.bf16.mxu0 %v9655_v9  ;;  %v4142_v3 = vadd.f32 %v4141_v23, %v3949_v34  ;;  %v9656_v31 = vld [vmem:[#allocation8 + $0x3e8] ss:$16 sps:$4 sm:$0xff]   ;;  %v9664_v32 = vld [vmem:[#allocation8 + $0x3cc] ss:$16 sps:$4 sm:$0xff]  }
 0x373   :  { %v3952_v16 = vpop.f32.mrf.mxu1  ;;  %v9659_v9 = vld [vmem:[#allocation8 + $0x5e8] ss:$16 sps:$4 sm:$0xff]  }
 0x374   :  { %v4145_v2 = vpop.f32.mrf.mxu0  ;;  %v3953_v55 = vadd.f32 %v3952_v16, %v3760_v27  ;;  %v4144_v41 = vadd.f32 %v4143_v48, %v3951_v45  ;;  %v13344_v16 = vld [vmem:[#allocation80_spill] sm:$0xff]  ;;  %10080 = vtanh.f32 %v4142_v3 }
 0x375   :  { %v10067_v21 = vpop.eup %10066  ;;  %v3954_v28 = vpop.f32.mrf.mxu1  ;;  %6439 = vmatpush1.bf16.msra.mxu1 %v9650_v57  ;;  %6632 = vmatpush1.bf16.msra.mxu0 %v9653_v5  ;;  %v3768_v63 = vadd.f32 %v13344_v16, %v11577_v17  ;;  %v13345_v57 = vld [vmem:[#allocation49_spill] sm:$0xff]  ;;  %v9662_v3 = vld [vmem:[#allocation8 + $0x3c8] ss:$16 sps:$4 sm:$0xff]  }
 0x376   :  { %v4147_v59 = vpop.f32.mrf.mxu0  ;;  %v10069_v54 = vpop.eup %10068  ;;  %v4146_v23 = vadd.f32 %v4145_v2, %v3953_v55  ;;  %v3955_v34 = vadd.f32 %v3954_v28, %v3762_v56  ;;  %6440 = vmatprep.subr.bf16.mxu1 %v9658_v18  ;;  %6633 = vmatprep.subr.bf16.mxu0 %v9661_v47  ;;  %v11777_v0 = vpack.c.bf16 %v10067_v21, %v10065_v50  ;;  %v13346_v18 = vld [vmem:[#allocation52_spill] sm:$0xff]  ;;  %v13347_v21 = vld [vmem:[#allocation103_spill] sm:$0xff] }
 0x377   :  { %v10071_v27 = vpop.eup %10070  ;;  %v3958_v48 = vpop.f32.mrf.mxu1  ;;  %6111 = vmatmul.mubr.bf16.gmra.mxu1 %v11697_v29  ;;  %6304 = vmatmul.mubr.bf16.gmra.mxu0 %v13345_v57  ;;  %v9665_v55 = vld [vmem:[#allocation8 + $0x5c8] ss:$16 sps:$4 sm:$0xff]   ;;  %v3770_v28 = vadd.f32 %v13347_v21, %v11572_v35  ;;  %v9679_v21 = vld [vmem:[#allocation8 + $0x58c] ss:$16 sps:$4 sm:$0xff]  }
 0x378   :  { %v4151_v45 = vpop.f32.mrf.mxu0  ;;  %10082 = vtanh.f32 %v4146_v23  ;;  %v4148_v5 = vadd.f32 %v4147_v59, %v3955_v34  ;;  %v3959_v2 = vadd.f32 %v3958_v48, %v3766_v6  ;;  %6120 = vmatprep.mubr.bf16.mxu1 %v11721_v49  ;;  %6313 = vmatprep.mubr.bf16.mxu0 %v13346_v18  ;;  %v11785_v47 = vpack.c.bf16 %v10071_v27, %v10069_v54  ;;  %v9670_v6 = vld [vmem:[#allocation8 + $0x3ac] ss:$16 sps:$4 sm:$0xff]  }
 0x379   :  { %10084 = vtanh.f32 %v4144_v41  ;;  %v3960_v50 = vpop.f32.mrf.mxu1  ;;  %6441 = vmatpush2.bf16.msra.mxu1 %v9656_v31  ;;  %6634 = vmatpush2.bf16.msra.mxu0 %v9659_v9  ;;  %v9673_v59 = vld [vmem:[#allocation8 + $0x5ac] ss:$16 sps:$4 sm:$0xff]   ;;  %v10073_v27 = vpop.eup %10072  ;;  %v3772_v41 = vadd.f32 %v11516_v38, %v11577_v17  ;;  %v3776_v48 = vadd.f32 %v11521_v62, %v11572_v35 }
 0x37a   :  { %v4153_v56 = vpop.f32.mrf.mxu0  ;;  %10086 = vtanh.f32 %v4148_v5  ;;  %v3961_v23 = vadd.f32 %v3960_v50, %v3768_v63  ;;  %6442 = vmatprep.subr.bf16.mxu1 %v9664_v32  ;;  %6635 = vmatprep.subr.bf16.mxu0 %v9667_v37  ;;  %v4152_v34 = vadd.f32 %v4151_v45, %v3959_v2  ;;  %v9668_v32 = vld [vmem:[#allocation8 + $0x3a8] ss:$16 sps:$4 sm:$0xff]   ;;  %v9676_v38 = vld [vmem:[#allocation8 + $0x38c] ss:$16 sps:$4 sm:$0xff]  }
 0x37b   :  { %v3962_v16 = vpop.f32.mrf.mxu1  ;;  %v9671_v37 = vld [vmem:[#allocation8 + $0x5a8] ss:$16 sps:$4 sm:$0xff]  }
 0x37c   :  { %v4155_v54 = vpop.f32.mrf.mxu0  ;;  %v3963_v31 = vadd.f32 %v3962_v16, %v3770_v28  ;;  %v4154_v57 = vadd.f32 %v4153_v56, %v3961_v23  ;;  %v13348_v16 = vld [vmem:[#allocation82_spill] sm:$0xff]  ;;  %10088 = vtanh.f32 %v4152_v34 }
 0x37d   :  { %v10075_v9 = vpop.eup %10074  ;;  %v3964_v18 = vpop.f32.mrf.mxu1  ;;  %6443 = vmatpush2.bf16.msra.mxu1 %v9662_v3  ;;  %6636 = vmatpush2.bf16.msra.mxu0 %v9665_v55  ;;  %v3778_v62 = vadd.f32 %v13348_v16, %v11577_v17  ;;  %v13349_v3 = vld [vmem:[#allocation51_spill] sm:$0xff]  ;;  %v9674_v34 = vld [vmem:[#allocation8 + $0x388] ss:$16 sps:$4 sm:$0xff]  }
 0x37e   :  { %v4157_v5 = vpop.f32.mrf.mxu0  ;;  %v10077_v63 = vpop.eup %10076  ;;  %v4156_v45 = vadd.f32 %v4155_v54, %v3963_v31  ;;  %v3965_v2 = vadd.f32 %v3964_v18, %v3772_v41  ;;  %v11793_v50 = vpack.c.bf16 %v10075_v9, %v10073_v27  ;;  %6444 = vmatprep.subr.bf16.mxu1 %v9670_v6  ;;  %6637 = vmatprep.subr.bf16.mxu0 %v9673_v59  ;;  %v13350_v6 = vld [vmem:[#allocation54_spill] sm:$0xff]  ;;  %v13351_v9 = vld [vmem:[#allocation105_spill] sm:$0xff] }
 0x37f   :  { %v10079_v28 = vpop.eup %10078  ;;  %v3968_v56 = vpop.f32.mrf.mxu1  ;;  %6121 = vmatmul.mubr.bf16.gmra.mxu1 %v11713_v36  ;;  %6314 = vmatmul.mubr.bf16.gmra.mxu0 %v13349_v3  ;;  %v9677_v31 = vld [vmem:[#allocation8 + $0x588] ss:$16 sps:$4 sm:$0xff]   ;;  %v3780_v18 = vadd.f32 %v13351_v9, %v11572_v35 }
 0x380   :  { %v4161_v23 = vpop.f32.mrf.mxu0  ;;  %10090 = vtanh.f32 %v4156_v45  ;;  %v4158_v55 = vadd.f32 %v4157_v5, %v3965_v2  ;;  %v3969_v54 = vadd.f32 %v3968_v56, %v3776_v48  ;;  %6130 = vmatprep.mubr.bf16.mxu1 %v11737_v7  ;;  %6323 = vmatprep.mubr.bf16.mxu0 %v13350_v6  ;;  %v11801_v59 = vpack.c.bf16 %v10079_v28, %v10077_v63  ;;  %v9682_v48 = vld [vmem:[#allocation8 + $0x36c] ss:$16 sps:$4 sm:$0xff]  }
 0x381   :  { %10092 = vtanh.f32 %v4154_v57  ;;  %v3970_v27 = vpop.f32.mrf.mxu1  ;;  %6445 = vmatpush2.bf16.msra.mxu1 %v9668_v32  ;;  %6638 = vmatpush2.bf16.msra.mxu0 %v9671_v37  ;;  %v9685_v5 = vld [vmem:[#allocation8 + $0x56c] ss:$16 sps:$4 sm:$0xff]   ;;  %v10081_v28 = vpop.eup %10080  ;;  %v3782_v57 = vadd.f32 %v11536_v52, %v11577_v17 }
 0x382   :  { %v4163_v41 = vpop.f32.mrf.mxu0  ;;  %10094 = vtanh.f32 %v4158_v55  ;;  %v3971_v45 = vadd.f32 %v3970_v27, %v3778_v62  ;;  %6446 = vmatprep.subr.bf16.mxu1 %v9676_v38  ;;  %6639 = vmatprep.subr.bf16.mxu0 %v9679_v21  ;;  %v4162_v2 = vadd.f32 %v4161_v23, %v3969_v54  ;;  %v13352_v56 = vld [vmem:[#allocation107_spill] sm:$0xff]  ;;  %v9680_v38 = vld [vmem:[#allocation8 + $0x368] ss:$16 sps:$4 sm:$0xff]  }
 0x383   :  { %v3972_v16 = vpop.f32.mrf.mxu1  ;;  %v3786_v3 = vadd.f32 %v13352_v56, %v11572_v35  ;;  %v9683_v21 = vld [vmem:[#allocation8 + $0x568] ss:$16 sps:$4 sm:$0xff]   ;;  %v9688_v52 = vld [vmem:[#allocation8 + $0x34c] ss:$16 sps:$4 sm:$0xff]  }
 0x384   :  { %v4165_v63 = vpop.f32.mrf.mxu0  ;;  %v3973_v32 = vadd.f32 %v3972_v16, %v3780_v18  ;;  %v4164_v6 = vadd.f32 %v4163_v41, %v3971_v45  ;;  %v9691_v18 = vld [vmem:[#allocation8 + $0x54c] ss:$16 sps:$4 sm:$0xff]   ;;  %10096 = vtanh.f32 %v4162_v2  ;;  %v9689_v2 = vld [vmem:[#allocation8 + $0x548] ss:$16 sps:$4 sm:$0xff]  }
 0x385   :  { %v10083_v37 = vpop.eup %10082  ;;  %v3974_v9 = vpop.f32.mrf.mxu1  ;;  %6447 = vmatpush2.bf16.msra.mxu1 %v9674_v34  ;;  %6640 = vmatpush2.bf16.msra.mxu0 %v9677_v31  ;;  %v13353_v7 = vld [vmem:[#allocation84_spill] sm:$0xff]  ;;  %v13354_v34 = vld [vmem:[#allocation53_spill] sm:$0xff] }
 0x386   :  { %v4167_v55 = vpop.f32.mrf.mxu0  ;;  %v10085_v62 = vpop.eup %10084  ;;  %v4166_v23 = vadd.f32 %v4165_v63, %v3973_v32  ;;  %v3975_v54 = vadd.f32 %v3974_v9, %v3782_v57  ;;  %v11809_v27 = vpack.c.bf16 %v10083_v37, %v10081_v28  ;;  %6448 = vmatprep.subr.bf16.mxu1 %v9682_v48  ;;  %6641 = vmatprep.subr.bf16.mxu0 %v9685_v5  ;;  %v13355_v48 = vld [vmem:[#allocation56_spill] sm:$0xff] }
 0x387   :  { %v10087_v16 = vpop.eup %10086  ;;  %v3788_v56 = vadd.f32 %v13353_v7, %v11577_v17  ;;  %v3978_v41 = vpop.f32.mrf.mxu1  ;;  %6131 = vmatmul.mubr.bf16.gmra.mxu1 %v11729_v15  ;;  %6324 = vmatmul.mubr.bf16.gmra.mxu0 %v13354_v34  ;;  %v9686_v7 = vld [vmem:[#allocation8 + $0x348] ss:$16 sps:$4 sm:$0xff]  }
 0x388   :  { %v4171_v45 = vpop.f32.mrf.mxu0  ;;  %10098 = vtanh.f32 %v4166_v23  ;;  %v4168_v31 = vadd.f32 %v4167_v55, %v3975_v54  ;;  %v3979_v63 = vadd.f32 %v3978_v41, %v3786_v3  ;;  %6140 = vmatprep.mubr.bf16.mxu1 %v11753_v46  ;;  %6333 = vmatprep.mubr.bf16.mxu0 %v13355_v48  ;;  %v11817_v5 = vpack.c.bf16 %v10087_v16, %v10085_v62  ;;  %v13356_v32 = vld [vmem:[#allocation108_spill] sm:$0xff] }
 0x389   :  { %10100 = vtanh.f32 %v4164_v6  ;;  %v3980_v28 = vpop.f32.mrf.mxu1  ;;  %6449 = vmatpush2.bf16.msra.mxu1 %v9680_v38  ;;  %6642 = vmatpush2.bf16.msra.mxu0 %v9683_v21  ;;  %v3790_v37 = vadd.f32 %v13356_v32, %v11572_v35  ;;  %v9694_v3 = vld [vmem:[#allocation8 + $0x32c] ss:$16 sps:$4 sm:$0xff]   ;;  %v10089_v16 = vpop.eup %10088  ;;  %v3792_v6 = vadd.f32 %v11556_v61, %v11577_v17  ;;  %v3796_v41 = vadd.f32 %v11562_v40, %v11572_v35 }
 0x38a   :  { %v4173_v57 = vpop.f32.mrf.mxu0  ;;  %10102 = vtanh.f32 %v4168_v31  ;;  %v3981_v9 = vadd.f32 %v3980_v28, %v3788_v56  ;;  %6450 = vmatprep.subr.bf16.mxu1 %v9688_v52  ;;  %6643 = vmatprep.subr.bf16.mxu0 %v9691_v18  ;;  %v9697_v55 = vld [vmem:[#allocation8 + $0x52c] ss:$16 sps:$4 sm:$0xff]   ;;  %v4172_v23 = vadd.f32 %v4171_v45, %v3979_v63  ;;  %v9692_v52 = vld [vmem:[#allocation8 + $0x328] ss:$16 sps:$4 sm:$0xff]  }
 0x38b   :  { %v3982_v54 = vpop.f32.mrf.mxu1  ;;  %v9695_v18 = vld [vmem:[#allocation8 + $0x528] ss:$16 sps:$4 sm:$0xff]   ;;  %v9700_v61 = vld [vmem:[#allocation8 + $0x30c] ss:$16 sps:$4 sm:$0xff]  }
 0x38c   :  { %v4175_v62 = vpop.f32.mrf.mxu0  ;;  %v3983_v38 = vadd.f32 %v3982_v54, %v3790_v37  ;;  %v4174_v34 = vadd.f32 %v4173_v57, %v3981_v9  ;;  %v9703_v32 = vld [vmem:[#allocation8 + $0x50c] ss:$16 sps:$4 sm:$0xff]   ;;  %10104 = vtanh.f32 %v4172_v23  ;;  %v9698_v23 = vld [vmem:[#allocation8 + $0x308] ss:$16 sps:$4 sm:$0xff]  }
 0x38d   :  { %v10091_v21 = vpop.eup %10090  ;;  %v3984_v48 = vpop.f32.mrf.mxu1  ;;  %6451 = vmatpush2.bf16.msra.mxu1 %v9686_v7  ;;  %6644 = vmatpush2.bf16.msra.mxu0 %v9689_v2  ;;  %v13358_v54 = vld [vmem:[#allocation110_spill] sm:$0xff]  ;;  %v13359_v7 = vld [vmem:[#allocation55_spill] sm:$0xff] }
 0x38e   :  { %v4177_v31 = vpop.f32.mrf.mxu0  ;;  %v10093_v56 = vpop.eup %10092  ;;  %v4176_v45 = vadd.f32 %v4175_v62, %v3983_v38  ;;  %v3985_v63 = vadd.f32 %v3984_v48, %v3792_v6  ;;  %v11825_v28 = vpack.c.bf16 %v10091_v21, %v10089_v16  ;;  %6452 = vmatprep.subr.bf16.mxu1 %v9694_v3  ;;  %6645 = vmatprep.subr.bf16.mxu0 %v9697_v55  ;;  %v13360_v3 = vld [vmem:[#allocation21_spill] sm:$0xff]  ;;  %v4670_v38 = vld [vmem:[#allocation10] sm:$0xf]  ;;  %v9701_v21 = vld [vmem:[#allocation8 + $0x508] ss:$16 sps:$4 sm:$0xff]  }
 0x38f   :  { %v10095_v37 = vpop.eup %10094  ;;  %v3798_v40 = vadd.f32 %v13358_v54, %v11577_v17  ;;  %v3988_v57 = vpop.f32.mrf.mxu1  ;;  %6141 = vmatmul.mubr.bf16.gmra.mxu1 %v11745_v43  ;;  %6334 = vmatmul.mubr.bf16.gmra.mxu0 %v13359_v7  ;;  %v3800_v48 = vadd.f32 %v11575_v11, %v11572_v35  ;;  %v13361_v54 = vld [vmem:[#allocation20_spill] sm:$0xff] }
 0x390   :  { %13357 = vst [vmem:[#allocation31_spill] sm:$0xff] %v11825_v28  ;;  %v4181_v9 = vpop.f32.mrf.mxu0  ;;  %10106 = vtanh.f32 %v4176_v45  ;;  %v4178_v2 = vadd.f32 %v4177_v31, %v3985_v63  ;;  %v3989_v62 = vadd.f32 %v3988_v57, %v3796_v41  ;;  %6150 = vmatprep.mubr.bf16.mxu1 %v11769_v42  ;;  %6343 = vmatprep.mubr.bf16.mxu0 %v13360_v3 }
 0x391   :  { %v11833_v55 = vpack.c.bf16 %v10095_v37, %v10093_v56  ;;  %10108 = vtanh.f32 %v4174_v34  ;;  %v3990_v16 = vpop.f32.mrf.mxu1  ;;  %6453 = vmatpush2.bf16.msra.mxu1 %v9692_v52  ;;  %6646 = vmatpush2.bf16.msra.mxu0 %v9695_v18  ;;  %v10097_v56 = vpop.eup %10096  ;;  %v3802_v34 = vadd.f32 %v11582_v58, %v11577_v17  ;;  %v13362_v52 = vsub.s32 0, %v13361_v54 }
 0x392   :  { %v4183_v6 = vpop.f32.mrf.mxu0  ;;  %10110 = vtanh.f32 %v4178_v2  ;;  %v3991_v31 = vadd.f32 %v3990_v16, %v3798_v40  ;;  %6454 = vmatprep.subr.bf16.mxu1 %v9700_v61  ;;  %6647 = vmatprep.subr.bf16.mxu0 %v9703_v32  ;;  %v4182_v41 = vadd.f32 %v4181_v9, %v3989_v62  ;;  %v13363_v40 = vsub.s32 1, %v13361_v54 }
 0x393   :  { %v3992_v45 = vpop.f32.mrf.mxu1  ;;  %v11841_v18 = vrot.slane %v4670_v38, %v13362_v52 }
 0x394   :  { %v4185_v63 = vpop.f32.mrf.mxu0  ;;  %v3993_v37 = vadd.f32 %v3992_v45, %v3800_v48  ;;  %v4184_v7 = vadd.f32 %v4183_v6, %v3991_v31  ;;  %v11845_v9 = vrot.slane %v4670_v38, %v13363_v40  ;;  %10112 = vtanh.f32 %v4182_v41 }
 0x395   :  { %v10099_v57 = vpop.eup %10098  ;;  %v3994_v3 = vpop.f32.mrf.mxu1  ;;  %6455 = vmatpush2.bf16.msra.mxu1 %v9698_v23  ;;  %6648 = vmatpush2.bf16.msra.mxu0 %v9701_v21  ;;  %v13365_v23 = vld [vmem:[#allocation23_spill] sm:$0xff] }
 0x396   :  { %v4187_v35 = vpop.f32.mrf.mxu0  ;;  %v10101_v11 = vpop.eup %10100  ;;  %v4186_v61 = vadd.f32 %v4185_v63, %v3993_v37  ;;  %v3995_v32 = vadd.f32 %v3994_v3, %v3802_v34  ;;  %v11847_v2 = vpack.c.bf16 %v10099_v57, %v10097_v56 }
 0x397   :  { %v10103_v17 = vpop.eup %10102  ;;  %v5686_v58 = vpop.f32.mrf.mxu1  ;;  %6151 = vmatmul.mubr.bf16.gmra.mxu1 %v11761_v10  ;;  %6344 = vmatmul.mubr.bf16.gmra.mxu0 %v13287_v26 }
 0x398   :  { %13364 = vst [vmem:[#allocation92_spill] sm:$0xff] %v11847_v2  ;;  %v5879_v62 = vpop.f32.mrf.mxu0  ;;  %10114 = vtanh.f32 %v4186_v61  ;;  %v4188_v16 = vadd.f32 %v4187_v35, %v3995_v32  ;;  %v5687_v6 = vadd.f32 %v5686_v58, %v11841_v18  ;;  %6160 = vmatprep.mubr.bf16.mxu1 %v11785_v47  ;;  %6353 = vmatprep.mubr.bf16.mxu0 %v13365_v23 }
 0x399   :  { %v11854_v38 = vpack.c.bf16 %v10103_v17, %v10101_v11  ;;  %10116 = vtanh.f32 %v4184_v7  ;;  %v5688_v21 = vpop.f32.mrf.mxu1  ;;  %v10105_v63 = vpop.eup %10104 }
 0x39a   :  { %v5881_v48 = vpop.f32.mrf.mxu0  ;;  %10118 = vtanh.f32 %v4188_v16  ;;  %v11856_v31 = vadd.f32 %v5879_v62, %v5687_v6  ;;  %v5689_v41 = vadd.f32 %v5688_v21, %v11845_v9 }
 0x39b   :  { %13366 = vst [vmem:[#allocation93_spill] sm:$0xff] %v11854_v38  ;;  %v5690_v45 = vpop.f32.mrf.mxu1 }
 0x39c   :  { %v5883_v26 = vpop.f32.mrf.mxu0  ;;  %v11859_v56 = vadd.f32 %v5881_v48, %v5689_v41  ;;  %v5691_v34 = vadd.f32 %v5690_v45, %v11841_v18 }
 0x39d   :  { %v10107_v37 = vpop.eup %10106  ;;  %v5692_v52 = vpop.f32.mrf.mxu1 }
 0x39e   :  { %v5885_v57 = vpop.f32.mrf.mxu0  ;;  %v10109_v3 = vpop.eup %10108  ;;  %v11862_v35 = vadd.f32 %v5883_v26, %v5691_v34  ;;  %v5693_v7 = vadd.f32 %v5692_v52, %v11845_v9  ;;  %v11865_v11 = vpack.c.bf16 %v10107_v37, %v10105_v63 }
 0x39f   :  { %v10111_v61 = vpop.eup %10110  ;;  %v5696_v32 = vpop.f32.mrf.mxu1  ;;  %6161 = vmatmul.mubr.bf16.gmra.mxu1 %v11777_v0  ;;  %6354 = vmatmul.mubr.bf16.gmra.mxu0 %v13291_v44 }
 0x3a0   :  { %13367 = vst [vmem:[#allocation30_spill] sm:$0xff] %v11865_v11  ;;  %v5889_v40 = vpop.f32.mrf.mxu0  ;;  %v11869_v17 = vadd.f32 %v5885_v57, %v5693_v7  ;;  %v5697_v58 = vadd.f32 %v5696_v32, %v11841_v18  ;;  %6170 = vmatprep.mubr.bf16.mxu1 %v11801_v59  ;;  %6363 = vmatprep.mubr.bf16.mxu0 %v13292_v24 }
 0x3a1   :  { %v11874_v62 = vpack.c.bf16 %v10111_v61, %v10109_v3  ;;  %v5698_v16 = vpop.f32.mrf.mxu1  ;;  %v10113_v45 = vpop.eup %10112 }
 0x3a2   :  { %v5891_v6 = vpop.f32.mrf.mxu0  ;;  %v11876_v23 = vadd.f32 %v5889_v40, %v5697_v58  ;;  %v5699_v21 = vadd.f32 %v5698_v16, %v11845_v9 }
 0x3a3   :  { %13368 = vst [vmem:[#allocation33_spill] sm:$0xff] %v11874_v62  ;;  %v5700_v48 = vpop.f32.mrf.mxu1 }
 0x3a4   :  { %v5893_v41 = vpop.f32.mrf.mxu0  ;;  %v11879_v44 = vadd.f32 %v5891_v6, %v5699_v21  ;;  %v5701_v26 = vadd.f32 %v5700_v48, %v11841_v18  ;;  %v9704_v6 = vld [vmem:[#allocation11 + $0x78] sm:$0xff]  }
 0x3a5   :  { %v10115_v63 = vpop.eup %10114  ;;  %v5702_v34 = vpop.f32.mrf.mxu1  ;;  %8568 = vmatprep.subr.bf16.mxu1 %v9704_v6 }
 0x3a6   :  { %v5895_v37 = vpop.f32.mrf.mxu0  ;;  %v10117_v52 = vpop.eup %10116  ;;  %v11882_v24 = vadd.f32 %v5893_v41, %v5701_v26  ;;  %v5703_v57 = vadd.f32 %v5702_v34, %v11845_v9  ;;  %v11885_v3 = vpack.c.bf16 %v10115_v63, %v10113_v45  ;;  %v9706_v26 = vld [vmem:[#allocation11 + $0xf8] sm:$0xff]  }
 0x3a7   :  { %v10119_v7 = vpop.eup %10118  ;;  %v5706_v61 = vpop.f32.mrf.mxu1  ;;  %6171 = vmatmul.mubr.bf16.gmra.mxu1 %v11793_v50  ;;  %6364 = vmatmul.mubr.bf16.gmra.mxu0 %v13295_v51 }
 0x3a8   :  { %13369 = vst [vmem:[#allocation36_spill] sm:$0xff] %v11885_v3  ;;  %v5899_v32 = vpop.f32.mrf.mxu0  ;;  %v11889_v40 = vadd.f32 %v5895_v37, %v5703_v57  ;;  %v5707_v58 = vadd.f32 %v5706_v61, %v11841_v18  ;;  %6180 = vmatprep.mubr.bf16.mxu1 %v11817_v5  ;;  %6373 = vmatprep.mubr.bf16.mxu0 %v13296_v13 }
 0x3a9   :  { %v11894_v16 = vpack.c.bf16 %v10119_v7, %v10117_v52  ;;  %v5708_v21 = vpop.f32.mrf.mxu1  ;;  %8680 = vmatprep.subr.bf16.mxu0 %v9706_v26 }
 0x3aa   :  { %v5901_v48 = vpop.f32.mrf.mxu0  ;;  %v11896_v41 = vadd.f32 %v5899_v32, %v5707_v58  ;;  %v5709_v45 = vadd.f32 %v5708_v21, %v11845_v9 }
 0x3ab   :  { %13370 = vst [vmem:[#allocation94_spill] sm:$0xff] %v11894_v16  ;;  %v5710_v51 = vpop.f32.mrf.mxu1 }
 0x3ac   :  { %v5903_v63 = vpop.f32.mrf.mxu0  ;;  %v11899_v34 = vadd.f32 %v5901_v48, %v5709_v45  ;;  %v5711_v37 = vadd.f32 %v5710_v51, %v11841_v18 }
 0x3ad   :  { %v5712_v57 = vpop.f32.mrf.mxu1 }
 0x3ae   :  { %v5905_v13 = vpop.f32.mrf.mxu0  ;;  %v11902_v52 = vadd.f32 %v5903_v63, %v5711_v37  ;;  %v5713_v7 = vadd.f32 %v5712_v57, %v11845_v9 }
 0x3af   :  { %v5716_v61 = vpop.f32.mrf.mxu1  ;;  %6181 = vmatmul.mubr.bf16.gmra.mxu1 %v11809_v27  ;;  %6374 = vmatmul.mubr.bf16.gmra.mxu0 %v13298_v30 }
 0x3b0   :  { %v5909_v32 = vpop.f32.mrf.mxu0  ;;  %v11907_v58 = vadd.f32 %v5905_v13, %v5713_v7  ;;  %v5717_v6 = vadd.f32 %v5716_v61, %v11841_v18  ;;  %6190 = vmatprep.mubr.bf16.mxu1 %v11833_v55  ;;  %6383 = vmatprep.mubr.bf16.mxu0 %v13299_v1 }
 0x3b1   :  { %v5718_v21 = vpop.f32.mrf.mxu1 }
 0x3b2   :  { %v5911_v48 = vpop.f32.mrf.mxu0  ;;  %v11912_v45 = vadd.f32 %v5909_v32, %v5717_v6  ;;  %v5719_v26 = vadd.f32 %v5718_v21, %v11845_v9 }
 0x3b3   :  { %v5720_v51 = vpop.f32.mrf.mxu1 }
 0x3b4   :  { %v5913_v63 = vpop.f32.mrf.mxu0  ;;  %v11915_v37 = vadd.f32 %v5911_v48, %v5719_v26  ;;  %v5721_v30 = vadd.f32 %v5720_v51, %v11841_v18 }
 0x3b5   :  { %v5722_v57 = vpop.f32.mrf.mxu1 }
 0x3b6   :  { %v5915_v13 = vpop.f32.mrf.mxu0  ;;  %v11918_v7 = vadd.f32 %v5913_v63, %v5721_v30  ;;  %v5723_v61 = vadd.f32 %v5722_v57, %v11845_v9 }
 0x3b7   :  { %v5726_v54 = vpop.f32.mrf.mxu1  ;;  %6191 = vmatmul.mubr.bf16.gmra.mxu1 %v11825_v28  ;;  %6384 = vmatmul.mubr.bf16.gmra.mxu0 %v13301_v4 }
 0x3b8   :  { %v5919_v1 = vpop.f32.mrf.mxu0  ;;  %v11923_v32 = vadd.f32 %v5915_v13, %v5723_v61  ;;  %v5727_v6 = vadd.f32 %v5726_v54, %v11841_v18  ;;  %6200 = vmatprep.mubr.bf16.mxu1 %v11854_v38  ;;  %6393 = vmatprep.mubr.bf16.mxu0 %v13302_v20 }
 0x3b9   :  { %v5728_v21 = vpop.f32.mrf.mxu1 }
 0x3ba   :  { %v5921_v48 = vpop.f32.mrf.mxu0  ;;  %v11928_v26 = vadd.f32 %v5919_v1, %v5727_v6  ;;  %v5729_v51 = vadd.f32 %v5728_v21, %v11845_v9 }
 0x3bb   :  { %v5730_v63 = vpop.f32.mrf.mxu1 }
 0x3bc   :  { %v5923_v30 = vpop.f32.mrf.mxu0  ;;  %v11931_v57 = vadd.f32 %v5921_v48, %v5729_v51  ;;  %v5731_v4 = vadd.f32 %v5730_v63, %v11841_v18 }
 0x3bd   :  { %v5732_v13 = vpop.f32.mrf.mxu1 }
 0x3be   :  { %v5925_v61 = vpop.f32.mrf.mxu0  ;;  %v11934_v28 = vadd.f32 %v5923_v30, %v5731_v4  ;;  %v5733_v54 = vadd.f32 %v5732_v13, %v11845_v9 }
 0x3bf   :  { %v5736_v38 = vpop.f32.mrf.mxu1  ;;  %6201 = vmatmul.mubr.bf16.gmra.mxu1 %v11847_v2  ;;  %6394 = vmatmul.mubr.bf16.gmra.mxu0 %v13306_v39 }
 0x3c0   :  { %v5929_v20 = vpop.f32.mrf.mxu0  ;;  %v11939_v1 = vadd.f32 %v5925_v61, %v5733_v54  ;;  %v5737_v6 = vadd.f32 %v5736_v38, %v11841_v18  ;;  %6210 = vmatprep.mubr.bf16.mxu1 %v11874_v62  ;;  %6403 = vmatprep.mubr.bf16.mxu0 %v13307_v8 }
 0x3c1   :  { %v5738_v21 = vpop.f32.mrf.mxu1 }
 0x3c2   :  { %v5931_v48 = vpop.f32.mrf.mxu0  ;;  %v11944_v51 = vadd.f32 %v5929_v20, %v5737_v6  ;;  %v5739_v63 = vadd.f32 %v5738_v21, %v11845_v9 }
 0x3c3   :  { %v5740_v30 = vpop.f32.mrf.mxu1 }
 0x3c4   :  { %v5933_v4 = vpop.f32.mrf.mxu0  ;;  %v11947_v13 = vadd.f32 %v5931_v48, %v5739_v63  ;;  %v5741_v39 = vadd.f32 %v5740_v30, %v11841_v18 }
 0x3c5   :  { %v5742_v61 = vpop.f32.mrf.mxu1 }
 0x3c6   :  { %v5935_v54 = vpop.f32.mrf.mxu0  ;;  %v11950_v2 = vadd.f32 %v5933_v4, %v5741_v39  ;;  %v5743_v38 = vadd.f32 %v5742_v61, %v11845_v9 }
 0x3c7   :  { %v5746_v62 = vpop.f32.mrf.mxu1  ;;  %6211 = vmatmul.mubr.bf16.gmra.mxu1 %v11865_v11  ;;  %6404 = vmatmul.mubr.bf16.gmra.mxu0 %v13313_v12 }
 0x3c8   :  { %13371 = vst [vmem:[#allocation95_spill] sm:$0xff] %v11950_v2  ;;  %v5939_v8 = vpop.f32.mrf.mxu0  ;;  %v11955_v20 = vadd.f32 %v5935_v54, %v5743_v38  ;;  %v5747_v6 = vadd.f32 %v5746_v62, %v11841_v18  ;;  %6220 = vmatprep.mubr.bf16.mxu1 %v11894_v16  ;;  %6413 = vmatprep.mubr.bf16.mxu0 %v13314_v60 }
 0x3c9   :  { %v5748_v21 = vpop.f32.mrf.mxu1 }
 0x3ca   :  { %13372 = vst [vmem:[#allocation38_spill] sm:$0xff] %v11955_v20  ;;  %v5941_v48 = vpop.f32.mrf.mxu0  ;;  %v11960_v63 = vadd.f32 %v5939_v8, %v5747_v6  ;;  %v5749_v30 = vadd.f32 %v5748_v21, %v11845_v9  ;;  %v13377_v21 = vld [vmem:[#allocation87_spill] sm:$0xff] }
 0x3cb   :  { %v5750_v4 = vpop.f32.mrf.mxu1 }
 0x3cc   :  { %13373 = vst [vmem:[#allocation32_spill] sm:$0xff] %v11960_v63  ;;  %v5943_v39 = vpop.f32.mrf.mxu0  ;;  %v11963_v61 = vadd.f32 %v5941_v48, %v5749_v30  ;;  %v5751_v12 = vadd.f32 %v5750_v4, %v11841_v18  ;;  %v13378_v48 = vld [vmem:[#allocation27_spill] sm:$0xff]  ;;  %v9710_v63 = vld [vmem:[#allocation11 + $0xf0] sm:$0xff]  }
 0x3cd   :  { %v5752_v54 = vpop.f32.mrf.mxu1 }
 0x3ce   :  { %13374 = vst [vmem:[#allocation35_spill] sm:$0xff] %v11963_v61  ;;  %v5945_v38 = vpop.f32.mrf.mxu0  ;;  %v11966_v11 = vadd.f32 %v5943_v39, %v5751_v12  ;;  %v5753_v62 = vadd.f32 %v5752_v54, %v11845_v9 }
 0x3cf   :  { %v5756_v16 = vpop.f32.mrf.mxu1  ;;  %6221 = vmatmul.mubr.bf16.gmra.mxu1 %v11885_v3  ;;  %6414 = vmatmul.mubr.bf16.gmra.mxu0 %v13319_v22  ;;  %v9705_v3 = vld [vmem:[#allocation11 + $0x38] sm:$0xff]  }
 0x3d0   :  { %13375 = vst [vmem:[#allocation40_spill] sm:$0xff] %v11966_v11  ;;  %v5949_v60 = vpop.f32.mrf.mxu0  ;;  %v11971_v8 = vadd.f32 %v5945_v38, %v5753_v62  ;;  %v5757_v6 = vadd.f32 %v5756_v16, %v11841_v18  ;;  %6456 = vmatprep.mubr.bf16.mxu1 %v13377_v21  ;;  %6649 = vmatprep.mubr.bf16.mxu0 %v13378_v48  ;;  %v9707_v16 = vld [vmem:[#allocation11 + $0xb8] sm:$0xff]   ;;  %v9708_v48 = vld [vmem:[#allocation11 + $0x70] sm:$0xff]  }
 0x3d1   :  { %v5758_v30 = vpop.f32.mrf.mxu1 }
 0x3d2   :  { %13376 = vst [vmem:[#allocation59_spill] sm:$0xff] %v11971_v8  ;;  %v5951_v4 = vpop.f32.mrf.mxu0  ;;  %v11976_v39 = vadd.f32 %v5949_v60, %v5757_v6  ;;  %v5759_v12 = vadd.f32 %v5758_v30, %v11845_v9  ;;  %v13383_v30 = vld [vmem:[#allocation24_spill] sm:$0xff] }
 0x3d3   :  { %v5760_v54 = vpop.f32.mrf.mxu1 }
 0x3d4   :  { %13379 = vst [vmem:[#allocation62_spill] sm:$0xff] %v11976_v39  ;;  %v5953_v11 = vpop.f32.mrf.mxu0  ;;  %v11979_v61 = vadd.f32 %v5951_v4, %v5759_v12  ;;  %v5761_v22 = vadd.f32 %v5760_v54, %v11841_v18  ;;  %v13382_v39 = vld [vmem:[#allocation86_spill] sm:$0xff]  ;;  %v13385_v54 = vld [vmem:[#allocation89_spill] sm:$0xff] }
 0x3d5   :  { %v5762_v38 = vpop.f32.mrf.mxu1 }
 0x3d6   :  { %13380 = vst [vmem:[#allocation61_spill] sm:$0xff] %v11979_v61  ;;  %v5955_v62 = vpop.f32.mrf.mxu0  ;;  %v11982_v8 = vadd.f32 %v5953_v11, %v5761_v22  ;;  %v5763_v21 = vadd.f32 %v5762_v38, %v11845_v9  ;;  %v13386_v61 = vld [vmem:[#allocation26_spill] sm:$0xff] }
 0x3d7   :  { %v5766_v60 = vpop.f32.mrf.mxu1  ;;  %6457 = vmatmul.mubr.bf16.vlgmr.msra.gmra.mxu1 %v13382_v39  ;;  %6650 = vmatmul.mubr.bf16.vlgmr.msra.gmra.mxu0 %v13383_v30  ;;  %v9709_v38 = vld [vmem:[#allocation11 + $0x30] sm:$0xff]  }
 0x3d8   :  { %13381 = vst [vmem:[#allocation34_spill] sm:$0xff] %v11982_v8  ;;  %v5959_v6 = vpop.f32.mrf.mxu0  ;;  %v11987_v4 = vadd.f32 %v5955_v62, %v5763_v21  ;;  %v5767_v12 = vadd.f32 %v5766_v60, %v11841_v18  ;;  %6466 = vmatprep.mubr.bf16.mxu1 %v13385_v54  ;;  %6659 = vmatprep.mubr.bf16.mxu0 %v13386_v61  ;;  %v9711_v8 = vld [vmem:[#allocation11 + $0xb0] sm:$0xff]   ;;  %v9712_v62 = vld [vmem:[#allocation11 + $0x68] sm:$0xff]  }
 0x3d9   :  { %v5768_v11 = vpop.f32.mrf.mxu1  ;;  %8569 = vmatpush3.bf16.msra.mxu1 %v9705_v3  ;;  %8681 = vmatpush3.bf16.msra.mxu0 %v9707_v16  ;;  %v9717_v21 = vld [vmem:[#allocation11 + $0xe8] sm:$0xff]  }
 0x3da   :  { %13384 = vst [vmem:[#allocation42_spill] sm:$0xff] %v11987_v4  ;;  %v5961_v22 = vpop.f32.mrf.mxu0  ;;  %v11992_v20 = vadd.f32 %v5959_v6, %v5767_v12  ;;  %v5769_v39 = vadd.f32 %v5768_v11, %v11845_v9  ;;  %8570 = vmatprep.subr.bf16.mxu1 %v9708_v48  ;;  %8682 = vmatprep.subr.bf16.mxu0 %v9710_v63  ;;  %v9713_v3 = vld [vmem:[#allocation11 + $0x28] sm:$0xff]   ;;  %v9714_v63 = vld [vmem:[#allocation11 + $0x60] sm:$0xff]  }
 0x3db   :  { %v5770_v30 = vpop.f32.mrf.mxu1  ;;  %v9719_v16 = vld [vmem:[#allocation11 + $0xa8] sm:$0xff]   ;;  %v9726_v48 = vld [vmem:[#allocation11 + $0xe0] sm:$0xff]  }
 0x3dc   :  { %13387 = vst [vmem:[#allocation63_spill] sm:$0xff] %v11992_v20  ;;  %v5963_v60 = vpop.f32.mrf.mxu0  ;;  %v11995_v4 = vadd.f32 %v5961_v22, %v5769_v39  ;;  %v5771_v61 = vadd.f32 %v5770_v30, %v11841_v18  ;;  %v13388_v22 = vld [vmem:[#allocation88_spill] sm:$0xff]  ;;  %v13391_v30 = vld [vmem:[#allocation29_spill] sm:$0xff] }
 0x3dd   :  { %v5772_v54 = vpop.f32.mrf.mxu1  ;;  %8571 = vmatpush3.bf16.msra.mxu1 %v9709_v38  ;;  %8683 = vmatpush3.bf16.msra.mxu0 %v9711_v8  ;;  %v13390_v38 = vld [vmem:[#allocation91_spill] sm:$0xff] }
 0x3de   :  { %v5965_v2 = vpop.f32.mrf.mxu0  ;;  %v11998_v6 = vadd.f32 %v5963_v60, %v5771_v61  ;;  %v5773_v12 = vadd.f32 %v5772_v54, %v11845_v9  ;;  %8572 = vmatprep.subr.bf16.mxu1 %v9712_v62  ;;  %8684 = vmatprep.subr.bf16.mxu0 %v9717_v21  ;;  %v9715_v62 = vld [vmem:[#allocation11 + $0x20] sm:$0xff]  }
 0x3df   :  { %v5776_v11 = vpop.f32.mrf.mxu1  ;;  %6467 = vmatmul.mubr.bf16.gmra.mxu1 %v13388_v22  ;;  %6660 = vmatmul.mubr.bf16.gmra.mxu0 %v11649_v25  ;;  %v9727_v21 = vld [vmem:[#allocation11 + $0xa0] sm:$0xff]   ;;  %v9716_v25 = vld [vmem:[#allocation11 + $0x58] sm:$0xff]  }
 0x3e0   :  { %v5969_v20 = vpop.f32.mrf.mxu0  ;;  %v12003_v39 = vadd.f32 %v5965_v2, %v5773_v12  ;;  %v5777_v8 = vadd.f32 %v5776_v11, %v11841_v18  ;;  %6476 = vmatprep.mubr.bf16.mxu1 %v13390_v38  ;;  %6669 = vmatprep.mubr.bf16.mxu0 %v13391_v30 }
 0x3e1   :  { %v5778_v60 = vpop.f32.mrf.mxu1  ;;  %8573 = vmatpush3.bf16.msra.mxu1 %v9713_v3  ;;  %8685 = vmatpush3.bf16.msra.mxu0 %v9719_v16  ;;  %v9718_v3 = vld [vmem:[#allocation11 + $0x18] sm:$0xff]  }
 0x3e2   :  { %13389 = vst [vmem:[#allocation65_spill] sm:$0xff] %v12003_v39  ;;  %v5971_v61 = vpop.f32.mrf.mxu0  ;;  %v12008_v54 = vadd.f32 %v5969_v20, %v5777_v8  ;;  %v5779_v22 = vadd.f32 %v5778_v60, %v11845_v9  ;;  %8574 = vmatprep.subr.bf16.mxu1 %v9714_v63  ;;  %8686 = vmatprep.subr.bf16.mxu0 %v9726_v48  ;;  %v9720_v8 = vld [vmem:[#allocation11 + $0x50] sm:$0xff]  }
 0x3e3   :  { %v5780_v2 = vpop.f32.mrf.mxu1  ;;  %v13393_v48 = vld [vmem:[#allocation90_spill] sm:$0xff] }
 0x3e4   :  { %v5973_v12 = vpop.f32.mrf.mxu0  ;;  %v12011_v11 = vadd.f32 %v5971_v61, %v5779_v22  ;;  %v5781_v38 = vadd.f32 %v5780_v2, %v11841_v18  ;;  %v13395_v2 = vld [vmem:[#allocation39_spill] sm:$0xff] }
 0x3e5   :  { %v5782_v30 = vpop.f32.mrf.mxu1  ;;  %8575 = vmatpush3.bf16.msra.mxu1 %v9715_v62  ;;  %8687 = vmatpush3.bf16.msra.mxu0 %v9727_v21 }
 0x3e6   :  { %v5975_v39 = vpop.f32.mrf.mxu0  ;;  %v12014_v16 = vadd.f32 %v5973_v12, %v5781_v38  ;;  %v5783_v20 = vadd.f32 %v5782_v30, %v11845_v9  ;;  %8576 = vmatprep.subr.bf16.mxu1 %v9716_v25  ;;  %v9721_v12 = vld [vmem:[#allocation11 + $0x10] sm:$0xff]   ;;  %v9722_v30 = vld [vmem:[#allocation11 + $0x48] sm:$0xff]  }
 0x3e7   :  { %v5786_v63 = vpop.f32.mrf.mxu1  ;;  %6477 = vmatmul.mubr.bf16.gmra.mxu1 %v13393_v48  ;;  %6670 = vmatmul.mubr.bf16.gmra.mxu0 %v11665_v53  ;;  %v9728_v48 = vld [vmem:[#allocation11 + $0xd8] sm:$0xff]  }
 0x3e8   :  { %13392 = vst [vmem:[#allocation97_spill] sm:$0xff] %v12014_v16  ;;  %v5979_v60 = vpop.f32.mrf.mxu0  ;;  %v12019_v61 = vadd.f32 %v5975_v39, %v5783_v20  ;;  %v5787_v22 = vadd.f32 %v5786_v63, %v11841_v18  ;;  %6486 = vmatprep.mubr.bf16.mxu1 %v13395_v2  ;;  %6679 = vmatprep.mubr.bf16.mxu0 %v11689_v19  ;;  %v9729_v53 = vld [vmem:[#allocation11 + $0x98] sm:$0xff]   ;;  %v13397_v16 = vld [vmem:[#allocation37_spill] sm:$0xff] }
 0x3e9   :  { %v5788_v62 = vpop.f32.mrf.mxu1  ;;  %8577 = vmatpush3.bf16.msra.mxu1 %v9718_v3  ;;  %8688 = vmatprep.subr.bf16.mxu0 %v9728_v48  ;;  %v9723_v3 = vld [vmem:[#allocation11 + $0x8] sm:$0xff]  }
 0x3ea   :  { %13394 = vst [vmem:[#allocation66_spill] sm:$0xff] %v12019_v61  ;;  %v5981_v21 = vpop.f32.mrf.mxu0  ;;  %v12024_v25 = vadd.f32 %v5979_v60, %v5787_v22  ;;  %v5789_v38 = vadd.f32 %v5788_v62, %v11845_v9  ;;  %8578 = vmatprep.subr.bf16.mxu1 %v9720_v8  ;;  %8689 = vmatpush3.bf16.msra.mxu0 %v9729_v53  ;;  %v9724_v8 = vld [vmem:[#allocation11 + $0x40] sm:$0xff]  }
 0x3eb   :  { %v5790_v39 = vpop.f32.mrf.mxu1  ;;  %v13398_v48 = vld [vmem:[#allocation60_spill] sm:$0xff] }
 0x3ec   :  { %13396 = vst [vmem:[#allocation41_spill] sm:$0xff] %v12024_v25  ;;  %v5983_v20 = vpop.f32.mrf.mxu0  ;;  %v12027_v61 = vadd.f32 %v5981_v21, %v5789_v38  ;;  %v5791_v63 = vadd.f32 %v5790_v39, %v11841_v18  ;;  %v9725_v39 = vld [vmem:[#allocation11] sm:$0xff]  }
 0x3ed   :  { %v5792_v19 = vpop.f32.mrf.mxu1  ;;  %8579 = vmatpush3.bf16.msra.mxu1 %v9721_v12 }
 0x3ee   :  { %v5985_v2 = vpop.f32.mrf.mxu0  ;;  %v12030_v60 = vadd.f32 %v5983_v20, %v5791_v63  ;;  %v5793_v22 = vadd.f32 %v5792_v19, %v11845_v9  ;;  %8580 = vmatprep.subr.bf16.mxu1 %v9722_v30 }
 0x3ef   :  { %v5796_v62 = vpop.f32.mrf.mxu1  ;;  %6487 = vmatmul.mubr.bf16.gmra.mxu1 %v13397_v16  ;;  %6680 = vmatmul.mubr.bf16.gmra.mxu0 %v11681_v33 }
 0x3f0   :  { %v5989_v25 = vpop.f32.mrf.mxu0  ;;  %v12035_v21 = vadd.f32 %v5985_v2, %v5793_v22  ;;  %v5797_v38 = vadd.f32 %v5796_v62, %v11841_v18  ;;  %6496 = vmatprep.mubr.bf16.mxu1 %v13398_v48  ;;  %6689 = vmatprep.mubr.bf16.mxu0 %v11705_v14 }
 0x3f1   :  { %v5798_v12 = vpop.f32.mrf.mxu1  ;;  %8581 = vmatpush3.bf16.msra.mxu1 %v9723_v3 }
 0x3f2   :  { %v5991_v53 = vpop.f32.mrf.mxu0  ;;  %v12040_v30 = vadd.f32 %v5989_v25, %v5797_v38  ;;  %v5799_v20 = vadd.f32 %v5798_v12, %v11845_v9  ;;  %8582 = vmatprep.subr.bf16.mxu1 %v9724_v8  ;;  %v13400_v25 = vld [vmem:[#allocation58_spill] sm:$0xff]  ;;  %v13401_v12 = vld [vmem:[#allocation96_spill] sm:$0xff] }
 0x3f3   :  { %v5800_v16 = vpop.f32.mrf.mxu1 }
 0x3f4   :  { %v5993_v63 = vpop.f32.mrf.mxu0  ;;  %v12043_v33 = vadd.f32 %v5991_v53, %v5799_v20  ;;  %v5801_v19 = vadd.f32 %v5800_v16, %v11841_v18 }
 0x3f5   :  { %v5802_v2 = vpop.f32.mrf.mxu1  ;;  %8583 = vmatpush3.bf16.msra.mxu1 %v9725_v39 }
 0x3f6   :  { %v5995_v22 = vpop.f32.mrf.mxu0  ;;  %v12046_v62 = vadd.f32 %v5993_v63, %v5801_v19  ;;  %v5803_v14 = vadd.f32 %v5802_v2, %v11845_v9  ;;  %v9730_v63 = vld [vmem:[#allocation11 + $0xd0] sm:$0xff]  }
 0x3f7   :  { %v5806_v3 = vpop.f32.mrf.mxu1  ;;  %6497 = vmatmul.mubr.bf16.gmra.mxu1 %v13400_v25  ;;  %6690 = vmatmul.mubr.bf16.gmra.mxu0 %v11697_v29  ;;  %v9731_v19 = vld [vmem:[#allocation11 + $0x90] sm:$0xff]  }
 0x3f8   :  { %13399 = vst [vmem:[#allocation44_spill] sm:$0xff] %v12046_v62  ;;  %v5999_v48 = vpop.f32.mrf.mxu0  ;;  %v12051_v8 = vadd.f32 %v5995_v22, %v5803_v14  ;;  %v5807_v38 = vadd.f32 %v5806_v3, %v11841_v18  ;;  %6506 = vmatprep.mubr.bf16.mxu1 %v13401_v12  ;;  %6699 = vmatprep.mubr.bf16.mxu0 %v11721_v49  ;;  %v13404_v12 = vld [vmem:[#allocation64_spill] sm:$0xff] }
 0x3f9   :  { %v5808_v53 = vpop.f32.mrf.mxu1  ;;  %8690 = vmatprep.subr.bf16.mxu0 %v9730_v63  ;;  %v13407_v63 = vld [vmem:[#allocation28_spill] sm:$0xff] }
 0x3fa   :  { %v6001_v39 = vpop.f32.mrf.mxu0  ;;  %v12056_v20 = vadd.f32 %v5999_v48, %v5807_v38  ;;  %v5809_v16 = vadd.f32 %v5808_v53, %v11845_v9  ;;  %8691 = vmatpush3.bf16.msra.mxu0 %v9731_v19 }
 0x3fb   :  { %v5810_v2 = vpop.f32.mrf.mxu1 }
 0x3fc   :  { %v6003_v25 = vpop.f32.mrf.mxu0  ;;  %v12059_v62 = vadd.f32 %v6001_v39, %v5809_v16  ;;  %v5811_v29 = vadd.f32 %v5810_v2, %v11841_v18  ;;  %v13406_v16 = vld [vmem:[#allocation69_spill] sm:$0xff] }
 0x3fd   :  { %v5812_v22 = vpop.f32.mrf.mxu1 }
 0x3fe   :  { %13402 = vst [vmem:[#allocation67_spill] sm:$0xff] %v12059_v62  ;;  %v6005_v14 = vpop.f32.mrf.mxu0  ;;  %v12062_v3 = vadd.f32 %v6003_v25, %v5811_v29  ;;  %v5813_v49 = vadd.f32 %v5812_v22, %v11845_v9 }
 0x3ff   :  { %v5816_v48 = vpop.f32.mrf.mxu1  ;;  %6507 = vmatmul.mubr.bf16.gmra.mxu1 %v13404_v12  ;;  %6700 = vmatmul.mubr.bf16.gmra.mxu0 %v11713_v36 }
 0x400   :  { %13403 = vst [vmem:[#allocation98_spill] sm:$0xff] %v12062_v3  ;;  %v6009_v38 = vpop.f32.mrf.mxu0  ;;  %v12067_v53 = vadd.f32 %v6005_v14, %v5813_v49  ;;  %v5817_v39 = vadd.f32 %v5816_v48, %v11841_v18  ;;  %6516 = vmatprep.mubr.bf16.mxu1 %v13406_v16  ;;  %6709 = vmatprep.mubr.bf16.mxu0 %v13407_v63 }
 0x401   :  { %v5818_v2 = vpop.f32.mrf.mxu1 }
 0x402   :  { %13405 = vst [vmem:[#allocation99_spill] sm:$0xff] %v12067_v53  ;;  %v6011_v19 = vpop.f32.mrf.mxu0  ;;  %v12072_v25 = vadd.f32 %v6009_v38, %v5817_v39  ;;  %v5819_v29 = vadd.f32 %v5818_v2, %v11845_v9  ;;  %v13410_v53 = vld [vmem:[#allocation68_spill] sm:$0xff]  ;;  %v13411_v2 = vld [vmem:[#allocation73_spill] sm:$0xff] }
 0x403   :  { %v5820_v22 = vpop.f32.mrf.mxu1 }
 0x404   :  { %v6013_v3 = vpop.f32.mrf.mxu0  ;;  %v12075_v62 = vadd.f32 %v6011_v19, %v5819_v29  ;;  %v5821_v36 = vadd.f32 %v5820_v22, %v11841_v18 }
 0x405   :  { %v5822_v14 = vpop.f32.mrf.mxu1 }
 0x406   :  { %13408 = vst [vmem:[#allocation70_spill] sm:$0xff] %v12075_v62  ;;  %v6015_v49 = vpop.f32.mrf.mxu0  ;;  %v12078_v12 = vadd.f32 %v6013_v3, %v5821_v36  ;;  %v5823_v48 = vadd.f32 %v5822_v14, %v11845_v9  ;;  %v9732_v36 = vld [vmem:[#allocation11 + $0xc8] sm:$0xff]  }
 0x407   :  { %v5826_v16 = vpop.f32.mrf.mxu1  ;;  %6517 = vmatmul.mubr.bf16.gmra.mxu1 %v13410_v53  ;;  %6710 = vmatmul.mubr.bf16.gmra.mxu0 %v11729_v15  ;;  %v9733_v14 = vld [vmem:[#allocation11 + $0x88] sm:$0xff]  }
 0x408   :  { %13409 = vst [vmem:[#allocation43_spill] sm:$0xff] %v12078_v12  ;;  %v6019_v63 = vpop.f32.mrf.mxu0  ;;  %v12083_v38 = vadd.f32 %v6015_v49, %v5823_v48  ;;  %v5827_v39 = vadd.f32 %v5826_v16, %v11841_v18  ;;  %6526 = vmatprep.mubr.bf16.mxu1 %v13411_v2  ;;  %6719 = vmatprep.mubr.bf16.mxu0 %v11753_v46  ;;  %v13413_v2 = vld [vmem:[#allocation72_spill] sm:$0xff] }
 0x409   :  { %v5828_v19 = vpop.f32.mrf.mxu1  ;;  %8692 = vmatprep.subr.bf16.mxu0 %v9732_v36 }
 0x40a   :  { %v6021_v29 = vpop.f32.mrf.mxu0  ;;  %v12088_v3 = vadd.f32 %v6019_v63, %v5827_v39  ;;  %v5829_v22 = vadd.f32 %v5828_v19, %v11845_v9  ;;  %8693 = vmatpush3.bf16.msra.mxu0 %v9733_v14 }
 0x40b   :  { %v5830_v12 = vpop.f32.mrf.mxu1 }
 0x40c   :  { %v6023_v53 = vpop.f32.mrf.mxu0  ;;  %v12091_v62 = vadd.f32 %v6021_v29, %v5829_v22  ;;  %v5831_v15 = vadd.f32 %v5830_v12, %v11841_v18  ;;  %v13415_v22 = vld [vmem:[#allocation77_spill] sm:$0xff] }
 0x40d   :  { %v5832_v49 = vpop.f32.mrf.mxu1 }
 0x40e   :  { %v6025_v48 = vpop.f32.mrf.mxu0  ;;  %v12094_v16 = vadd.f32 %v6023_v53, %v5831_v15  ;;  %v5833_v46 = vadd.f32 %v5832_v49, %v11845_v9 }
 0x40f   :  { %v5836_v63 = vpop.f32.mrf.mxu1  ;;  %6527 = vmatmul.mubr.bf16.gmra.mxu1 %v13413_v2  ;;  %6720 = vmatmul.mubr.bf16.gmra.mxu0 %v11745_v43 }
 0x410   :  { %13412 = vst [vmem:[#allocation46_spill] sm:$0xff] %v12094_v16  ;;  %v6029_v39 = vpop.f32.mrf.mxu0  ;;  %v12099_v19 = vadd.f32 %v6025_v48, %v5833_v46  ;;  %v5837_v29 = vadd.f32 %v5836_v63, %v11841_v18  ;;  %6536 = vmatprep.mubr.bf16.mxu1 %v13415_v22  ;;  %6729 = vmatprep.mubr.bf16.mxu0 %v11769_v42 }
 0x411   :  { %v5838_v12 = vpop.f32.mrf.mxu1 }
 0x412   :  { %13414 = vst [vmem:[#allocation71_spill] sm:$0xff] %v12099_v19  ;;  %v6031_v36 = vpop.f32.mrf.mxu0  ;;  %v12104_v14 = vadd.f32 %v6029_v39, %v5837_v29  ;;  %v5839_v53 = vadd.f32 %v5838_v12, %v11845_v9  ;;  %v13416_v19 = vld [vmem:[#allocation76_spill] sm:$0xff]  ;;  %v13417_v29 = vld [vmem:[#allocation79_spill] sm:$0xff] }
 0x413   :  { %v5840_v15 = vpop.f32.mrf.mxu1 }
 0x414   :  { %v6033_v49 = vpop.f32.mrf.mxu0  ;;  %v12107_v16 = vadd.f32 %v6031_v36, %v5839_v53  ;;  %v5841_v43 = vadd.f32 %v5840_v15, %v11841_v18 }
 0x415   :  { %v5842_v48 = vpop.f32.mrf.mxu1 }
 0x416   :  { %v6035_v46 = vpop.f32.mrf.mxu0  ;;  %v12110_v2 = vadd.f32 %v6033_v49, %v5841_v43  ;;  %v5843_v63 = vadd.f32 %v5842_v48, %v11845_v9  ;;  %v9734_v49 = vld [vmem:[#allocation11 + $0xc0] sm:$0xff]  }
 0x417   :  { %v6072_v22 = vpop.f32.mrf.mxu1  ;;  %6537 = vmatmul.mubr.bf16.gmra.mxu1 %v13416_v19  ;;  %6730 = vmatmul.mubr.bf16.gmra.mxu0 %v11761_v10  ;;  %v9735_v48 = vld [vmem:[#allocation11 + $0x80] sm:$0xff]  }
 0x418   :  { %v12113_v42 = vpop.f32.mrf.mxu0  ;;  %v12117_v39 = vadd.f32 %v6035_v46, %v5843_v63  ;;  %6546 = vmatprep.mubr.bf16.mxu1 %v13417_v29  ;;  %6739 = vmatprep.mubr.bf16.mxu0 %v11785_v47  ;;  %v6073_v36 = vadd.f32 %v6072_v22, %v11856_v31  ;;  %v13419_v31 = vld [vmem:[#allocation102_spill] sm:$0xff] }
 0x419   :  { %v6074_v18 = vpop.f32.mrf.mxu1  ;;  %8694 = vmatprep.subr.bf16.mxu0 %v9734_v49 }
 0x41a   :  { %v12121_v12 = vpop.f32.mrf.mxu0  ;;  %v6075_v15 = vadd.f32 %v6074_v18, %v11859_v56  ;;  %v6810_v46 = vmax.f32 %v6073_v36, 0.0  ;;  %v13420_v18 = vld [vmem:[#allocation81_spill] sm:$0xff]  ;;  %8695 = vmatpush3.bf16.msra.mxu0 %v9735_v48 }
 0x41b   :  { %13418 = vst [vmem:[#allocation100_spill] sm:$0xff] %v12121_v12  ;;  %v6076_v53 = vpop.f32.mrf.mxu1 }
 0x41c   :  { %v12124_v9 = vpop.f32.mrf.mxu0  ;;  %v6077_v19 = vadd.f32 %v6076_v53, %v11862_v35  ;;  %v6811_v56 = vmax.f32 %v6075_v15, 0.0 }
 0x41d   :  { %v6078_v10 = vpop.f32.mrf.mxu1 }
 0x41e   :  { %v12128_v43 = vpop.f32.mrf.mxu0  ;;  %v6814_v63 = vmax.f32 %v6077_v19, 0.0  ;;  %v6079_v47 = vadd.f32 %v6078_v10, %v11869_v17 }
 0x41f   :  { %v6082_v29 = vpop.f32.mrf.mxu1  ;;  %6547 = vmatmul.mubr.bf16.gmra.mxu1 %v13419_v31  ;;  %6740 = vmatmul.mubr.bf16.gmra.mxu0 %v11777_v0 }
 0x420   :  { %v12131_v12 = vpop.f32.mrf.mxu0  ;;  %v12135_v22 = vpack.c.bf16 %v6814_v63, %v6810_v46  ;;  %v6815_v35 = vmax.f32 %v6079_v47, 0.0  ;;  %6556 = vmatprep.mubr.bf16.mxu1 %v13420_v18  ;;  %6749 = vmatprep.mubr.bf16.mxu0 %v11801_v59  ;;  %v6083_v17 = vadd.f32 %v6082_v29, %v11876_v23  ;;  %v13421_v23 = vld [vmem:[#allocation104_spill] sm:$0xff] }
 0x421   :  { %v6084_v36 = vpop.f32.mrf.mxu1 }
 0x422   :  { %v12139_v53 = vpop.f32.mrf.mxu0  ;;  %v12142_v19 = vpack.c.bf16 %v6815_v35, %v6811_v56  ;;  %v6085_v0 = vadd.f32 %v6084_v36, %v11879_v44  ;;  %v6818_v47 = vmax.f32 %v6083_v17, 0.0  ;;  %v13422_v35 = vld [vmem:[#allocation83_spill] sm:$0xff] }
 0x423   :  { %v6086_v49 = vpop.f32.mrf.mxu1 }
 0x424   :  { %v12144_v10 = vpop.f32.mrf.mxu0  ;;  %v6087_v15 = vadd.f32 %v6086_v49, %v11882_v24  ;;  %v6819_v29 = vmax.f32 %v6085_v0, 0.0 }
 0x425   :  { %v6088_v46 = vpop.f32.mrf.mxu1 }
 0x426   :  { %v12148_v63 = vpop.f32.mrf.mxu0  ;;  %v6822_v59 = vmax.f32 %v6087_v15, 0.0  ;;  %v6089_v31 = vadd.f32 %v6088_v46, %v11889_v40 }
 0x427   :  { %v6092_v18 = vpop.f32.mrf.mxu1  ;;  %6557 = vmatmul.mubr.bf16.gmra.mxu1 %v13421_v23  ;;  %6750 = vmatmul.mubr.bf16.gmra.mxu0 %v11793_v50 }
 0x428   :  { %v12151_v48 = vpop.f32.mrf.mxu0  ;;  %v12155_v56 = vpack.c.bf16 %v6822_v59, %v6818_v47  ;;  %v6823_v44 = vmax.f32 %v6089_v31, 0.0  ;;  %6566 = vmatprep.mubr.bf16.mxu1 %v13422_v35  ;;  %6759 = vmatprep.mubr.bf16.mxu0 %v11817_v5  ;;  %v6093_v40 = vadd.f32 %v6092_v18, %v11896_v41  ;;  %v13423_v41 = vld [vmem:[#allocation106_spill] sm:$0xff] }
 0x429   :  { %v6094_v24 = vpop.f32.mrf.mxu1 }
 0x42a   :  { %v12159_v36 = vpop.f32.mrf.mxu0  ;;  %v12162_v17 = vpack.c.bf16 %v6823_v44, %v6819_v29  ;;  %v6095_v50 = vadd.f32 %v6094_v24, %v11899_v34  ;;  %v6826_v59 = vmax.f32 %v6093_v40, 0.0  ;;  %v13424_v44 = vld [vmem:[#allocation85_spill] sm:$0xff] }
 0x42b   :  { %v6096_v49 = vpop.f32.mrf.mxu1 }
 0x42c   :  { %v12164_v15 = vpop.f32.mrf.mxu0  ;;  %v6097_v0 = vadd.f32 %v6096_v49, %v11902_v52  ;;  %v6827_v18 = vmax.f32 %v6095_v50, 0.0 }
 0x42d   :  { %v6098_v46 = vpop.f32.mrf.mxu1 }
 0x42e   :  { %v12168_v47 = vpop.f32.mrf.mxu0  ;;  %v6830_v31 = vmax.f32 %v6097_v0, 0.0  ;;  %v6099_v5 = vadd.f32 %v6098_v46, %v11907_v58 }
 0x42f   :  { %v6102_v23 = vpop.f32.mrf.mxu1  ;;  %6567 = vmatmul.mubr.bf16.gmra.mxu1 %v13423_v41  ;;  %6760 = vmatmul.mubr.bf16.gmra.mxu0 %v11809_v27 }
 0x430   :  { %v12171_v35 = vpop.f32.mrf.mxu0  ;;  %v12175_v29 = vpack.c.bf16 %v6830_v31, %v6826_v59  ;;  %v6831_v34 = vmax.f32 %v6099_v5, 0.0  ;;  %6576 = vmatprep.mubr.bf16.mxu1 %v13424_v44  ;;  %6769 = vmatprep.mubr.bf16.mxu0 %v11833_v55  ;;  %v6103_v58 = vadd.f32 %v6102_v23, %v11912_v45  ;;  %v13429_v45 = vld [vmem:[#allocation109_spill] sm:$0xff]  ;;  %v13430_v23 = vld [vmem:[#allocation31_spill] sm:$0xff] }
 0x431   :  { %v6104_v52 = vpop.f32.mrf.mxu1 }
 0x432   :  { %v12179_v24 = vpop.f32.mrf.mxu0  ;;  %v12182_v40 = vpack.c.bf16 %v6831_v34, %v6827_v18  ;;  %v6105_v27 = vadd.f32 %v6104_v52, %v11915_v37  ;;  %v6834_v31 = vmax.f32 %v6103_v58, 0.0  ;;  %v13431_v52 = vld [vmem:[#allocation112_spill] sm:$0xff] }
 0x433   :  { %13425 = vst [vmem:[#allocation74_spill] sm:$0xff] %v12179_v24  ;;  %v6106_v49 = vpop.f32.mrf.mxu1 }
 0x434   :  { %v12184_v0 = vpop.f32.mrf.mxu0  ;;  %v6107_v50 = vadd.f32 %v6106_v49, %v11918_v7  ;;  %v6835_v18 = vmax.f32 %v6105_v27, 0.0  ;;  %v13432_v7 = vld [vmem:[#allocation93_spill] sm:$0xff] }
 0x435   :  { %13426 = vst [vmem:[#allocation45_spill] sm:$0xff] %v12184_v0  ;;  %v6108_v46 = vpop.f32.mrf.mxu1 }
 0x436   :  { %v12188_v59 = vpop.f32.mrf.mxu0  ;;  %v6838_v5 = vmax.f32 %v6107_v50, 0.0  ;;  %v6109_v55 = vadd.f32 %v6108_v46, %v11923_v32 }
 0x437   :  { %13427 = vst [vmem:[#allocation48_spill] sm:$0xff] %v12188_v59  ;;  %v6112_v41 = vpop.f32.mrf.mxu1  ;;  %6577 = vmatmul.mubr.bf16.gmra.mxu1 %v13429_v45  ;;  %6770 = vmatmul.mubr.bf16.gmra.mxu0 %v13430_v23 }
 0x438   :  { %v12191_v44 = vpop.f32.mrf.mxu0  ;;  %v12195_v34 = vpack.c.bf16 %v6838_v5, %v6834_v31  ;;  %v6839_v37 = vmax.f32 %v6109_v55, 0.0  ;;  %6586 = vmatprep.mubr.bf16.mxu1 %v13431_v52  ;;  %6779 = vmatprep.mubr.bf16.mxu0 %v13432_v7  ;;  %v6113_v32 = vadd.f32 %v6112_v41, %v11928_v26  ;;  %v13437_v26 = vld [vmem:[#allocation111_spill] sm:$0xff]  ;;  %v13438_v41 = vld [vmem:[#allocation92_spill] sm:$0xff] }
 0x439   :  { %13428 = vst [vmem:[#allocation75_spill] sm:$0xff] %v12191_v44  ;;  %v6114_v49 = vpop.f32.mrf.mxu1 }
 0x43a   :  { %v12199_v58 = vpop.f32.mrf.mxu0  ;;  %v12202_v50 = vpack.c.bf16 %v6839_v37, %v6835_v18  ;;  %v6115_v45 = vadd.f32 %v6114_v49, %v11931_v57  ;;  %v6842_v55 = vmax.f32 %v6113_v32, 0.0  ;;  %v13439_v49 = vld [vmem:[#allocation113_spill] sm:$0xff] }
 0x43b   :  { %13433 = vst [vmem:[#allocation78_spill] sm:$0xff] %v12199_v58  ;;  %v6116_v46 = vpop.f32.mrf.mxu1 }
 0x43c   :  { %v12204_v44 = vpop.f32.mrf.mxu0  ;;  %v6117_v27 = vadd.f32 %v6116_v46, %v11934_v28  ;;  %v6843_v18 = vmax.f32 %v6115_v45, 0.0  ;;  %v13440_v28 = vld [vmem:[#allocation33_spill] sm:$0xff]  ;;  %v13443_v45 = vld [vmem:[#allocation95_spill] sm:$0xff] }
 0x43d   :  { %13434 = vst [vmem:[#allocation47_spill] sm:$0xff] %v12204_v44  ;;  %v6118_v31 = vpop.f32.mrf.mxu1 }
 0x43e   :  { %v12208_v5 = vpop.f32.mrf.mxu0  ;;  %v6846_v23 = vmax.f32 %v6117_v27, 0.0  ;;  %v6119_v52 = vadd.f32 %v6118_v31, %v11939_v1 }
 0x43f   :  { %13435 = vst [vmem:[#allocation50_spill] sm:$0xff] %v12208_v5  ;;  %v6122_v7 = vpop.f32.mrf.mxu1  ;;  %6587 = vmatmul.mubr.bf16.gmra.mxu1 %v13437_v26  ;;  %6780 = vmatmul.mubr.bf16.gmra.mxu0 %v13438_v41 }
 0x440   :  { %v12211_v58 = vpop.f32.mrf.mxu0  ;;  %v12215_v37 = vpack.c.bf16 %v6846_v23, %v6842_v55  ;;  %v6847_v57 = vmax.f32 %v6119_v52, 0.0  ;;  %6596 = vmatprep.mubr.bf16.mxu1 %v13439_v49  ;;  %6789 = vmatprep.mubr.bf16.mxu0 %v13440_v28  ;;  %v6123_v1 = vadd.f32 %v6122_v7, %v11944_v51  ;;  %v13445_v28 = vld [vmem:[#allocation38_spill] sm:$0xff]  ;;  %v13447_v51 = vld [vmem:[#allocation57_spill] sm:$0xff] }
 0x441   :  { %13436 = vst [vmem:[#allocation101_spill] sm:$0xff] %v12211_v58  ;;  %v6124_v46 = vpop.f32.mrf.mxu1  ;;  %v13448_v7 = vld [vmem:[#allocation30_spill] sm:$0xff] }
 0x442   :  { %v12219_v32 = vpop.f32.mrf.mxu0  ;;  %v12222_v27 = vpack.c.bf16 %v6847_v57, %v6843_v18  ;;  %v6125_v26 = vadd.f32 %v6124_v46, %v11947_v13  ;;  %v6850_v41 = vmax.f32 %v6123_v1, 0.0  ;;  %v13449_v46 = vld [vmem:[#allocation25_spill] sm:$0xff] }
 0x443   :  { %13441 = vst [vmem:[#allocation80_spill] sm:$0xff] %v12219_v32  ;;  %v6126_v31 = vpop.f32.mrf.mxu1 }
 0x444   :  { %v12224_v58 = vpop.f32.mrf.mxu0  ;;  %v6127_v55 = vadd.f32 %v6126_v31, %v13443_v45  ;;  %v6851_v18 = vmax.f32 %v6125_v26, 0.0  ;;  %v13450_v31 = vld [vmem:[#allocation94_spill] sm:$0xff]  ;;  %v13455_v26 = vld [vmem:[#allocation40_spill] sm:$0xff] }
 0x445   :  { %13442 = vst [vmem:[#allocation49_spill] sm:$0xff] %v12224_v58  ;;  %v6128_v23 = vpop.f32.mrf.mxu1 }
 0x446   :  { %v12228_v52 = vpop.f32.mrf.mxu0  ;;  %v6854_v49 = vmax.f32 %v6127_v55, 0.0  ;;  %v6129_v5 = vadd.f32 %v6128_v23, %v13445_v28  ;;  %v13452_v55 = vld [vmem:[#allocation32_spill] sm:$0xff] }
 0x447   :  { %13444 = vst [vmem:[#allocation52_spill] sm:$0xff] %v12228_v52  ;;  %v6132_v44 = vpop.f32.mrf.mxu1  ;;  %6597 = vmatmul.mubr.bf16.gmra.mxu1 %v13447_v51  ;;  %6790 = vmatmul.mubr.bf16.gmra.mxu0 %v13448_v7  ;;  %v13454_v51 = vld [vmem:[#allocation35_spill] sm:$0xff] }
 0x448   :  { %v12231_v32 = vpop.f32.mrf.mxu0  ;;  %v12235_v57 = vpack.c.bf16 %v6854_v49, %v6850_v41  ;;  %v6855_v13 = vmax.f32 %v6129_v5, 0.0  ;;  %6606 = vmatprep.mubr.bf16.mxu1 %v13449_v46  ;;  %6799 = vmatprep.mubr.bf16.mxu0 %v13450_v31  ;;  %v6133_v23 = vadd.f32 %v6132_v44, %v13452_v55  ;;  %v13457_v31 = vld [vmem:[#allocation59_spill] sm:$0xff]  ;;  %v13459_v44 = vld [vmem:[#allocation22_spill] sm:$0xff] }
 0x449   :  { %13446 = vst [vmem:[#allocation103_spill] sm:$0xff] %v12231_v32  ;;  %v6134_v45 = vpop.f32.mrf.mxu1 }
 0x44a   :  { %v12239_v1 = vpop.f32.mrf.mxu0  ;;  %v12242_v28 = vpack.c.bf16 %v6855_v13, %v6851_v18  ;;  %v6135_v7 = vadd.f32 %v6134_v45, %v13454_v51  ;;  %v6858_v46 = vmax.f32 %v6133_v23, 0.0  ;;  %v13460_v18 = vld [vmem:[#allocation36_spill] sm:$0xff]  ;;  %v13462_v23 = vld [vmem:[#allocation62_spill] sm:$0xff] }
 0x44b   :  { %13451 = vst [vmem:[#allocation82_spill] sm:$0xff] %v12239_v1  ;;  %v6136_v32 = vpop.f32.mrf.mxu1 }
 0x44c   :  { %v12244_v52 = vpop.f32.mrf.mxu0  ;;  %v6137_v41 = vadd.f32 %v6136_v32, %v13455_v26  ;;  %v6859_v13 = vmax.f32 %v6135_v7, 0.0 }
 0x44d   :  { %13453 = vst [vmem:[#allocation51_spill] sm:$0xff] %v12244_v52  ;;  %v6138_v49 = vpop.f32.mrf.mxu1 }
 0x44e   :  { %v12248_v5 = vpop.f32.mrf.mxu0  ;;  %v6862_v58 = vmax.f32 %v6137_v41, 0.0  ;;  %v6139_v59 = vadd.f32 %v6138_v49, %v13457_v31 }
 0x44f   :  { %13456 = vst [vmem:[#allocation54_spill] sm:$0xff] %v12248_v5  ;;  %v6142_v0 = vpop.f32.mrf.mxu1  ;;  %6607 = vmatmul.mubr.bf16.gmra.mxu1 %v13459_v44  ;;  %6800 = vmatmul.mubr.bf16.gmra.mxu0 %v13460_v18  ;;  %v13464_v5 = vld [vmem:[#allocation34_spill] sm:$0xff] }
 0x450   :  { %v12251_v1 = vpop.f32.mrf.mxu0  ;;  %v12255_v55 = vpack.c.bf16 %v6862_v58, %v6858_v46  ;;  %v6863_v45 = vmax.f32 %v6139_v59, 0.0  ;;  %7297 = vmatprep.mubr.bf16.mxu1 %v12142_v19  ;;  %v6143_v26 = vadd.f32 %v6142_v0, %v13462_v23  ;;  %v13465_v19 = vld [vmem:[#allocation42_spill] sm:$0xff] }
 0x451   :  { %13458 = vst [vmem:[#allocation105_spill] sm:$0xff] %v12251_v1  ;;  %v6144_v32 = vpop.f32.mrf.mxu1  ;;  %v13463_v1 = vld [vmem:[#allocation61_spill] sm:$0xff] }
 0x452   :  { %v12258_v51 = vpop.f32.mrf.mxu0  ;;  %v12261_v41 = vpack.c.bf16 %v6863_v45, %v6859_v13  ;;  %v6145_v44 = vadd.f32 %v6144_v32, %v13463_v1  ;;  %v6866_v59 = vmax.f32 %v6143_v26, 0.0  ;;  %v13468_v32 = vld [vmem:[#allocation63_spill] sm:$0xff] }
 0x453   :  { %13461 = vst [vmem:[#allocation107_spill] sm:$0xff] %v12258_v51  ;;  %v6146_v49 = vpop.f32.mrf.mxu1 }
 0x454   :  { %v12263_v31 = vpop.f32.mrf.mxu0  ;;  %v6147_v18 = vadd.f32 %v6146_v49, %v13464_v5  ;;  %v6867_v0 = vmax.f32 %v6145_v44, 0.0 }
 0x455   :  { %v6148_v7 = vpop.f32.mrf.mxu1 }
 0x456   :  { %v12267_v58 = vpop.f32.mrf.mxu0  ;;  %v6870_v46 = vmax.f32 %v6147_v18, 0.0  ;;  %v6149_v52 = vadd.f32 %v6148_v7, %v13465_v19 }
 0x457   :  { %v6152_v24 = vpop.f32.mrf.mxu1  ;;  %7298 = vmatmul.mubr.bf16.vlgmr.msra.gmra.mxu1 %v12135_v22 }
 0x458   :  { %v12270_v51 = vpop.f32.mrf.mxu0  ;;  %v12273_v13 = vpack.c.bf16 %v6870_v46, %v6866_v59  ;;  %v6871_v45 = vmax.f32 %v6149_v52, 0.0  ;;  %7305 = vmatprep.mubr.bf16.mxu1 %v12162_v17  ;;  %v6153_v23 = vadd.f32 %v6152_v24, %v13468_v32  ;;  %v13469_v17 = vld [vmem:[#allocation65_spill] sm:$0xff] }
 0x459   :  { %13466 = vst [vmem:[#allocation84_spill] sm:$0xff] %v12270_v51  ;;  %v6154_v1 = vpop.f32.mrf.mxu1 }
 0x45a   :  { %v12276_v5 = vpop.f32.mrf.mxu0  ;;  %v12279_v26 = vpack.c.bf16 %v6871_v45, %v6867_v0  ;;  %v6155_v7 = vadd.f32 %v6154_v1, %v11995_v4  ;;  %v6874_v52 = vmax.f32 %v6153_v23, 0.0 }
 0x45b   :  { %13467 = vst [vmem:[#allocation53_spill] sm:$0xff] %v12276_v5  ;;  %v6156_v49 = vpop.f32.mrf.mxu1 }
 0x45c   :  { %v12281_v18 = vpop.f32.mrf.mxu0  ;;  %v6157_v22 = vadd.f32 %v6156_v49, %v11998_v6  ;;  %v6875_v24 = vmax.f32 %v6155_v7, 0.0 }
 0x45d   :  { %v6158_v44 = vpop.f32.mrf.mxu1 }
 0x45e   :  { %v12285_v59 = vpop.f32.mrf.mxu0  ;;  %v6878_v46 = vmax.f32 %v6157_v22, 0.0  ;;  %v6159_v19 = vadd.f32 %v6158_v44, %v13469_v17  ;;  %v13472_v44 = vld [vmem:[#allocation97_spill] sm:$0xff] }
 0x45f   :  { %v6162_v51 = vpop.f32.mrf.mxu1  ;;  %7306 = vmatmul.mubr.bf16.gmra.mxu1 %v12155_v56 }
 0x460   :  { %v12288_v5 = vpop.f32.mrf.mxu0  ;;  %v12291_v0 = vpack.c.bf16 %v6878_v46, %v6874_v52  ;;  %v6879_v45 = vmax.f32 %v6159_v19, 0.0  ;;  %7313 = vmatprep.mubr.bf16.mxu1 %v12182_v40  ;;  %v6163_v1 = vadd.f32 %v6162_v51, %v12008_v54  ;;  %v13473_v40 = vld [vmem:[#allocation66_spill] sm:$0xff] }
 0x461   :  { %13470 = vst [vmem:[#allocation56_spill] sm:$0xff] %v12288_v5  ;;  %v6164_v4 = vpop.f32.mrf.mxu1 }
 0x462   :  { %v12294_v6 = vpop.f32.mrf.mxu0  ;;  %v12297_v32 = vpack.c.bf16 %v6879_v45, %v6875_v24  ;;  %v6165_v22 = vadd.f32 %v6164_v4, %v12011_v11  ;;  %v6882_v46 = vmax.f32 %v6163_v1, 0.0  ;;  %v13475_v4 = vld [vmem:[#allocation41_spill] sm:$0xff] }
 0x463   :  { %13471 = vst [vmem:[#allocation108_spill] sm:$0xff] %v12294_v6  ;;  %v6166_v23 = vpop.f32.mrf.mxu1 }
 0x464   :  { %v12299_v49 = vpop.f32.mrf.mxu0  ;;  %v6167_v56 = vadd.f32 %v6166_v23, %v13472_v44  ;;  %v6883_v54 = vmax.f32 %v6165_v22, 0.0 }
 0x465   :  { %v6168_v7 = vpop.f32.mrf.mxu1 }
 0x466   :  { %v12303_v52 = vpop.f32.mrf.mxu0  ;;  %v6886_v17 = vmax.f32 %v6167_v56, 0.0  ;;  %v6169_v19 = vadd.f32 %v6168_v7, %v13473_v40 }
 0x467   :  { %v6172_v5 = vpop.f32.mrf.mxu1  ;;  %7314 = vmatmul.mubr.bf16.gmra.mxu1 %v12175_v29 }
 0x468   :  { %v12306_v6 = vpop.f32.mrf.mxu0  ;;  %v12309_v51 = vpack.c.bf16 %v6886_v17, %v6882_v46  ;;  %v6887_v24 = vmax.f32 %v6169_v19, 0.0  ;;  %7321 = vmatprep.mubr.bf16.mxu1 %v12202_v50  ;;  %v6173_v23 = vadd.f32 %v6172_v5, %v13475_v4 }
 0x469   :  { %v6174_v11 = vpop.f32.mrf.mxu1 }
 0x46a   :  { %v12312_v45 = vpop.f32.mrf.mxu0  ;;  %v12315_v1 = vpack.c.bf16 %v6887_v24, %v6883_v54  ;;  %v6175_v7 = vadd.f32 %v6174_v11, %v12027_v61  ;;  %v6890_v17 = vmax.f32 %v6173_v23, 0.0 }
 0x46b   :  { %13474 = vst [vmem:[#allocation110_spill] sm:$0xff] %v12312_v45  ;;  %v6176_v44 = vpop.f32.mrf.mxu1 }
 0x46c   :  { %v12317_v56 = vpop.f32.mrf.mxu0  ;;  %v6177_v29 = vadd.f32 %v6176_v44, %v12030_v60  ;;  %v6891_v5 = vmax.f32 %v6175_v7, 0.0 }
 0x46d   :  { %v6178_v22 = vpop.f32.mrf.mxu1 }
 0x46e   :  { %v12321_v46 = vpop.f32.mrf.mxu0  ;;  %v6894_v40 = vmax.f32 %v6177_v29, 0.0  ;;  %v6179_v50 = vadd.f32 %v6178_v22, %v12035_v21  ;;  %v13477_v29 = vld [vmem:[#allocation44_spill] sm:$0xff] }
 0x46f   :  { %v6182_v19 = vpop.f32.mrf.mxu1  ;;  %7322 = vmatmul.mubr.bf16.gmra.mxu1 %v12195_v34 }
 0x470   :  { %v12324_v45 = vpop.f32.mrf.mxu0  ;;  %v12327_v54 = vpack.c.bf16 %v6894_v40, %v6890_v17  ;;  %v6895_v24 = vmax.f32 %v6179_v50, 0.0  ;;  %7329 = vmatprep.mubr.bf16.mxu1 %v12222_v27  ;;  %v6183_v11 = vadd.f32 %v6182_v19, %v12040_v30 }
 0x471   :  { %v6184_v61 = vpop.f32.mrf.mxu1 }
 0x472   :  { %v12330_v60 = vpop.f32.mrf.mxu0  ;;  %v12333_v4 = vpack.c.bf16 %v6895_v24, %v6891_v5  ;;  %v6185_v44 = vadd.f32 %v6184_v61, %v12043_v33  ;;  %v6898_v17 = vmax.f32 %v6183_v11, 0.0 }
 0x473   :  { %13476 = vst [vmem:[#allocation55_spill] sm:$0xff] %v12330_v60  ;;  %v6186_v23 = vpop.f32.mrf.mxu1 }
 0x474   :  { %v12335_v21 = vpop.f32.mrf.mxu0  ;;  %v6187_v34 = vadd.f32 %v6186_v23, %v13477_v29  ;;  %v6899_v30 = vmax.f32 %v6185_v44, 0.0  ;;  %v13481_v29 = vld [vmem:[#allocation67_spill] sm:$0xff] }
 0x475   :  { %v6188_v7 = vpop.f32.mrf.mxu1 }
 0x476   :  { %v12339_v22 = vpop.f32.mrf.mxu0  ;;  %v6902_v40 = vmax.f32 %v6187_v34, 0.0  ;;  %v6189_v27 = vadd.f32 %v6188_v7, %v12051_v8  ;;  %v13482_v7 = vld [vmem:[#allocation98_spill] sm:$0xff] }
 0x477   :  { %13478 = vst [vmem:[#allocation21_spill] sm:$0xff] %v12339_v22  ;;  %v6192_v50 = vpop.f32.mrf.mxu1  ;;  %7330 = vmatmul.mubr.bf16.gmra.mxu1 %v12215_v37 }
 0x478   :  { %v12342_v60 = vpop.f32.mrf.mxu0  ;;  %v12345_v19 = vpack.c.bf16 %v6902_v40, %v6898_v17  ;;  %v6903_v5 = vmax.f32 %v6189_v27, 0.0  ;;  %7337 = vmatprep.mubr.bf16.mxu1 %v12242_v28  ;;  %v6193_v61 = vadd.f32 %v6192_v50, %v12056_v20  ;;  %v13483_v28 = vld [vmem:[#allocation99_spill] sm:$0xff] }
 0x479   :  { %13479 = vst [vmem:[#allocation23_spill] sm:$0xff] %v12342_v60  ;;  %v6194_v33 = vpop.f32.mrf.mxu1 }
 0x47a   :  { %v12348_v24 = vpop.f32.mrf.mxu0  ;;  %v12351_v11 = vpack.c.bf16 %v6903_v5, %v6899_v30  ;;  %v6195_v34 = vadd.f32 %v6194_v33, %v13481_v29  ;;  %v6906_v40 = vmax.f32 %v6193_v61, 0.0 }
 0x47b   :  { %13480 = vst [vmem:[#allocation87_spill] sm:$0xff] %v12348_v24  ;;  %v6196_v23 = vpop.f32.mrf.mxu1 }
 0x47c   :  { %v12353_v8 = vpop.f32.mrf.mxu0  ;;  %v6197_v37 = vadd.f32 %v6196_v23, %v13482_v7  ;;  %v6907_v20 = vmax.f32 %v6195_v34, 0.0 }
 0x47d   :  { %v6198_v44 = vpop.f32.mrf.mxu1 }
 0x47e   :  { %v12357_v17 = vpop.f32.mrf.mxu0  ;;  %v6910_v27 = vmax.f32 %v6197_v37, 0.0  ;;  %v6199_v60 = vadd.f32 %v6198_v44, %v13483_v28  ;;  %v13486_v37 = vld [vmem:[#allocation70_spill] sm:$0xff]  ;;  %v13487_v28 = vld [vmem:[#allocation43_spill] sm:$0xff] }
 0x47f   :  { %v6202_v22 = vpop.f32.mrf.mxu1  ;;  %7338 = vmatmul.mubr.bf16.gmra.mxu1 %v12235_v57 }
 0x480   :  { %v12360_v24 = vpop.f32.mrf.mxu0  ;;  %v12363_v50 = vpack.c.bf16 %v6910_v27, %v6906_v40  ;;  %v6911_v30 = vmax.f32 %v6199_v60, 0.0  ;;  %7345 = vmatprep.mubr.bf16.mxu1 %v12261_v41  ;;  %v6203_v23 = vadd.f32 %v6202_v22, %v12072_v25 }
 0x481   :  { %13484 = vst [vmem:[#allocation27_spill] sm:$0xff] %v12360_v24  ;;  %v6204_v5 = vpop.f32.mrf.mxu1 }
 0x482   :  { %v12366_v33 = vpop.f32.mrf.mxu0  ;;  %v12369_v61 = vpack.c.bf16 %v6911_v30, %v6907_v20  ;;  %v6205_v44 = vadd.f32 %v6204_v5, %v13486_v37  ;;  %v6914_v60 = vmax.f32 %v6203_v23, 0.0 }
 0x483   :  { %13485 = vst [vmem:[#allocation86_spill] sm:$0xff] %v12366_v33  ;;  %v6206_v29 = vpop.f32.mrf.mxu1 }
 0x484   :  { %v12371_v7 = vpop.f32.mrf.mxu0  ;;  %v6207_v57 = vadd.f32 %v6206_v29, %v13487_v28  ;;  %v6915_v25 = vmax.f32 %v6205_v44, 0.0 }
 0x485   :  { %v6208_v34 = vpop.f32.mrf.mxu1 }
 0x486   :  { %v12375_v40 = vpop.f32.mrf.mxu0  ;;  %v6918_v27 = vmax.f32 %v6207_v57, 0.0  ;;  %v6209_v41 = vadd.f32 %v6208_v34, %v12083_v38  ;;  %v13490_v57 = vld [vmem:[#allocation46_spill] sm:$0xff] }
 0x487   :  { %v6212_v24 = vpop.f32.mrf.mxu1  ;;  %7346 = vmatmul.mubr.bf16.gmra.mxu1 %v12255_v55 }
 0x488   :  { %v12378_v33 = vpop.f32.mrf.mxu0  ;;  %v12381_v22 = vpack.c.bf16 %v6918_v27, %v6914_v60  ;;  %v6919_v20 = vmax.f32 %v6209_v41, 0.0  ;;  %7353 = vmatprep.mubr.bf16.mxu1 %v12279_v26  ;;  %v6213_v29 = vadd.f32 %v6212_v24, %v12088_v3  ;;  %v13491_v26 = vld [vmem:[#allocation71_spill] sm:$0xff] }
 0x489   :  { %13488 = vst [vmem:[#allocation24_spill] sm:$0xff] %v12378_v33  ;;  %v6214_v30 = vpop.f32.mrf.mxu1 }
 0x48a   :  { %v12384_v5 = vpop.f32.mrf.mxu0  ;;  %v12387_v23 = vpack.c.bf16 %v6919_v20, %v6915_v25  ;;  %v6215_v28 = vadd.f32 %v6214_v30, %v12091_v62  ;;  %v6922_v60 = vmax.f32 %v6213_v29, 0.0  ;;  %v10419_v30 = vld [vmem:[#allocation10] sm:$0xf] }
 0x48b   :  { %13489 = vst [vmem:[#allocation89_spill] sm:$0xff] %v12384_v5  ;;  %v6216_v37 = vpop.f32.mrf.mxu1 }
 0x48c   :  { %v12389_v38 = vpop.f32.mrf.mxu0  ;;  %v6217_v55 = vadd.f32 %v6216_v37, %v13490_v57  ;;  %v6923_v3 = vmax.f32 %v6215_v28, 0.0  ;;  %v13493_v37 = vld [vmem:[#allocation20_spill] sm:$0xff] }
 0x48d   :  { %v6218_v44 = vpop.f32.mrf.mxu1  ;;  %v13494_v29 = vsub.s32 2, %v13493_v37 }
 0x48e   :  { %v12393_v34 = vpop.f32.mrf.mxu0  ;;  %v6926_v27 = vmax.f32 %v6217_v55, 0.0  ;;  %v6219_v41 = vadd.f32 %v6218_v44, %v13491_v26 }
 0x48f   :  { %v6222_v33 = vpop.f32.mrf.mxu1  ;;  %7354 = vmatmul.mubr.bf16.gmra.mxu1 %v12273_v13  ;;  %v12406_v57 = vrot.slane %v10419_v30, %v13494_v29  ;;  %v13495_v13 = vsub.s32 3, %v13493_v37 }
 0x490   :  { %v12396_v5 = vpop.f32.mrf.mxu0  ;;  %v12399_v24 = vpack.c.bf16 %v6926_v27, %v6922_v60  ;;  %v6927_v25 = vmax.f32 %v6219_v41, 0.0  ;;  %7361 = vmatprep.mubr.bf16.mxu1 %v12297_v32  ;;  %v6223_v55 = vadd.f32 %v6222_v33, %v12104_v14 }
 0x491   :  { %v6224_v62 = vpop.f32.mrf.mxu1  ;;  %v12413_v28 = vrot.slane %v10419_v30, %v13495_v13  ;;  %v6266_v29 = vadd.f32 %v12113_v42, %v12406_v57 }
 0x492   :  { %v12402_v20 = vpop.f32.mrf.mxu0  ;;  %v12409_v44 = vpack.c.bf16 %v6927_v25, %v6923_v3  ;;  %v6225_v32 = vadd.f32 %v6224_v62, %v12107_v16  ;;  %v6930_v14 = vmax.f32 %v6223_v55, 0.0  ;;  %v13498_v25 = vld [vmem:[#allocation100_spill] sm:$0xff]  ;;  %v6270_v55 = vadd.f32 %v12124_v9, %v12406_v57 }
 0x493   :  { %13492 = vst [vmem:[#allocation26_spill] sm:$0xff] %v12402_v20  ;;  %v6226_v60 = vpop.f32.mrf.mxu1  ;;  %v6268_v30 = vadd.f32 %v13498_v25, %v12413_v28  ;;  %v6278_v9 = vadd.f32 %v12139_v53, %v12413_v28 }
 0x494   :  { %v12415_v27 = vpop.f32.mrf.mxu0  ;;  %v6227_v26 = vadd.f32 %v6226_v60, %v12110_v2  ;;  %v6931_v16 = vmax.f32 %v6225_v32, 0.0 }
 0x495   :  { %13496 = vst [vmem:[#allocation88_spill] sm:$0xff] %v12415_v27  ;;  %v6228_v41 = vpop.f32.mrf.mxu1 }
 0x496   :  { %v12419_v20 = vpop.f32.mrf.mxu0  ;;  %v6934_v33 = vmax.f32 %v6227_v26, 0.0  ;;  %v6229_v3 = vadd.f32 %v6228_v41, %v12117_v39 }
 0x497   :  { %13497 = vst [vmem:[#allocation91_spill] sm:$0xff] %v12419_v20  ;;  %v6458_v37 = vpop.f32.mrf.mxu1  ;;  %7362 = vmatmul.mubr.bf16.gmra.mxu1 %v12291_v0  ;;  %v6272_v0 = vadd.f32 %v12128_v43, %v12413_v28 }
 0x498   :  { %v6651_v13 = vpop.f32.mrf.mxu0  ;;  %v12427_v62 = vpack.c.bf16 %v6934_v33, %v6930_v14  ;;  %v6935_v2 = vmax.f32 %v6229_v3, 0.0  ;;  %v6459_v60 = vadd.f32 %v6458_v37, %v6266_v29  ;;  %7369 = vmatprep.mubr.bf16.mxu1 %v12315_v1  ;;  %v6276_v1 = vadd.f32 %v12131_v12, %v12406_v57 }
 0x499   :  { %v6460_v20 = vpop.f32.mrf.mxu1 }
 0x49a   :  { %v6653_v42 = vpop.f32.mrf.mxu0  ;;  %v6461_v39 = vadd.f32 %v6460_v20, %v6268_v30  ;;  %v12432_v26 = vpack.c.bf16 %v6935_v2, %v6931_v16  ;;  %v6652_v32 = vadd.f32 %v6651_v13, %v6459_v60  ;;  %v6280_v60 = vadd.f32 %v12144_v10, %v12406_v57 }
 0x49b   :  { %v6462_v41 = vpop.f32.mrf.mxu1 }
 0x49c   :  { %v6655_v25 = vpop.f32.mrf.mxu0  ;;  %v6463_v14 = vadd.f32 %v6462_v41, %v6270_v55  ;;  %v6654_v29 = vadd.f32 %v6653_v42, %v6461_v39  ;;  %v6812_v16 = vmax.f32 %v6652_v32, 0.0 }
 0x49d   :  { %v6464_v33 = vpop.f32.mrf.mxu1 }
 0x49e   :  { %v6657_v3 = vpop.f32.mrf.mxu0  ;;  %v6656_v37 = vadd.f32 %v6655_v25, %v6463_v14  ;;  %v6465_v27 = vadd.f32 %v6464_v33, %v6272_v0  ;;  %v6813_v55 = vmax.f32 %v6654_v29, 0.0  ;;  %v6288_v29 = vadd.f32 %v12159_v36, %v12413_v28 }
 0x49f   :  { %v6468_v20 = vpop.f32.mrf.mxu1  ;;  %7370 = vmatmul.mubr.bf16.gmra.mxu1 %v12309_v51  ;;  %v6282_v51 = vadd.f32 %v12148_v63, %v12413_v28 }
 0x4a0   :  { %v6661_v30 = vpop.f32.mrf.mxu0  ;;  %v6816_v2 = vmax.f32 %v6656_v37, 0.0  ;;  %v6658_v43 = vadd.f32 %v6657_v3, %v6465_v27  ;;  %v6469_v13 = vadd.f32 %v6468_v20, %v6276_v1  ;;  %7377 = vmatprep.mubr.bf16.mxu1 %v12333_v4  ;;  %v6286_v4 = vadd.f32 %v12151_v48, %v12406_v57 }
 0x4a1   :  { %v6470_v12 = vpop.f32.mrf.mxu1  ;;  %v6290_v48 = vadd.f32 %v12164_v15, %v12406_v57 }
 0x4a2   :  { %v6663_v42 = vpop.f32.mrf.mxu0  ;;  %v6940_v39 = vpack.c.bf16 %v6816_v2, %v6812_v16  ;;  %v6817_v41 = vmax.f32 %v6658_v43, 0.0  ;;  %v6471_v25 = vadd.f32 %v6470_v12, %v6278_v9  ;;  %v6662_v32 = vadd.f32 %v6661_v30, %v6469_v13 }
 0x4a3   :  { %v6472_v53 = vpop.f32.mrf.mxu1 }
 0x4a4   :  { %v6665_v0 = vpop.f32.mrf.mxu0  ;;  %v6473_v14 = vadd.f32 %v6472_v53, %v6280_v60  ;;  %v6941_v27 = vpack.c.bf16 %v6817_v41, %v6813_v55  ;;  %v6664_v10 = vadd.f32 %v6663_v42, %v6471_v25  ;;  %v6820_v63 = vmax.f32 %v6662_v32, 0.0 }
 0x4a5   :  { %v6474_v33 = vpop.f32.mrf.mxu1 }
 0x4a6   :  { %v6667_v3 = vpop.f32.mrf.mxu0  ;;  %v6666_v1 = vadd.f32 %v6665_v0, %v6473_v14  ;;  %v6475_v37 = vadd.f32 %v6474_v33, %v6282_v51  ;;  %7458 = vmatprep.mubr.bf16.mxu0 %v6941_v27  ;;  %v6821_v60 = vmax.f32 %v6664_v10, 0.0  ;;  %v13499_v27 = vld [vmem:[#allocation74_spill] sm:$0xff] }
 0x4a7   :  { %v6478_v9 = vpop.f32.mrf.mxu1  ;;  %7378 = vmatmul.mubr.bf16.gmra.mxu1 %v12327_v54  ;;  %7459 = vmatmul.mubr.bf16.vlgmr.msra.gmra.mxu0 %v6940_v39  ;;  %v6292_v54 = vadd.f32 %v12168_v47, %v12413_v28  ;;  %v6298_v33 = vadd.f32 %v13499_v27, %v12413_v28 }
 0x4a8   :  { %v6671_v20 = vpop.f32.mrf.mxu0  ;;  %v6824_v30 = vmax.f32 %v6666_v1, 0.0  ;;  %v6668_v16 = vadd.f32 %v6667_v3, %v6475_v37  ;;  %v6479_v2 = vadd.f32 %v6478_v9, %v6286_v4  ;;  %7385 = vmatprep.mubr.bf16.mxu1 %v12351_v11  ;;  %v6296_v11 = vadd.f32 %v12171_v35, %v12406_v57  ;;  %v13500_v35 = vld [vmem:[#allocation45_spill] sm:$0xff] }
 0x4a9   :  { %v6480_v43 = vpop.f32.mrf.mxu1 }
 0x4aa   :  { %v6673_v13 = vpop.f32.mrf.mxu0  ;;  %v6944_v12 = vpack.c.bf16 %v6824_v30, %v6820_v63  ;;  %v6825_v42 = vmax.f32 %v6668_v16, 0.0  ;;  %v6481_v36 = vadd.f32 %v6480_v43, %v6288_v29  ;;  %v6672_v39 = vadd.f32 %v6671_v20, %v6479_v2 }
 0x4ab   :  { %v6482_v55 = vpop.f32.mrf.mxu1  ;;  %v6300_v29 = vadd.f32 %v13500_v35, %v12406_v57 }
 0x4ac   :  { %v6675_v41 = vpop.f32.mrf.mxu0  ;;  %v6483_v25 = vadd.f32 %v6482_v55, %v6290_v48  ;;  %v6945_v53 = vpack.c.bf16 %v6825_v42, %v6821_v60  ;;  %v6674_v15 = vadd.f32 %v6673_v13, %v6481_v36  ;;  %v6828_v47 = vmax.f32 %v6672_v39, 0.0 }
 0x4ad   :  { %v6484_v0 = vpop.f32.mrf.mxu1 }
 0x4ae   :  { %v6677_v51 = vpop.f32.mrf.mxu0  ;;  %v6676_v32 = vadd.f32 %v6675_v41, %v6483_v25  ;;  %v6485_v14 = vadd.f32 %v6484_v0, %v6292_v54  ;;  %7466 = vmatprep.mubr.bf16.mxu0 %v6945_v53  ;;  %v6829_v63 = vmax.f32 %v6674_v15, 0.0  ;;  %v13503_v53 = vld [vmem:[#allocation78_spill] sm:$0xff] }
 0x4af   :  { %v6488_v3 = vpop.f32.mrf.mxu1  ;;  %7386 = vmatmul.mubr.bf16.gmra.mxu1 %v12345_v19  ;;  %7467 = vmatmul.mubr.bf16.gmra.mxu0 %v6944_v12  ;;  %v13501_v19 = vld [vmem:[#allocation48_spill] sm:$0xff]  ;;  %v6308_v0 = vadd.f32 %v13503_v53, %v12413_v28 }
 0x4b0   :  { %v6681_v4 = vpop.f32.mrf.mxu0  ;;  %v6832_v10 = vmax.f32 %v6676_v32, 0.0  ;;  %v6678_v1 = vadd.f32 %v6677_v51, %v6485_v14  ;;  %v6489_v37 = vadd.f32 %v6488_v3, %v6296_v11  ;;  %7393 = vmatprep.mubr.bf16.mxu1 %v12369_v61  ;;  %v6302_v13 = vadd.f32 %v13501_v19, %v12413_v28  ;;  %v13502_v61 = vld [vmem:[#allocation75_spill] sm:$0xff] }
 0x4b1   :  { %v6490_v9 = vpop.f32.mrf.mxu1  ;;  %v6306_v41 = vadd.f32 %v13502_v61, %v12406_v57 }
 0x4b2   :  { %v6683_v20 = vpop.f32.mrf.mxu0  ;;  %v6948_v30 = vpack.c.bf16 %v6832_v10, %v6828_v47  ;;  %v6833_v16 = vmax.f32 %v6678_v1, 0.0  ;;  %v6491_v2 = vadd.f32 %v6490_v9, %v6298_v33  ;;  %v6682_v60 = vadd.f32 %v6681_v4, %v6489_v37  ;;  %v13504_v33 = vld [vmem:[#allocation47_spill] sm:$0xff] }
 0x4b3   :  { %v6492_v48 = vpop.f32.mrf.mxu1  ;;  %v6310_v3 = vadd.f32 %v13504_v33, %v12406_v57 }
 0x4b4   :  { %v6685_v43 = vpop.f32.mrf.mxu0  ;;  %v6493_v12 = vadd.f32 %v6492_v48, %v6300_v29  ;;  %v6949_v42 = vpack.c.bf16 %v6833_v16, %v6829_v63  ;;  %v6684_v54 = vadd.f32 %v6683_v20, %v6491_v2  ;;  %v6836_v15 = vmax.f32 %v6682_v60, 0.0 }
 0x4b5   :  { %v6494_v36 = vpop.f32.mrf.mxu1 }
 0x4b6   :  { %v6687_v55 = vpop.f32.mrf.mxu0  ;;  %v6686_v39 = vadd.f32 %v6685_v43, %v6493_v12  ;;  %v6495_v25 = vadd.f32 %v6494_v36, %v6302_v13  ;;  %7474 = vmatprep.mubr.bf16.mxu0 %v6949_v42  ;;  %v6837_v10 = vmax.f32 %v6684_v54, 0.0  ;;  %v13507_v12 = vld [vmem:[#allocation80_spill] sm:$0xff] }
 0x4b7   :  { %v6498_v51 = vpop.f32.mrf.mxu1  ;;  %7394 = vmatmul.mubr.bf16.gmra.mxu1 %v12363_v50  ;;  %7475 = vmatmul.mubr.bf16.gmra.mxu0 %v6948_v30  ;;  %v13505_v50 = vld [vmem:[#allocation50_spill] sm:$0xff]  ;;  %v6318_v42 = vadd.f32 %v13507_v12, %v12413_v28 }
 0x4b8   :  { %v6691_v11 = vpop.f32.mrf.mxu0  ;;  %v6840_v32 = vmax.f32 %v6686_v39, 0.0  ;;  %v6688_v14 = vadd.f32 %v6687_v55, %v6495_v25  ;;  %v6499_v27 = vadd.f32 %v6498_v51, %v6306_v41  ;;  %7401 = vmatprep.mubr.bf16.mxu1 %v12387_v23  ;;  %v6312_v20 = vadd.f32 %v13505_v50, %v12413_v28  ;;  %v13506_v23 = vld [vmem:[#allocation101_spill] sm:$0xff] }
 0x4b9   :  { %v6500_v4 = vpop.f32.mrf.mxu1  ;;  %v6316_v43 = vadd.f32 %v13506_v23, %v12406_v57  ;;  %v13508_v25 = vld [vmem:[#allocation49_spill] sm:$0xff] }
 0x4ba   :  { %v6693_v47 = vpop.f32.mrf.mxu0  ;;  %v6952_v1 = vpack.c.bf16 %v6840_v32, %v6836_v15  ;;  %v6841_v37 = vmax.f32 %v6688_v14, 0.0  ;;  %v6501_v35 = vadd.f32 %v6500_v4, %v6308_v0  ;;  %v6692_v63 = vadd.f32 %v6691_v11, %v6499_v27 }
 0x4bb   :  { %v6502_v29 = vpop.f32.mrf.mxu1  ;;  %v6320_v53 = vadd.f32 %v13508_v25, %v12406_v57 }
 0x4bc   :  { %v6695_v9 = vpop.f32.mrf.mxu0  ;;  %v6503_v30 = vadd.f32 %v6502_v29, %v6310_v3  ;;  %v6953_v16 = vpack.c.bf16 %v6841_v37, %v6837_v10  ;;  %v6694_v19 = vadd.f32 %v6693_v47, %v6501_v35  ;;  %v6844_v61 = vmax.f32 %v6692_v63, 0.0 }
 0x4bd   :  { %v6504_v2 = vpop.f32.mrf.mxu1 }
 0x4be   :  { %v6697_v48 = vpop.f32.mrf.mxu0  ;;  %v6696_v13 = vadd.f32 %v6695_v9, %v6503_v30  ;;  %v6505_v60 = vadd.f32 %v6504_v2, %v6312_v20  ;;  %7482 = vmatprep.mubr.bf16.mxu0 %v6953_v16  ;;  %v6845_v11 = vmax.f32 %v6694_v19, 0.0  ;;  %v13511_v20 = vld [vmem:[#allocation82_spill] sm:$0xff]  ;;  %v13512_v19 = vld [vmem:[#allocation51_spill] sm:$0xff] }
 0x4bf   :  { %v6508_v36 = vpop.f32.mrf.mxu1  ;;  %7402 = vmatmul.mubr.bf16.gmra.mxu1 %v12381_v22  ;;  %7483 = vmatmul.mubr.bf16.gmra.mxu0 %v6952_v1  ;;  %v13509_v22 = vld [vmem:[#allocation52_spill] sm:$0xff]  ;;  %v6328_v63 = vadd.f32 %v13511_v20, %v12413_v28 }
 0x4c0   :  { %v6701_v55 = vpop.f32.mrf.mxu0  ;;  %v6848_v41 = vmax.f32 %v6696_v13, 0.0  ;;  %v6698_v54 = vadd.f32 %v6697_v48, %v6505_v60  ;;  %v6509_v39 = vadd.f32 %v6508_v36, %v6316_v43  ;;  %7409 = vmatprep.mubr.bf16.mxu1 %v12409_v44  ;;  %v6322_v3 = vadd.f32 %v13509_v22, %v12413_v28  ;;  %v13510_v44 = vld [vmem:[#allocation103_spill] sm:$0xff] }
 0x4c1   :  { %v6510_v0 = vpop.f32.mrf.mxu1  ;;  %v6326_v35 = vadd.f32 %v13510_v44, %v12406_v57  ;;  %v6330_v13 = vadd.f32 %v13512_v19, %v12406_v57  ;;  %v6340_v44 = vadd.f32 %v12263_v31, %v12406_v57 }
 0x4c2   :  { %v6703_v51 = vpop.f32.mrf.mxu0  ;;  %v6956_v15 = vpack.c.bf16 %v6848_v41, %v6844_v61  ;;  %v6849_v32 = vmax.f32 %v6698_v54, 0.0  ;;  %v6511_v14 = vadd.f32 %v6510_v0, %v6318_v42  ;;  %v6702_v47 = vadd.f32 %v6701_v55, %v6509_v39 }
 0x4c3   :  { %v6512_v27 = vpop.f32.mrf.mxu1 }
 0x4c4   :  { %v6705_v33 = vpop.f32.mrf.mxu0  ;;  %v6957_v4 = vpack.c.bf16 %v6849_v32, %v6845_v11  ;;  %v6513_v10 = vadd.f32 %v6512_v27, %v6320_v53  ;;  %v6704_v29 = vadd.f32 %v6703_v51, %v6511_v14  ;;  %v6852_v2 = vmax.f32 %v6702_v47, 0.0 }
 0x4c5   :  { %v6514_v1 = vpop.f32.mrf.mxu1 }
 0x4c6   :  { %v6707_v37 = vpop.f32.mrf.mxu0  ;;  %v6706_v9 = vadd.f32 %v6705_v33, %v6513_v10  ;;  %v6515_v50 = vadd.f32 %v6514_v1, %v6322_v3  ;;  %7490 = vmatprep.mubr.bf16.mxu0 %v6957_v4  ;;  %v6853_v42 = vmax.f32 %v6704_v29, 0.0  ;;  %v13515_v33 = vld [vmem:[#allocation107_spill] sm:$0xff] }
 0x4c7   :  { %v6518_v30 = vpop.f32.mrf.mxu1  ;;  %7410 = vmatmul.mubr.bf16.gmra.mxu1 %v12399_v24  ;;  %7491 = vmatmul.mubr.bf16.gmra.mxu0 %v6956_v15  ;;  %v13513_v24 = vld [vmem:[#allocation54_spill] sm:$0xff]  ;;  %v6338_v22 = vadd.f32 %v13515_v33, %v12413_v28 }
 0x4c8   :  { %v6711_v16 = vpop.f32.mrf.mxu0  ;;  %v6856_v48 = vmax.f32 %v6706_v9, 0.0  ;;  %v6708_v23 = vadd.f32 %v6707_v37, %v6515_v50  ;;  %v6519_v43 = vadd.f32 %v6518_v30, %v6326_v35  ;;  %7417 = vmatprep.mubr.bf16.mxu1 %v12432_v26  ;;  %v6332_v39 = vadd.f32 %v13513_v24, %v12413_v28  ;;  %v13514_v26 = vld [vmem:[#allocation105_spill] sm:$0xff] }
 0x4c9   :  { %v6520_v60 = vpop.f32.mrf.mxu1  ;;  %v6336_v15 = vadd.f32 %v13514_v26, %v12406_v57 }
 0x4ca   :  { %v6713_v12 = vpop.f32.mrf.mxu0  ;;  %v6960_v36 = vpack.c.bf16 %v6856_v48, %v6852_v2  ;;  %v6857_v55 = vmax.f32 %v6708_v23, 0.0  ;;  %v6521_v61 = vadd.f32 %v6520_v60, %v6328_v63  ;;  %v6712_v53 = vadd.f32 %v6711_v16, %v6519_v43 }
 0x4cb   :  { %v6522_v41 = vpop.f32.mrf.mxu1  ;;  %v6342_v2 = vadd.f32 %v12267_v58, %v12413_v28 }
 0x4cc   :  { %v6715_v54 = vpop.f32.mrf.mxu0  ;;  %v6961_v25 = vpack.c.bf16 %v6857_v55, %v6853_v42  ;;  %v6523_v0 = vadd.f32 %v6522_v41, %v6330_v13  ;;  %v6714_v32 = vadd.f32 %v6713_v12, %v6521_v61  ;;  %v6860_v47 = vmax.f32 %v6712_v53, 0.0  ;;  %v13516_v13 = vld [vmem:[#allocation84_spill] sm:$0xff] }
 0x4cd   :  { %v6524_v51 = vpop.f32.mrf.mxu1  ;;  %v6346_v60 = vadd.f32 %v13516_v13, %v12406_v57 }
 0x4ce   :  { %v6717_v11 = vpop.f32.mrf.mxu0  ;;  %v6716_v14 = vadd.f32 %v6715_v54, %v6523_v0  ;;  %v6525_v27 = vadd.f32 %v6524_v51, %v6332_v39  ;;  %7498 = vmatprep.mubr.bf16.mxu0 %v6961_v25  ;;  %v6861_v9 = vmax.f32 %v6714_v32, 0.0  ;;  %v6350_v25 = vadd.f32 %v12281_v18, %v12406_v57 }
 0x4cf   :  { %v6528_v3 = vpop.f32.mrf.mxu1  ;;  %7418 = vmatmul.mubr.bf16.gmra.mxu1 %v12427_v62  ;;  %7499 = vmatmul.mubr.bf16.gmra.mxu0 %v6960_v36  ;;  %v13517_v36 = vld [vmem:[#allocation53_spill] sm:$0xff] }
 0x4d0   :  { %v6721_v4 = vpop.f32.mrf.mxu0  ;;  %v6864_v10 = vmax.f32 %v6716_v14, 0.0  ;;  %v6718_v1 = vadd.f32 %v6717_v11, %v6525_v27  ;;  %v6529_v37 = vadd.f32 %v6528_v3, %v6336_v15  ;;  %v6348_v55 = vadd.f32 %v13517_v36, %v12413_v28 }
 0x4d1   :  { %v6530_v35 = vpop.f32.mrf.mxu1  ;;  %v6352_v27 = vadd.f32 %v12285_v59, %v12413_v28 }
 0x4d2   :  { %v6723_v29 = vpop.f32.mrf.mxu0  ;;  %v6964_v50 = vpack.c.bf16 %v6864_v10, %v6860_v47  ;;  %v6865_v20 = vmax.f32 %v6718_v1, 0.0  ;;  %v6531_v63 = vadd.f32 %v6530_v35, %v6338_v22  ;;  %v6722_v48 = vadd.f32 %v6721_v4, %v6529_v37  ;;  %v13518_v10 = vld [vmem:[#allocation56_spill] sm:$0xff] }
 0x4d3   :  { %v6532_v30 = vpop.f32.mrf.mxu1  ;;  %v6356_v1 = vadd.f32 %v13518_v10, %v12406_v57  ;;  %v13519_v35 = vld [vmem:[#allocation108_spill] sm:$0xff] }
 0x4d4   :  { %v6725_v16 = vpop.f32.mrf.mxu0  ;;  %v6965_v62 = vpack.c.bf16 %v6865_v20, %v6861_v9  ;;  %v6533_v23 = vadd.f32 %v6532_v30, %v6340_v44  ;;  %v6724_v31 = vadd.f32 %v6723_v29, %v6531_v63  ;;  %v6868_v54 = vmax.f32 %v6722_v48, 0.0 }
 0x4d5   :  { %v6534_v43 = vpop.f32.mrf.mxu1  ;;  %v6358_v29 = vadd.f32 %v13519_v35, %v12413_v28 }
 0x4d6   :  { %v6727_v19 = vpop.f32.mrf.mxu0  ;;  %v6726_v12 = vadd.f32 %v6725_v16, %v6533_v23  ;;  %v6535_v42 = vadd.f32 %v6534_v43, %v6342_v2  ;;  %7506 = vmatprep.mubr.bf16.mxu0 %v6965_v62  ;;  %v6869_v51 = vmax.f32 %v6724_v31, 0.0  ;;  %v6360_v16 = vadd.f32 %v12299_v49, %v12406_v57 }
 0x4d7   :  { %v6538_v61 = vpop.f32.mrf.mxu1  ;;  %7507 = vmatmul.mubr.bf16.gmra.mxu0 %v6964_v50  ;;  %v6362_v31 = vadd.f32 %v12303_v52, %v12413_v28 }
 0x4d8   :  { %v6731_v41 = vpop.f32.mrf.mxu0  ;;  %v6872_v58 = vmax.f32 %v6726_v12, 0.0  ;;  %v6728_v24 = vadd.f32 %v6727_v19, %v6535_v42  ;;  %v6539_v39 = vadd.f32 %v6538_v61, %v6346_v60 }
 0x4d9   :  { %v6540_v53 = vpop.f32.mrf.mxu1 }
 0x4da   :  { %v6733_v0 = vpop.f32.mrf.mxu0  ;;  %v6968_v11 = vpack.c.bf16 %v6872_v58, %v6868_v54  ;;  %v6873_v26 = vmax.f32 %v6728_v24, 0.0  ;;  %v6541_v15 = vadd.f32 %v6540_v53, %v6348_v55  ;;  %v6732_v22 = vadd.f32 %v6731_v41, %v6539_v39  ;;  %v13520_v24 = vld [vmem:[#allocation110_spill] sm:$0xff] }
 0x4db   :  { %v6542_v32 = vpop.f32.mrf.mxu1  ;;  %v6366_v41 = vadd.f32 %v12306_v6, %v12406_v57  ;;  %v6368_v39 = vadd.f32 %v13520_v24, %v12413_v28 }
 0x4dc   :  { %v6735_v14 = vpop.f32.mrf.mxu0  ;;  %v6969_v33 = vpack.c.bf16 %v6873_v26, %v6869_v51  ;;  %v6543_v3 = vadd.f32 %v6542_v32, %v6350_v25  ;;  %v6734_v18 = vadd.f32 %v6733_v0, %v6541_v15  ;;  %v6876_v20 = vmax.f32 %v6732_v22, 0.0 }
 0x4dd   :  { %v6544_v4 = vpop.f32.mrf.mxu1  ;;  %v6370_v26 = vadd.f32 %v12317_v56, %v12406_v57 }
 0x4de   :  { %v6737_v47 = vpop.f32.mrf.mxu0  ;;  %v6736_v37 = vadd.f32 %v6735_v14, %v6543_v3  ;;  %v6545_v44 = vadd.f32 %v6544_v4, %v6352_v27  ;;  %7514 = vmatprep.mubr.bf16.mxu0 %v6969_v33  ;;  %v6877_v48 = vmax.f32 %v6734_v18, 0.0  ;;  %v6372_v4 = vadd.f32 %v12321_v46, %v12413_v28 }
 0x4df   :  { %v6548_v9 = vpop.f32.mrf.mxu1  ;;  %7515 = vmatmul.mubr.bf16.gmra.mxu0 %v6968_v11 }
 0x4e0   :  { %v6741_v50 = vpop.f32.mrf.mxu0  ;;  %v6880_v59 = vmax.f32 %v6736_v37, 0.0  ;;  %v6738_v63 = vadd.f32 %v6737_v47, %v6545_v44  ;;  %v6549_v30 = vadd.f32 %v6548_v9, %v6356_v1  ;;  %v6376_v44 = vadd.f32 %v12324_v45, %v12406_v57  ;;  %v13521_v9 = vld [vmem:[#allocation55_spill] sm:$0xff] }
 0x4e1   :  { %v6550_v2 = vpop.f32.mrf.mxu1 }
 0x4e2   :  { %v6743_v62 = vpop.f32.mrf.mxu0  ;;  %v6972_v23 = vpack.c.bf16 %v6880_v59, %v6876_v20  ;;  %v6881_v43 = vmax.f32 %v6738_v63, 0.0  ;;  %v6551_v19 = vadd.f32 %v6550_v2, %v6358_v29  ;;  %v6742_v42 = vadd.f32 %v6741_v50, %v6549_v30 }
 0x4e3   :  { %v6552_v13 = vpop.f32.mrf.mxu1  ;;  %v6378_v50 = vadd.f32 %v13521_v9, %v12413_v28  ;;  %v6380_v2 = vadd.f32 %v12335_v21, %v12406_v57 }
 0x4e4   :  { %v6745_v60 = vpop.f32.mrf.mxu0  ;;  %v6973_v12 = vpack.c.bf16 %v6881_v43, %v6877_v48  ;;  %v6553_v36 = vadd.f32 %v6552_v13, %v6360_v16  ;;  %v6744_v49 = vadd.f32 %v6743_v62, %v6551_v19  ;;  %v6884_v0 = vmax.f32 %v6742_v42, 0.0 }
 0x4e5   :  { %v6554_v55 = vpop.f32.mrf.mxu1 }
 0x4e6   :  { %v6747_v61 = vpop.f32.mrf.mxu0  ;;  %v6746_v54 = vadd.f32 %v6745_v60, %v6553_v36  ;;  %v6555_v58 = vadd.f32 %v6554_v55, %v6362_v31  ;;  %7522 = vmatprep.mubr.bf16.mxu0 %v6973_v12  ;;  %v6885_v6 = vmax.f32 %v6744_v49, 0.0  ;;  %v13522_v31 = vld [vmem:[#allocation21_spill] sm:$0xff]  ;;  %v13523_v49 = vld [vmem:[#allocation23_spill] sm:$0xff] }
 0x4e7   :  { %v6558_v25 = vpop.f32.mrf.mxu1  ;;  %7523 = vmatmul.mubr.bf16.gmra.mxu0 %v6972_v23  ;;  %v6382_v12 = vadd.f32 %v13522_v31, %v12413_v28  ;;  %v6402_v31 = vadd.f32 %v12375_v40, %v12413_v28 }
 0x4e8   :  { %v6751_v53 = vpop.f32.mrf.mxu0  ;;  %v6888_v52 = vmax.f32 %v6746_v54, 0.0  ;;  %v6748_v51 = vadd.f32 %v6747_v61, %v6555_v58  ;;  %v6559_v11 = vadd.f32 %v6558_v25, %v6366_v41  ;;  %v6386_v54 = vadd.f32 %v13523_v49, %v12406_v57 }
 0x4e9   :  { %v6560_v15 = vpop.f32.mrf.mxu1 }
 0x4ea   :  { %v6753_v32 = vpop.f32.mrf.mxu0  ;;  %v6976_v14 = vpack.c.bf16 %v6888_v52, %v6884_v0  ;;  %v6889_v27 = vmax.f32 %v6748_v51, 0.0  ;;  %v6561_v33 = vadd.f32 %v6560_v15, %v6368_v39  ;;  %v6752_v10 = vadd.f32 %v6751_v53, %v6559_v11  ;;  %v13524_v39 = vld [vmem:[#allocation87_spill] sm:$0xff] }
 0x4eb   :  { %v6562_v22 = vpop.f32.mrf.mxu1  ;;  %v6388_v25 = vadd.f32 %v13524_v39, %v12413_v28  ;;  %v6390_v15 = vadd.f32 %v12353_v8, %v12406_v57 }
 0x4ec   :  { %v6755_v3 = vpop.f32.mrf.mxu0  ;;  %v6977_v47 = vpack.c.bf16 %v6889_v27, %v6885_v6  ;;  %v6563_v1 = vadd.f32 %v6562_v22, %v6370_v26  ;;  %v6754_v56 = vadd.f32 %v6753_v32, %v6561_v33  ;;  %v6892_v63 = vmax.f32 %v6752_v10, 0.0 }
 0x4ed   :  { %v6564_v18 = vpop.f32.mrf.mxu1 }
 0x4ee   :  { %v6757_v37 = vpop.f32.mrf.mxu0  ;;  %v6756_v35 = vadd.f32 %v6755_v3, %v6563_v1  ;;  %v6565_v29 = vadd.f32 %v6564_v18, %v6372_v4  ;;  %7530 = vmatprep.mubr.bf16.mxu0 %v6977_v47  ;;  %v6893_v45 = vmax.f32 %v6754_v56, 0.0  ;;  %v6392_v47 = vadd.f32 %v12357_v17, %v12413_v28  ;;  %v13525_v56 = vld [vmem:[#allocation27_spill] sm:$0xff] }
 0x4ef   :  { %v6568_v20 = vpop.f32.mrf.mxu1  ;;  %7531 = vmatmul.mubr.bf16.gmra.mxu0 %v6976_v14 }
 0x4f0   :  { %v6761_v59 = vpop.f32.mrf.mxu0  ;;  %v6896_v46 = vmax.f32 %v6756_v35, 0.0  ;;  %v6758_v30 = vadd.f32 %v6757_v37, %v6565_v29  ;;  %v6569_v16 = vadd.f32 %v6568_v20, %v6376_v44  ;;  %v6396_v35 = vadd.f32 %v13525_v56, %v12406_v57  ;;  %v13529_v56 = vld [vmem:[#allocation26_spill] sm:$0xff] }
 0x4f1   :  { %v6570_v62 = vpop.f32.mrf.mxu1 }
 0x4f2   :  { %v6763_v48 = vpop.f32.mrf.mxu0  ;;  %v6980_v23 = vpack.c.bf16 %v6896_v46, %v6892_v63  ;;  %v6897_v43 = vmax.f32 %v6758_v30, 0.0  ;;  %v6571_v19 = vadd.f32 %v6570_v62, %v6378_v50  ;;  %v6762_v36 = vadd.f32 %v6761_v59, %v6569_v16  ;;  %v13526_v50 = vld [vmem:[#allocation86_spill] sm:$0xff] }
 0x4f3   :  { %v6572_v13 = vpop.f32.mrf.mxu1  ;;  %v6398_v20 = vadd.f32 %v13526_v50, %v12413_v28 }
 0x4f4   :  { %v6765_v60 = vpop.f32.mrf.mxu0  ;;  %v6981_v42 = vpack.c.bf16 %v6897_v43, %v6893_v45  ;;  %v6573_v55 = vadd.f32 %v6572_v13, %v6380_v2  ;;  %v6764_v21 = vadd.f32 %v6763_v48, %v6571_v19  ;;  %v6900_v52 = vmax.f32 %v6762_v36, 0.0 }
 0x4f5   :  { %v6574_v61 = vpop.f32.mrf.mxu1  ;;  %v6400_v2 = vadd.f32 %v12371_v7, %v12406_v57 }
 0x4f6   :  { %v6767_v41 = vpop.f32.mrf.mxu0  ;;  %v6766_v58 = vadd.f32 %v6765_v60, %v6573_v55  ;;  %v6575_v24 = vadd.f32 %v6574_v61, %v6382_v12  ;;  %7538 = vmatprep.mubr.bf16.mxu0 %v6981_v42  ;;  %v6901_v14 = vmax.f32 %v6764_v21, 0.0 }
 0x4f7   :  { %v6578_v53 = vpop.f32.mrf.mxu1  ;;  %7539 = vmatmul.mubr.bf16.gmra.mxu0 %v6980_v23 }
 0x4f8   :  { %v6771_v0 = vpop.f32.mrf.mxu0  ;;  %v6904_v51 = vmax.f32 %v6766_v58, 0.0  ;;  %v6768_v11 = vadd.f32 %v6767_v41, %v6575_v24  ;;  %v6579_v26 = vadd.f32 %v6578_v53, %v6386_v54  ;;  %v13527_v41 = vld [vmem:[#allocation24_spill] sm:$0xff]  ;;  %v13528_v58 = vld [vmem:[#allocation89_spill] sm:$0xff] }
 0x4f9   :  { %v6580_v32 = vpop.f32.mrf.mxu1  ;;  %v6406_v49 = vadd.f32 %v13527_v41, %v12406_v57  ;;  %v6408_v24 = vadd.f32 %v13528_v58, %v12413_v28 }
 0x4fa   :  { %v6773_v6 = vpop.f32.mrf.mxu0  ;;  %v6984_v27 = vpack.c.bf16 %v6904_v51, %v6900_v52  ;;  %v6905_v33 = vmax.f32 %v6768_v11, 0.0  ;;  %v6581_v22 = vadd.f32 %v6580_v32, %v6388_v25  ;;  %v6772_v1 = vadd.f32 %v6771_v0, %v6579_v26 }
 0x4fb   :  { %v6582_v3 = vpop.f32.mrf.mxu1  ;;  %v6410_v51 = vadd.f32 %v12389_v38, %v12406_v57 }
 0x4fc   :  { %v6775_v4 = vpop.f32.mrf.mxu0  ;;  %v6985_v10 = vpack.c.bf16 %v6905_v33, %v6901_v14  ;;  %v6583_v18 = vadd.f32 %v6582_v3, %v6390_v15  ;;  %v6774_v8 = vadd.f32 %v6773_v6, %v6581_v22  ;;  %v6908_v46 = vmax.f32 %v6772_v1, 0.0 }
 0x4fd   :  { %v6584_v37 = vpop.f32.mrf.mxu1  ;;  %v6412_v22 = vadd.f32 %v12393_v34, %v12413_v28 }
 0x4fe   :  { %v6777_v44 = vpop.f32.mrf.mxu0  ;;  %v6776_v29 = vadd.f32 %v6775_v4, %v6583_v18  ;;  %v6585_v9 = vadd.f32 %v6584_v37, %v6392_v47  ;;  %7546 = vmatprep.mubr.bf16.mxu0 %v6985_v10  ;;  %v6909_v45 = vmax.f32 %v6774_v8, 0.0  ;;  %v6416_v18 = vadd.f32 %v12396_v5, %v12406_v57 }
 0x4ff   :  { %v6588_v59 = vpop.f32.mrf.mxu1  ;;  %7547 = vmatmul.mubr.bf16.gmra.mxu0 %v6984_v27 }
 0x500   :  { %v6781_v63 = vpop.f32.mrf.mxu0  ;;  %v6912_v17 = vmax.f32 %v6776_v29, 0.0  ;;  %v6778_v30 = vadd.f32 %v6777_v44, %v6585_v9  ;;  %v6589_v16 = vadd.f32 %v6588_v59, %v6396_v35  ;;  %v6418_v35 = vadd.f32 %v13529_v56, %v12413_v28  ;;  %v13530_v59 = vld [vmem:[#allocation88_spill] sm:$0xff] }
 0x501   :  { %v6590_v62 = vpop.f32.mrf.mxu1 }
 0x502   :  { %v6783_v48 = vpop.f32.mrf.mxu0  ;;  %v6988_v23 = vpack.c.bf16 %v6912_v17, %v6908_v46  ;;  %v6913_v43 = vmax.f32 %v6778_v30, 0.0  ;;  %v6591_v19 = vadd.f32 %v6590_v62, %v6398_v20  ;;  %v6782_v42 = vadd.f32 %v6781_v63, %v6589_v16 }
 0x503   :  { %v6592_v13 = vpop.f32.mrf.mxu1  ;;  %v6420_v63 = vadd.f32 %v13530_v59, %v12406_v57 }
 0x504   :  { %v6785_v60 = vpop.f32.mrf.mxu0  ;;  %v6989_v12 = vpack.c.bf16 %v6913_v43, %v6909_v45  ;;  %v6593_v36 = vadd.f32 %v6592_v13, %v6400_v2  ;;  %v6784_v7 = vadd.f32 %v6783_v48, %v6591_v19  ;;  %v6916_v53 = vmax.f32 %v6782_v42, 0.0  ;;  %v13531_v45 = vld [vmem:[#allocation91_spill] sm:$0xff] }
 0x505   :  { %v6594_v55 = vpop.f32.mrf.mxu1 }
 0x506   :  { %v6787_v61 = vpop.f32.mrf.mxu0  ;;  %v6786_v54 = vadd.f32 %v6785_v60, %v6593_v36  ;;  %v6595_v21 = vadd.f32 %v6594_v55, %v6402_v31  ;;  %7554 = vmatprep.mubr.bf16.mxu0 %v6989_v12  ;;  %v6917_v15 = vmax.f32 %v6784_v7, 0.0 }
 0x507   :  { %v6598_v39 = vpop.f32.mrf.mxu1  ;;  %7555 = vmatmul.mubr.bf16.gmra.mxu0 %v6988_v23  ;;  %v6422_v23 = vadd.f32 %v13531_v45, %v12413_v28 }
 0x508   :  { %v6791_v25 = vpop.f32.mrf.mxu0  ;;  %v6920_v40 = vmax.f32 %v6786_v54, 0.0  ;;  %v6788_v0 = vadd.f32 %v6787_v61, %v6595_v21  ;;  %v6599_v52 = vadd.f32 %v6598_v39, %v6406_v49 }
 0x509   :  { %v6600_v11 = vpop.f32.mrf.mxu1 }
 0x50a   :  { %v6793_v26 = vpop.f32.mrf.mxu0  ;;  %v6992_v32 = vpack.c.bf16 %v6920_v40, %v6916_v53  ;;  %v6921_v6 = vmax.f32 %v6788_v0, 0.0  ;;  %v6601_v14 = vadd.f32 %v6600_v11, %v6408_v24  ;;  %v6792_v4 = vadd.f32 %v6791_v25, %v6599_v52 }
 0x50b   :  { %v6602_v27 = vpop.f32.mrf.mxu1 }
 0x50c   :  { %v6795_v33 = vpop.f32.mrf.mxu0  ;;  %v6993_v3 = vpack.c.bf16 %v6921_v6, %v6917_v15  ;;  %v6603_v47 = vadd.f32 %v6602_v27, %v6410_v51  ;;  %v6794_v38 = vadd.f32 %v6793_v26, %v6601_v14  ;;  %v6924_v9 = vmax.f32 %v6792_v4, 0.0 }
 0x50d   :  { %v6604_v10 = vpop.f32.mrf.mxu1 }
 0x50e   :  { %v6797_v1 = vpop.f32.mrf.mxu0  ;;  %v6796_v37 = vadd.f32 %v6795_v33, %v6603_v47  ;;  %v6605_v44 = vadd.f32 %v6604_v10, %v6412_v22  ;;  %7562 = vmatprep.mubr.bf16.mxu0 %v6993_v3  ;;  %v6925_v5 = vmax.f32 %v6794_v38, 0.0 }
 0x50f   :  { %v6608_v8 = vpop.f32.mrf.mxu1  ;;  %7563 = vmatmul.mubr.bf16.gmra.mxu0 %v6992_v32 }
 0x510   :  { %v6801_v29 = vpop.f32.mrf.mxu0  ;;  %v6928_v34 = vmax.f32 %v6796_v37, 0.0  ;;  %v6798_v50 = vadd.f32 %v6797_v1, %v6605_v44  ;;  %v6609_v20 = vadd.f32 %v6608_v8, %v6416_v18 }
 0x511   :  { %v6610_v46 = vpop.f32.mrf.mxu1 }
 0x512   :  { %v6803_v17 = vpop.f32.mrf.mxu0  ;;  %v6996_v30 = vpack.c.bf16 %v6928_v34, %v6924_v9  ;;  %v6929_v16 = vmax.f32 %v6798_v50, 0.0  ;;  %v6611_v2 = vadd.f32 %v6610_v46, %v6418_v35  ;;  %v6802_v19 = vadd.f32 %v6801_v29, %v6609_v20  ;;  %v12611_v34 = vld [vmem:[#allocation13] ss:$0 sm:$0xff] }
 0x513   :  { %v6612_v62 = vpop.f32.mrf.mxu1 }
 0x514   :  { %v6805_v48 = vpop.f32.mrf.mxu0  ;;  %v6997_v43 = vpack.c.bf16 %v6929_v16, %v6925_v5  ;;  %v6613_v13 = vadd.f32 %v6612_v62, %v6420_v63  ;;  %v6804_v31 = vadd.f32 %v6803_v17, %v6611_v2  ;;  %v6932_v55 = vmax.f32 %v6802_v19, 0.0 }
 0x515   :  { %v6614_v60 = vpop.f32.mrf.mxu1 }
 0x516   :  { %v6806_v12 = vadd.f32 %v6805_v48, %v6613_v13  ;;  %v6615_v42 = vadd.f32 %v6614_v60, %v6422_v23  ;;  %7570 = vmatprep.mubr.bf16.mxu0 %v6997_v43  ;;  %v6807_v57 = vpop.f32.mrf.mxu0  ;;  %v6933_v7 = vmax.f32 %v6804_v31, 0.0 }
 0x517   :  { %v8584_v36 = vpop.f32.mrf.mxu1  ;;  %7571 = vmatmul.mubr.bf16.gmra.mxu0 %v6996_v30 }
 0x518   :  { %v6936_v61 = vmax.f32 %v6806_v12, 0.0  ;;  %v6808_v41 = vadd.f32 %v6807_v57, %v6615_v42 }
 0x519   :  { %v8585_v49 = vpop.f32.mrf.mxu1 }
 0x51a   :  { %v7000_v54 = vpack.c.bf16 %v6936_v61, %v6932_v55  ;;  %v6937_v21 = vmax.f32 %v6808_v41, 0.0  ;;  %v8586_v9 = vadd.f32 %v8585_v49, %v8584_v36 }
 0x51b   :  { %v8587_v58 = vpop.f32.mrf.mxu1 }
 0x51c   :  { %v7001_v28 = vpack.c.bf16 %v6937_v21, %v6933_v7  ;;  %v7300_v63 = vadd.f32 %v8586_v9, %v12611_v34 }
 0x51d   :  { %v8588_v24 = vpop.f32.mrf.mxu1 }
 0x51e   :  { %7578 = vmatprep.mubr.bf16.mxu0 %v7001_v28  ;;  %v8589_v46 = vadd.f32 %v8588_v24, %v8587_v58 }
 0x51f   :  { %v8590_v39 = vpop.f32.mrf.mxu1  ;;  %7579 = vmatmul.mubr.bf16.gmra.mxu0 %v7000_v54 }
 0x520   :  { %v7303_v62 = vadd.f32 %v8589_v46, %v12611_v34 }
 0x521   :  { %v8591_v25 = vpop.f32.mrf.mxu1 }
 0x522   :  { %v8592_v48 = vadd.f32 %v8591_v25, %v8590_v39 }
 0x523   :  { %v8593_v53 = vpop.f32.mrf.mxu1 }
 0x524   :  { %v7308_v60 = vadd.f32 %v8592_v48, %v12611_v34 }
 0x525   :  { %v8594_v40 = vpop.f32.mrf.mxu1 }
 0x526   :  { %v8595_v31 = vadd.f32 %v8594_v40, %v8593_v53 }
 0x527   :  { %v8596_v0 = vpop.f32.mrf.mxu1 }
 0x528   :  { %v7311_v61 = vadd.f32 %v8595_v31, %v12611_v34 }
 0x529   :  { %v8597_v52 = vpop.f32.mrf.mxu1 }
 0x52a   :  { %v8598_v41 = vadd.f32 %v8597_v52, %v8596_v0 }
 0x52b   :  { %v8599_v51 = vpop.f32.mrf.mxu1 }
 0x52c   :  { %v7316_v28 = vadd.f32 %v8598_v41, %v12611_v34 }
 0x52d   :  { %v8600_v11 = vpop.f32.mrf.mxu1 }
 0x52e   :  { %v8601_v24 = vadd.f32 %v8600_v11, %v8599_v51 }
 0x52f   :  { %v12569_v26 = vpop.f32.mrf.mxu1 }
 0x530   :  { %v7319_v52 = vadd.f32 %v8601_v24, %v12611_v34 }
 0x531   :  { %v12571_v15 = vpop.f32.mrf.mxu1 }
 0x532   :  { %v8604_v9 = vadd.f32 %v12571_v15, %v12569_v26 }
 0x533   :  { %v12573_v32 = vpop.f32.mrf.mxu1 }
 0x534   :  { %v7324_v46 = vadd.f32 %v8604_v9, %v12611_v34 }
 0x535   :  { %v12575_v6 = vpop.f32.mrf.mxu1 }
 0x537   :  { %v12577_v14 = vpop.f32.mrf.mxu1 }
 0x539   :  { %v12579_v27 = vpop.f32.mrf.mxu1 }
 0x53b   :  { %v12581_v33 = vpop.f32.mrf.mxu1 }
 0x53d   :  { %v12583_v22 = vpop.f32.mrf.mxu1 }
 0x53f   :  { %v12585_v3 = vpop.f32.mrf.mxu1 }
 0x541   :  { %v12587_v4 = vpop.f32.mrf.mxu1 }
 0x543   :  { %v12589_v47 = vpop.f32.mrf.mxu1 }
 0x545   :  { %v12591_v10 = vpop.f32.mrf.mxu1 }
 0x547   :  { %v12593_v1 = vpop.f32.mrf.mxu1 }
 0x549   :  { %v12595_v18 = vpop.f32.mrf.mxu1 }
 0x54b   :  { %v12597_v38 = vpop.f32.mrf.mxu1 }
 0x54d   :  { %v12599_v37 = vpop.f32.mrf.mxu1 }
 0x54f   :  { %v12601_v44 = vpop.f32.mrf.mxu1 }
 0x551   :  { %v12603_v56 = vpop.f32.mrf.mxu1 }
 0x553   :  { %v12605_v35 = vpop.f32.mrf.mxu1 }
 0x555   :  { %v12607_v8 = vpop.f32.mrf.mxu1 }
 0x557   :  { %v12609_v29 = vpop.f32.mrf.mxu1 }
 0x559   :  { %v12613_v50 = vpop.f32.mrf.mxu1 }
 0x55b   :  { %v12616_v5 = vpop.f32.mrf.mxu1 }
 0x55d   :  { %v12622_v23 = vpop.f32.mrf.mxu1 }
 0x55f   :  { %v12628_v42 = vpop.f32.mrf.mxu1 }
 0x561   :  { %v12634_v7 = vpop.f32.mrf.mxu1 }
 0x563   :  { %v12640_v25 = vpop.f32.mrf.mxu1 }
 0x567   :  { %v8696_v20 = vpop.f32.mrf.mxu0 }
 0x569   :  { %v8697_v59 = vpop.f32.mrf.mxu0 }
 0x56a   :  { %v8698_v17 = vadd.f32 %v8697_v59, %v8696_v20  ;;  %v12648_v59 = vpop.f32.mrf.mxu1 }
 0x56b   :  { %v8699_v30 = vpop.f32.mrf.mxu0 }
 0x56c   :  { %v12618_v16 = vadd.f32 %v8698_v17, %v7300_v63  ;;  %v8607_v17 = vadd.f32 %v12575_v6, %v12573_v32 }
 0x56d   :  { %v8700_v2 = vpop.f32.mrf.mxu0 }
 0x56e   :  { %v8701_v45 = vadd.f32 %v8700_v2, %v8699_v30  ;;  %7587 = vmax.xlane.f32.xlu0 %v12618_v16  ;;  %v12656_v2 = vpop.f32.mrf.mxu1  ;;  %v7327_v48 = vadd.f32 %v8607_v17, %v12611_v34 }
 0x56f   :  { %v8702_v43 = vpop.f32.mrf.mxu0 }
 0x570   :  { %v12624_v19 = vadd.f32 %v8701_v45, %v7303_v62  ;;  %v8610_v45 = vadd.f32 %v12579_v27, %v12577_v14 }
 0x571   :  { %v8703_v13 = vpop.f32.mrf.mxu0 }
 0x572   :  { %v8704_v12 = vadd.f32 %v8703_v13, %v8702_v43  ;;  %7589 = vmax.xlane.f32.xlu0 %v12624_v19  ;;  %v12664_v13 = vpop.f32.mrf.mxu1  ;;  %v7332_v31 = vadd.f32 %v8610_v45, %v12611_v34 }
 0x573   :  { %v8705_v57 = vpop.f32.mrf.mxu0 }
 0x574   :  { %v12630_v36 = vadd.f32 %v8704_v12, %v7308_v60  ;;  %v8613_v12 = vadd.f32 %v12583_v22, %v12581_v33 }
 0x575   :  { %v8706_v55 = vpop.f32.mrf.mxu0 }
 0x576   :  { %v8707_v49 = vadd.f32 %v8706_v55, %v8705_v57  ;;  %7591 = vmax.xlane.f32.xlu1 %v12630_v36  ;;  %v12672_v55 = vpop.f32.mrf.mxu1  ;;  %v7335_v41 = vadd.f32 %v8613_v12, %v12611_v34 }
 0x577   :  { %v8708_v54 = vpop.f32.mrf.mxu0 }
 0x578   :  { %v12636_v21 = vadd.f32 %v8707_v49, %v7311_v61  ;;  %v8616_v49 = vadd.f32 %v12587_v4, %v12585_v3 }
 0x579   :  { %v8709_v58 = vpop.f32.mrf.mxu0 }
 0x57a   :  { %v8710_v39 = vadd.f32 %v8709_v58, %v8708_v54  ;;  %7593 = vmax.xlane.f32.xlu1 %v12636_v21  ;;  %v12680_v58 = vpop.f32.mrf.mxu1  ;;  %v7340_v24 = vadd.f32 %v8616_v49, %v12611_v34 }
 0x57b   :  { %v8711_v53 = vpop.f32.mrf.mxu0 }
 0x57c   :  { %v12642_v40 = vadd.f32 %v8710_v39, %v7316_v28  ;;  %v8619_v39 = vadd.f32 %v12591_v10, %v12589_v47 }
 0x57d   :  { %v8712_v0 = vpop.f32.mrf.mxu0 }
 0x57e   :  { %v8713_v20 = vadd.f32 %v8712_v0, %v8711_v53  ;;  %7595 = vmax.xlane.f32.xlu0 %v12642_v40  ;;  %v12688_v0 = vpop.f32.mrf.mxu1  ;;  %v7343_v9 = vadd.f32 %v8619_v39, %v12611_v34 }
 0x57f   :  { %v8714_v51 = vpop.f32.mrf.mxu0 }
 0x580   :  { %v12650_v11 = vadd.f32 %v8713_v20, %v7319_v52  ;;  %v8622_v20 = vadd.f32 %v12595_v18, %v12593_v1 }
 0x581   :  { %v8715_v63 = vpop.f32.mrf.mxu0 }
 0x582   :  { %v8716_v30 = vadd.f32 %v8715_v63, %v8714_v51  ;;  %7597 = vmax.xlane.f32.xlu1 %v12650_v11  ;;  %v12696_v63 = vpop.f32.mrf.mxu1  ;;  %v7348_v17 = vadd.f32 %v8622_v20, %v12611_v34 }
 0x583   :  { %v8717_v26 = vpop.f32.mrf.mxu0 }
 0x584   :  { %v12658_v15 = vadd.f32 %v8716_v30, %v7324_v46  ;;  %v8625_v30 = vadd.f32 %v12599_v37, %v12597_v38 }
 0x585   :  { %v8718_v62 = vpop.f32.mrf.mxu0 }
 0x586   :  { %v8719_v43 = vadd.f32 %v8718_v62, %v8717_v26  ;;  %7599 = vmax.xlane.f32.xlu0 %v12658_v15  ;;  %v12704_v62 = vpop.f32.mrf.mxu1  ;;  %v7351_v45 = vadd.f32 %v8625_v30, %v12611_v34 }
 0x587   :  { %v8720_v32 = vpop.f32.mrf.mxu0 }
 0x588   :  { %v12666_v6 = vadd.f32 %v8719_v43, %v7327_v48  ;;  %v8628_v43 = vadd.f32 %v12603_v56, %v12601_v44 }
 0x589   :  { %v8721_v60 = vpop.f32.mrf.mxu0 }
 0x58a   :  { %v8722_v57 = vadd.f32 %v8721_v60, %v8720_v32  ;;  %7601 = vmax.xlane.f32.xlu1 %v12666_v6  ;;  %v12712_v60 = vpop.f32.mrf.mxu1  ;;  %v7356_v12 = vadd.f32 %v8628_v43, %v12611_v34 }
 0x58b   :  { %v8723_v14 = vpop.f32.mrf.mxu0 }
 0x58c   :  { %v12674_v27 = vadd.f32 %v8722_v57, %v7332_v31  ;;  %v8631_v57 = vadd.f32 %v12607_v8, %v12605_v35 }
 0x58d   :  { %v8724_v61 = vpop.f32.mrf.mxu0 }
 0x58e   :  { %v8725_v54 = vadd.f32 %v8724_v61, %v8723_v14  ;;  %7603 = vmax.xlane.f32.xlu0 %v12674_v27  ;;  %v12720_v61 = vpop.f32.mrf.mxu1  ;;  %v7359_v49 = vadd.f32 %v8631_v57, %v12611_v34 }
 0x58f   :  { %v8726_v33 = vpop.f32.mrf.mxu0 }
 0x590   :  { %v12682_v22 = vadd.f32 %v8725_v54, %v7335_v41  ;;  %v8634_v54 = vadd.f32 %v12613_v50, %v12609_v29 }
 0x591   :  { %v8727_v28 = vpop.f32.mrf.mxu0 }
 0x592   :  { %v8728_v53 = vadd.f32 %v8727_v28, %v8726_v33  ;;  %7605 = vmax.xlane.f32.xlu1 %v12682_v22  ;;  %v8657_v28 = vpop.f32.mrf.mxu1  ;;  %v7364_v39 = vadd.f32 %v8634_v54, %v12611_v34 }
 0x593   :  { %v8729_v3 = vpop.f32.mrf.mxu0 }
 0x594   :  { %v12690_v4 = vadd.f32 %v8728_v53, %v7340_v24  ;;  %v8637_v53 = vadd.f32 %v12622_v23, %v12616_v5 }
 0x595   :  { %v8730_v52 = vpop.f32.mrf.mxu0 }
 0x596   :  { %v8731_v51 = vadd.f32 %v8730_v52, %v8729_v3  ;;  %7607 = vmax.xlane.f32.xlu0 %v12690_v4  ;;  %v8659_v52 = vpop.f32.mrf.mxu1  ;;  %v7367_v50 = vadd.f32 %v8637_v53, %v12611_v34 }
 0x597   :  { %v8732_v47 = vpop.f32.mrf.mxu0 }
 0x598   :  { %v12698_v10 = vadd.f32 %v8731_v51, %v7343_v9  ;;  %v8640_v51 = vadd.f32 %v12634_v7, %v12628_v42 }
 0x599   :  { %v8733_v46 = vpop.f32.mrf.mxu0 }
 0x59a   :  { %v8734_v26 = vadd.f32 %v8733_v46, %v8732_v47  ;;  %7609 = vmax.xlane.f32.xlu1 %v12698_v10  ;;  %v8660_v46 = vpop.f32.mrf.mxu1  ;;  %v7372_v23 = vadd.f32 %v8640_v51, %v12611_v34 }
 0x59b   :  { %v8735_v1 = vpop.f32.mrf.mxu0 }
 0x59c   :  { %v12706_v18 = vadd.f32 %v8734_v26, %v7348_v17  ;;  %v8643_v26 = vadd.f32 %v12648_v59, %v12640_v25 }
 0x59d   :  { %v8736_v48 = vpop.f32.mrf.mxu0 }
 0x59e   :  { %v8737_v32 = vadd.f32 %v8736_v48, %v8735_v1  ;;  %7611 = vmax.xlane.f32.xlu0 %v12706_v18  ;;  %v8662_v48 = vpop.f32.mrf.mxu1  ;;  %v7375_v7 = vadd.f32 %v8643_v26, %v12611_v34 }
 0x59f   :  { %v8738_v38 = vpop.f32.mrf.mxu0 }
 0x5a0   :  { %v12714_v37 = vadd.f32 %v8737_v32, %v7351_v45  ;;  %v8646_v32 = vadd.f32 %v12664_v13, %v12656_v2 }
 0x5a1   :  { %v8739_v31 = vpop.f32.mrf.mxu0 }
 0x5a2   :  { %v8740_v14 = vadd.f32 %v8739_v31, %v8738_v38  ;;  %7613 = vmax.xlane.f32.xlu1 %v12714_v37  ;;  %v8663_v31 = vpop.f32.mrf.mxu1  ;;  %v7380_v59 = vadd.f32 %v8646_v32, %v12611_v34 }
 0x5a3   :  { %v8741_v44 = vpop.f32.mrf.mxu0 }
 0x5a4   :  { %v12722_v56 = vadd.f32 %v8740_v14, %v7356_v12  ;;  %v8649_v14 = vadd.f32 %v12680_v58, %v12672_v55 }
 0x5a5   :  { %v8742_v41 = vpop.f32.mrf.mxu0 }
 0x5a6   :  { %v8743_v33 = vadd.f32 %v8742_v41, %v8741_v44  ;;  %7615 = vmax.xlane.f32.xlu0 %v12722_v56  ;;  %v8665_v41 = vpop.f32.mrf.mxu1  ;;  %v7383_v13 = vadd.f32 %v8649_v14, %v12611_v34 }
 0x5a7   :  { %v8744_v24 = vpop.f32.mrf.mxu0 }
 0x5a8   :  { %v12728_v35 = vadd.f32 %v8743_v33, %v7359_v49  ;;  %v8652_v33 = vadd.f32 %v12696_v63, %v12688_v0 }
 0x5a9   :  { %v8745_v8 = vpop.f32.mrf.mxu0 }
 0x5aa   :  { %v8746_v3 = vadd.f32 %v8745_v8, %v8744_v24  ;;  %7617 = vmax.xlane.f32.xlu1 %v12728_v35  ;;  %v8666_v8 = vpop.f32.mrf.mxu1  ;;  %v7388_v58 = vadd.f32 %v8652_v33, %v12611_v34 }
 0x5ab   :  { %v8747_v9 = vpop.f32.mrf.mxu0 }
 0x5ac   :  { %v12734_v20 = vadd.f32 %v8746_v3, %v7364_v39  ;;  %v8655_v3 = vadd.f32 %v12712_v60, %v12704_v62 }
 0x5ad   :  { %v8748_v29 = vpop.f32.mrf.mxu0 }
 0x5ae   :  { %v8749_v47 = vadd.f32 %v8748_v29, %v8747_v9  ;;  %7619 = vmax.xlane.f32.xlu0 %v12734_v20  ;;  %v8668_v29 = vpop.f32.mrf.mxu1  ;;  %v7391_v63 = vadd.f32 %v8655_v3, %v12611_v34 }
 0x5af   :  { %v8750_v17 = vpop.f32.mrf.mxu0 }
 0x5b0   :  { %v12740_v30 = vadd.f32 %v8749_v47, %v7367_v50  ;;  %v8658_v47 = vadd.f32 %v8657_v28, %v12720_v61  ;;  %v8664_v28 = vadd.f32 %v8663_v31, %v8662_v48 }
 0x5b1   :  { %v8751_v5 = vpop.f32.mrf.mxu0 }
 0x5b2   :  { %v8752_v1 = vadd.f32 %v8751_v5, %v8750_v17  ;;  %7621 = vmax.xlane.f32.xlu1 %v12740_v30  ;;  %v8669_v5 = vpop.f32.mrf.mxu1  ;;  %v7396_v60 = vadd.f32 %v8658_v47, %v12611_v34 }
 0x5b3   :  { %v8753_v45 = vpop.f32.mrf.mxu0  ;;  %v8670_v31 = vadd.f32 %v8669_v5, %v8668_v29 }
 0x5b4   :  { %v12746_v43 = vadd.f32 %v8752_v1, %v7372_v23  ;;  %v8661_v1 = vadd.f32 %v8660_v46, %v8659_v52  ;;  %v7404_v52 = vadd.f32 %v8664_v28, %v12611_v34  ;;  %v8667_v46 = vadd.f32 %v8666_v8, %v8665_v41 }
 0x5b5   :  { %v8754_v42 = vpop.f32.mrf.mxu0  ;;  %v7412_v41 = vadd.f32 %v8670_v31, %v12611_v34 }
 0x5b6   :  { %v8755_v38 = vadd.f32 %v8754_v42, %v8753_v45  ;;  %7623 = vmax.xlane.f32.xlu0 %v12746_v43  ;;  %v8671_v42 = vpop.f32.mrf.mxu1  ;;  %v7399_v61 = vadd.f32 %v8661_v1, %v12611_v34  ;;  %v7407_v48 = vadd.f32 %v8667_v46, %v12611_v34 }
 0x5b7   :  { %v8756_v12 = vpop.f32.mrf.mxu0 }
 0x5b8   :  { %v12752_v57 = vadd.f32 %v8755_v38, %v7375_v7 }
 0x5b9   :  { %v8757_v25 = vpop.f32.mrf.mxu0 }
 0x5ba   :  { %v8758_v44 = vadd.f32 %v8757_v25, %v8756_v12  ;;  %7625 = vmax.xlane.f32.xlu1 %v12752_v57  ;;  %v8672_v25 = vpop.f32.mrf.mxu1 }
 0x5bb   :  { %v8759_v49 = vpop.f32.mrf.mxu0  ;;  %v8673_v8 = vadd.f32 %v8672_v25, %v8671_v42 }
 0x5bc   :  { %v12758_v54 = vadd.f32 %v8758_v44, %v7380_v59 }
 0x5bd   :  { %v8760_v2 = vpop.f32.mrf.mxu0  ;;  %v7415_v29 = vadd.f32 %v8673_v8, %v12611_v34 }
 0x5be   :  { %v8761_v24 = vadd.f32 %v8760_v2, %v8759_v49  ;;  %7627 = vmax.xlane.f32.xlu0 %v12758_v54  ;;  %v8674_v2 = vpop.f32.mrf.mxu1 }
 0x5bf   :  { %v8762_v39 = vpop.f32.mrf.mxu0 }
 0x5c0   :  { %v12764_v53 = vadd.f32 %v8761_v24, %v7383_v13 }
 0x5c1   :  { %v8763_v55 = vpop.f32.mrf.mxu0 }
 0x5c2   :  { %v8764_v9 = vadd.f32 %v8763_v55, %v8762_v39  ;;  %7629 = vmax.xlane.f32.xlu1 %v12764_v53  ;;  %v8675_v55 = vpop.f32.mrf.mxu1 }
 0x5c3   :  { %v8765_v50 = vpop.f32.mrf.mxu0  ;;  %v8676_v5 = vadd.f32 %v8675_v55, %v8674_v2 }
 0x5c4   :  { %v12770_v51 = vadd.f32 %v8764_v9, %v7388_v58 }
 0x5c5   :  { %v8766_v0 = vpop.f32.mrf.mxu0  ;;  %v7420_v42 = vadd.f32 %v8676_v5, %v12611_v34 }
 0x5c6   :  { %v8767_v17 = vadd.f32 %v8766_v0, %v8765_v50  ;;  %7631 = vmax.xlane.f32.xlu0 %v12770_v51  ;;  %v8677_v0 = vpop.f32.mrf.mxu1 }
 0x5c7   :  { %v8768_v23 = vpop.f32.mrf.mxu0 }
 0x5c8   :  { %v12775_v26 = vadd.f32 %v8767_v17, %v7391_v63 }
 0x5c9   :  { %v8769_v62 = vpop.f32.mrf.mxu0 }
 0x5ca   :  { %v8770_v45 = vadd.f32 %v8769_v62, %v8768_v23  ;;  %7633 = vmax.xlane.f32.xlu1 %v12775_v26  ;;  %v8678_v62 = vpop.f32.mrf.mxu1 }
 0x5cb   :  { %v8771_v7 = vpop.f32.mrf.mxu0 }
 0x5cc   :  { %v12779_v32 = vadd.f32 %v8770_v45, %v7396_v60 }
 0x5cd   :  { %v8772_v38 = vpop.f32.mrf.mxu0 }
 0x5ce   :  { %v8773_v12 = vadd.f32 %v8772_v38, %v8771_v7  ;;  %7635 = vmax.xlane.f32.xlu0 %v12779_v32  ;;  %v8679_v7 = vadd.f32 %v8678_v62, %v8677_v0 }
 0x5cf   :  { %v8774_v59 = vpop.f32.mrf.mxu0 }
 0x5d0   :  { %v12783_v14 = vadd.f32 %v8773_v12, %v7399_v61  ;;  %v7423_v25 = vadd.f32 %v8679_v7, %v12611_v34 }
 0x5d1   :  { %v8775_v44 = vpop.f32.mrf.mxu0 }
 0x5d2   :  { %v8776_v49 = vadd.f32 %v8775_v44, %v8774_v59  ;;  %7637 = vmax.xlane.f32.xlu1 %v12783_v14 }
 0x5d3   :  { %v8777_v13 = vpop.f32.mrf.mxu0 }
 0x5d4   :  { %v12787_v33 = vadd.f32 %v8776_v49, %v7404_v52 }
 0x5d5   :  { %v8778_v24 = vpop.f32.mrf.mxu0 }
 0x5d6   :  { %v8779_v39 = vadd.f32 %v8778_v24, %v8777_v13  ;;  %7639 = vmax.xlane.f32.xlu0 %v12787_v33 }
 0x5d7   :  { %v8780_v58 = vpop.f32.mrf.mxu0 }
 0x5d8   :  { %v12791_v3 = vadd.f32 %v8779_v39, %v7407_v48 }
 0x5d9   :  { %v8781_v9 = vpop.f32.mrf.mxu0 }
 0x5da   :  { %v8782_v50 = vadd.f32 %v8781_v9, %v8780_v58  ;;  %7641 = vmax.xlane.f32.xlu1 %v12791_v3 }
 0x5db   :  { %v8783_v63 = vpop.f32.mrf.mxu0 }
 0x5dc   :  { %v12795_v47 = vadd.f32 %v8782_v50, %v7412_v41 }
 0x5dd   :  { %v8784_v17 = vpop.f32.mrf.mxu0 }
 0x5de   :  { %v8785_v23 = vadd.f32 %v8784_v17, %v8783_v63  ;;  %7643 = vmax.xlane.f32.xlu0 %v12795_v47 }
 0x5df   :  { %v8786_v60 = vpop.f32.mrf.mxu0 }
 0x5e0   :  { %v12799_v1 = vadd.f32 %v8785_v23, %v7415_v29 }
 0x5e1   :  { %v8787_v45 = vpop.f32.mrf.mxu0 }
 0x5e2   :  { %v8788_v38 = vadd.f32 %v8787_v45, %v8786_v60  ;;  %7645 = vmax.xlane.f32.xlu1 %v12799_v1 }
 0x5e3   :  { %v8789_v61 = vpop.f32.mrf.mxu0 }
 0x5e4   :  { %v12803_v28 = vadd.f32 %v8788_v38, %v7420_v42 }
 0x5e5   :  { %v8790_v12 = vpop.f32.mrf.mxu0 }
 0x5e6   :  { %v8791_v59 = vadd.f32 %v8790_v12, %v8789_v61  ;;  %7647 = vmax.xlane.f32.xlu0 %v12803_v28 }
 0x5e8   :  { %v12807_v44 = vadd.f32 %v8791_v59, %v7423_v25 }
 0x5ea   :  { %7649 = vmax.xlane.f32.xlu1 %v12807_v44 }
 0x5f7   :  { %v7588_v52 = vpop.xlane.xlu0 %7587 }
 0x5f8   :  { %v12811_v46 = vsub.f32 %v12618_v16, %v7588_v52 }
 0x5fa   :  { %v7683_v49 = vmul.f32 1.442695, %v12811_v46 }
 0x5fb   :  { %v7590_v2 = vpop.xlane.xlu0 %7589 }
 0x5fc   :  { %10120 = vpow2.f32 %v7683_v49  ;;  %v12815_v13 = vsub.f32 %v12624_v19, %v7590_v2 }
 0x5fe   :  { %v7685_v34 = vmul.f32 1.442695, %v12815_v13 }
 0x5ff   :  { %v7592_v24 = vpop.xlane.xlu1 %7591 }
 0x600   :  { %10122 = vpow2.f32 %v7685_v34  ;;  %v12819_v48 = vsub.f32 %v12630_v36, %v7592_v24 }
 0x602   :  { %v7687_v31 = vmul.f32 1.442695, %v12819_v48 }
 0x603   :  { %v7594_v39 = vpop.xlane.xlu1 %7593 }
 0x604   :  { %10124 = vpow2.f32 %v7687_v31  ;;  %v12823_v16 = vsub.f32 %v12636_v21, %v7594_v39 }
 0x606   :  { %v7689_v55 = vmul.f32 1.442695, %v12823_v16 }
 0x607   :  { %v7596_v58 = vpop.xlane.xlu0 %7595 }
 0x608   :  { %10126 = vpow2.f32 %v7689_v55  ;;  %v12827_v19 = vsub.f32 %v12642_v40, %v7596_v58 }
 0x609   :  { %v10121_v9 = vpop.eup %10120 }
 0x60a   :  { %v7691_v41 = vmul.f32 1.442695, %v12827_v19  ;;  %7747 = vadd.xlane.f32.xlu0 %v10121_v9 }
 0x60b   :  { %v7598_v36 = vpop.xlane.xlu1 %7597 }
 0x60c   :  { %10128 = vpow2.f32 %v7691_v41  ;;  %v12831_v8 = vsub.f32 %v12650_v11, %v7598_v36 }
 0x60d   :  { %v10123_v50 = vpop.eup %10122 }
 0x60e   :  { %v7693_v21 = vmul.f32 1.442695, %v12831_v8  ;;  %7749 = vadd.xlane.f32.xlu1 %v10123_v50 }
 0x60f   :  { %v7600_v0 = vpop.xlane.xlu0 %7599 }
 0x610   :  { %10130 = vpow2.f32 %v7693_v21  ;;  %v12835_v63 = vsub.f32 %v12658_v15, %v7600_v0 }
 0x611   :  { %v10125_v40 = vpop.eup %10124 }
 0x612   :  { %v7695_v17 = vmul.f32 1.442695, %v12835_v63  ;;  %7751 = vadd.xlane.f32.xlu0 %v10125_v40 }
 0x613   :  { %v7602_v29 = vpop.xlane.xlu1 %7601 }
 0x614   :  { %10132 = vpow2.f32 %v7695_v17  ;;  %v12839_v5 = vsub.f32 %v12666_v6, %v7602_v29 }
 0x615   :  { %v10127_v11 = vpop.eup %10126 }
 0x616   :  { %v7697_v23 = vmul.f32 1.442695, %v12839_v5  ;;  %7753 = vadd.xlane.f32.xlu1 %v10127_v11 }
 0x617   :  { %v7604_v62 = vpop.xlane.xlu0 %7603 }
 0x618   :  { %10134 = vpow2.f32 %v7697_v23  ;;  %v12843_v60 = vsub.f32 %v12674_v27, %v7604_v62 }
 0x619   :  { %v10129_v15 = vpop.eup %10128 }
 0x61a   :  { %v7699_v45 = vmul.f32 1.442695, %v12843_v60  ;;  %7755 = vadd.xlane.f32.xlu0 %v10129_v15 }
 0x61b   :  { %v7606_v42 = vpop.xlane.xlu1 %7605 }
 0x61c   :  { %10136 = vpow2.f32 %v7699_v45  ;;  %v12847_v7 = vsub.f32 %v12682_v22, %v7606_v42 }
 0x61d   :  { %v10131_v6 = vpop.eup %10130 }
 0x61e   :  { %v7701_v38 = vmul.f32 1.442695, %v12847_v7  ;;  %7757 = vadd.xlane.f32.xlu1 %v10131_v6 }
 0x61f   :  { %v7608_v61 = vpop.xlane.xlu0 %7607 }
 0x620   :  { %10138 = vpow2.f32 %v7701_v38  ;;  %v12851_v12 = vsub.f32 %v12690_v4, %v7608_v61 }
 0x621   :  { %v10133_v27 = vpop.eup %10132 }
 0x622   :  { %v7703_v25 = vmul.f32 1.442695, %v12851_v12  ;;  %7759 = vadd.xlane.f32.xlu0 %v10133_v27 }
 0x623   :  { %v7610_v59 = vpop.xlane.xlu1 %7609 }
 0x624   :  { %10140 = vpow2.f32 %v7703_v25  ;;  %v12855_v52 = vsub.f32 %v12698_v10, %v7610_v59 }
 0x625   :  { %v10135_v22 = vpop.eup %10134 }
 0x626   :  { %v7705_v49 = vmul.f32 1.442695, %v12855_v52  ;;  %7761 = vadd.xlane.f32.xlu1 %v10135_v22 }
 0x627   :  { %v7612_v2 = vpop.xlane.xlu0 %7611 }
 0x628   :  { %10142 = vpow2.f32 %v7705_v49  ;;  %v12859_v34 = vsub.f32 %v12706_v18, %v7612_v2 }
 0x629   :  { %v10137_v4 = vpop.eup %10136 }
 0x62a   :  { %v7707_v24 = vmul.f32 1.442695, %v12859_v34  ;;  %7763 = vadd.xlane.f32.xlu0 %v10137_v4 }
 0x62b   :  { %v7614_v31 = vpop.xlane.xlu1 %7613 }
 0x62c   :  { %10144 = vpow2.f32 %v7707_v24  ;;  %v12863_v39 = vsub.f32 %v12714_v37, %v7614_v31 }
 0x62d   :  { %v10139_v10 = vpop.eup %10138 }
 0x62e   :  { %v7709_v55 = vmul.f32 1.442695, %v12863_v39  ;;  %7765 = vadd.xlane.f32.xlu1 %v10139_v10 }
 0x62f   :  { %v7616_v58 = vpop.xlane.xlu0 %7615 }
 0x630   :  { %10146 = vpow2.f32 %v7709_v55  ;;  %v12867_v9 = vsub.f32 %v12722_v56, %v7616_v58 }
 0x631   :  { %v10141_v18 = vpop.eup %10140 }
 0x632   :  { %v7711_v41 = vmul.f32 1.442695, %v12867_v9  ;;  %7767 = vadd.xlane.f32.xlu0 %v10141_v18 }
 0x633   :  { %v7618_v36 = vpop.xlane.xlu1 %7617 }
 0x634   :  { %10148 = vpow2.f32 %v7711_v41  ;;  %v12871_v50 = vsub.f32 %v12728_v35, %v7618_v36 }
 0x635   :  { %v10143_v37 = vpop.eup %10142 }
 0x636   :  { %v7713_v21 = vmul.f32 1.442695, %v12871_v50  ;;  %7769 = vadd.xlane.f32.xlu1 %v10143_v37 }
 0x637   :  { %v7620_v0 = vpop.xlane.xlu0 %7619 }
 0x638   :  { %10150 = vpow2.f32 %v7713_v21  ;;  %v12875_v40 = vsub.f32 %v12734_v20, %v7620_v0 }
 0x639   :  { %v10145_v56 = vpop.eup %10144 }
 0x63a   :  { %v7715_v17 = vmul.f32 1.442695, %v12875_v40  ;;  %7771 = vadd.xlane.f32.xlu0 %v10145_v56 }
 0x63b   :  { %v7622_v29 = vpop.xlane.xlu1 %7621 }
 0x63c   :  { %10152 = vpow2.f32 %v7715_v17  ;;  %v12879_v11 = vsub.f32 %v12740_v30, %v7622_v29 }
 0x63d   :  { %v10147_v35 = vpop.eup %10146 }
 0x63e   :  { %v7717_v23 = vmul.f32 1.442695, %v12879_v11  ;;  %7773 = vadd.xlane.f32.xlu1 %v10147_v35 }
 0x63f   :  { %v7624_v62 = vpop.xlane.xlu0 %7623 }
 0x640   :  { %10154 = vpow2.f32 %v7717_v23  ;;  %v12883_v15 = vsub.f32 %v12746_v43, %v7624_v62 }
 0x641   :  { %v10149_v20 = vpop.eup %10148 }
 0x642   :  { %v7719_v45 = vmul.f32 1.442695, %v12883_v15  ;;  %7775 = vadd.xlane.f32.xlu0 %v10149_v20 }
 0x643   :  { %v7626_v42 = vpop.xlane.xlu1 %7625 }
 0x644   :  { %10156 = vpow2.f32 %v7719_v45  ;;  %v12887_v6 = vsub.f32 %v12752_v57, %v7626_v42 }
 0x645   :  { %v10151_v30 = vpop.eup %10150 }
 0x646   :  { %v7721_v38 = vmul.f32 1.442695, %v12887_v6  ;;  %7777 = vadd.xlane.f32.xlu1 %v10151_v30 }
 0x647   :  { %v7628_v61 = vpop.xlane.xlu0 %7627 }
 0x648   :  { %10158 = vpow2.f32 %v7721_v38  ;;  %v12891_v27 = vsub.f32 %v12758_v54, %v7628_v61 }
 0x649   :  { %v10153_v43 = vpop.eup %10152 }
 0x64a   :  { %v7723_v25 = vmul.f32 1.442695, %v12891_v27  ;;  %7779 = vadd.xlane.f32.xlu0 %v10153_v43 }
 0x64b   :  { %v7630_v59 = vpop.xlane.xlu1 %7629 }
 0x64c   :  { %10160 = vpow2.f32 %v7723_v25  ;;  %v12895_v22 = vsub.f32 %v12764_v53, %v7630_v59 }
 0x64d   :  { %v10155_v57 = vpop.eup %10154 }
 0x64e   :  { %v7725_v49 = vmul.f32 1.442695, %v12895_v22  ;;  %7781 = vadd.xlane.f32.xlu1 %v10155_v57 }
 0x64f   :  { %v7632_v2 = vpop.xlane.xlu0 %7631 }
 0x650   :  { %10162 = vpow2.f32 %v7725_v49  ;;  %v12899_v4 = vsub.f32 %v12770_v51, %v7632_v2 }
 0x651   :  { %v10157_v54 = vpop.eup %10156 }
 0x652   :  { %v7727_v24 = vmul.f32 1.442695, %v12899_v4  ;;  %7783 = vadd.xlane.f32.xlu0 %v10157_v54 }
 0x653   :  { %v7634_v31 = vpop.xlane.xlu1 %7633 }
 0x654   :  { %10164 = vpow2.f32 %v7727_v24  ;;  %v12903_v10 = vsub.f32 %v12775_v26, %v7634_v31 }
 0x655   :  { %v10159_v53 = vpop.eup %10158 }
 0x656   :  { %v7729_v55 = vmul.f32 1.442695, %v12903_v10  ;;  %7785 = vadd.xlane.f32.xlu1 %v10159_v53 }
 0x657   :  { %v7636_v58 = vpop.xlane.xlu0 %7635 }
 0x658   :  { %10166 = vpow2.f32 %v7729_v55  ;;  %v12907_v18 = vsub.f32 %v12779_v32, %v7636_v58 }
 0x659   :  { %v10161_v51 = vpop.eup %10160 }
 0x65a   :  { %v7731_v41 = vmul.f32 1.442695, %v12907_v18  ;;  %7787 = vadd.xlane.f32.xlu0 %v10161_v51 }
 0x65b   :  { %v7638_v36 = vpop.xlane.xlu1 %7637 }
 0x65c   :  { %10168 = vpow2.f32 %v7731_v41  ;;  %v12911_v37 = vsub.f32 %v12783_v14, %v7638_v36 }
 0x65d   :  { %v10163_v26 = vpop.eup %10162 }
 0x65e   :  { %v7733_v21 = vmul.f32 1.442695, %v12911_v37  ;;  %7789 = vadd.xlane.f32.xlu1 %v10163_v26 }
 0x65f   :  { %v7640_v0 = vpop.xlane.xlu0 %7639 }
 0x660   :  { %10170 = vpow2.f32 %v7733_v21  ;;  %v12915_v56 = vsub.f32 %v12787_v33, %v7640_v0 }
 0x661   :  { %v10165_v32 = vpop.eup %10164 }
 0x662   :  { %v7735_v17 = vmul.f32 1.442695, %v12915_v56  ;;  %7791 = vadd.xlane.f32.xlu0 %v10165_v32 }
 0x663   :  { %v7642_v29 = vpop.xlane.xlu1 %7641 }
 0x664   :  { %10172 = vpow2.f32 %v7735_v17  ;;  %v12919_v35 = vsub.f32 %v12791_v3, %v7642_v29 }
 0x665   :  { %v10167_v14 = vpop.eup %10166 }
 0x666   :  { %v7737_v23 = vmul.f32 1.442695, %v12919_v35  ;;  %7793 = vadd.xlane.f32.xlu1 %v10167_v14 }
 0x667   :  { %v7644_v62 = vpop.xlane.xlu0 %7643 }
 0x668   :  { %10174 = vpow2.f32 %v7737_v23  ;;  %v12923_v20 = vsub.f32 %v12795_v47, %v7644_v62 }
 0x669   :  { %v10169_v33 = vpop.eup %10168 }
 0x66a   :  { %v7739_v45 = vmul.f32 1.442695, %v12923_v20  ;;  %7795 = vadd.xlane.f32.xlu0 %v10169_v33 }
 0x66b   :  { %v7646_v42 = vpop.xlane.xlu1 %7645 }
 0x66c   :  { %10176 = vpow2.f32 %v7739_v45  ;;  %v12927_v30 = vsub.f32 %v12799_v1, %v7646_v42 }
 0x66d   :  { %v10171_v3 = vpop.eup %10170 }
 0x66e   :  { %v7741_v38 = vmul.f32 1.442695, %v12927_v30  ;;  %7797 = vadd.xlane.f32.xlu1 %v10171_v3 }
 0x66f   :  { %v7648_v61 = vpop.xlane.xlu0 %7647 }
 0x670   :  { %10178 = vpow2.f32 %v7741_v38  ;;  %v12931_v43 = vsub.f32 %v12803_v28, %v7648_v61 }
 0x671   :  { %v10173_v47 = vpop.eup %10172 }
 0x672   :  { %v7743_v25 = vmul.f32 1.442695, %v12931_v43  ;;  %7799 = vadd.xlane.f32.xlu0 %v10173_v47 }
 0x673   :  { %v7650_v59 = vpop.xlane.xlu1 %7649 }
 0x674   :  { %10180 = vpow2.f32 %v7743_v25  ;;  %v12935_v57 = vsub.f32 %v12807_v44, %v7650_v59 }
 0x675   :  { %v10175_v1 = vpop.eup %10174 }
 0x676   :  { %v7745_v49 = vmul.f32 1.442695, %v12935_v57  ;;  %7801 = vadd.xlane.f32.xlu1 %v10175_v1 }
 0x678   :  { %10182 = vpow2.f32 %v7745_v49 }
 0x679   :  { %v10177_v2 = vpop.eup %10176 }
 0x67a   :  { %7803 = vadd.xlane.f32.xlu0 %v10177_v2 }
 0x67d   :  { %v10179_v54 = vpop.eup %10178 }
 0x67e   :  { %7805 = vadd.xlane.f32.xlu1 %v10179_v54 }
 0x681   :  { %v10181_v28 = vpop.eup %10180 }
 0x682   :  { %7807 = vadd.xlane.f32.xlu0 %v10181_v28 }
 0x685   :  { %v10183_v24 = vpop.eup %10182 }
 0x686   :  { %7809 = vadd.xlane.f32.xlu1 %v10183_v24 }
 0x693   :  { %v7748_v31 = vpop.xlane.xlu0 %7747 }
 0x694   :  { %10184 = vlog2.f32 %v7748_v31 }
 0x697   :  { %v7750_v53 = vpop.xlane.xlu1 %7749 }
 0x698   :  { %10186 = vlog2.f32 %v7750_v53 }
 0x69b   :  { %v7752_v55 = vpop.xlane.xlu0 %7751 }
 0x69c   :  { %10188 = vlog2.f32 %v7752_v55 }
 0x69f   :  { %v7754_v44 = vpop.xlane.xlu1 %7753 }
 0x6a0   :  { %10190 = vlog2.f32 %v7754_v44 }
 0x6a1   :  { %v10185_v58 = vpop.eup %10184 }
 0x6a2   :  { %v7812_v51 = vmul.f32 0.6931472, %v10185_v58 }
 0x6a3   :  { %v7756_v41 = vpop.xlane.xlu0 %7755 }
 0x6a4   :  { %v7875_v36 = vsub.f32 %v12811_v46, %v7812_v51  ;;  %10192 = vlog2.f32 %v7756_v41 }
 0x6a5   :  { %v10187_v26 = vpop.eup %10186 }
 0x6a6   :  { %7907 = vst [vmem:[#allocation14] sm:$0xff] %v7875_v36  ;;  %v7814_v21 = vmul.f32 0.6931472, %v10187_v26 }
 0x6a7   :  { %v7758_v0 = vpop.xlane.xlu1 %7757 }
 0x6a8   :  { %v7876_v32 = vsub.f32 %v12815_v13, %v7814_v21  ;;  %10194 = vlog2.f32 %v7758_v0 }
 0x6a9   :  { %v10189_v17 = vpop.eup %10188 }
 0x6aa   :  { %7908 = vst [vmem:[#allocation14 + $0x8] sm:$0xff] %v7876_v32  ;;  %v7816_v29 = vmul.f32 0.6931472, %v10189_v17 }
 0x6ab   :  { %v7760_v14 = vpop.xlane.xlu0 %7759 }
 0x6ac   :  { %v7877_v23 = vsub.f32 %v12819_v48, %v7816_v29  ;;  %10196 = vlog2.f32 %v7760_v14 }
 0x6ad   :  { %v10191_v62 = vpop.eup %10190 }
 0x6ae   :  { %7909 = vst [vmem:[#allocation14 + $0x10] sm:$0xff] %v7877_v23  ;;  %v7818_v33 = vmul.f32 0.6931472, %v10191_v62 }
 0x6af   :  { %v7762_v45 = vpop.xlane.xlu1 %7761 }
 0x6b0   :  { %v7878_v46 = vsub.f32 %v12823_v16, %v7818_v33  ;;  %10198 = vlog2.f32 %v7762_v45 }
 0x6b1   :  { %v10193_v42 = vpop.eup %10192 }
 0x6b2   :  { %7910 = vst [vmem:[#allocation14 + $0x18] sm:$0xff] %v7878_v46  ;;  %v7820_v3 = vmul.f32 0.6931472, %v10193_v42 }
 0x6b3   :  { %v7764_v38 = vpop.xlane.xlu0 %7763 }
 0x6b4   :  { %v7879_v13 = vsub.f32 %v12827_v19, %v7820_v3  ;;  %10200 = vlog2.f32 %v7764_v38 }
 0x6b5   :  { %v10195_v61 = vpop.eup %10194 }
 0x6b6   :  { %7911 = vst [vmem:[#allocation14 + $0x20] sm:$0xff] %v7879_v13  ;;  %v7822_v47 = vmul.f32 0.6931472, %v10195_v61 }
 0x6b7   :  { %v7766_v25 = vpop.xlane.xlu1 %7765 }
 0x6b8   :  { %v7880_v48 = vsub.f32 %v12831_v8, %v7822_v47  ;;  %10202 = vlog2.f32 %v7766_v25 }
 0x6b9   :  { %v10197_v59 = vpop.eup %10196 }
 0x6ba   :  { %7912 = vst [vmem:[#allocation14 + $0x28] sm:$0xff] %v7880_v48  ;;  %v7824_v1 = vmul.f32 0.6931472, %v10197_v59 }
 0x6bb   :  { %v7768_v49 = vpop.xlane.xlu0 %7767 }
 0x6bc   :  { %v7881_v16 = vsub.f32 %v12835_v63, %v7824_v1  ;;  %10204 = vlog2.f32 %v7768_v49 }
 0x6bd   :  { %v10199_v2 = vpop.eup %10198 }
 0x6be   :  { %7913 = vst [vmem:[#allocation14 + $0x30] sm:$0xff] %v7881_v16  ;;  %v7826_v54 = vmul.f32 0.6931472, %v10199_v2 }
 0x6bf   :  { %v7770_v28 = vpop.xlane.xlu1 %7769 }
 0x6c0   :  { %v7882_v19 = vsub.f32 %v12839_v5, %v7826_v54  ;;  %10206 = vlog2.f32 %v7770_v28 }
 0x6c1   :  { %v10201_v24 = vpop.eup %10200 }
 0x6c2   :  { %7914 = vst [vmem:[#allocation14 + $0x38] sm:$0xff] %v7882_v19  ;;  %v7828_v31 = vmul.f32 0.6931472, %v10201_v24 }
 0x6c3   :  { %v7772_v53 = vpop.xlane.xlu0 %7771 }
 0x6c4   :  { %v7883_v8 = vsub.f32 %v12843_v60, %v7828_v31  ;;  %10208 = vlog2.f32 %v7772_v53 }
 0x6c5   :  { %v10203_v55 = vpop.eup %10202 }
 0x6c6   :  { %7915 = vst [vmem:[#allocation14 + $0x40] sm:$0xff] %v7883_v8  ;;  %v7830_v44 = vmul.f32 0.6931472, %v10203_v55 }
 0x6c7   :  { %v7774_v58 = vpop.xlane.xlu1 %7773 }
 0x6c8   :  { %v7884_v63 = vsub.f32 %v12847_v7, %v7830_v44  ;;  %10210 = vlog2.f32 %v7774_v58 }
 0x6c9   :  { %v10205_v51 = vpop.eup %10204 }
 0x6ca   :  { %7916 = vst [vmem:[#allocation14 + $0x48] sm:$0xff] %v7884_v63  ;;  %v7832_v41 = vmul.f32 0.6931472, %v10205_v51 }
 0x6cb   :  { %v7776_v36 = vpop.xlane.xlu0 %7775 }
 0x6cc   :  { %v7885_v5 = vsub.f32 %v12851_v12, %v7832_v41  ;;  %10212 = vlog2.f32 %v7776_v36 }
 0x6cd   :  { %v10207_v26 = vpop.eup %10206 }
 0x6ce   :  { %7917 = vst [vmem:[#allocation14 + $0x50] sm:$0xff] %v7885_v5  ;;  %v7834_v21 = vmul.f32 0.6931472, %v10207_v26 }
 0x6cf   :  { %v7778_v0 = vpop.xlane.xlu1 %7777 }
 0x6d0   :  { %v7886_v60 = vsub.f32 %v12855_v52, %v7834_v21  ;;  %10214 = vlog2.f32 %v7778_v0 }
 0x6d1   :  { %v10209_v32 = vpop.eup %10208 }
 0x6d2   :  { %7918 = vst [vmem:[#allocation14 + $0x58] sm:$0xff] %v7886_v60  ;;  %v7836_v17 = vmul.f32 0.6931472, %v10209_v32 }
 0x6d3   :  { %v7780_v29 = vpop.xlane.xlu0 %7779 }
 0x6d4   :  { %v7887_v7 = vsub.f32 %v12859_v34, %v7836_v17  ;;  %10216 = vlog2.f32 %v7780_v29 }
 0x6d5   :  { %v10211_v14 = vpop.eup %10210 }
 0x6d6   :  { %7919 = vst [vmem:[#allocation14 + $0x60] sm:$0xff] %v7887_v7  ;;  %v7838_v23 = vmul.f32 0.6931472, %v10211_v14 }
 0x6d7   :  { %v7782_v62 = vpop.xlane.xlu1 %7781 }
 0x6d8   :  { %v7888_v12 = vsub.f32 %v12863_v39, %v7838_v23  ;;  %10218 = vlog2.f32 %v7782_v62 }
 0x6d9   :  { %v10213_v33 = vpop.eup %10212 }
 0x6da   :  { %7920 = vst [vmem:[#allocation14 + $0x68] sm:$0xff] %v7888_v12  ;;  %v7840_v45 = vmul.f32 0.6931472, %v10213_v33 }
 0x6db   :  { %v7784_v46 = vpop.xlane.xlu0 %7783 }
 0x6dc   :  { %v7889_v52 = vsub.f32 %v12867_v9, %v7840_v45  ;;  %10220 = vlog2.f32 %v7784_v46 }
 0x6dd   :  { %v10215_v42 = vpop.eup %10214 }
 0x6de   :  { %7921 = vst [vmem:[#allocation14 + $0x70] sm:$0xff] %v7889_v52  ;;  %v7842_v3 = vmul.f32 0.6931472, %v10215_v42 }
 0x6df   :  { %v7786_v38 = vpop.xlane.xlu1 %7785 }
 0x6e0   :  { %v7890_v34 = vsub.f32 %v12871_v50, %v7842_v3  ;;  %10222 = vlog2.f32 %v7786_v38 }
 0x6e1   :  { %v10217_v13 = vpop.eup %10216 }
 0x6e2   :  { %7922 = vst [vmem:[#allocation14 + $0x78] sm:$0xff] %v7890_v34  ;;  %v7844_v61 = vmul.f32 0.6931472, %v10217_v13 }
 0x6e3   :  { %v7788_v47 = vpop.xlane.xlu0 %7787 }
 0x6e4   :  { %v7891_v39 = vsub.f32 %v12875_v40, %v7844_v61  ;;  %10224 = vlog2.f32 %v7788_v47 }
 0x6e5   :  { %v10219_v25 = vpop.eup %10218 }
 0x6e6   :  { %7923 = vst [vmem:[#allocation14 + $0x80] sm:$0xff] %v7891_v39  ;;  %v7846_v48 = vmul.f32 0.6931472, %v10219_v25 }
 0x6e7   :  { %v7790_v59 = vpop.xlane.xlu1 %7789 }
 0x6e8   :  { %v7892_v9 = vsub.f32 %v12879_v11, %v7846_v48  ;;  %10226 = vlog2.f32 %v7790_v59 }
 0x6e9   :  { %v10221_v1 = vpop.eup %10220 }
 0x6ea   :  { %7924 = vst [vmem:[#allocation14 + $0x88] sm:$0xff] %v7892_v9  ;;  %v7848_v49 = vmul.f32 0.6931472, %v10221_v1 }
 0x6eb   :  { %v7792_v16 = vpop.xlane.xlu0 %7791 }
 0x6ec   :  { %v7893_v50 = vsub.f32 %v12883_v15, %v7848_v49  ;;  %10228 = vlog2.f32 %v7792_v16 }
 0x6ed   :  { %v10223_v2 = vpop.eup %10222 }
 0x6ee   :  { %7925 = vst [vmem:[#allocation14 + $0x90] sm:$0xff] %v7893_v50  ;;  %v7850_v54 = vmul.f32 0.6931472, %v10223_v2 }
 0x6ef   :  { %v7794_v28 = vpop.xlane.xlu1 %7793 }
 0x6f0   :  { %v7894_v40 = vsub.f32 %v12887_v6, %v7850_v54  ;;  %10230 = vlog2.f32 %v7794_v28 }
 0x6f1   :  { %v10225_v19 = vpop.eup %10224 }
 0x6f2   :  { %7926 = vst [vmem:[#allocation14 + $0x98] sm:$0xff] %v7894_v40  ;;  %v7852_v24 = vmul.f32 0.6931472, %v10225_v19 }
 0x6f3   :  { %v7796_v31 = vpop.xlane.xlu0 %7795 }
 0x6f4   :  { %v7895_v11 = vsub.f32 %v12891_v27, %v7852_v24  ;;  %10232 = vlog2.f32 %v7796_v31 }
 0x6f5   :  { %v10227_v53 = vpop.eup %10226 }
 0x6f6   :  { %7927 = vst [vmem:[#allocation14 + $0xa0] sm:$0xff] %v7895_v11  ;;  %v7854_v8 = vmul.f32 0.6931472, %v10227_v53 }
 0x6f7   :  { %v7798_v55 = vpop.xlane.xlu1 %7797 }
 0x6f8   :  { %v7896_v15 = vsub.f32 %v12895_v22, %v7854_v8  ;;  %10234 = vlog2.f32 %v7798_v55 }
 0x6f9   :  { %v10229_v44 = vpop.eup %10228 }
 0x6fa   :  { %7928 = vst [vmem:[#allocation14 + $0xa8] sm:$0xff] %v7896_v15  ;;  %v7856_v58 = vmul.f32 0.6931472, %v10229_v44 }
 0x6fb   :  { %v7800_v63 = vpop.xlane.xlu0 %7799 }
 0x6fc   :  { %v7897_v6 = vsub.f32 %v12899_v4, %v7856_v58  ;;  %10236 = vlog2.f32 %v7800_v63 }
 0x6fd   :  { %v10231_v51 = vpop.eup %10230 }
 0x6fe   :  { %7929 = vst [vmem:[#allocation14 + $0xb0] sm:$0xff] %v7897_v6  ;;  %v7858_v41 = vmul.f32 0.6931472, %v10231_v51 }
 0x6ff   :  { %v7802_v36 = vpop.xlane.xlu1 %7801 }
 0x700   :  { %v7898_v27 = vsub.f32 %v12903_v10, %v7858_v41  ;;  %10238 = vlog2.f32 %v7802_v36 }
 0x701   :  { %v10233_v5 = vpop.eup %10232 }
 0x702   :  { %7930 = vst [vmem:[#allocation14 + $0xb8] sm:$0xff] %v7898_v27  ;;  %v7860_v26 = vmul.f32 0.6931472, %v10233_v5 }
 0x703   :  { %v7804_v21 = vpop.xlane.xlu0 %7803 }
 0x704   :  { %v7899_v22 = vsub.f32 %v12907_v18, %v7860_v26  ;;  %10240 = vlog2.f32 %v7804_v21 }
 0x705   :  { %v10235_v0 = vpop.eup %10234 }
 0x706   :  { %7931 = vst [vmem:[#allocation14 + $0xc0] sm:$0xff] %v7899_v22  ;;  %v7862_v60 = vmul.f32 0.6931472, %v10235_v0 }
 0x707   :  { %v7806_v32 = vpop.xlane.xlu1 %7805 }
 0x708   :  { %v7900_v4 = vsub.f32 %v12911_v37, %v7862_v60  ;;  %10242 = vlog2.f32 %v7806_v32 }
 0x709   :  { %v10237_v17 = vpop.eup %10236 }
 0x70a   :  { %7932 = vst [vmem:[#allocation14 + $0xc8] sm:$0xff] %v7900_v4  ;;  %v7864_v29 = vmul.f32 0.6931472, %v10237_v17 }
 0x70b   :  { %v7808_v7 = vpop.xlane.xlu0 %7807 }
 0x70c   :  { %v7901_v10 = vsub.f32 %v12915_v56, %v7864_v29  ;;  %10244 = vlog2.f32 %v7808_v7 }
 0x70d   :  { %v10239_v14 = vpop.eup %10238 }
 0x70e   :  { %7933 = vst [vmem:[#allocation14 + $0xd0] sm:$0xff] %v7901_v10  ;;  %v7866_v23 = vmul.f32 0.6931472, %v10239_v14 }
 0x70f   :  { %v7810_v62 = vpop.xlane.xlu1 %7809 }
 0x710   :  { %v7902_v18 = vsub.f32 %v12919_v35, %v7866_v23  ;;  %10246 = vlog2.f32 %v7810_v62 }
 0x711   :  { %v10241_v12 = vpop.eup %10240 }
 0x712   :  { %7934 = vst [vmem:[#allocation14 + $0xd8] sm:$0xff] %v7902_v18  ;;  %v7868_v33 = vmul.f32 0.6931472, %v10241_v12 }
 0x714   :  { %v7903_v37 = vsub.f32 %v12923_v20, %v7868_v33 }
 0x715   :  { %v10243_v45 = vpop.eup %10242 }
 0x716   :  { %7935 = vst [vmem:[#allocation14 + $0xe0] sm:$0xff] %v7903_v37  ;;  %v7870_v46 = vmul.f32 0.6931472, %v10243_v45 }
 0x718   :  { %v7904_v52 = vsub.f32 %v12927_v30, %v7870_v46 }
 0x719   :  { %v10245_v42 = vpop.eup %10244 }
 0x71a   :  { %7936 = vst [vmem:[#allocation14 + $0xe8] sm:$0xff] %v7904_v52  ;;  %v7872_v56 = vmul.f32 0.6931472, %v10245_v42 }
 0x71c   :  { %v7905_v3 = vsub.f32 %v12931_v43, %v7872_v56 }
 0x71d   :  { %v10247_v38 = vpop.eup %10246 }
 0x71e   :  { %7937 = vst [vmem:[#allocation14 + $0xf0] sm:$0xff] %v7905_v3  ;;  %v7874_v35 = vmul.f32 0.6931472, %v10247_v38 }
 0x720   :  { %v7906_v34 = vsub.f32 %v12935_v57, %v7874_v35 }
 0x722   :  { %7938 = vst [vmem:[#allocation14 + $0xf8] sm:$0xff] %v7906_v34 }
 0x723   :  { %10571 = shalt.err (!%p10568_p11)
}
 0x724   :  { %s10604_s16 = smov 128   ;;  %s10605_s17 = smov 8  }
 0x725   :  { %7950 = dma.vmem_to_hbm [thread:$0]  %s7945_s6, 4096, %s12980_s7, [#allocation4], %s10604_s16, %s10604_s16, %s10605_s17  }
 0x726   :  { %10588 = dma.done.wait [#allocation4], 4096  }
 0x727   :  { %10589 = vsyncadd [#allocation4], 4294963200 }
 0x728   :  { %7954 = vsyncpa [#allocation3], 1 }
 0x729   :  { %7955 = vsyncpa [#allocation6], 1 }
 0x72a   :  { %7956 = vsyncpa [#allocation9], 1 }
 0x72b   :  { %7957 = vsyncpa [#allocation12], 1 }
 0x72c   :  { %7958 = vsyncpa [#allocation4], 1 }

</bundles_post_ra>
